<compile_context>
chip_gen: v5e
topology: v5e:2x2
jax: 0.10.0
libtpu: 0.0.40
codegen_flags: <defaults>
</compile_context>

<pallas_src>
import jax
import jax.numpy as jnp
from jax.experimental import pallas as pl
from jax.experimental.pallas import tpu as pltpu

# Architecture constants implied by fc1 = Linear(32*8*8, 128): input is 3x32x32.
H1, W1, C1, F1 = 32, 32, 3, 16      # conv1: 32x32x3  -> 32x32x16
H2, W2, C2, F2 = 16, 16, 16, 32     # conv2: 16x16x16 -> 16x16x32
PAD_W, COL0 = 32, 8                 # conv2 scratch: interior stored at cols [8, 24)
FEAT = (H2 // 2) * (W2 // 2) * F2   # 2048 flattened features into fc1


def dummy_convnet_kernel(p1_ref, w1_ref, b1_ref, w2_ref, b2_ref,
                         fc1w_ref, fc1b_ref, fc2w_ref, fc2b_ref,
                         o_ref, pad_ref, fcin_ref):
    """Whole forward for a block of `bt` images (grid is over batch blocks)."""
    f32 = jnp.float32
    bf16 = jnp.bfloat16
    bt = p1_ref.shape[0]

    # ---- conv1: ONE deep-K (K=27) bf16 MXU matmul on wrapper-built patches ----
    a1 = jnp.dot(p1_ref[...].reshape(bt * H1 * W1, 9 * C1), w1_ref[...],
                 preferred_element_type=f32)
    # Pool first, then bias + ReLU (maxpool commutes with both): the wrapper
    # permuted the patch rows so the 2x2 pool parities are leading dims.
    a1 = a1.reshape(bt, 2, 2, H2, W2, F1)              # (bt, ph, pw, h2, w2, c)
    pooled1 = jnp.maximum(jnp.maximum(a1[:, 0, 0], a1[:, 0, 1]),
                          jnp.maximum(a1[:, 1, 0], a1[:, 1, 1]))
    h1 = jnp.maximum(pooled1 + b1_ref[...], 0.0)       # (bt, 16, 16, 16) f32

    # ---- conv2: persistent zero-padded VMEM scratch (bf16 matmul operand) ----
    # Re-zero only the halo (2 rows + 2 one-column strips) each step; the
    # interior is fully overwritten.  Do NOT gate this on program_id==0: with
    # "parallel" semantics each TensorCore has its own scratch instance.
    zrow = jnp.zeros((bt, 1, PAD_W, C2), bf16)
    pad_ref[:, 0:1] = zrow
    pad_ref[:, H2 + 1:H2 + 2] = zrow
    zcol = jnp.zeros((bt, H2, 1, C2), bf16)
    pad_ref[:, 1:1 + H2, COL0 - 1:COL0] = zcol
    pad_ref[:, 1:1 + H2, COL0 + W2:COL0 + W2 + 1] = zcol
    pad_ref[:, 1:1 + H2, COL0:COL0 + W2, :] = h1.astype(bf16)

    # Nine accumulated K=16 matmuls straight from the shifted window views
    # (replaces the 9-way lane concat; MXU has ample slack at this size).
    acc2 = jnp.zeros((bt * H2 * W2, F2), f32)
    for ky in range(3):
        for kx in range(3):
            tap = pad_ref[:, ky:ky + H2, COL0 - 1 + kx:COL0 - 1 + kx + W2, :]
            acc2 = acc2 + jnp.dot(tap.reshape(bt * H2 * W2, C2),
                                  w2_ref[3 * ky + kx],
                                  preferred_element_type=f32)

    # H-direction pool via a leading-axis split (no sublane work).
    a2 = acc2.reshape(bt, H2 // 2, 2, W2, F2)
    ah = jnp.maximum(a2[:, :, 0], a2[:, :, 1])          # (bt, 8, 16, 32) f32
    b2v = b2_ref[...]                                    # (1, 32) f32, hoisted

    # ---- W-pool + bias + ReLU + flatten: 64 lane-offset stores into the fc
    # input scratch; (H, W, C) feature order matches the pre-permuted fc1_w. ----
    for ph in range(H2 // 2):
        for pw in range(W2 // 2):
            k = ph * (W2 // 2) + pw
            v = jnp.maximum(ah[:, ph, 2 * pw, :], ah[:, ph, 2 * pw + 1, :])
            fcin_ref[:, F2 * k:F2 * (k + 1)] = (
                jnp.maximum(v + b2v, 0.0).astype(bf16))

    # ---- fc1 + ReLU + fc2 (bf16 operands, f32 accumulation, lane-dense out) ----
    z = jnp.maximum(jnp.dot(fcin_ref[...], fc1w_ref[...],
                            preferred_element_type=f32) + fc1b_ref[...], 0.0)
    o_ref[0] = (jnp.dot(z.astype(bf16), fc2w_ref[...],
                        preferred_element_type=f32) + fc2b_ref[...]
                ).astype(o_ref.dtype)


def dummy_convnet_forward(x_nchw, params, bt=None):
    b = x_nchw.shape[0]
    nc = params["fc2_w"].shape[-1]
    ncp = ((nc + 127) // 128) * 128           # lane-dense (>=128) output width

    # Batch blocking: Bt images per grid step; keep the grid length even where
    # possible so both v7x TensorCores stay busy under "parallel" semantics.
    if bt is None:
        bt = 4 if b >= 8 else (2 if b >= 4 else 1)
    steps = pl.cdiv(b, bt)
    if steps > 1 and steps % 2:
        steps += 1
    bp = steps * bt

    # conv1 im2col in the wrapper (one fused XLA op); bf16 halves its HBM
    # traffic.  Rows are permuted so the 2x2-pool parities become leading dims
    # of the conv1 output -> in-kernel pooling is four leading-axis slices.
    x = jnp.transpose(x_nchw, (0, 2, 3, 1)).astype(jnp.float32)      # NHWC
    xp = jnp.pad(x, ((0, 0), (1, 1), (1, 1), (0, 0)))
    p1 = jnp.concatenate(
        [xp[:, ky:ky + H1, kx:kx + W1, :] for ky in range(3) for kx in range(3)],
        axis=-1)                                                     # (b,32,32,27)
    p1 = p1.reshape(b, H1 // 2, 2, W1 // 2, 2, 9 * C1)               # (b,h2,ph,w2,pw,27)
    p1 = p1.transpose(0, 2, 4, 1, 3, 5).reshape(b, H1 * W1, 9 * C1)  # (b,ph,pw,h2,w2)->rows
    p1 = p1.astype(jnp.bfloat16)
    if bp != b:
        p1 = jnp.pad(p1, ((0, bp - b), (0, 0), (0, 0)))

    fc2w = jnp.pad(params["fc2_w"], ((0, 0), (0, ncp - nc)))
    fc2b = jnp.pad(params["fc2_b"], ((0, 0), (0, ncp - nc)))

    out = pl.pallas_call(
        dummy_convnet_kernel,
        out_shape=jax.ShapeDtypeStruct((steps, bt, ncp), jnp.float32),
        grid=(steps,),
        in_specs=[
            pl.BlockSpec((bt, H1 * W1, 9 * C1), lambda i: (i, 0, 0)),
            pl.BlockSpec((9 * C1, F1), lambda i: (0, 0)),
            pl.BlockSpec((1, F1), lambda i: (0, 0)),
            pl.BlockSpec((9, C2, F2), lambda i: (0, 0, 0)),
            pl.BlockSpec((1, F2), lambda i: (0, 0)),
            pl.BlockSpec((FEAT, 128), lambda i: (0, 0)),
            pl.BlockSpec((1, 128), lambda i: (0, 0)),
            pl.BlockSpec((128, ncp), lambda i: (0, 0)),
            pl.BlockSpec((1, ncp), lambda i: (0, 0)),
        ],
        out_specs=pl.BlockSpec((1, bt, ncp), lambda i: (i, 0, 0)),
        scratch_shapes=[
            pltpu.VMEM((bt, H2 + 2, PAD_W, C2), jnp.bfloat16),  # conv2 padded map
            pltpu.VMEM((bt, FEAT), jnp.bfloat16),               # flattened fc input
        ],
        compiler_params=pltpu.CompilerParams(
            dimension_semantics=("parallel",),
            vmem_limit_bytes=32 * 1024 * 1024),
    )(p1, params["w1"], params["b1"], params["w2"], params["b2"],
      params["fc1_w"], params["fc1_b"], fc2w, fc2b)
    return out.reshape(bp, ncp)[:b, :nc]


# ----------------------------- parameters -----------------------------------
def init_torch_params(key, num_classes=10):
    """PyTorch-layout params, default-style uniform(-1/sqrt(fan_in), +) init."""
    ks = jax.random.split(key, 8)

    def u(k, shape, fan_in):
        bound = 1.0 / float(fan_in) ** 0.5
        return jax.random.uniform(k, shape, jnp.float32, -bound, bound)

    return {
        "conv1_w": u(ks[0], (F1, C1, 3, 3), C1 * 9),          # OIHW
        "conv1_b": u(ks[1], (F1,), C1 * 9),
        "conv2_w": u(ks[2], (F2, C2, 3, 3), C2 * 9),
        "conv2_b": u(ks[3], (F2,), C2 * 9),
        "fc1_w": u(ks[4], (128, FEAT), FEAT),                 # (out, in), in=(C,H,W)
        "fc1_b": u(ks[5], (128,), FEAT),
        "fc2_w": u(ks[6], (num_classes, 128), 128),
        "fc2_b": u(ks[7], (num_classes,), 128),
    }


def to_kernel_params(p):
    """Torch layout -> kernel layout: im2col conv weights, per-tap conv2 weights,
    (H,W,C)-ordered fc1, bf16 matmul operands (biases stay f32)."""
    w1 = jnp.transpose(p["conv1_w"], (2, 3, 1, 0)).reshape(9 * C1, F1)   # (27,16)
    w2 = jnp.transpose(p["conv2_w"], (2, 3, 1, 0)).reshape(9, C2, F2)    # (9,16,32)
    fc1 = jnp.transpose(p["fc1_w"].reshape(128, F2, H2 // 2, W2 // 2),
                        (0, 2, 3, 1)).reshape(128, FEAT)                 # in -> (H,W,C)
    return {
        "w1": w1.astype(jnp.bfloat16), "b1": p["conv1_b"].reshape(1, F1),
        "w2": w2.astype(jnp.bfloat16), "b2": p["conv2_b"].reshape(1, F2),
        "fc1_w": fc1.T.astype(jnp.bfloat16), "fc1_b": p["fc1_b"].reshape(1, 128),
        "fc2_w": p["fc2_w"].T.astype(jnp.bfloat16),
        "fc2_b": p["fc2_b"].reshape(1, -1),
    }


# ----------------------------- reference -------------------------------------
def reference_forward(x_nchw, tp):
    """Pure-JAX/XLA NCHW reference mirroring the PyTorch module exactly."""
    dn = ("NCHW", "OIHW", "NCHW")

    def conv_relu(x, w, bias):
        y = jax.lax.conv_general_dilated(x, w, (1, 1), ((1, 1), (1, 1)),
                                         dimension_numbers=dn)
        return jnp.maximum(y + bias.reshape(1, -1, 1, 1), 0.0)

    def pool(x):
        return jax.lax.reduce_window(x, -jnp.inf, jax.lax.max,
                                     (1, 1, 2, 2), (1, 1, 2, 2), "VALID")

    h = pool(conv_relu(x_nchw, tp["conv1_w"], tp["conv1_b"]))
    h = pool(conv_relu(h, tp["conv2_w"], tp["conv2_b"]))
    h = h.reshape(h.shape[0], -1)          # torch x.view(B,-1): (C,H,W) order
    h = jnp.maximum(h @ tp["fc1_w"].T + tp["fc1_b"], 0.0)
    return h @ tp["fc2_w"].T + tp["fc2_b"]


if __name__ == "__main__":
    key = jax.random.PRNGKey(0)
    k_x, k_p = jax.random.split(key)
    # fc1 = Linear(32*8*8, 128) forces 3x32x32 inputs; keep batch small (=2).
    x = jax.random.normal(k_x, (2, 3, 32, 32), dtype=jnp.float32)
    torch_params = init_torch_params(k_p, num_classes=10)
    kernel_params = to_kernel_params(torch_params)

    out = jax.block_until_ready(jax.jit(dummy_convnet_forward)(x, kernel_params))
    assert out.shape == (2, 10) and out.dtype == jnp.float32

    ref = jax.block_until_ready(jax.jit(reference_forward)(x, torch_params))
    max_err = float(jnp.max(jnp.abs(out - ref)))
    # bf16 MXU operands (f32 accumulation): expect ~1e-3..1e-2 absolute error.
    assert max_err < 3e-2, f"kernel/reference mismatch: max abs err = {max_err}"
    print("KERNEL_OK")
</pallas_src>

<mosaic_0001>
module attributes {stable_mosaic.version = 11 : i64} {
  func.func @dummy_convnet_kernel(%arg0: i32, %arg1: memref<1x1024x27xbf16, #tpu.memory_space<vmem>>, %arg2: memref<27x16xbf16, #tpu.memory_space<vmem>>, %arg3: memref<1x16xf32, #tpu.memory_space<vmem>>, %arg4: memref<9x16x32xbf16, #tpu.memory_space<vmem>>, %arg5: memref<1x32xf32, #tpu.memory_space<vmem>>, %arg6: memref<2048x128xbf16, #tpu.memory_space<vmem>>, %arg7: memref<1x128xf32, #tpu.memory_space<vmem>>, %arg8: memref<128x128xbf16, #tpu.memory_space<vmem>>, %arg9: memref<1x128xf32, #tpu.memory_space<vmem>>, %arg10: memref<1x1x128xf32, #tpu.memory_space<vmem>>, %arg11: memref<1x18x32x16xbf16, #tpu.memory_space<vmem>>, %arg12: memref<1x2048xbf16, #tpu.memory_space<vmem>>) attributes {dimension_semantics = [#tpu.dimension_semantics<parallel>], iteration_bounds = array<i64: 2>, scalar_prefetch = 0 : i64, scratch_operands = 2 : i64, tpu.core_type = #tpu.core_type<tc>, window_params = [{transform_indices = @transform_0, window_bounds = array<i64: 1, 1024, 27>}, {pipeline_mode = #tpu.pipeline_mode<synchronous>, transform_indices = @transform_1, window_bounds = array<i64: 27, 16>}, {pipeline_mode = #tpu.pipeline_mode<synchronous>, transform_indices = @transform_2, window_bounds = array<i64: 1, 16>}, {pipeline_mode = #tpu.pipeline_mode<synchronous>, transform_indices = @transform_3, window_bounds = array<i64: 9, 16, 32>}, {pipeline_mode = #tpu.pipeline_mode<synchronous>, transform_indices = @transform_4, window_bounds = array<i64: 1, 32>}, {pipeline_mode = #tpu.pipeline_mode<synchronous>, transform_indices = @transform_5, window_bounds = array<i64: 2048, 128>}, {pipeline_mode = #tpu.pipeline_mode<synchronous>, transform_indices = @transform_6, window_bounds = array<i64: 1, 128>}, {pipeline_mode = #tpu.pipeline_mode<synchronous>, transform_indices = @transform_7, window_bounds = array<i64: 128, 128>}, {pipeline_mode = #tpu.pipeline_mode<synchronous>, transform_indices = @transform_8, window_bounds = array<i64: 1, 128>}, {transform_indices = @transform_9, window_bounds = array<i64: 1, 1, 128>}]} {
    %c0 = arith.constant 0 : index
    %c0_0 = arith.constant 0 : index
    %c0_1 = arith.constant 0 : index
    %0 = vector.load %arg1[%c0, %c0_0, %c0_1] : memref<1x1024x27xbf16, #tpu.memory_space<vmem>>, vector<1x1024x27xbf16>
    %1 = vector.shape_cast %0 : vector<1x1024x27xbf16> to vector<1024x27xbf16>
    %c0_2 = arith.constant 0 : index
    %c0_3 = arith.constant 0 : index
    %2 = vector.load %arg2[%c0_2, %c0_3] : memref<27x16xbf16, #tpu.memory_space<vmem>>, vector<27x16xbf16>
    %cst = arith.constant dense<0.000000e+00> : vector<1024x16xf32>
    %3 = tpu.matmul %1, %2, %cst {dimension_numbers = #tpu.dot_dimension_numbers<[1], [0], [0], [1], [0, 0, 1, 1], [], []>} : vector<1024x27xbf16>, vector<27x16xbf16>, vector<1024x16xf32> -> vector<1024x16xf32>
    %4 = vector.shape_cast %3 : vector<1024x16xf32> to vector<1x2x2x16x16x16xf32>
    %5 = vector.extract_strided_slice %4 {offsets = [0, 0, 0, 0, 0, 0], sizes = [1, 1, 1, 16, 16, 16], strides = [1, 1, 1, 1, 1, 1]} : vector<1x2x2x16x16x16xf32> to vector<1x1x1x16x16x16xf32>
    %6 = vector.shape_cast %5 : vector<1x1x1x16x16x16xf32> to vector<1x16x16x16xf32>
    %7 = vector.extract_strided_slice %4 {offsets = [0, 0, 1, 0, 0, 0], sizes = [1, 1, 1, 16, 16, 16], strides = [1, 1, 1, 1, 1, 1]} : vector<1x2x2x16x16x16xf32> to vector<1x1x1x16x16x16xf32>
    %8 = vector.shape_cast %7 : vector<1x1x1x16x16x16xf32> to vector<1x16x16x16xf32>
    %9 = arith.maximumf %6, %8 : vector<1x16x16x16xf32>
    %10 = vector.extract_strided_slice %4 {offsets = [0, 1, 0, 0, 0, 0], sizes = [1, 1, 1, 16, 16, 16], strides = [1, 1, 1, 1, 1, 1]} : vector<1x2x2x16x16x16xf32> to vector<1x1x1x16x16x16xf32>
    %11 = vector.shape_cast %10 : vector<1x1x1x16x16x16xf32> to vector<1x16x16x16xf32>
    %12 = vector.extract_strided_slice %4 {offsets = [0, 1, 1, 0, 0, 0], sizes = [1, 1, 1, 16, 16, 16], strides = [1, 1, 1, 1, 1, 1]} : vector<1x2x2x16x16x16xf32> to vector<1x1x1x16x16x16xf32>
    %13 = vector.shape_cast %12 : vector<1x1x1x16x16x16xf32> to vector<1x16x16x16xf32>
    %14 = arith.maximumf %11, %13 : vector<1x16x16x16xf32>
    %15 = arith.maximumf %9, %14 : vector<1x16x16x16xf32>
    %c0_4 = arith.constant 0 : index
    %c0_5 = arith.constant 0 : index
    %16 = vector.load %arg3[%c0_4, %c0_5] : memref<1x16xf32, #tpu.memory_space<vmem>>, vector<1x16xf32>
    %17 = vector.shape_cast %16 : vector<1x16xf32> to vector<1x1x1x16xf32>
    %18 = vector.broadcast %17 : vector<1x1x1x16xf32> to vector<1x16x16x16xf32>
    %19 = arith.addf %15, %18 : vector<1x16x16x16xf32>
    %cst_6 = arith.constant 0.000000e+00 : f32
    %20 = vector.broadcast %cst_6 : f32 to vector<1x16x16x16xf32>
    %21 = arith.maximumf %19, %20 : vector<1x16x16x16xf32>
    %cst_7 = arith.constant 0.000000e+00 : bf16
    %22 = vector.broadcast %cst_7 : bf16 to vector<1x1x32x16xbf16>
    %c0_8 = arith.constant 0 : index
    %c0_9 = arith.constant 0 : index
    %c0_10 = arith.constant 0 : index
    %c0_11 = arith.constant 0 : index
    %23 = vector.load %arg11[%c0_8, %c0_9, %c0_10, %c0_11] : memref<1x18x32x16xbf16, #tpu.memory_space<vmem>>, vector<1x1x32x16xbf16>
    tpu.vector_store %arg11[%c0_8, %c0_9, %c0_10, %c0_11], %22 {strides = array<i32>} : memref<1x18x32x16xbf16, #tpu.memory_space<vmem>>, vector<1x1x32x16xbf16>,
    %c0_12 = arith.constant 0 : index
    %c17 = arith.constant 17 : index
    %c0_13 = arith.constant 0 : index
    %c0_14 = arith.constant 0 : index
    %24 = vector.load %arg11[%c0_12, %c17, %c0_13, %c0_14] : memref<1x18x32x16xbf16, #tpu.memory_space<vmem>>, vector<1x1x32x16xbf16>
    tpu.vector_store %arg11[%c0_12, %c17, %c0_13, %c0_14], %22 {strides = array<i32>} : memref<1x18x32x16xbf16, #tpu.memory_space<vmem>>, vector<1x1x32x16xbf16>,
    %cst_15 = arith.constant 0.000000e+00 : bf16
    %25 = vector.broadcast %cst_15 : bf16 to vector<1x16x1x16xbf16>
    %c0_16 = arith.constant 0 : index
    %c1 = arith.constant 1 : index
    %c7 = arith.constant 7 : index
    %c0_17 = arith.constant 0 : index
    %26 = vector.load %arg11[%c0_16, %c1, %c7, %c0_17] : memref<1x18x32x16xbf16, #tpu.memory_space<vmem>>, vector<1x16x1x16xbf16>
    tpu.vector_store %arg11[%c0_16, %c1, %c7, %c0_17], %25 {strides = array<i32>} : memref<1x18x32x16xbf16, #tpu.memory_space<vmem>>, vector<1x16x1x16xbf16>,
    %c0_18 = arith.constant 0 : index
    %c1_19 = arith.constant 1 : index
    %c24 = arith.constant 24 : index
    %c0_20 = arith.constant 0 : index
    %27 = vector.load %arg11[%c0_18, %c1_19, %c24, %c0_20] : memref<1x18x32x16xbf16, #tpu.memory_space<vmem>>, vector<1x16x1x16xbf16>
    tpu.vector_store %arg11[%c0_18, %c1_19, %c24, %c0_20], %25 {strides = array<i32>} : memref<1x18x32x16xbf16, #tpu.memory_space<vmem>>, vector<1x16x1x16xbf16>,
    %28 = arith.truncf %21 : vector<1x16x16x16xf32> to vector<1x16x16x16xbf16>
    %c0_21 = arith.constant 0 : index
    %c1_22 = arith.constant 1 : index
    %c8 = arith.constant 8 : index
    %c0_23 = arith.constant 0 : index
    %29 = vector.load %arg11[%c0_21, %c1_22, %c8, %c0_23] : memref<1x18x32x16xbf16, #tpu.memory_space<vmem>>, vector<1x16x16x16xbf16>
    tpu.vector_store %arg11[%c0_21, %c1_22, %c8, %c0_23], %28 {strides = array<i32>} : memref<1x18x32x16xbf16, #tpu.memory_space<vmem>>, vector<1x16x16x16xbf16>,
    %cst_24 = arith.constant 0.000000e+00 : f32
    %30 = vector.broadcast %cst_24 : f32 to vector<256x32xf32>
    %c0_25 = arith.constant 0 : index
    %c0_26 = arith.constant 0 : index
    %c7_27 = arith.constant 7 : index
    %c0_28 = arith.constant 0 : index
    %31 = vector.load %arg11[%c0_25, %c0_26, %c7_27, %c0_28] : memref<1x18x32x16xbf16, #tpu.memory_space<vmem>>, vector<1x16x16x16xbf16>
    %32 = vector.shape_cast %31 : vector<1x16x16x16xbf16> to vector<256x16xbf16>
    %c0_29 = arith.constant 0 : index
    %c0_30 = arith.constant 0 : index
    %c0_31 = arith.constant 0 : index
    %33 = vector.load %arg4[%c0_29, %c0_30, %c0_31] : memref<9x16x32xbf16, #tpu.memory_space<vmem>>, vector<1x16x32xbf16>
    %34 = vector.shape_cast %33 : vector<1x16x32xbf16> to vector<16x32xbf16>
    %cst_32 = arith.constant dense<0.000000e+00> : vector<256x32xf32>
    %35 = tpu.matmul %32, %34, %cst_32 {dimension_numbers = #tpu.dot_dimension_numbers<[1], [0], [0], [1], [0, 0, 1, 1], [], []>} : vector<256x16xbf16>, vector<16x32xbf16>, vector<256x32xf32> -> vector<256x32xf32>
    %36 = arith.addf %30, %35 : vector<256x32xf32>
    %c0_33 = arith.constant 0 : index
    %c0_34 = arith.constant 0 : index
    %c8_35 = arith.constant 8 : index
    %c0_36 = arith.constant 0 : index
    %37 = vector.load %arg11[%c0_33, %c0_34, %c8_35, %c0_36] : memref<1x18x32x16xbf16, #tpu.memory_space<vmem>>, vector<1x16x16x16xbf16>
    %38 = vector.shape_cast %37 : vector<1x16x16x16xbf16> to vector<256x16xbf16>
    %c1_37 = arith.constant 1 : index
    %c0_38 = arith.constant 0 : index
    %c0_39 = arith.constant 0 : index
    %39 = vector.load %arg4[%c1_37, %c0_38, %c0_39] : memref<9x16x32xbf16, #tpu.memory_space<vmem>>, vector<1x16x32xbf16>
    %40 = vector.shape_cast %39 : vector<1x16x32xbf16> to vector<16x32xbf16>
    %cst_40 = arith.constant dense<0.000000e+00> : vector<256x32xf32>
    %41 = tpu.matmul %38, %40, %cst_40 {dimension_numbers = #tpu.dot_dimension_numbers<[1], [0], [0], [1], [0, 0, 1, 1], [], []>} : vector<256x16xbf16>, vector<16x32xbf16>, vector<256x32xf32> -> vector<256x32xf32>
    %42 = arith.addf %36, %41 : vector<256x32xf32>
    %c0_41 = arith.constant 0 : index
    %c0_42 = arith.constant 0 : index
    %c9 = arith.constant 9 : index
    %c0_43 = arith.constant 0 : index
    %43 = vector.load %arg11[%c0_41, %c0_42, %c9, %c0_43] : memref<1x18x32x16xbf16, #tpu.memory_space<vmem>>, vector<1x16x16x16xbf16>
    %44 = vector.shape_cast %43 : vector<1x16x16x16xbf16> to vector<256x16xbf16>
    %c2 = arith.constant 2 : index
    %c0_44 = arith.constant 0 : index
    %c0_45 = arith.constant 0 : index
    %45 = vector.load %arg4[%c2, %c0_44, %c0_45] : memref<9x16x32xbf16, #tpu.memory_space<vmem>>, vector<1x16x32xbf16>
    %46 = vector.shape_cast %45 : vector<1x16x32xbf16> to vector<16x32xbf16>
    %cst_46 = arith.constant dense<0.000000e+00> : vector<256x32xf32>
    %47 = tpu.matmul %44, %46, %cst_46 {dimension_numbers = #tpu.dot_dimension_numbers<[1], [0], [0], [1], [0, 0, 1, 1], [], []>} : vector<256x16xbf16>, vector<16x32xbf16>, vector<256x32xf32> -> vector<256x32xf32>
    %48 = arith.addf %42, %47 : vector<256x32xf32>
    %c0_47 = arith.constant 0 : index
    %c1_48 = arith.constant 1 : index
    %c7_49 = arith.constant 7 : index
    %c0_50 = arith.constant 0 : index
    %49 = vector.load %arg11[%c0_47, %c1_48, %c7_49, %c0_50] : memref<1x18x32x16xbf16, #tpu.memory_space<vmem>>, vector<1x16x16x16xbf16>
    %50 = vector.shape_cast %49 : vector<1x16x16x16xbf16> to vector<256x16xbf16>
    %c3 = arith.constant 3 : index
    %c0_51 = arith.constant 0 : index
    %c0_52 = arith.constant 0 : index
    %51 = vector.load %arg4[%c3, %c0_51, %c0_52] : memref<9x16x32xbf16, #tpu.memory_space<vmem>>, vector<1x16x32xbf16>
    %52 = vector.shape_cast %51 : vector<1x16x32xbf16> to vector<16x32xbf16>
    %cst_53 = arith.constant dense<0.000000e+00> : vector<256x32xf32>
    %53 = tpu.matmul %50, %52, %cst_53 {dimension_numbers = #tpu.dot_dimension_numbers<[1], [0], [0], [1], [0, 0, 1, 1], [], []>} : vector<256x16xbf16>, vector<16x32xbf16>, vector<256x32xf32> -> vector<256x32xf32>
    %54 = arith.addf %48, %53 : vector<256x32xf32>
    %c0_54 = arith.constant 0 : index
    %c1_55 = arith.constant 1 : index
    %c8_56 = arith.constant 8 : index
    %c0_57 = arith.constant 0 : index
    %55 = vector.load %arg11[%c0_54, %c1_55, %c8_56, %c0_57] : memref<1x18x32x16xbf16, #tpu.memory_space<vmem>>, vector<1x16x16x16xbf16>
    %56 = vector.shape_cast %55 : vector<1x16x16x16xbf16> to vector<256x16xbf16>
    %c4 = arith.constant 4 : index
    %c0_58 = arith.constant 0 : index
    %c0_59 = arith.constant 0 : index
    %57 = vector.load %arg4[%c4, %c0_58, %c0_59] : memref<9x16x32xbf16, #tpu.memory_space<vmem>>, vector<1x16x32xbf16>
    %58 = vector.shape_cast %57 : vector<1x16x32xbf16> to vector<16x32xbf16>
    %cst_60 = arith.constant dense<0.000000e+00> : vector<256x32xf32>
    %59 = tpu.matmul %56, %58, %cst_60 {dimension_numbers = #tpu.dot_dimension_numbers<[1], [0], [0], [1], [0, 0, 1, 1], [], []>} : vector<256x16xbf16>, vector<16x32xbf16>, vector<256x32xf32> -> vector<256x32xf32>
    %60 = arith.addf %54, %59 : vector<256x32xf32>
    %c0_61 = arith.constant 0 : index
    %c1_62 = arith.constant 1 : index
    %c9_63 = arith.constant 9 : index
    %c0_64 = arith.constant 0 : index
    %61 = vector.load %arg11[%c0_61, %c1_62, %c9_63, %c0_64] : memref<1x18x32x16xbf16, #tpu.memory_space<vmem>>, vector<1x16x16x16xbf16>
    %62 = vector.shape_cast %61 : vector<1x16x16x16xbf16> to vector<256x16xbf16>
    %c5 = arith.constant 5 : index
    %c0_65 = arith.constant 0 : index
    %c0_66 = arith.constant 0 : index
    %63 = vector.load %arg4[%c5, %c0_65, %c0_66] : memref<9x16x32xbf16, #tpu.memory_space<vmem>>, vector<1x16x32xbf16>
    %64 = vector.shape_cast %63 : vector<1x16x32xbf16> to vector<16x32xbf16>
    %cst_67 = arith.constant dense<0.000000e+00> : vector<256x32xf32>
    %65 = tpu.matmul %62, %64, %cst_67 {dimension_numbers = #tpu.dot_dimension_numbers<[1], [0], [0], [1], [0, 0, 1, 1], [], []>} : vector<256x16xbf16>, vector<16x32xbf16>, vector<256x32xf32> -> vector<256x32xf32>
    %66 = arith.addf %60, %65 : vector<256x32xf32>
    %c0_68 = arith.constant 0 : index
    %c2_69 = arith.constant 2 : index
    %c7_70 = arith.constant 7 : index
    %c0_71 = arith.constant 0 : index
    %67 = vector.load %arg11[%c0_68, %c2_69, %c7_70, %c0_71] : memref<1x18x32x16xbf16, #tpu.memory_space<vmem>>, vector<1x16x16x16xbf16>
    %68 = vector.shape_cast %67 : vector<1x16x16x16xbf16> to vector<256x16xbf16>
    %c6 = arith.constant 6 : index
    %c0_72 = arith.constant 0 : index
    %c0_73 = arith.constant 0 : index
    %69 = vector.load %arg4[%c6, %c0_72, %c0_73] : memref<9x16x32xbf16, #tpu.memory_space<vmem>>, vector<1x16x32xbf16>
    %70 = vector.shape_cast %69 : vector<1x16x32xbf16> to vector<16x32xbf16>
    %cst_74 = arith.constant dense<0.000000e+00> : vector<256x32xf32>
    %71 = tpu.matmul %68, %70, %cst_74 {dimension_numbers = #tpu.dot_dimension_numbers<[1], [0], [0], [1], [0, 0, 1, 1], [], []>} : vector<256x16xbf16>, vector<16x32xbf16>, vector<256x32xf32> -> vector<256x32xf32>
    %72 = arith.addf %66, %71 : vector<256x32xf32>
    %c0_75 = arith.constant 0 : index
    %c2_76 = arith.constant 2 : index
    %c8_77 = arith.constant 8 : index
    %c0_78 = arith.constant 0 : index
    %73 = vector.load %arg11[%c0_75, %c2_76, %c8_77, %c0_78] : memref<1x18x32x16xbf16, #tpu.memory_space<vmem>>, vector<1x16x16x16xbf16>
    %74 = vector.shape_cast %73 : vector<1x16x16x16xbf16> to vector<256x16xbf16>
    %c7_79 = arith.constant 7 : index
    %c0_80 = arith.constant 0 : index
    %c0_81 = arith.constant 0 : index
    %75 = vector.load %arg4[%c7_79, %c0_80, %c0_81] : memref<9x16x32xbf16, #tpu.memory_space<vmem>>, vector<1x16x32xbf16>
    %76 = vector.shape_cast %75 : vector<1x16x32xbf16> to vector<16x32xbf16>
    %cst_82 = arith.constant dense<0.000000e+00> : vector<256x32xf32>
    %77 = tpu.matmul %74, %76, %cst_82 {dimension_numbers = #tpu.dot_dimension_numbers<[1], [0], [0], [1], [0, 0, 1, 1], [], []>} : vector<256x16xbf16>, vector<16x32xbf16>, vector<256x32xf32> -> vector<256x32xf32>
    %78 = arith.addf %72, %77 : vector<256x32xf32>
    %c0_83 = arith.constant 0 : index
    %c2_84 = arith.constant 2 : index
    %c9_85 = arith.constant 9 : index
    %c0_86 = arith.constant 0 : index
    %79 = vector.load %arg11[%c0_83, %c2_84, %c9_85, %c0_86] : memref<1x18x32x16xbf16, #tpu.memory_space<vmem>>, vector<1x16x16x16xbf16>
    %80 = vector.shape_cast %79 : vector<1x16x16x16xbf16> to vector<256x16xbf16>
    %c8_87 = arith.constant 8 : index
    %c0_88 = arith.constant 0 : index
    %c0_89 = arith.constant 0 : index
    %81 = vector.load %arg4[%c8_87, %c0_88, %c0_89] : memref<9x16x32xbf16, #tpu.memory_space<vmem>>, vector<1x16x32xbf16>
    %82 = vector.shape_cast %81 : vector<1x16x32xbf16> to vector<16x32xbf16>
    %cst_90 = arith.constant dense<0.000000e+00> : vector<256x32xf32>
    %83 = tpu.matmul %80, %82, %cst_90 {dimension_numbers = #tpu.dot_dimension_numbers<[1], [0], [0], [1], [0, 0, 1, 1], [], []>} : vector<256x16xbf16>, vector<16x32xbf16>, vector<256x32xf32> -> vector<256x32xf32>
    %84 = arith.addf %78, %83 : vector<256x32xf32>
    %85 = vector.shape_cast %84 : vector<256x32xf32> to vector<1x8x2x16x32xf32>
    %86 = vector.extract_strided_slice %85 {offsets = [0, 0, 0, 0, 0], sizes = [1, 8, 1, 16, 32], strides = [1, 1, 1, 1, 1]} : vector<1x8x2x16x32xf32> to vector<1x8x1x16x32xf32>
    %87 = vector.shape_cast %86 : vector<1x8x1x16x32xf32> to vector<1x8x16x32xf32>
    %88 = vector.extract_strided_slice %85 {offsets = [0, 0, 1, 0, 0], sizes = [1, 8, 1, 16, 32], strides = [1, 1, 1, 1, 1]} : vector<1x8x2x16x32xf32> to vector<1x8x1x16x32xf32>
    %89 = vector.shape_cast %88 : vector<1x8x1x16x32xf32> to vector<1x8x16x32xf32>
    %90 = arith.maximumf %87, %89 : vector<1x8x16x32xf32>
    %c0_91 = arith.constant 0 : index
    %c0_92 = arith.constant 0 : index
    %91 = vector.load %arg5[%c0_91, %c0_92] : memref<1x32xf32, #tpu.memory_space<vmem>>, vector<1x32xf32>
    %92 = vector.extract_strided_slice %90 {offsets = [0, 0, 0, 0], sizes = [1, 1, 1, 32], strides = [1, 1, 1, 1]} : vector<1x8x16x32xf32> to vector<1x1x1x32xf32>
    %93 = vector.shape_cast %92 : vector<1x1x1x32xf32> to vector<1x32xf32>
    %94 = vector.extract_strided_slice %90 {offsets = [0, 0, 1, 0], sizes = [1, 1, 1, 32], strides = [1, 1, 1, 1]} : vector<1x8x16x32xf32> to vector<1x1x1x32xf32>
    %95 = vector.shape_cast %94 : vector<1x1x1x32xf32> to vector<1x32xf32>
    %96 = arith.maximumf %93, %95 : vector<1x32xf32>
    %97 = arith.addf %96, %91 : vector<1x32xf32>
    %cst_93 = arith.constant 0.000000e+00 : f32
    %98 = vector.broadcast %cst_93 : f32 to vector<1x32xf32>
    %99 = arith.maximumf %97, %98 : vector<1x32xf32>
    %100 = arith.truncf %99 : vector<1x32xf32> to vector<1x32xbf16>
    %c0_94 = arith.constant 0 : index
    %c0_95 = arith.constant 0 : index
    %101 = vector.load %arg12[%c0_94, %c0_95] : memref<1x2048xbf16, #tpu.memory_space<vmem>>, vector<1x32xbf16>
    tpu.vector_store %arg12[%c0_94, %c0_95], %100 {strides = array<i32>} : memref<1x2048xbf16, #tpu.memory_space<vmem>>, vector<1x32xbf16>,
    %102 = vector.extract_strided_slice %90 {offsets = [0, 0, 2, 0], sizes = [1, 1, 1, 32], strides = [1, 1, 1, 1]} : vector<1x8x16x32xf32> to vector<1x1x1x32xf32>
    %103 = vector.shape_cast %102 : vector<1x1x1x32xf32> to vector<1x32xf32>
    %104 = vector.extract_strided_slice %90 {offsets = [0, 0, 3, 0], sizes = [1, 1, 1, 32], strides = [1, 1, 1, 1]} : vector<1x8x16x32xf32> to vector<1x1x1x32xf32>
    %105 = vector.shape_cast %104 : vector<1x1x1x32xf32> to vector<1x32xf32>
    %106 = arith.maximumf %103, %105 : vector<1x32xf32>
    %107 = arith.addf %106, %91 : vector<1x32xf32>
    %cst_96 = arith.constant 0.000000e+00 : f32
    %108 = vector.broadcast %cst_96 : f32 to vector<1x32xf32>
    %109 = arith.maximumf %107, %108 : vector<1x32xf32>
    %110 = arith.truncf %109 : vector<1x32xf32> to vector<1x32xbf16>
    %c0_97 = arith.constant 0 : index
    %c32 = arith.constant 32 : index
    %111 = vector.load %arg12[%c0_97, %c32] : memref<1x2048xbf16, #tpu.memory_space<vmem>>, vector<1x32xbf16>
    tpu.vector_store %arg12[%c0_97, %c32], %110 {strides = array<i32>} : memref<1x2048xbf16, #tpu.memory_space<vmem>>, vector<1x32xbf16>,
    %112 = vector.extract_strided_slice %90 {offsets = [0, 0, 4, 0], sizes = [1, 1, 1, 32], strides = [1, 1, 1, 1]} : vector<1x8x16x32xf32> to vector<1x1x1x32xf32>
    %113 = vector.shape_cast %112 : vector<1x1x1x32xf32> to vector<1x32xf32>
    %114 = vector.extract_strided_slice %90 {offsets = [0, 0, 5, 0], sizes = [1, 1, 1, 32], strides = [1, 1, 1, 1]} : vector<1x8x16x32xf32> to vector<1x1x1x32xf32>
    %115 = vector.shape_cast %114 : vector<1x1x1x32xf32> to vector<1x32xf32>
    %116 = arith.maximumf %113, %115 : vector<1x32xf32>
    %117 = arith.addf %116, %91 : vector<1x32xf32>
    %cst_98 = arith.constant 0.000000e+00 : f32
    %118 = vector.broadcast %cst_98 : f32 to vector<1x32xf32>
    %119 = arith.maximumf %117, %118 : vector<1x32xf32>
    %120 = arith.truncf %119 : vector<1x32xf32> to vector<1x32xbf16>
    %c0_99 = arith.constant 0 : index
    %c64 = arith.constant 64 : index
    %121 = vector.load %arg12[%c0_99, %c64] : memref<1x2048xbf16, #tpu.memory_space<vmem>>, vector<1x32xbf16>
    tpu.vector_store %arg12[%c0_99, %c64], %120 {strides = array<i32>} : memref<1x2048xbf16, #tpu.memory_space<vmem>>, vector<1x32xbf16>,
    %122 = vector.extract_strided_slice %90 {offsets = [0, 0, 6, 0], sizes = [1, 1, 1, 32], strides = [1, 1, 1, 1]} : vector<1x8x16x32xf32> to vector<1x1x1x32xf32>
    %123 = vector.shape_cast %122 : vector<1x1x1x32xf32> to vector<1x32xf32>
    %124 = vector.extract_strided_slice %90 {offsets = [0, 0, 7, 0], sizes = [1, 1, 1, 32], strides = [1, 1, 1, 1]} : vector<1x8x16x32xf32> to vector<1x1x1x32xf32>
    %125 = vector.shape_cast %124 : vector<1x1x1x32xf32> to vector<1x32xf32>
    %126 = arith.maximumf %123, %125 : vector<1x32xf32>
    %127 = arith.addf %126, %91 : vector<1x32xf32>
    %cst_100 = arith.constant 0.000000e+00 : f32
    %128 = vector.broadcast %cst_100 : f32 to vector<1x32xf32>
    %129 = arith.maximumf %127, %128 : vector<1x32xf32>
    %130 = arith.truncf %129 : vector<1x32xf32> to vector<1x32xbf16>
    %c0_101 = arith.constant 0 : index
    %c96 = arith.constant 96 : index
    %131 = vector.load %arg12[%c0_101, %c96] : memref<1x2048xbf16, #tpu.memory_space<vmem>>, vector<1x32xbf16>
    tpu.vector_store %arg12[%c0_101, %c96], %130 {strides = array<i32>} : memref<1x2048xbf16, #tpu.memory_space<vmem>>, vector<1x32xbf16>,
    %132 = vector.extract_strided_slice %90 {offsets = [0, 0, 8, 0], sizes = [1, 1, 1, 32], strides = [1, 1, 1, 1]} : vector<1x8x16x32xf32> to vector<1x1x1x32xf32>
    %133 = vector.shape_cast %132 : vector<1x1x1x32xf32> to vector<1x32xf32>
    %134 = vector.extract_strided_slice %90 {offsets = [0, 0, 9, 0], sizes = [1, 1, 1, 32], strides = [1, 1, 1, 1]} : vector<1x8x16x32xf32> to vector<1x1x1x32xf32>
    %135 = vector.shape_cast %134 : vector<1x1x1x32xf32> to vector<1x32xf32>
    %136 = arith.maximumf %133, %135 : vector<1x32xf32>
    %137 = arith.addf %136, %91 : vector<1x32xf32>
    %cst_102 = arith.constant 0.000000e+00 : f32
    %138 = vector.broadcast %cst_102 : f32 to vector<1x32xf32>
    %139 = arith.maximumf %137, %138 : vector<1x32xf32>
    %140 = arith.truncf %139 : vector<1x32xf32> to vector<1x32xbf16>
    %c0_103 = arith.constant 0 : index
    %c128 = arith.constant 128 : index
    %141 = vector.load %arg12[%c0_103, %c128] : memref<1x2048xbf16, #tpu.memory_space<vmem>>, vector<1x32xbf16>
    tpu.vector_store %arg12[%c0_103, %c128], %140 {strides = array<i32>} : memref<1x2048xbf16, #tpu.memory_space<vmem>>, vector<1x32xbf16>,
    %142 = vector.extract_strided_slice %90 {offsets = [0, 0, 10, 0], sizes = [1, 1, 1, 32], strides = [1, 1, 1, 1]} : vector<1x8x16x32xf32> to vector<1x1x1x32xf32>
    %143 = vector.shape_cast %142 : vector<1x1x1x32xf32> to vector<1x32xf32>
    %144 = vector.extract_strided_slice %90 {offsets = [0, 0, 11, 0], sizes = [1, 1, 1, 32], strides = [1, 1, 1, 1]} : vector<1x8x16x32xf32> to vector<1x1x1x32xf32>
    %145 = vector.shape_cast %144 : vector<1x1x1x32xf32> to vector<1x32xf32>
    %146 = arith.maximumf %143, %145 : vector<1x32xf32>
    %147 = arith.addf %146, %91 : vector<1x32xf32>
    %cst_104 = arith.constant 0.000000e+00 : f32
    %148 = vector.broadcast %cst_104 : f32 to vector<1x32xf32>
    %149 = arith.maximumf %147, %148 : vector<1x32xf32>
    %150 = arith.truncf %149 : vector<1x32xf32> to vector<1x32xbf16>
    %c0_105 = arith.constant 0 : index
    %c160 = arith.constant 160 : index
    %151 = vector.load %arg12[%c0_105, %c160] : memref<1x2048xbf16, #tpu.memory_space<vmem>>, vector<1x32xbf16>
    tpu.vector_store %arg12[%c0_105, %c160], %150 {strides = array<i32>} : memref<1x2048xbf16, #tpu.memory_space<vmem>>, vector<1x32xbf16>,
    %152 = vector.extract_strided_slice %90 {offsets = [0, 0, 12, 0], sizes = [1, 1, 1, 32], strides = [1, 1, 1, 1]} : vector<1x8x16x32xf32> to vector<1x1x1x32xf32>
    %153 = vector.shape_cast %152 : vector<1x1x1x32xf32> to vector<1x32xf32>
    %154 = vector.extract_strided_slice %90 {offsets = [0, 0, 13, 0], sizes = [1, 1, 1, 32], strides = [1, 1, 1, 1]} : vector<1x8x16x32xf32> to vector<1x1x1x32xf32>
    %155 = vector.shape_cast %154 : vector<1x1x1x32xf32> to vector<1x32xf32>
    %156 = arith.maximumf %153, %155 : vector<1x32xf32>
    %157 = arith.addf %156, %91 : vector<1x32xf32>
    %cst_106 = arith.constant 0.000000e+00 : f32
    %158 = vector.broadcast %cst_106 : f32 to vector<1x32xf32>
    %159 = arith.maximumf %157, %158 : vector<1x32xf32>
    %160 = arith.truncf %159 : vector<1x32xf32> to vector<1x32xbf16>
    %c0_107 = arith.constant 0 : index
    %c192 = arith.constant 192 : index
    %161 = vector.load %arg12[%c0_107, %c192] : memref<1x2048xbf16, #tpu.memory_space<vmem>>, vector<1x32xbf16>
    tpu.vector_store %arg12[%c0_107, %c192], %160 {strides = array<i32>} : memref<1x2048xbf16, #tpu.memory_space<vmem>>, vector<1x32xbf16>,
    %162 = vector.extract_strided_slice %90 {offsets = [0, 0, 14, 0], sizes = [1, 1, 1, 32], strides = [1, 1, 1, 1]} : vector<1x8x16x32xf32> to vector<1x1x1x32xf32>
    %163 = vector.shape_cast %162 : vector<1x1x1x32xf32> to vector<1x32xf32>
    %164 = vector.extract_strided_slice %90 {offsets = [0, 0, 15, 0], sizes = [1, 1, 1, 32], strides = [1, 1, 1, 1]} : vector<1x8x16x32xf32> to vector<1x1x1x32xf32>
    %165 = vector.shape_cast %164 : vector<1x1x1x32xf32> to vector<1x32xf32>
    %166 = arith.maximumf %163, %165 : vector<1x32xf32>
    %167 = arith.addf %166, %91 : vector<1x32xf32>
    %cst_108 = arith.constant 0.000000e+00 : f32
    %168 = vector.broadcast %cst_108 : f32 to vector<1x32xf32>
    %169 = arith.maximumf %167, %168 : vector<1x32xf32>
    %170 = arith.truncf %169 : vector<1x32xf32> to vector<1x32xbf16>
    %c0_109 = arith.constant 0 : index
    %c224 = arith.constant 224 : index
    %171 = vector.load %arg12[%c0_109, %c224] : memref<1x2048xbf16, #tpu.memory_space<vmem>>, vector<1x32xbf16>
    tpu.vector_store %arg12[%c0_109, %c224], %170 {strides = array<i32>} : memref<1x2048xbf16, #tpu.memory_space<vmem>>, vector<1x32xbf16>,
    %172 = vector.extract_strided_slice %90 {offsets = [0, 1, 0, 0], sizes = [1, 1, 1, 32], strides = [1, 1, 1, 1]} : vector<1x8x16x32xf32> to vector<1x1x1x32xf32>
    %173 = vector.shape_cast %172 : vector<1x1x1x32xf32> to vector<1x32xf32>
    %174 = vector.extract_strided_slice %90 {offsets = [0, 1, 1, 0], sizes = [1, 1, 1, 32], strides = [1, 1, 1, 1]} : vector<1x8x16x32xf32> to vector<1x1x1x32xf32>
    %175 = vector.shape_cast %174 : vector<1x1x1x32xf32> to vector<1x32xf32>
    %176 = arith.maximumf %173, %175 : vector<1x32xf32>
    %177 = arith.addf %176, %91 : vector<1x32xf32>
    %cst_110 = arith.constant 0.000000e+00 : f32
    %178 = vector.broadcast %cst_110 : f32 to vector<1x32xf32>
    %179 = arith.maximumf %177, %178 : vector<1x32xf32>
    %180 = arith.truncf %179 : vector<1x32xf32> to vector<1x32xbf16>
    %c0_111 = arith.constant 0 : index
    %c256 = arith.constant 256 : index
    %181 = vector.load %arg12[%c0_111, %c256] : memref<1x2048xbf16, #tpu.memory_space<vmem>>, vector<1x32xbf16>
    tpu.vector_store %arg12[%c0_111, %c256], %180 {strides = array<i32>} : memref<1x2048xbf16, #tpu.memory_space<vmem>>, vector<1x32xbf16>,
    %182 = vector.extract_strided_slice %90 {offsets = [0, 1, 2, 0], sizes = [1, 1, 1, 32], strides = [1, 1, 1, 1]} : vector<1x8x16x32xf32> to vector<1x1x1x32xf32>
    %183 = vector.shape_cast %182 : vector<1x1x1x32xf32> to vector<1x32xf32>
    %184 = vector.extract_strided_slice %90 {offsets = [0, 1, 3, 0], sizes = [1, 1, 1, 32], strides = [1, 1, 1, 1]} : vector<1x8x16x32xf32> to vector<1x1x1x32xf32>
    %185 = vector.shape_cast %184 : vector<1x1x1x32xf32> to vector<1x32xf32>
    %186 = arith.maximumf %183, %185 : vector<1x32xf32>
    %187 = arith.addf %186, %91 : vector<1x32xf32>
    %cst_112 = arith.constant 0.000000e+00 : f32
    %188 = vector.broadcast %cst_112 : f32 to vector<1x32xf32>
    %189 = arith.maximumf %187, %188 : vector<1x32xf32>
    %190 = arith.truncf %189 : vector<1x32xf32> to vector<1x32xbf16>
    %c0_113 = arith.constant 0 : index
    %c288 = arith.constant 288 : index
    %191 = vector.load %arg12[%c0_113, %c288] : memref<1x2048xbf16, #tpu.memory_space<vmem>>, vector<1x32xbf16>
    tpu.vector_store %arg12[%c0_113, %c288], %190 {strides = array<i32>} : memref<1x2048xbf16, #tpu.memory_space<vmem>>, vector<1x32xbf16>,
    %192 = vector.extract_strided_slice %90 {offsets = [0, 1, 4, 0], sizes = [1, 1, 1, 32], strides = [1, 1, 1, 1]} : vector<1x8x16x32xf32> to vector<1x1x1x32xf32>
    %193 = vector.shape_cast %192 : vector<1x1x1x32xf32> to vector<1x32xf32>
    %194 = vector.extract_strided_slice %90 {offsets = [0, 1, 5, 0], sizes = [1, 1, 1, 32], strides = [1, 1, 1, 1]} : vector<1x8x16x32xf32> to vector<1x1x1x32xf32>
    %195 = vector.shape_cast %194 : vector<1x1x1x32xf32> to vector<1x32xf32>
    %196 = arith.maximumf %193, %195 : vector<1x32xf32>
    %197 = arith.addf %196, %91 : vector<1x32xf32>
    %cst_114 = arith.constant 0.000000e+00 : f32
    %198 = vector.broadcast %cst_114 : f32 to vector<1x32xf32>
    %199 = arith.maximumf %197, %198 : vector<1x32xf32>
    %200 = arith.truncf %199 : vector<1x32xf32> to vector<1x32xbf16>
    %c0_115 = arith.constant 0 : index
    %c320 = arith.constant 320 : index
    %201 = vector.load %arg12[%c0_115, %c320] : memref<1x2048xbf16, #tpu.memory_space<vmem>>, vector<1x32xbf16>
    tpu.vector_store %arg12[%c0_115, %c320], %200 {strides = array<i32>} : memref<1x2048xbf16, #tpu.memory_space<vmem>>, vector<1x32xbf16>,
    %202 = vector.extract_strided_slice %90 {offsets = [0, 1, 6, 0], sizes = [1, 1, 1, 32], strides = [1, 1, 1, 1]} : vector<1x8x16x32xf32> to vector<1x1x1x32xf32>
    %203 = vector.shape_cast %202 : vector<1x1x1x32xf32> to vector<1x32xf32>
    %204 = vector.extract_strided_slice %90 {offsets = [0, 1, 7, 0], sizes = [1, 1, 1, 32], strides = [1, 1, 1, 1]} : vector<1x8x16x32xf32> to vector<1x1x1x32xf32>
    %205 = vector.shape_cast %204 : vector<1x1x1x32xf32> to vector<1x32xf32>
    %206 = arith.maximumf %203, %205 : vector<1x32xf32>
    %207 = arith.addf %206, %91 : vector<1x32xf32>
    %cst_116 = arith.constant 0.000000e+00 : f32
    %208 = vector.broadcast %cst_116 : f32 to vector<1x32xf32>
    %209 = arith.maximumf %207, %208 : vector<1x32xf32>
    %210 = arith.truncf %209 : vector<1x32xf32> to vector<1x32xbf16>
    %c0_117 = arith.constant 0 : index
    %c352 = arith.constant 352 : index
    %211 = vector.load %arg12[%c0_117, %c352] : memref<1x2048xbf16, #tpu.memory_space<vmem>>, vector<1x32xbf16>
    tpu.vector_store %arg12[%c0_117, %c352], %210 {strides = array<i32>} : memref<1x2048xbf16, #tpu.memory_space<vmem>>, vector<1x32xbf16>,
    %212 = vector.extract_strided_slice %90 {offsets = [0, 1, 8, 0], sizes = [1, 1, 1, 32], strides = [1, 1, 1, 1]} : vector<1x8x16x32xf32> to vector<1x1x1x32xf32>
    %213 = vector.shape_cast %212 : vector<1x1x1x32xf32> to vector<1x32xf32>
    %214 = vector.extract_strided_slice %90 {offsets = [0, 1, 9, 0], sizes = [1, 1, 1, 32], strides = [1, 1, 1, 1]} : vector<1x8x16x32xf32> to vector<1x1x1x32xf32>
    %215 = vector.shape_cast %214 : vector<1x1x1x32xf32> to vector<1x32xf32>
    %216 = arith.maximumf %213, %215 : vector<1x32xf32>
    %217 = arith.addf %216, %91 : vector<1x32xf32>
    %cst_118 = arith.constant 0.000000e+00 : f32
    %218 = vector.broadcast %cst_118 : f32 to vector<1x32xf32>
    %219 = arith.maximumf %217, %218 : vector<1x32xf32>
    %220 = arith.truncf %219 : vector<1x32xf32> to vector<1x32xbf16>
    %c0_119 = arith.constant 0 : index
    %c384 = arith.constant 384 : index
    %221 = vector.load %arg12[%c0_119, %c384] : memref<1x2048xbf16, #tpu.memory_space<vmem>>, vector<1x32xbf16>
    tpu.vector_store %arg12[%c0_119, %c384], %220 {strides = array<i32>} : memref<1x2048xbf16, #tpu.memory_space<vmem>>, vector<1x32xbf16>,
    %222 = vector.extract_strided_slice %90 {offsets = [0, 1, 10, 0], sizes = [1, 1, 1, 32], strides = [1, 1, 1, 1]} : vector<1x8x16x32xf32> to vector<1x1x1x32xf32>
    %223 = vector.shape_cast %222 : vector<1x1x1x32xf32> to vector<1x32xf32>
    %224 = vector.extract_strided_slice %90 {offsets = [0, 1, 11, 0], sizes = [1, 1, 1, 32], strides = [1, 1, 1, 1]} : vector<1x8x16x32xf32> to vector<1x1x1x32xf32>
    %225 = vector.shape_cast %224 : vector<1x1x1x32xf32> to vector<1x32xf32>
    %226 = arith.maximumf %223, %225 : vector<1x32xf32>
    %227 = arith.addf %226, %91 : vector<1x32xf32>
    %cst_120 = arith.constant 0.000000e+00 : f32
    %228 = vector.broadcast %cst_120 : f32 to vector<1x32xf32>
    %229 = arith.maximumf %227, %228 : vector<1x32xf32>
    %230 = arith.truncf %229 : vector<1x32xf32> to vector<1x32xbf16>
    %c0_121 = arith.constant 0 : index
    %c416 = arith.constant 416 : index
    %231 = vector.load %arg12[%c0_121, %c416] : memref<1x2048xbf16, #tpu.memory_space<vmem>>, vector<1x32xbf16>
    tpu.vector_store %arg12[%c0_121, %c416], %230 {strides = array<i32>} : memref<1x2048xbf16, #tpu.memory_space<vmem>>, vector<1x32xbf16>,
    %232 = vector.extract_strided_slice %90 {offsets = [0, 1, 12, 0], sizes = [1, 1, 1, 32], strides = [1, 1, 1, 1]} : vector<1x8x16x32xf32> to vector<1x1x1x32xf32>
    %233 = vector.shape_cast %232 : vector<1x1x1x32xf32> to vector<1x32xf32>
    %234 = vector.extract_strided_slice %90 {offsets = [0, 1, 13, 0], sizes = [1, 1, 1, 32], strides = [1, 1, 1, 1]} : vector<1x8x16x32xf32> to vector<1x1x1x32xf32>
    %235 = vector.shape_cast %234 : vector<1x1x1x32xf32> to vector<1x32xf32>
    %236 = arith.maximumf %233, %235 : vector<1x32xf32>
    %237 = arith.addf %236, %91 : vector<1x32xf32>
    %cst_122 = arith.constant 0.000000e+00 : f32
    %238 = vector.broadcast %cst_122 : f32 to vector<1x32xf32>
    %239 = arith.maximumf %237, %238 : vector<1x32xf32>
    %240 = arith.truncf %239 : vector<1x32xf32> to vector<1x32xbf16>
    %c0_123 = arith.constant 0 : index
    %c448 = arith.constant 448 : index
    %241 = vector.load %arg12[%c0_123, %c448] : memref<1x2048xbf16, #tpu.memory_space<vmem>>, vector<1x32xbf16>
    tpu.vector_store %arg12[%c0_123, %c448], %240 {strides = array<i32>} : memref<1x2048xbf16, #tpu.memory_space<vmem>>, vector<1x32xbf16>,
    %242 = vector.extract_strided_slice %90 {offsets = [0, 1, 14, 0], sizes = [1, 1, 1, 32], strides = [1, 1, 1, 1]} : vector<1x8x16x32xf32> to vector<1x1x1x32xf32>
    %243 = vector.shape_cast %242 : vector<1x1x1x32xf32> to vector<1x32xf32>
    %244 = vector.extract_strided_slice %90 {offsets = [0, 1, 15, 0], sizes = [1, 1, 1, 32], strides = [1, 1, 1, 1]} : vector<1x8x16x32xf32> to vector<1x1x1x32xf32>
    %245 = vector.shape_cast %244 : vector<1x1x1x32xf32> to vector<1x32xf32>
    %246 = arith.maximumf %243, %245 : vector<1x32xf32>
    %247 = arith.addf %246, %91 : vector<1x32xf32>
    %cst_124 = arith.constant 0.000000e+00 : f32
    %248 = vector.broadcast %cst_124 : f32 to vector<1x32xf32>
    %249 = arith.maximumf %247, %248 : vector<1x32xf32>
    %250 = arith.truncf %249 : vector<1x32xf32> to vector<1x32xbf16>
    %c0_125 = arith.constant 0 : index
    %c480 = arith.constant 480 : index
    %251 = vector.load %arg12[%c0_125, %c480] : memref<1x2048xbf16, #tpu.memory_space<vmem>>, vector<1x32xbf16>
    tpu.vector_store %arg12[%c0_125, %c480], %250 {strides = array<i32>} : memref<1x2048xbf16, #tpu.memory_space<vmem>>, vector<1x32xbf16>,
    %252 = vector.extract_strided_slice %90 {offsets = [0, 2, 0, 0], sizes = [1, 1, 1, 32], strides = [1, 1, 1, 1]} : vector<1x8x16x32xf32> to vector<1x1x1x32xf32>
    %253 = vector.shape_cast %252 : vector<1x1x1x32xf32> to vector<1x32xf32>
    %254 = vector.extract_strided_slice %90 {offsets = [0, 2, 1, 0], sizes = [1, 1, 1, 32], strides = [1, 1, 1, 1]} : vector<1x8x16x32xf32> to vector<1x1x1x32xf32>
    %255 = vector.shape_cast %254 : vector<1x1x1x32xf32> to vector<1x32xf32>
    %256 = arith.maximumf %253, %255 : vector<1x32xf32>
    %257 = arith.addf %256, %91 : vector<1x32xf32>
    %cst_126 = arith.constant 0.000000e+00 : f32
    %258 = vector.broadcast %cst_126 : f32 to vector<1x32xf32>
    %259 = arith.maximumf %257, %258 : vector<1x32xf32>
    %260 = arith.truncf %259 : vector<1x32xf32> to vector<1x32xbf16>
    %c0_127 = arith.constant 0 : index
    %c512 = arith.constant 512 : index
    %261 = vector.load %arg12[%c0_127, %c512] : memref<1x2048xbf16, #tpu.memory_space<vmem>>, vector<1x32xbf16>
    tpu.vector_store %arg12[%c0_127, %c512], %260 {strides = array<i32>} : memref<1x2048xbf16, #tpu.memory_space<vmem>>, vector<1x32xbf16>,
    %262 = vector.extract_strided_slice %90 {offsets = [0, 2, 2, 0], sizes = [1, 1, 1, 32], strides = [1, 1, 1, 1]} : vector<1x8x16x32xf32> to vector<1x1x1x32xf32>
    %263 = vector.shape_cast %262 : vector<1x1x1x32xf32> to vector<1x32xf32>
    %264 = vector.extract_strided_slice %90 {offsets = [0, 2, 3, 0], sizes = [1, 1, 1, 32], strides = [1, 1, 1, 1]} : vector<1x8x16x32xf32> to vector<1x1x1x32xf32>
    %265 = vector.shape_cast %264 : vector<1x1x1x32xf32> to vector<1x32xf32>
    %266 = arith.maximumf %263, %265 : vector<1x32xf32>
    %267 = arith.addf %266, %91 : vector<1x32xf32>
    %cst_128 = arith.constant 0.000000e+00 : f32
    %268 = vector.broadcast %cst_128 : f32 to vector<1x32xf32>
    %269 = arith.maximumf %267, %268 : vector<1x32xf32>
    %270 = arith.truncf %269 : vector<1x32xf32> to vector<1x32xbf16>
    %c0_129 = arith.constant 0 : index
    %c544 = arith.constant 544 : index
    %271 = vector.load %arg12[%c0_129, %c544] : memref<1x2048xbf16, #tpu.memory_space<vmem>>, vector<1x32xbf16>
    tpu.vector_store %arg12[%c0_129, %c544], %270 {strides = array<i32>} : memref<1x2048xbf16, #tpu.memory_space<vmem>>, vector<1x32xbf16>,
    %272 = vector.extract_strided_slice %90 {offsets = [0, 2, 4, 0], sizes = [1, 1, 1, 32], strides = [1, 1, 1, 1]} : vector<1x8x16x32xf32> to vector<1x1x1x32xf32>
    %273 = vector.shape_cast %272 : vector<1x1x1x32xf32> to vector<1x32xf32>
    %274 = vector.extract_strided_slice %90 {offsets = [0, 2, 5, 0], sizes = [1, 1, 1, 32], strides = [1, 1, 1, 1]} : vector<1x8x16x32xf32> to vector<1x1x1x32xf32>
    %275 = vector.shape_cast %274 : vector<1x1x1x32xf32> to vector<1x32xf32>
    %276 = arith.maximumf %273, %275 : vector<1x32xf32>
    %277 = arith.addf %276, %91 : vector<1x32xf32>
    %cst_130 = arith.constant 0.000000e+00 : f32
    %278 = vector.broadcast %cst_130 : f32 to vector<1x32xf32>
    %279 = arith.maximumf %277, %278 : vector<1x32xf32>
    %280 = arith.truncf %279 : vector<1x32xf32> to vector<1x32xbf16>
    %c0_131 = arith.constant 0 : index
    %c576 = arith.constant 576 : index
    %281 = vector.load %arg12[%c0_131, %c576] : memref<1x2048xbf16, #tpu.memory_space<vmem>>, vector<1x32xbf16>
    tpu.vector_store %arg12[%c0_131, %c576], %280 {strides = array<i32>} : memref<1x2048xbf16, #tpu.memory_space<vmem>>, vector<1x32xbf16>,
    %282 = vector.extract_strided_slice %90 {offsets = [0, 2, 6, 0], sizes = [1, 1, 1, 32], strides = [1, 1, 1, 1]} : vector<1x8x16x32xf32> to vector<1x1x1x32xf32>
    %283 = vector.shape_cast %282 : vector<1x1x1x32xf32> to vector<1x32xf32>
    %284 = vector.extract_strided_slice %90 {offsets = [0, 2, 7, 0], sizes = [1, 1, 1, 32], strides = [1, 1, 1, 1]} : vector<1x8x16x32xf32> to vector<1x1x1x32xf32>
    %285 = vector.shape_cast %284 : vector<1x1x1x32xf32> to vector<1x32xf32>
    %286 = arith.maximumf %283, %285 : vector<1x32xf32>
    %287 = arith.addf %286, %91 : vector<1x32xf32>
    %cst_132 = arith.constant 0.000000e+00 : f32
    %288 = vector.broadcast %cst_132 : f32 to vector<1x32xf32>
    %289 = arith.maximumf %287, %288 : vector<1x32xf32>
    %290 = arith.truncf %289 : vector<1x32xf32> to vector<1x32xbf16>
    %c0_133 = arith.constant 0 : index
    %c608 = arith.constant 608 : index
    %291 = vector.load %arg12[%c0_133, %c608] : memref<1x2048xbf16, #tpu.memory_space<vmem>>, vector<1x32xbf16>
    tpu.vector_store %arg12[%c0_133, %c608], %290 {strides = array<i32>} : memref<1x2048xbf16, #tpu.memory_space<vmem>>, vector<1x32xbf16>,
    %292 = vector.extract_strided_slice %90 {offsets = [0, 2, 8, 0], sizes = [1, 1, 1, 32], strides = [1, 1, 1, 1]} : vector<1x8x16x32xf32> to vector<1x1x1x32xf32>
    %293 = vector.shape_cast %292 : vector<1x1x1x32xf32> to vector<1x32xf32>
    %294 = vector.extract_strided_slice %90 {offsets = [0, 2, 9, 0], sizes = [1, 1, 1, 32], strides = [1, 1, 1, 1]} : vector<1x8x16x32xf32> to vector<1x1x1x32xf32>
    %295 = vector.shape_cast %294 : vector<1x1x1x32xf32> to vector<1x32xf32>
    %296 = arith.maximumf %293, %295 : vector<1x32xf32>
    %297 = arith.addf %296, %91 : vector<1x32xf32>
    %cst_134 = arith.constant 0.000000e+00 : f32
    %298 = vector.broadcast %cst_134 : f32 to vector<1x32xf32>
    %299 = arith.maximumf %297, %298 : vector<1x32xf32>
    %300 = arith.truncf %299 : vector<1x32xf32> to vector<1x32xbf16>
    %c0_135 = arith.constant 0 : index
    %c640 = arith.constant 640 : index
    %301 = vector.load %arg12[%c0_135, %c640] : memref<1x2048xbf16, #tpu.memory_space<vmem>>, vector<1x32xbf16>
    tpu.vector_store %arg12[%c0_135, %c640], %300 {strides = array<i32>} : memref<1x2048xbf16, #tpu.memory_space<vmem>>, vector<1x32xbf16>,
    %302 = vector.extract_strided_slice %90 {offsets = [0, 2, 10, 0], sizes = [1, 1, 1, 32], strides = [1, 1, 1, 1]} : vector<1x8x16x32xf32> to vector<1x1x1x32xf32>
    %303 = vector.shape_cast %302 : vector<1x1x1x32xf32> to vector<1x32xf32>
    %304 = vector.extract_strided_slice %90 {offsets = [0, 2, 11, 0], sizes = [1, 1, 1, 32], strides = [1, 1, 1, 1]} : vector<1x8x16x32xf32> to vector<1x1x1x32xf32>
    %305 = vector.shape_cast %304 : vector<1x1x1x32xf32> to vector<1x32xf32>
    %306 = arith.maximumf %303, %305 : vector<1x32xf32>
    %307 = arith.addf %306, %91 : vector<1x32xf32>
    %cst_136 = arith.constant 0.000000e+00 : f32
    %308 = vector.broadcast %cst_136 : f32 to vector<1x32xf32>
    %309 = arith.maximumf %307, %308 : vector<1x32xf32>
    %310 = arith.truncf %309 : vector<1x32xf32> to vector<1x32xbf16>
    %c0_137 = arith.constant 0 : index
    %c672 = arith.constant 672 : index
    %311 = vector.load %arg12[%c0_137, %c672] : memref<1x2048xbf16, #tpu.memory_space<vmem>>, vector<1x32xbf16>
    tpu.vector_store %arg12[%c0_137, %c672], %310 {strides = array<i32>} : memref<1x2048xbf16, #tpu.memory_space<vmem>>, vector<1x32xbf16>,
    %312 = vector.extract_strided_slice %90 {offsets = [0, 2, 12, 0], sizes = [1, 1, 1, 32], strides = [1, 1, 1, 1]} : vector<1x8x16x32xf32> to vector<1x1x1x32xf32>
    %313 = vector.shape_cast %312 : vector<1x1x1x32xf32> to vector<1x32xf32>
    %314 = vector.extract_strided_slice %90 {offsets = [0, 2, 13, 0], sizes = [1, 1, 1, 32], strides = [1, 1, 1, 1]} : vector<1x8x16x32xf32> to vector<1x1x1x32xf32>
    %315 = vector.shape_cast %314 : vector<1x1x1x32xf32> to vector<1x32xf32>
    %316 = arith.maximumf %313, %315 : vector<1x32xf32>
    %317 = arith.addf %316, %91 : vector<1x32xf32>
    %cst_138 = arith.constant 0.000000e+00 : f32
    %318 = vector.broadcast %cst_138 : f32 to vector<1x32xf32>
    %319 = arith.maximumf %317, %318 : vector<1x32xf32>
    %320 = arith.truncf %319 : vector<1x32xf32> to vector<1x32xbf16>
    %c0_139 = arith.constant 0 : index
    %c704 = arith.constant 704 : index
    %321 = vector.load %arg12[%c0_139, %c704] : memref<1x2048xbf16, #tpu.memory_space<vmem>>, vector<1x32xbf16>
    tpu.vector_store %arg12[%c0_139, %c704], %320 {strides = array<i32>} : memref<1x2048xbf16, #tpu.memory_space<vmem>>, vector<1x32xbf16>,
    %322 = vector.extract_strided_slice %90 {offsets = [0, 2, 14, 0], sizes = [1, 1, 1, 32], strides = [1, 1, 1, 1]} : vector<1x8x16x32xf32> to vector<1x1x1x32xf32>
    %323 = vector.shape_cast %322 : vector<1x1x1x32xf32> to vector<1x32xf32>
    %324 = vector.extract_strided_slice %90 {offsets = [0, 2, 15, 0], sizes = [1, 1, 1, 32], strides = [1, 1, 1, 1]} : vector<1x8x16x32xf32> to vector<1x1x1x32xf32>
    %325 = vector.shape_cast %324 : vector<1x1x1x32xf32> to vector<1x32xf32>
    %326 = arith.maximumf %323, %325 : vector<1x32xf32>
    %327 = arith.addf %326, %91 : vector<1x32xf32>
    %cst_140 = arith.constant 0.000000e+00 : f32
    %328 = vector.broadcast %cst_140 : f32 to vector<1x32xf32>
    %329 = arith.maximumf %327, %328 : vector<1x32xf32>
    %330 = arith.truncf %329 : vector<1x32xf32> to vector<1x32xbf16>
    %c0_141 = arith.constant 0 : index
    %c736 = arith.constant 736 : index
    %331 = vector.load %arg12[%c0_141, %c736] : memref<1x2048xbf16, #tpu.memory_space<vmem>>, vector<1x32xbf16>
    tpu.vector_store %arg12[%c0_141, %c736], %330 {strides = array<i32>} : memref<1x2048xbf16, #tpu.memory_space<vmem>>, vector<1x32xbf16>,
    %332 = vector.extract_strided_slice %90 {offsets = [0, 3, 0, 0], sizes = [1, 1, 1, 32], strides = [1, 1, 1, 1]} : vector<1x8x16x32xf32> to vector<1x1x1x32xf32>
    %333 = vector.shape_cast %332 : vector<1x1x1x32xf32> to vector<1x32xf32>
    %334 = vector.extract_strided_slice %90 {offsets = [0, 3, 1, 0], sizes = [1, 1, 1, 32], strides = [1, 1, 1, 1]} : vector<1x8x16x32xf32> to vector<1x1x1x32xf32>
    %335 = vector.shape_cast %334 : vector<1x1x1x32xf32> to vector<1x32xf32>
    %336 = arith.maximumf %333, %335 : vector<1x32xf32>
    %337 = arith.addf %336, %91 : vector<1x32xf32>
    %cst_142 = arith.constant 0.000000e+00 : f32
    %338 = vector.broadcast %cst_142 : f32 to vector<1x32xf32>
    %339 = arith.maximumf %337, %338 : vector<1x32xf32>
    %340 = arith.truncf %339 : vector<1x32xf32> to vector<1x32xbf16>
    %c0_143 = arith.constant 0 : index
    %c768 = arith.constant 768 : index
    %341 = vector.load %arg12[%c0_143, %c768] : memref<1x2048xbf16, #tpu.memory_space<vmem>>, vector<1x32xbf16>
    tpu.vector_store %arg12[%c0_143, %c768], %340 {strides = array<i32>} : memref<1x2048xbf16, #tpu.memory_space<vmem>>, vector<1x32xbf16>,
    %342 = vector.extract_strided_slice %90 {offsets = [0, 3, 2, 0], sizes = [1, 1, 1, 32], strides = [1, 1, 1, 1]} : vector<1x8x16x32xf32> to vector<1x1x1x32xf32>
    %343 = vector.shape_cast %342 : vector<1x1x1x32xf32> to vector<1x32xf32>
    %344 = vector.extract_strided_slice %90 {offsets = [0, 3, 3, 0], sizes = [1, 1, 1, 32], strides = [1, 1, 1, 1]} : vector<1x8x16x32xf32> to vector<1x1x1x32xf32>
    %345 = vector.shape_cast %344 : vector<1x1x1x32xf32> to vector<1x32xf32>
    %346 = arith.maximumf %343, %345 : vector<1x32xf32>
    %347 = arith.addf %346, %91 : vector<1x32xf32>
    %cst_144 = arith.constant 0.000000e+00 : f32
    %348 = vector.broadcast %cst_144 : f32 to vector<1x32xf32>
    %349 = arith.maximumf %347, %348 : vector<1x32xf32>
    %350 = arith.truncf %349 : vector<1x32xf32> to vector<1x32xbf16>
    %c0_145 = arith.constant 0 : index
    %c800 = arith.constant 800 : index
    %351 = vector.load %arg12[%c0_145, %c800] : memref<1x2048xbf16, #tpu.memory_space<vmem>>, vector<1x32xbf16>
    tpu.vector_store %arg12[%c0_145, %c800], %350 {strides = array<i32>} : memref<1x2048xbf16, #tpu.memory_space<vmem>>, vector<1x32xbf16>,
    %352 = vector.extract_strided_slice %90 {offsets = [0, 3, 4, 0], sizes = [1, 1, 1, 32], strides = [1, 1, 1, 1]} : vector<1x8x16x32xf32> to vector<1x1x1x32xf32>
    %353 = vector.shape_cast %352 : vector<1x1x1x32xf32> to vector<1x32xf32>
    %354 = vector.extract_strided_slice %90 {offsets = [0, 3, 5, 0], sizes = [1, 1, 1, 32], strides = [1, 1, 1, 1]} : vector<1x8x16x32xf32> to vector<1x1x1x32xf32>
    %355 = vector.shape_cast %354 : vector<1x1x1x32xf32> to vector<1x32xf32>
    %356 = arith.maximumf %353, %355 : vector<1x32xf32>
    %357 = arith.addf %356, %91 : vector<1x32xf32>
    %cst_146 = arith.constant 0.000000e+00 : f32
    %358 = vector.broadcast %cst_146 : f32 to vector<1x32xf32>
    %359 = arith.maximumf %357, %358 : vector<1x32xf32>
    %360 = arith.truncf %359 : vector<1x32xf32> to vector<1x32xbf16>
    %c0_147 = arith.constant 0 : index
    %c832 = arith.constant 832 : index
    %361 = vector.load %arg12[%c0_147, %c832] : memref<1x2048xbf16, #tpu.memory_space<vmem>>, vector<1x32xbf16>
    tpu.vector_store %arg12[%c0_147, %c832], %360 {strides = array<i32>} : memref<1x2048xbf16, #tpu.memory_space<vmem>>, vector<1x32xbf16>,
    %362 = vector.extract_strided_slice %90 {offsets = [0, 3, 6, 0], sizes = [1, 1, 1, 32], strides = [1, 1, 1, 1]} : vector<1x8x16x32xf32> to vector<1x1x1x32xf32>
    %363 = vector.shape_cast %362 : vector<1x1x1x32xf32> to vector<1x32xf32>
    %364 = vector.extract_strided_slice %90 {offsets = [0, 3, 7, 0], sizes = [1, 1, 1, 32], strides = [1, 1, 1, 1]} : vector<1x8x16x32xf32> to vector<1x1x1x32xf32>
    %365 = vector.shape_cast %364 : vector<1x1x1x32xf32> to vector<1x32xf32>
    %366 = arith.maximumf %363, %365 : vector<1x32xf32>
    %367 = arith.addf %366, %91 : vector<1x32xf32>
    %cst_148 = arith.constant 0.000000e+00 : f32
    %368 = vector.broadcast %cst_148 : f32 to vector<1x32xf32>
    %369 = arith.maximumf %367, %368 : vector<1x32xf32>
    %370 = arith.truncf %369 : vector<1x32xf32> to vector<1x32xbf16>
    %c0_149 = arith.constant 0 : index
    %c864 = arith.constant 864 : index
    %371 = vector.load %arg12[%c0_149, %c864] : memref<1x2048xbf16, #tpu.memory_space<vmem>>, vector<1x32xbf16>
    tpu.vector_store %arg12[%c0_149, %c864], %370 {strides = array<i32>} : memref<1x2048xbf16, #tpu.memory_space<vmem>>, vector<1x32xbf16>,
    %372 = vector.extract_strided_slice %90 {offsets = [0, 3, 8, 0], sizes = [1, 1, 1, 32], strides = [1, 1, 1, 1]} : vector<1x8x16x32xf32> to vector<1x1x1x32xf32>
    %373 = vector.shape_cast %372 : vector<1x1x1x32xf32> to vector<1x32xf32>
    %374 = vector.extract_strided_slice %90 {offsets = [0, 3, 9, 0], sizes = [1, 1, 1, 32], strides = [1, 1, 1, 1]} : vector<1x8x16x32xf32> to vector<1x1x1x32xf32>
    %375 = vector.shape_cast %374 : vector<1x1x1x32xf32> to vector<1x32xf32>
    %376 = arith.maximumf %373, %375 : vector<1x32xf32>
    %377 = arith.addf %376, %91 : vector<1x32xf32>
    %cst_150 = arith.constant 0.000000e+00 : f32
    %378 = vector.broadcast %cst_150 : f32 to vector<1x32xf32>
    %379 = arith.maximumf %377, %378 : vector<1x32xf32>
    %380 = arith.truncf %379 : vector<1x32xf32> to vector<1x32xbf16>
    %c0_151 = arith.constant 0 : index
    %c896 = arith.constant 896 : index
    %381 = vector.load %arg12[%c0_151, %c896] : memref<1x2048xbf16, #tpu.memory_space<vmem>>, vector<1x32xbf16>
    tpu.vector_store %arg12[%c0_151, %c896], %380 {strides = array<i32>} : memref<1x2048xbf16, #tpu.memory_space<vmem>>, vector<1x32xbf16>,
    %382 = vector.extract_strided_slice %90 {offsets = [0, 3, 10, 0], sizes = [1, 1, 1, 32], strides = [1, 1, 1, 1]} : vector<1x8x16x32xf32> to vector<1x1x1x32xf32>
    %383 = vector.shape_cast %382 : vector<1x1x1x32xf32> to vector<1x32xf32>
    %384 = vector.extract_strided_slice %90 {offsets = [0, 3, 11, 0], sizes = [1, 1, 1, 32], strides = [1, 1, 1, 1]} : vector<1x8x16x32xf32> to vector<1x1x1x32xf32>
    %385 = vector.shape_cast %384 : vector<1x1x1x32xf32> to vector<1x32xf32>
    %386 = arith.maximumf %383, %385 : vector<1x32xf32>
    %387 = arith.addf %386, %91 : vector<1x32xf32>
    %cst_152 = arith.constant 0.000000e+00 : f32
    %388 = vector.broadcast %cst_152 : f32 to vector<1x32xf32>
    %389 = arith.maximumf %387, %388 : vector<1x32xf32>
    %390 = arith.truncf %389 : vector<1x32xf32> to vector<1x32xbf16>
    %c0_153 = arith.constant 0 : index
    %c928 = arith.constant 928 : index
    %391 = vector.load %arg12[%c0_153, %c928] : memref<1x2048xbf16, #tpu.memory_space<vmem>>, vector<1x32xbf16>
    tpu.vector_store %arg12[%c0_153, %c928], %390 {strides = array<i32>} : memref<1x2048xbf16, #tpu.memory_space<vmem>>, vector<1x32xbf16>,
    %392 = vector.extract_strided_slice %90 {offsets = [0, 3, 12, 0], sizes = [1, 1, 1, 32], strides = [1, 1, 1, 1]} : vector<1x8x16x32xf32> to vector<1x1x1x32xf32>
    %393 = vector.shape_cast %392 : vector<1x1x1x32xf32> to vector<1x32xf32>
    %394 = vector.extract_strided_slice %90 {offsets = [0, 3, 13, 0], sizes = [1, 1, 1, 32], strides = [1, 1, 1, 1]} : vector<1x8x16x32xf32> to vector<1x1x1x32xf32>
    %395 = vector.shape_cast %394 : vector<1x1x1x32xf32> to vector<1x32xf32>
    %396 = arith.maximumf %393, %395 : vector<1x32xf32>
    %397 = arith.addf %396, %91 : vector<1x32xf32>
    %cst_154 = arith.constant 0.000000e+00 : f32
    %398 = vector.broadcast %cst_154 : f32 to vector<1x32xf32>
    %399 = arith.maximumf %397, %398 : vector<1x32xf32>
    %400 = arith.truncf %399 : vector<1x32xf32> to vector<1x32xbf16>
    %c0_155 = arith.constant 0 : index
    %c960 = arith.constant 960 : index
    %401 = vector.load %arg12[%c0_155, %c960] : memref<1x2048xbf16, #tpu.memory_space<vmem>>, vector<1x32xbf16>
    tpu.vector_store %arg12[%c0_155, %c960], %400 {strides = array<i32>} : memref<1x2048xbf16, #tpu.memory_space<vmem>>, vector<1x32xbf16>,
    %402 = vector.extract_strided_slice %90 {offsets = [0, 3, 14, 0], sizes = [1, 1, 1, 32], strides = [1, 1, 1, 1]} : vector<1x8x16x32xf32> to vector<1x1x1x32xf32>
    %403 = vector.shape_cast %402 : vector<1x1x1x32xf32> to vector<1x32xf32>
    %404 = vector.extract_strided_slice %90 {offsets = [0, 3, 15, 0], sizes = [1, 1, 1, 32], strides = [1, 1, 1, 1]} : vector<1x8x16x32xf32> to vector<1x1x1x32xf32>
    %405 = vector.shape_cast %404 : vector<1x1x1x32xf32> to vector<1x32xf32>
    %406 = arith.maximumf %403, %405 : vector<1x32xf32>
    %407 = arith.addf %406, %91 : vector<1x32xf32>
    %cst_156 = arith.constant 0.000000e+00 : f32
    %408 = vector.broadcast %cst_156 : f32 to vector<1x32xf32>
    %409 = arith.maximumf %407, %408 : vector<1x32xf32>
    %410 = arith.truncf %409 : vector<1x32xf32> to vector<1x32xbf16>
    %c0_157 = arith.constant 0 : index
    %c992 = arith.constant 992 : index
    %411 = vector.load %arg12[%c0_157, %c992] : memref<1x2048xbf16, #tpu.memory_space<vmem>>, vector<1x32xbf16>
    tpu.vector_store %arg12[%c0_157, %c992], %410 {strides = array<i32>} : memref<1x2048xbf16, #tpu.memory_space<vmem>>, vector<1x32xbf16>,
    %412 = vector.extract_strided_slice %90 {offsets = [0, 4, 0, 0], sizes = [1, 1, 1, 32], strides = [1, 1, 1, 1]} : vector<1x8x16x32xf32> to vector<1x1x1x32xf32>
    %413 = vector.shape_cast %412 : vector<1x1x1x32xf32> to vector<1x32xf32>
    %414 = vector.extract_strided_slice %90 {offsets = [0, 4, 1, 0], sizes = [1, 1, 1, 32], strides = [1, 1, 1, 1]} : vector<1x8x16x32xf32> to vector<1x1x1x32xf32>
    %415 = vector.shape_cast %414 : vector<1x1x1x32xf32> to vector<1x32xf32>
    %416 = arith.maximumf %413, %415 : vector<1x32xf32>
    %417 = arith.addf %416, %91 : vector<1x32xf32>
    %cst_158 = arith.constant 0.000000e+00 : f32
    %418 = vector.broadcast %cst_158 : f32 to vector<1x32xf32>
    %419 = arith.maximumf %417, %418 : vector<1x32xf32>
    %420 = arith.truncf %419 : vector<1x32xf32> to vector<1x32xbf16>
    %c0_159 = arith.constant 0 : index
    %c1024 = arith.constant 1024 : index
    %421 = vector.load %arg12[%c0_159, %c1024] : memref<1x2048xbf16, #tpu.memory_space<vmem>>, vector<1x32xbf16>
    tpu.vector_store %arg12[%c0_159, %c1024], %420 {strides = array<i32>} : memref<1x2048xbf16, #tpu.memory_space<vmem>>, vector<1x32xbf16>,
    %422 = vector.extract_strided_slice %90 {offsets = [0, 4, 2, 0], sizes = [1, 1, 1, 32], strides = [1, 1, 1, 1]} : vector<1x8x16x32xf32> to vector<1x1x1x32xf32>
    %423 = vector.shape_cast %422 : vector<1x1x1x32xf32> to vector<1x32xf32>
    %424 = vector.extract_strided_slice %90 {offsets = [0, 4, 3, 0], sizes = [1, 1, 1, 32], strides = [1, 1, 1, 1]} : vector<1x8x16x32xf32> to vector<1x1x1x32xf32>
    %425 = vector.shape_cast %424 : vector<1x1x1x32xf32> to vector<1x32xf32>
    %426 = arith.maximumf %423, %425 : vector<1x32xf32>
    %427 = arith.addf %426, %91 : vector<1x32xf32>
    %cst_160 = arith.constant 0.000000e+00 : f32
    %428 = vector.broadcast %cst_160 : f32 to vector<1x32xf32>
    %429 = arith.maximumf %427, %428 : vector<1x32xf32>
    %430 = arith.truncf %429 : vector<1x32xf32> to vector<1x32xbf16>
    %c0_161 = arith.constant 0 : index
    %c1056 = arith.constant 1056 : index
    %431 = vector.load %arg12[%c0_161, %c1056] : memref<1x2048xbf16, #tpu.memory_space<vmem>>, vector<1x32xbf16>
    tpu.vector_store %arg12[%c0_161, %c1056], %430 {strides = array<i32>} : memref<1x2048xbf16, #tpu.memory_space<vmem>>, vector<1x32xbf16>,
    %432 = vector.extract_strided_slice %90 {offsets = [0, 4, 4, 0], sizes = [1, 1, 1, 32], strides = [1, 1, 1, 1]} : vector<1x8x16x32xf32> to vector<1x1x1x32xf32>
    %433 = vector.shape_cast %432 : vector<1x1x1x32xf32> to vector<1x32xf32>
    %434 = vector.extract_strided_slice %90 {offsets = [0, 4, 5, 0], sizes = [1, 1, 1, 32], strides = [1, 1, 1, 1]} : vector<1x8x16x32xf32> to vector<1x1x1x32xf32>
    %435 = vector.shape_cast %434 : vector<1x1x1x32xf32> to vector<1x32xf32>
    %436 = arith.maximumf %433, %435 : vector<1x32xf32>
    %437 = arith.addf %436, %91 : vector<1x32xf32>
    %cst_162 = arith.constant 0.000000e+00 : f32
    %438 = vector.broadcast %cst_162 : f32 to vector<1x32xf32>
    %439 = arith.maximumf %437, %438 : vector<1x32xf32>
    %440 = arith.truncf %439 : vector<1x32xf32> to vector<1x32xbf16>
    %c0_163 = arith.constant 0 : index
    %c1088 = arith.constant 1088 : index
    %441 = vector.load %arg12[%c0_163, %c1088] : memref<1x2048xbf16, #tpu.memory_space<vmem>>, vector<1x32xbf16>
    tpu.vector_store %arg12[%c0_163, %c1088], %440 {strides = array<i32>} : memref<1x2048xbf16, #tpu.memory_space<vmem>>, vector<1x32xbf16>,
    %442 = vector.extract_strided_slice %90 {offsets = [0, 4, 6, 0], sizes = [1, 1, 1, 32], strides = [1, 1, 1, 1]} : vector<1x8x16x32xf32> to vector<1x1x1x32xf32>
    %443 = vector.shape_cast %442 : vector<1x1x1x32xf32> to vector<1x32xf32>
    %444 = vector.extract_strided_slice %90 {offsets = [0, 4, 7, 0], sizes = [1, 1, 1, 32], strides = [1, 1, 1, 1]} : vector<1x8x16x32xf32> to vector<1x1x1x32xf32>
    %445 = vector.shape_cast %444 : vector<1x1x1x32xf32> to vector<1x32xf32>
    %446 = arith.maximumf %443, %445 : vector<1x32xf32>
    %447 = arith.addf %446, %91 : vector<1x32xf32>
    %cst_164 = arith.constant 0.000000e+00 : f32
    %448 = vector.broadcast %cst_164 : f32 to vector<1x32xf32>
    %449 = arith.maximumf %447, %448 : vector<1x32xf32>
    %450 = arith.truncf %449 : vector<1x32xf32> to vector<1x32xbf16>
    %c0_165 = arith.constant 0 : index
    %c1120 = arith.constant 1120 : index
    %451 = vector.load %arg12[%c0_165, %c1120] : memref<1x2048xbf16, #tpu.memory_space<vmem>>, vector<1x32xbf16>
    tpu.vector_store %arg12[%c0_165, %c1120], %450 {strides = array<i32>} : memref<1x2048xbf16, #tpu.memory_space<vmem>>, vector<1x32xbf16>,
    %452 = vector.extract_strided_slice %90 {offsets = [0, 4, 8, 0], sizes = [1, 1, 1, 32], strides = [1, 1, 1, 1]} : vector<1x8x16x32xf32> to vector<1x1x1x32xf32>
    %453 = vector.shape_cast %452 : vector<1x1x1x32xf32> to vector<1x32xf32>
    %454 = vector.extract_strided_slice %90 {offsets = [0, 4, 9, 0], sizes = [1, 1, 1, 32], strides = [1, 1, 1, 1]} : vector<1x8x16x32xf32> to vector<1x1x1x32xf32>
    %455 = vector.shape_cast %454 : vector<1x1x1x32xf32> to vector<1x32xf32>
    %456 = arith.maximumf %453, %455 : vector<1x32xf32>
    %457 = arith.addf %456, %91 : vector<1x32xf32>
    %cst_166 = arith.constant 0.000000e+00 : f32
    %458 = vector.broadcast %cst_166 : f32 to vector<1x32xf32>
    %459 = arith.maximumf %457, %458 : vector<1x32xf32>
    %460 = arith.truncf %459 : vector<1x32xf32> to vector<1x32xbf16>
    %c0_167 = arith.constant 0 : index
    %c1152 = arith.constant 1152 : index
    %461 = vector.load %arg12[%c0_167, %c1152] : memref<1x2048xbf16, #tpu.memory_space<vmem>>, vector<1x32xbf16>
    tpu.vector_store %arg12[%c0_167, %c1152], %460 {strides = array<i32>} : memref<1x2048xbf16, #tpu.memory_space<vmem>>, vector<1x32xbf16>,
    %462 = vector.extract_strided_slice %90 {offsets = [0, 4, 10, 0], sizes = [1, 1, 1, 32], strides = [1, 1, 1, 1]} : vector<1x8x16x32xf32> to vector<1x1x1x32xf32>
    %463 = vector.shape_cast %462 : vector<1x1x1x32xf32> to vector<1x32xf32>
    %464 = vector.extract_strided_slice %90 {offsets = [0, 4, 11, 0], sizes = [1, 1, 1, 32], strides = [1, 1, 1, 1]} : vector<1x8x16x32xf32> to vector<1x1x1x32xf32>
    %465 = vector.shape_cast %464 : vector<1x1x1x32xf32> to vector<1x32xf32>
    %466 = arith.maximumf %463, %465 : vector<1x32xf32>
    %467 = arith.addf %466, %91 : vector<1x32xf32>
    %cst_168 = arith.constant 0.000000e+00 : f32
    %468 = vector.broadcast %cst_168 : f32 to vector<1x32xf32>
    %469 = arith.maximumf %467, %468 : vector<1x32xf32>
    %470 = arith.truncf %469 : vector<1x32xf32> to vector<1x32xbf16>
    %c0_169 = arith.constant 0 : index
    %c1184 = arith.constant 1184 : index
    %471 = vector.load %arg12[%c0_169, %c1184] : memref<1x2048xbf16, #tpu.memory_space<vmem>>, vector<1x32xbf16>
    tpu.vector_store %arg12[%c0_169, %c1184], %470 {strides = array<i32>} : memref<1x2048xbf16, #tpu.memory_space<vmem>>, vector<1x32xbf16>,
    %472 = vector.extract_strided_slice %90 {offsets = [0, 4, 12, 0], sizes = [1, 1, 1, 32], strides = [1, 1, 1, 1]} : vector<1x8x16x32xf32> to vector<1x1x1x32xf32>
    %473 = vector.shape_cast %472 : vector<1x1x1x32xf32> to vector<1x32xf32>
    %474 = vector.extract_strided_slice %90 {offsets = [0, 4, 13, 0], sizes = [1, 1, 1, 32], strides = [1, 1, 1, 1]} : vector<1x8x16x32xf32> to vector<1x1x1x32xf32>
    %475 = vector.shape_cast %474 : vector<1x1x1x32xf32> to vector<1x32xf32>
    %476 = arith.maximumf %473, %475 : vector<1x32xf32>
    %477 = arith.addf %476, %91 : vector<1x32xf32>
    %cst_170 = arith.constant 0.000000e+00 : f32
    %478 = vector.broadcast %cst_170 : f32 to vector<1x32xf32>
    %479 = arith.maximumf %477, %478 : vector<1x32xf32>
    %480 = arith.truncf %479 : vector<1x32xf32> to vector<1x32xbf16>
    %c0_171 = arith.constant 0 : index
    %c1216 = arith.constant 1216 : index
    %481 = vector.load %arg12[%c0_171, %c1216] : memref<1x2048xbf16, #tpu.memory_space<vmem>>, vector<1x32xbf16>
    tpu.vector_store %arg12[%c0_171, %c1216], %480 {strides = array<i32>} : memref<1x2048xbf16, #tpu.memory_space<vmem>>, vector<1x32xbf16>,
    %482 = vector.extract_strided_slice %90 {offsets = [0, 4, 14, 0], sizes = [1, 1, 1, 32], strides = [1, 1, 1, 1]} : vector<1x8x16x32xf32> to vector<1x1x1x32xf32>
    %483 = vector.shape_cast %482 : vector<1x1x1x32xf32> to vector<1x32xf32>
    %484 = vector.extract_strided_slice %90 {offsets = [0, 4, 15, 0], sizes = [1, 1, 1, 32], strides = [1, 1, 1, 1]} : vector<1x8x16x32xf32> to vector<1x1x1x32xf32>
    %485 = vector.shape_cast %484 : vector<1x1x1x32xf32> to vector<1x32xf32>
    %486 = arith.maximumf %483, %485 : vector<1x32xf32>
    %487 = arith.addf %486, %91 : vector<1x32xf32>
    %cst_172 = arith.constant 0.000000e+00 : f32
    %488 = vector.broadcast %cst_172 : f32 to vector<1x32xf32>
    %489 = arith.maximumf %487, %488 : vector<1x32xf32>
    %490 = arith.truncf %489 : vector<1x32xf32> to vector<1x32xbf16>
    %c0_173 = arith.constant 0 : index
    %c1248 = arith.constant 1248 : index
    %491 = vector.load %arg12[%c0_173, %c1248] : memref<1x2048xbf16, #tpu.memory_space<vmem>>, vector<1x32xbf16>
    tpu.vector_store %arg12[%c0_173, %c1248], %490 {strides = array<i32>} : memref<1x2048xbf16, #tpu.memory_space<vmem>>, vector<1x32xbf16>,
    %492 = vector.extract_strided_slice %90 {offsets = [0, 5, 0, 0], sizes = [1, 1, 1, 32], strides = [1, 1, 1, 1]} : vector<1x8x16x32xf32> to vector<1x1x1x32xf32>
    %493 = vector.shape_cast %492 : vector<1x1x1x32xf32> to vector<1x32xf32>
    %494 = vector.extract_strided_slice %90 {offsets = [0, 5, 1, 0], sizes = [1, 1, 1, 32], strides = [1, 1, 1, 1]} : vector<1x8x16x32xf32> to vector<1x1x1x32xf32>
    %495 = vector.shape_cast %494 : vector<1x1x1x32xf32> to vector<1x32xf32>
    %496 = arith.maximumf %493, %495 : vector<1x32xf32>
    %497 = arith.addf %496, %91 : vector<1x32xf32>
    %cst_174 = arith.constant 0.000000e+00 : f32
    %498 = vector.broadcast %cst_174 : f32 to vector<1x32xf32>
    %499 = arith.maximumf %497, %498 : vector<1x32xf32>
    %500 = arith.truncf %499 : vector<1x32xf32> to vector<1x32xbf16>
    %c0_175 = arith.constant 0 : index
    %c1280 = arith.constant 1280 : index
    %501 = vector.load %arg12[%c0_175, %c1280] : memref<1x2048xbf16, #tpu.memory_space<vmem>>, vector<1x32xbf16>
    tpu.vector_store %arg12[%c0_175, %c1280], %500 {strides = array<i32>} : memref<1x2048xbf16, #tpu.memory_space<vmem>>, vector<1x32xbf16>,
    %502 = vector.extract_strided_slice %90 {offsets = [0, 5, 2, 0], sizes = [1, 1, 1, 32], strides = [1, 1, 1, 1]} : vector<1x8x16x32xf32> to vector<1x1x1x32xf32>
    %503 = vector.shape_cast %502 : vector<1x1x1x32xf32> to vector<1x32xf32>
    %504 = vector.extract_strided_slice %90 {offsets = [0, 5, 3, 0], sizes = [1, 1, 1, 32], strides = [1, 1, 1, 1]} : vector<1x8x16x32xf32> to vector<1x1x1x32xf32>
    %505 = vector.shape_cast %504 : vector<1x1x1x32xf32> to vector<1x32xf32>
    %506 = arith.maximumf %503, %505 : vector<1x32xf32>
    %507 = arith.addf %506, %91 : vector<1x32xf32>
    %cst_176 = arith.constant 0.000000e+00 : f32
    %508 = vector.broadcast %cst_176 : f32 to vector<1x32xf32>
    %509 = arith.maximumf %507, %508 : vector<1x32xf32>
    %510 = arith.truncf %509 : vector<1x32xf32> to vector<1x32xbf16>
    %c0_177 = arith.constant 0 : index
    %c1312 = arith.constant 1312 : index
    %511 = vector.load %arg12[%c0_177, %c1312] : memref<1x2048xbf16, #tpu.memory_space<vmem>>, vector<1x32xbf16>
    tpu.vector_store %arg12[%c0_177, %c1312], %510 {strides = array<i32>} : memref<1x2048xbf16, #tpu.memory_space<vmem>>, vector<1x32xbf16>,
    %512 = vector.extract_strided_slice %90 {offsets = [0, 5, 4, 0], sizes = [1, 1, 1, 32], strides = [1, 1, 1, 1]} : vector<1x8x16x32xf32> to vector<1x1x1x32xf32>
    %513 = vector.shape_cast %512 : vector<1x1x1x32xf32> to vector<1x32xf32>
    %514 = vector.extract_strided_slice %90 {offsets = [0, 5, 5, 0], sizes = [1, 1, 1, 32], strides = [1, 1, 1, 1]} : vector<1x8x16x32xf32> to vector<1x1x1x32xf32>
    %515 = vector.shape_cast %514 : vector<1x1x1x32xf32> to vector<1x32xf32>
    %516 = arith.maximumf %513, %515 : vector<1x32xf32>
    %517 = arith.addf %516, %91 : vector<1x32xf32>
    %cst_178 = arith.constant 0.000000e+00 : f32
    %518 = vector.broadcast %cst_178 : f32 to vector<1x32xf32>
    %519 = arith.maximumf %517, %518 : vector<1x32xf32>
    %520 = arith.truncf %519 : vector<1x32xf32> to vector<1x32xbf16>
    %c0_179 = arith.constant 0 : index
    %c1344 = arith.constant 1344 : index
    %521 = vector.load %arg12[%c0_179, %c1344] : memref<1x2048xbf16, #tpu.memory_space<vmem>>, vector<1x32xbf16>
    tpu.vector_store %arg12[%c0_179, %c1344], %520 {strides = array<i32>} : memref<1x2048xbf16, #tpu.memory_space<vmem>>, vector<1x32xbf16>,
    %522 = vector.extract_strided_slice %90 {offsets = [0, 5, 6, 0], sizes = [1, 1, 1, 32], strides = [1, 1, 1, 1]} : vector<1x8x16x32xf32> to vector<1x1x1x32xf32>
    %523 = vector.shape_cast %522 : vector<1x1x1x32xf32> to vector<1x32xf32>
    %524 = vector.extract_strided_slice %90 {offsets = [0, 5, 7, 0], sizes = [1, 1, 1, 32], strides = [1, 1, 1, 1]} : vector<1x8x16x32xf32> to vector<1x1x1x32xf32>
    %525 = vector.shape_cast %524 : vector<1x1x1x32xf32> to vector<1x32xf32>
    %526 = arith.maximumf %523, %525 : vector<1x32xf32>
    %527 = arith.addf %526, %91 : vector<1x32xf32>
    %cst_180 = arith.constant 0.000000e+00 : f32
    %528 = vector.broadcast %cst_180 : f32 to vector<1x32xf32>
    %529 = arith.maximumf %527, %528 : vector<1x32xf32>
    %530 = arith.truncf %529 : vector<1x32xf32> to vector<1x32xbf16>
    %c0_181 = arith.constant 0 : index
    %c1376 = arith.constant 1376 : index
    %531 = vector.load %arg12[%c0_181, %c1376] : memref<1x2048xbf16, #tpu.memory_space<vmem>>, vector<1x32xbf16>
    tpu.vector_store %arg12[%c0_181, %c1376], %530 {strides = array<i32>} : memref<1x2048xbf16, #tpu.memory_space<vmem>>, vector<1x32xbf16>,
    %532 = vector.extract_strided_slice %90 {offsets = [0, 5, 8, 0], sizes = [1, 1, 1, 32], strides = [1, 1, 1, 1]} : vector<1x8x16x32xf32> to vector<1x1x1x32xf32>
    %533 = vector.shape_cast %532 : vector<1x1x1x32xf32> to vector<1x32xf32>
    %534 = vector.extract_strided_slice %90 {offsets = [0, 5, 9, 0], sizes = [1, 1, 1, 32], strides = [1, 1, 1, 1]} : vector<1x8x16x32xf32> to vector<1x1x1x32xf32>
    %535 = vector.shape_cast %534 : vector<1x1x1x32xf32> to vector<1x32xf32>
    %536 = arith.maximumf %533, %535 : vector<1x32xf32>
    %537 = arith.addf %536, %91 : vector<1x32xf32>
    %cst_182 = arith.constant 0.000000e+00 : f32
    %538 = vector.broadcast %cst_182 : f32 to vector<1x32xf32>
    %539 = arith.maximumf %537, %538 : vector<1x32xf32>
    %540 = arith.truncf %539 : vector<1x32xf32> to vector<1x32xbf16>
    %c0_183 = arith.constant 0 : index
    %c1408 = arith.constant 1408 : index
    %541 = vector.load %arg12[%c0_183, %c1408] : memref<1x2048xbf16, #tpu.memory_space<vmem>>, vector<1x32xbf16>
    tpu.vector_store %arg12[%c0_183, %c1408], %540 {strides = array<i32>} : memref<1x2048xbf16, #tpu.memory_space<vmem>>, vector<1x32xbf16>,
    %542 = vector.extract_strided_slice %90 {offsets = [0, 5, 10, 0], sizes = [1, 1, 1, 32], strides = [1, 1, 1, 1]} : vector<1x8x16x32xf32> to vector<1x1x1x32xf32>
    %543 = vector.shape_cast %542 : vector<1x1x1x32xf32> to vector<1x32xf32>
    %544 = vector.extract_strided_slice %90 {offsets = [0, 5, 11, 0], sizes = [1, 1, 1, 32], strides = [1, 1, 1, 1]} : vector<1x8x16x32xf32> to vector<1x1x1x32xf32>
    %545 = vector.shape_cast %544 : vector<1x1x1x32xf32> to vector<1x32xf32>
    %546 = arith.maximumf %543, %545 : vector<1x32xf32>
    %547 = arith.addf %546, %91 : vector<1x32xf32>
    %cst_184 = arith.constant 0.000000e+00 : f32
    %548 = vector.broadcast %cst_184 : f32 to vector<1x32xf32>
    %549 = arith.maximumf %547, %548 : vector<1x32xf32>
    %550 = arith.truncf %549 : vector<1x32xf32> to vector<1x32xbf16>
    %c0_185 = arith.constant 0 : index
    %c1440 = arith.constant 1440 : index
    %551 = vector.load %arg12[%c0_185, %c1440] : memref<1x2048xbf16, #tpu.memory_space<vmem>>, vector<1x32xbf16>
    tpu.vector_store %arg12[%c0_185, %c1440], %550 {strides = array<i32>} : memref<1x2048xbf16, #tpu.memory_space<vmem>>, vector<1x32xbf16>,
    %552 = vector.extract_strided_slice %90 {offsets = [0, 5, 12, 0], sizes = [1, 1, 1, 32], strides = [1, 1, 1, 1]} : vector<1x8x16x32xf32> to vector<1x1x1x32xf32>
    %553 = vector.shape_cast %552 : vector<1x1x1x32xf32> to vector<1x32xf32>
    %554 = vector.extract_strided_slice %90 {offsets = [0, 5, 13, 0], sizes = [1, 1, 1, 32], strides = [1, 1, 1, 1]} : vector<1x8x16x32xf32> to vector<1x1x1x32xf32>
    %555 = vector.shape_cast %554 : vector<1x1x1x32xf32> to vector<1x32xf32>
    %556 = arith.maximumf %553, %555 : vector<1x32xf32>
    %557 = arith.addf %556, %91 : vector<1x32xf32>
    %cst_186 = arith.constant 0.000000e+00 : f32
    %558 = vector.broadcast %cst_186 : f32 to vector<1x32xf32>
    %559 = arith.maximumf %557, %558 : vector<1x32xf32>
    %560 = arith.truncf %559 : vector<1x32xf32> to vector<1x32xbf16>
    %c0_187 = arith.constant 0 : index
    %c1472 = arith.constant 1472 : index
    %561 = vector.load %arg12[%c0_187, %c1472] : memref<1x2048xbf16, #tpu.memory_space<vmem>>, vector<1x32xbf16>
    tpu.vector_store %arg12[%c0_187, %c1472], %560 {strides = array<i32>} : memref<1x2048xbf16, #tpu.memory_space<vmem>>, vector<1x32xbf16>,
    %562 = vector.extract_strided_slice %90 {offsets = [0, 5, 14, 0], sizes = [1, 1, 1, 32], strides = [1, 1, 1, 1]} : vector<1x8x16x32xf32> to vector<1x1x1x32xf32>
    %563 = vector.shape_cast %562 : vector<1x1x1x32xf32> to vector<1x32xf32>
    %564 = vector.extract_strided_slice %90 {offsets = [0, 5, 15, 0], sizes = [1, 1, 1, 32], strides = [1, 1, 1, 1]} : vector<1x8x16x32xf32> to vector<1x1x1x32xf32>
    %565 = vector.shape_cast %564 : vector<1x1x1x32xf32> to vector<1x32xf32>
    %566 = arith.maximumf %563, %565 : vector<1x32xf32>
    %567 = arith.addf %566, %91 : vector<1x32xf32>
    %cst_188 = arith.constant 0.000000e+00 : f32
    %568 = vector.broadcast %cst_188 : f32 to vector<1x32xf32>
    %569 = arith.maximumf %567, %568 : vector<1x32xf32>
    %570 = arith.truncf %569 : vector<1x32xf32> to vector<1x32xbf16>
    %c0_189 = arith.constant 0 : index
    %c1504 = arith.constant 1504 : index
    %571 = vector.load %arg12[%c0_189, %c1504] : memref<1x2048xbf16, #tpu.memory_space<vmem>>, vector<1x32xbf16>
    tpu.vector_store %arg12[%c0_189, %c1504], %570 {strides = array<i32>} : memref<1x2048xbf16, #tpu.memory_space<vmem>>, vector<1x32xbf16>,
    %572 = vector.extract_strided_slice %90 {offsets = [0, 6, 0, 0], sizes = [1, 1, 1, 32], strides = [1, 1, 1, 1]} : vector<1x8x16x32xf32> to vector<1x1x1x32xf32>
    %573 = vector.shape_cast %572 : vector<1x1x1x32xf32> to vector<1x32xf32>
    %574 = vector.extract_strided_slice %90 {offsets = [0, 6, 1, 0], sizes = [1, 1, 1, 32], strides = [1, 1, 1, 1]} : vector<1x8x16x32xf32> to vector<1x1x1x32xf32>
    %575 = vector.shape_cast %574 : vector<1x1x1x32xf32> to vector<1x32xf32>
    %576 = arith.maximumf %573, %575 : vector<1x32xf32>
    %577 = arith.addf %576, %91 : vector<1x32xf32>
    %cst_190 = arith.constant 0.000000e+00 : f32
    %578 = vector.broadcast %cst_190 : f32 to vector<1x32xf32>
    %579 = arith.maximumf %577, %578 : vector<1x32xf32>
    %580 = arith.truncf %579 : vector<1x32xf32> to vector<1x32xbf16>
    %c0_191 = arith.constant 0 : index
    %c1536 = arith.constant 1536 : index
    %581 = vector.load %arg12[%c0_191, %c1536] : memref<1x2048xbf16, #tpu.memory_space<vmem>>, vector<1x32xbf16>
    tpu.vector_store %arg12[%c0_191, %c1536], %580 {strides = array<i32>} : memref<1x2048xbf16, #tpu.memory_space<vmem>>, vector<1x32xbf16>,
    %582 = vector.extract_strided_slice %90 {offsets = [0, 6, 2, 0], sizes = [1, 1, 1, 32], strides = [1, 1, 1, 1]} : vector<1x8x16x32xf32> to vector<1x1x1x32xf32>
    %583 = vector.shape_cast %582 : vector<1x1x1x32xf32> to vector<1x32xf32>
    %584 = vector.extract_strided_slice %90 {offsets = [0, 6, 3, 0], sizes = [1, 1, 1, 32], strides = [1, 1, 1, 1]} : vector<1x8x16x32xf32> to vector<1x1x1x32xf32>
    %585 = vector.shape_cast %584 : vector<1x1x1x32xf32> to vector<1x32xf32>
    %586 = arith.maximumf %583, %585 : vector<1x32xf32>
    %587 = arith.addf %586, %91 : vector<1x32xf32>
    %cst_192 = arith.constant 0.000000e+00 : f32
    %588 = vector.broadcast %cst_192 : f32 to vector<1x32xf32>
    %589 = arith.maximumf %587, %588 : vector<1x32xf32>
    %590 = arith.truncf %589 : vector<1x32xf32> to vector<1x32xbf16>
    %c0_193 = arith.constant 0 : index
    %c1568 = arith.constant 1568 : index
    %591 = vector.load %arg12[%c0_193, %c1568] : memref<1x2048xbf16, #tpu.memory_space<vmem>>, vector<1x32xbf16>
    tpu.vector_store %arg12[%c0_193, %c1568], %590 {strides = array<i32>} : memref<1x2048xbf16, #tpu.memory_space<vmem>>, vector<1x32xbf16>,
    %592 = vector.extract_strided_slice %90 {offsets = [0, 6, 4, 0], sizes = [1, 1, 1, 32], strides = [1, 1, 1, 1]} : vector<1x8x16x32xf32> to vector<1x1x1x32xf32>
    %593 = vector.shape_cast %592 : vector<1x1x1x32xf32> to vector<1x32xf32>
    %594 = vector.extract_strided_slice %90 {offsets = [0, 6, 5, 0], sizes = [1, 1, 1, 32], strides = [1, 1, 1, 1]} : vector<1x8x16x32xf32> to vector<1x1x1x32xf32>
    %595 = vector.shape_cast %594 : vector<1x1x1x32xf32> to vector<1x32xf32>
    %596 = arith.maximumf %593, %595 : vector<1x32xf32>
    %597 = arith.addf %596, %91 : vector<1x32xf32>
    %cst_194 = arith.constant 0.000000e+00 : f32
    %598 = vector.broadcast %cst_194 : f32 to vector<1x32xf32>
    %599 = arith.maximumf %597, %598 : vector<1x32xf32>
    %600 = arith.truncf %599 : vector<1x32xf32> to vector<1x32xbf16>
    %c0_195 = arith.constant 0 : index
    %c1600 = arith.constant 1600 : index
    %601 = vector.load %arg12[%c0_195, %c1600] : memref<1x2048xbf16, #tpu.memory_space<vmem>>, vector<1x32xbf16>
    tpu.vector_store %arg12[%c0_195, %c1600], %600 {strides = array<i32>} : memref<1x2048xbf16, #tpu.memory_space<vmem>>, vector<1x32xbf16>,
    %602 = vector.extract_strided_slice %90 {offsets = [0, 6, 6, 0], sizes = [1, 1, 1, 32], strides = [1, 1, 1, 1]} : vector<1x8x16x32xf32> to vector<1x1x1x32xf32>
    %603 = vector.shape_cast %602 : vector<1x1x1x32xf32> to vector<1x32xf32>
    %604 = vector.extract_strided_slice %90 {offsets = [0, 6, 7, 0], sizes = [1, 1, 1, 32], strides = [1, 1, 1, 1]} : vector<1x8x16x32xf32> to vector<1x1x1x32xf32>
    %605 = vector.shape_cast %604 : vector<1x1x1x32xf32> to vector<1x32xf32>
    %606 = arith.maximumf %603, %605 : vector<1x32xf32>
    %607 = arith.addf %606, %91 : vector<1x32xf32>
    %cst_196 = arith.constant 0.000000e+00 : f32
    %608 = vector.broadcast %cst_196 : f32 to vector<1x32xf32>
    %609 = arith.maximumf %607, %608 : vector<1x32xf32>
    %610 = arith.truncf %609 : vector<1x32xf32> to vector<1x32xbf16>
    %c0_197 = arith.constant 0 : index
    %c1632 = arith.constant 1632 : index
    %611 = vector.load %arg12[%c0_197, %c1632] : memref<1x2048xbf16, #tpu.memory_space<vmem>>, vector<1x32xbf16>
    tpu.vector_store %arg12[%c0_197, %c1632], %610 {strides = array<i32>} : memref<1x2048xbf16, #tpu.memory_space<vmem>>, vector<1x32xbf16>,
    %612 = vector.extract_strided_slice %90 {offsets = [0, 6, 8, 0], sizes = [1, 1, 1, 32], strides = [1, 1, 1, 1]} : vector<1x8x16x32xf32> to vector<1x1x1x32xf32>
    %613 = vector.shape_cast %612 : vector<1x1x1x32xf32> to vector<1x32xf32>
    %614 = vector.extract_strided_slice %90 {offsets = [0, 6, 9, 0], sizes = [1, 1, 1, 32], strides = [1, 1, 1, 1]} : vector<1x8x16x32xf32> to vector<1x1x1x32xf32>
    %615 = vector.shape_cast %614 : vector<1x1x1x32xf32> to vector<1x32xf32>
    %616 = arith.maximumf %613, %615 : vector<1x32xf32>
    %617 = arith.addf %616, %91 : vector<1x32xf32>
    %cst_198 = arith.constant 0.000000e+00 : f32
    %618 = vector.broadcast %cst_198 : f32 to vector<1x32xf32>
    %619 = arith.maximumf %617, %618 : vector<1x32xf32>
    %620 = arith.truncf %619 : vector<1x32xf32> to vector<1x32xbf16>
    %c0_199 = arith.constant 0 : index
    %c1664 = arith.constant 1664 : index
    %621 = vector.load %arg12[%c0_199, %c1664] : memref<1x2048xbf16, #tpu.memory_space<vmem>>, vector<1x32xbf16>
    tpu.vector_store %arg12[%c0_199, %c1664], %620 {strides = array<i32>} : memref<1x2048xbf16, #tpu.memory_space<vmem>>, vector<1x32xbf16>,
    %622 = vector.extract_strided_slice %90 {offsets = [0, 6, 10, 0], sizes = [1, 1, 1, 32], strides = [1, 1, 1, 1]} : vector<1x8x16x32xf32> to vector<1x1x1x32xf32>
    %623 = vector.shape_cast %622 : vector<1x1x1x32xf32> to vector<1x32xf32>
    %624 = vector.extract_strided_slice %90 {offsets = [0, 6, 11, 0], sizes = [1, 1, 1, 32], strides = [1, 1, 1, 1]} : vector<1x8x16x32xf32> to vector<1x1x1x32xf32>
    %625 = vector.shape_cast %624 : vector<1x1x1x32xf32> to vector<1x32xf32>
    %626 = arith.maximumf %623, %625 : vector<1x32xf32>
    %627 = arith.addf %626, %91 : vector<1x32xf32>
    %cst_200 = arith.constant 0.000000e+00 : f32
    %628 = vector.broadcast %cst_200 : f32 to vector<1x32xf32>
    %629 = arith.maximumf %627, %628 : vector<1x32xf32>
    %630 = arith.truncf %629 : vector<1x32xf32> to vector<1x32xbf16>
    %c0_201 = arith.constant 0 : index
    %c1696 = arith.constant 1696 : index
    %631 = vector.load %arg12[%c0_201, %c1696] : memref<1x2048xbf16, #tpu.memory_space<vmem>>, vector<1x32xbf16>
    tpu.vector_store %arg12[%c0_201, %c1696], %630 {strides = array<i32>} : memref<1x2048xbf16, #tpu.memory_space<vmem>>, vector<1x32xbf16>,
    %632 = vector.extract_strided_slice %90 {offsets = [0, 6, 12, 0], sizes = [1, 1, 1, 32], strides = [1, 1, 1, 1]} : vector<1x8x16x32xf32> to vector<1x1x1x32xf32>
    %633 = vector.shape_cast %632 : vector<1x1x1x32xf32> to vector<1x32xf32>
    %634 = vector.extract_strided_slice %90 {offsets = [0, 6, 13, 0], sizes = [1, 1, 1, 32], strides = [1, 1, 1, 1]} : vector<1x8x16x32xf32> to vector<1x1x1x32xf32>
    %635 = vector.shape_cast %634 : vector<1x1x1x32xf32> to vector<1x32xf32>
    %636 = arith.maximumf %633, %635 : vector<1x32xf32>
    %637 = arith.addf %636, %91 : vector<1x32xf32>
    %cst_202 = arith.constant 0.000000e+00 : f32
    %638 = vector.broadcast %cst_202 : f32 to vector<1x32xf32>
    %639 = arith.maximumf %637, %638 : vector<1x32xf32>
    %640 = arith.truncf %639 : vector<1x32xf32> to vector<1x32xbf16>
    %c0_203 = arith.constant 0 : index
    %c1728 = arith.constant 1728 : index
    %641 = vector.load %arg12[%c0_203, %c1728] : memref<1x2048xbf16, #tpu.memory_space<vmem>>, vector<1x32xbf16>
    tpu.vector_store %arg12[%c0_203, %c1728], %640 {strides = array<i32>} : memref<1x2048xbf16, #tpu.memory_space<vmem>>, vector<1x32xbf16>,
    %642 = vector.extract_strided_slice %90 {offsets = [0, 6, 14, 0], sizes = [1, 1, 1, 32], strides = [1, 1, 1, 1]} : vector<1x8x16x32xf32> to vector<1x1x1x32xf32>
    %643 = vector.shape_cast %642 : vector<1x1x1x32xf32> to vector<1x32xf32>
    %644 = vector.extract_strided_slice %90 {offsets = [0, 6, 15, 0], sizes = [1, 1, 1, 32], strides = [1, 1, 1, 1]} : vector<1x8x16x32xf32> to vector<1x1x1x32xf32>
    %645 = vector.shape_cast %644 : vector<1x1x1x32xf32> to vector<1x32xf32>
    %646 = arith.maximumf %643, %645 : vector<1x32xf32>
    %647 = arith.addf %646, %91 : vector<1x32xf32>
    %cst_204 = arith.constant 0.000000e+00 : f32
    %648 = vector.broadcast %cst_204 : f32 to vector<1x32xf32>
    %649 = arith.maximumf %647, %648 : vector<1x32xf32>
    %650 = arith.truncf %649 : vector<1x32xf32> to vector<1x32xbf16>
    %c0_205 = arith.constant 0 : index
    %c1760 = arith.constant 1760 : index
    %651 = vector.load %arg12[%c0_205, %c1760] : memref<1x2048xbf16, #tpu.memory_space<vmem>>, vector<1x32xbf16>
    tpu.vector_store %arg12[%c0_205, %c1760], %650 {strides = array<i32>} : memref<1x2048xbf16, #tpu.memory_space<vmem>>, vector<1x32xbf16>,
    %652 = vector.extract_strided_slice %90 {offsets = [0, 7, 0, 0], sizes = [1, 1, 1, 32], strides = [1, 1, 1, 1]} : vector<1x8x16x32xf32> to vector<1x1x1x32xf32>
    %653 = vector.shape_cast %652 : vector<1x1x1x32xf32> to vector<1x32xf32>
    %654 = vector.extract_strided_slice %90 {offsets = [0, 7, 1, 0], sizes = [1, 1, 1, 32], strides = [1, 1, 1, 1]} : vector<1x8x16x32xf32> to vector<1x1x1x32xf32>
    %655 = vector.shape_cast %654 : vector<1x1x1x32xf32> to vector<1x32xf32>
    %656 = arith.maximumf %653, %655 : vector<1x32xf32>
    %657 = arith.addf %656, %91 : vector<1x32xf32>
    %cst_206 = arith.constant 0.000000e+00 : f32
    %658 = vector.broadcast %cst_206 : f32 to vector<1x32xf32>
    %659 = arith.maximumf %657, %658 : vector<1x32xf32>
    %660 = arith.truncf %659 : vector<1x32xf32> to vector<1x32xbf16>
    %c0_207 = arith.constant 0 : index
    %c1792 = arith.constant 1792 : index
    %661 = vector.load %arg12[%c0_207, %c1792] : memref<1x2048xbf16, #tpu.memory_space<vmem>>, vector<1x32xbf16>
    tpu.vector_store %arg12[%c0_207, %c1792], %660 {strides = array<i32>} : memref<1x2048xbf16, #tpu.memory_space<vmem>>, vector<1x32xbf16>,
    %662 = vector.extract_strided_slice %90 {offsets = [0, 7, 2, 0], sizes = [1, 1, 1, 32], strides = [1, 1, 1, 1]} : vector<1x8x16x32xf32> to vector<1x1x1x32xf32>
    %663 = vector.shape_cast %662 : vector<1x1x1x32xf32> to vector<1x32xf32>
    %664 = vector.extract_strided_slice %90 {offsets = [0, 7, 3, 0], sizes = [1, 1, 1, 32], strides = [1, 1, 1, 1]} : vector<1x8x16x32xf32> to vector<1x1x1x32xf32>
    %665 = vector.shape_cast %664 : vector<1x1x1x32xf32> to vector<1x32xf32>
    %666 = arith.maximumf %663, %665 : vector<1x32xf32>
    %667 = arith.addf %666, %91 : vector<1x32xf32>
    %cst_208 = arith.constant 0.000000e+00 : f32
    %668 = vector.broadcast %cst_208 : f32 to vector<1x32xf32>
    %669 = arith.maximumf %667, %668 : vector<1x32xf32>
    %670 = arith.truncf %669 : vector<1x32xf32> to vector<1x32xbf16>
    %c0_209 = arith.constant 0 : index
    %c1824 = arith.constant 1824 : index
    %671 = vector.load %arg12[%c0_209, %c1824] : memref<1x2048xbf16, #tpu.memory_space<vmem>>, vector<1x32xbf16>
    tpu.vector_store %arg12[%c0_209, %c1824], %670 {strides = array<i32>} : memref<1x2048xbf16, #tpu.memory_space<vmem>>, vector<1x32xbf16>,
    %672 = vector.extract_strided_slice %90 {offsets = [0, 7, 4, 0], sizes = [1, 1, 1, 32], strides = [1, 1, 1, 1]} : vector<1x8x16x32xf32> to vector<1x1x1x32xf32>
    %673 = vector.shape_cast %672 : vector<1x1x1x32xf32> to vector<1x32xf32>
    %674 = vector.extract_strided_slice %90 {offsets = [0, 7, 5, 0], sizes = [1, 1, 1, 32], strides = [1, 1, 1, 1]} : vector<1x8x16x32xf32> to vector<1x1x1x32xf32>
    %675 = vector.shape_cast %674 : vector<1x1x1x32xf32> to vector<1x32xf32>
    %676 = arith.maximumf %673, %675 : vector<1x32xf32>
    %677 = arith.addf %676, %91 : vector<1x32xf32>
    %cst_210 = arith.constant 0.000000e+00 : f32
    %678 = vector.broadcast %cst_210 : f32 to vector<1x32xf32>
    %679 = arith.maximumf %677, %678 : vector<1x32xf32>
    %680 = arith.truncf %679 : vector<1x32xf32> to vector<1x32xbf16>
    %c0_211 = arith.constant 0 : index
    %c1856 = arith.constant 1856 : index
    %681 = vector.load %arg12[%c0_211, %c1856] : memref<1x2048xbf16, #tpu.memory_space<vmem>>, vector<1x32xbf16>
    tpu.vector_store %arg12[%c0_211, %c1856], %680 {strides = array<i32>} : memref<1x2048xbf16, #tpu.memory_space<vmem>>, vector<1x32xbf16>,
    %682 = vector.extract_strided_slice %90 {offsets = [0, 7, 6, 0], sizes = [1, 1, 1, 32], strides = [1, 1, 1, 1]} : vector<1x8x16x32xf32> to vector<1x1x1x32xf32>
    %683 = vector.shape_cast %682 : vector<1x1x1x32xf32> to vector<1x32xf32>
    %684 = vector.extract_strided_slice %90 {offsets = [0, 7, 7, 0], sizes = [1, 1, 1, 32], strides = [1, 1, 1, 1]} : vector<1x8x16x32xf32> to vector<1x1x1x32xf32>
    %685 = vector.shape_cast %684 : vector<1x1x1x32xf32> to vector<1x32xf32>
    %686 = arith.maximumf %683, %685 : vector<1x32xf32>
    %687 = arith.addf %686, %91 : vector<1x32xf32>
    %cst_212 = arith.constant 0.000000e+00 : f32
    %688 = vector.broadcast %cst_212 : f32 to vector<1x32xf32>
    %689 = arith.maximumf %687, %688 : vector<1x32xf32>
    %690 = arith.truncf %689 : vector<1x32xf32> to vector<1x32xbf16>
    %c0_213 = arith.constant 0 : index
    %c1888 = arith.constant 1888 : index
    %691 = vector.load %arg12[%c0_213, %c1888] : memref<1x2048xbf16, #tpu.memory_space<vmem>>, vector<1x32xbf16>
    tpu.vector_store %arg12[%c0_213, %c1888], %690 {strides = array<i32>} : memref<1x2048xbf16, #tpu.memory_space<vmem>>, vector<1x32xbf16>,
    %692 = vector.extract_strided_slice %90 {offsets = [0, 7, 8, 0], sizes = [1, 1, 1, 32], strides = [1, 1, 1, 1]} : vector<1x8x16x32xf32> to vector<1x1x1x32xf32>
    %693 = vector.shape_cast %692 : vector<1x1x1x32xf32> to vector<1x32xf32>
    %694 = vector.extract_strided_slice %90 {offsets = [0, 7, 9, 0], sizes = [1, 1, 1, 32], strides = [1, 1, 1, 1]} : vector<1x8x16x32xf32> to vector<1x1x1x32xf32>
    %695 = vector.shape_cast %694 : vector<1x1x1x32xf32> to vector<1x32xf32>
    %696 = arith.maximumf %693, %695 : vector<1x32xf32>
    %697 = arith.addf %696, %91 : vector<1x32xf32>
    %cst_214 = arith.constant 0.000000e+00 : f32
    %698 = vector.broadcast %cst_214 : f32 to vector<1x32xf32>
    %699 = arith.maximumf %697, %698 : vector<1x32xf32>
    %700 = arith.truncf %699 : vector<1x32xf32> to vector<1x32xbf16>
    %c0_215 = arith.constant 0 : index
    %c1920 = arith.constant 1920 : index
    %701 = vector.load %arg12[%c0_215, %c1920] : memref<1x2048xbf16, #tpu.memory_space<vmem>>, vector<1x32xbf16>
    tpu.vector_store %arg12[%c0_215, %c1920], %700 {strides = array<i32>} : memref<1x2048xbf16, #tpu.memory_space<vmem>>, vector<1x32xbf16>,
    %702 = vector.extract_strided_slice %90 {offsets = [0, 7, 10, 0], sizes = [1, 1, 1, 32], strides = [1, 1, 1, 1]} : vector<1x8x16x32xf32> to vector<1x1x1x32xf32>
    %703 = vector.shape_cast %702 : vector<1x1x1x32xf32> to vector<1x32xf32>
    %704 = vector.extract_strided_slice %90 {offsets = [0, 7, 11, 0], sizes = [1, 1, 1, 32], strides = [1, 1, 1, 1]} : vector<1x8x16x32xf32> to vector<1x1x1x32xf32>
    %705 = vector.shape_cast %704 : vector<1x1x1x32xf32> to vector<1x32xf32>
    %706 = arith.maximumf %703, %705 : vector<1x32xf32>
    %707 = arith.addf %706, %91 : vector<1x32xf32>
    %cst_216 = arith.constant 0.000000e+00 : f32
    %708 = vector.broadcast %cst_216 : f32 to vector<1x32xf32>
    %709 = arith.maximumf %707, %708 : vector<1x32xf32>
    %710 = arith.truncf %709 : vector<1x32xf32> to vector<1x32xbf16>
    %c0_217 = arith.constant 0 : index
    %c1952 = arith.constant 1952 : index
    %711 = vector.load %arg12[%c0_217, %c1952] : memref<1x2048xbf16, #tpu.memory_space<vmem>>, vector<1x32xbf16>
    tpu.vector_store %arg12[%c0_217, %c1952], %710 {strides = array<i32>} : memref<1x2048xbf16, #tpu.memory_space<vmem>>, vector<1x32xbf16>,
    %712 = vector.extract_strided_slice %90 {offsets = [0, 7, 12, 0], sizes = [1, 1, 1, 32], strides = [1, 1, 1, 1]} : vector<1x8x16x32xf32> to vector<1x1x1x32xf32>
    %713 = vector.shape_cast %712 : vector<1x1x1x32xf32> to vector<1x32xf32>
    %714 = vector.extract_strided_slice %90 {offsets = [0, 7, 13, 0], sizes = [1, 1, 1, 32], strides = [1, 1, 1, 1]} : vector<1x8x16x32xf32> to vector<1x1x1x32xf32>
    %715 = vector.shape_cast %714 : vector<1x1x1x32xf32> to vector<1x32xf32>
    %716 = arith.maximumf %713, %715 : vector<1x32xf32>
    %717 = arith.addf %716, %91 : vector<1x32xf32>
    %cst_218 = arith.constant 0.000000e+00 : f32
    %718 = vector.broadcast %cst_218 : f32 to vector<1x32xf32>
    %719 = arith.maximumf %717, %718 : vector<1x32xf32>
    %720 = arith.truncf %719 : vector<1x32xf32> to vector<1x32xbf16>
    %c0_219 = arith.constant 0 : index
    %c1984 = arith.constant 1984 : index
    %721 = vector.load %arg12[%c0_219, %c1984] : memref<1x2048xbf16, #tpu.memory_space<vmem>>, vector<1x32xbf16>
    tpu.vector_store %arg12[%c0_219, %c1984], %720 {strides = array<i32>} : memref<1x2048xbf16, #tpu.memory_space<vmem>>, vector<1x32xbf16>,
    %722 = vector.extract_strided_slice %90 {offsets = [0, 7, 14, 0], sizes = [1, 1, 1, 32], strides = [1, 1, 1, 1]} : vector<1x8x16x32xf32> to vector<1x1x1x32xf32>
    %723 = vector.shape_cast %722 : vector<1x1x1x32xf32> to vector<1x32xf32>
    %724 = vector.extract_strided_slice %90 {offsets = [0, 7, 15, 0], sizes = [1, 1, 1, 32], strides = [1, 1, 1, 1]} : vector<1x8x16x32xf32> to vector<1x1x1x32xf32>
    %725 = vector.shape_cast %724 : vector<1x1x1x32xf32> to vector<1x32xf32>
    %726 = arith.maximumf %723, %725 : vector<1x32xf32>
    %727 = arith.addf %726, %91 : vector<1x32xf32>
    %cst_220 = arith.constant 0.000000e+00 : f32
    %728 = vector.broadcast %cst_220 : f32 to vector<1x32xf32>
    %729 = arith.maximumf %727, %728 : vector<1x32xf32>
    %730 = arith.truncf %729 : vector<1x32xf32> to vector<1x32xbf16>
    %c0_221 = arith.constant 0 : index
    %c2016 = arith.constant 2016 : index
    %731 = vector.load %arg12[%c0_221, %c2016] : memref<1x2048xbf16, #tpu.memory_space<vmem>>, vector<1x32xbf16>
    tpu.vector_store %arg12[%c0_221, %c2016], %730 {strides = array<i32>} : memref<1x2048xbf16, #tpu.memory_space<vmem>>, vector<1x32xbf16>,
    %c0_222 = arith.constant 0 : index
    %c0_223 = arith.constant 0 : index
    %732 = vector.load %arg12[%c0_222, %c0_223] : memref<1x2048xbf16, #tpu.memory_space<vmem>>, vector<1x2048xbf16>
    %c0_224 = arith.constant 0 : index
    %c0_225 = arith.constant 0 : index
    %733 = vector.load %arg6[%c0_224, %c0_225] : memref<2048x128xbf16, #tpu.memory_space<vmem>>, vector<2048x128xbf16>
    %cst_226 = arith.constant dense<0.000000e+00> : vector<1x128xf32>
    %734 = tpu.matmul %732, %733, %cst_226 {dimension_numbers = #tpu.dot_dimension_numbers<[1], [0], [0], [1], [0, 0, 1, 1], [], []>} : vector<1x2048xbf16>, vector<2048x128xbf16>, vector<1x128xf32> -> vector<1x128xf32>
    %c0_227 = arith.constant 0 : index
    %c0_228 = arith.constant 0 : index
    %735 = vector.load %arg7[%c0_227, %c0_228] : memref<1x128xf32, #tpu.memory_space<vmem>>, vector<1x128xf32>
    %736 = arith.addf %734, %735 : vector<1x128xf32>
    %cst_229 = arith.constant 0.000000e+00 : f32
    %737 = vector.broadcast %cst_229 : f32 to vector<1x128xf32>
    %738 = arith.maximumf %736, %737 : vector<1x128xf32>
    %739 = arith.truncf %738 : vector<1x128xf32> to vector<1x128xbf16>
    %c0_230 = arith.constant 0 : index
    %c0_231 = arith.constant 0 : index
    %740 = vector.load %arg8[%c0_230, %c0_231] : memref<128x128xbf16, #tpu.memory_space<vmem>>, vector<128x128xbf16>
    %cst_232 = arith.constant dense<0.000000e+00> : vector<1x128xf32>
    %741 = tpu.matmul %739, %740, %cst_232 {dimension_numbers = #tpu.dot_dimension_numbers<[1], [0], [0], [1], [0, 0, 1, 1], [], []>} : vector<1x128xbf16>, vector<128x128xbf16>, vector<1x128xf32> -> vector<1x128xf32>
    %c0_233 = arith.constant 0 : index
    %c0_234 = arith.constant 0 : index
    %742 = vector.load %arg9[%c0_233, %c0_234] : memref<1x128xf32, #tpu.memory_space<vmem>>, vector<1x128xf32>
    %743 = arith.addf %741, %742 : vector<1x128xf32>
    %c0_235 = arith.constant 0 : index
    %c0_236 = arith.constant 0 : index
    %c0_237 = arith.constant 0 : index
    %744 = vector.load %arg10[%c0_235, %c0_236, %c0_237] : memref<1x1x128xf32, #tpu.memory_space<vmem>>, vector<1x1x128xf32>
    %745 = vector.shape_cast %744 : vector<1x1x128xf32> to vector<1x128xf32>
    %746 = vector.shape_cast %743 : vector<1x128xf32> to vector<1x1x128xf32>
    tpu.vector_store %arg10[%c0_235, %c0_236, %c0_237], %746 {strides = array<i32>} : memref<1x1x128xf32, #tpu.memory_space<vmem>>, vector<1x1x128xf32>,
    return
  }
  func.func @transform_0(%arg0: i32) -> (i32, i32, i32) {
    %c0_i32 = arith.constant 0 : i32
    %c0_i32_0 = arith.constant 0 : i32
    %c0_i32_1 = arith.constant 0 : i32
    return %arg0, %c0_i32, %c0_i32_0 : i32, i32, i32
  }
  func.func @transform_1(%arg0: i32) -> (i32, i32) {
    %c0_i32 = arith.constant 0 : i32
    %c0_i32_0 = arith.constant 0 : i32
    %c0_i32_1 = arith.constant 0 : i32
    return %c0_i32, %c0_i32_0 : i32, i32
  }
  func.func @transform_2(%arg0: i32) -> (i32, i32) {
    %c0_i32 = arith.constant 0 : i32
    %c0_i32_0 = arith.constant 0 : i32
    %c0_i32_1 = arith.constant 0 : i32
    return %c0_i32, %c0_i32_0 : i32, i32
  }
  func.func @transform_3(%arg0: i32) -> (i32, i32, i32) {
    %c0_i32 = arith.constant 0 : i32
    %c0_i32_0 = arith.constant 0 : i32
    %c0_i32_1 = arith.constant 0 : i32
    %c0_i32_2 = arith.constant 0 : i32
    return %c0_i32, %c0_i32_0, %c0_i32_1 : i32, i32, i32
  }
  func.func @transform_4(%arg0: i32) -> (i32, i32) {
    %c0_i32 = arith.constant 0 : i32
    %c0_i32_0 = arith.constant 0 : i32
    %c0_i32_1 = arith.constant 0 : i32
    return %c0_i32, %c0_i32_0 : i32, i32
  }
  func.func @transform_5(%arg0: i32) -> (i32, i32) {
    %c0_i32 = arith.constant 0 : i32
    %c0_i32_0 = arith.constant 0 : i32
    %c0_i32_1 = arith.constant 0 : i32
    return %c0_i32, %c0_i32_0 : i32, i32
  }
  func.func @transform_6(%arg0: i32) -> (i32, i32) {
    %c0_i32 = arith.constant 0 : i32
    %c0_i32_0 = arith.constant 0 : i32
    %c0_i32_1 = arith.constant 0 : i32
    return %c0_i32, %c0_i32_0 : i32, i32
  }
  func.func @transform_7(%arg0: i32) -> (i32, i32) {
    %c0_i32 = arith.constant 0 : i32
    %c0_i32_0 = arith.constant 0 : i32
    %c0_i32_1 = arith.constant 0 : i32
    return %c0_i32, %c0_i32_0 : i32, i32
  }
  func.func @transform_8(%arg0: i32) -> (i32, i32) {
    %c0_i32 = arith.constant 0 : i32
    %c0_i32_0 = arith.constant 0 : i32
    %c0_i32_1 = arith.constant 0 : i32
    return %c0_i32, %c0_i32_0 : i32, i32
  }
  func.func @transform_9(%arg0: i32) -> (i32, i32, i32) {
    %c0_i32 = arith.constant 0 : i32
    %c0_i32_0 = arith.constant 0 : i32
    %c0_i32_1 = arith.constant 0 : i32
    return %arg0, %c0_i32, %c0_i32_0 : i32, i32, i32
  }
}

</mosaic_0001>

<bundles_post_ra>
// kernel: dummy_convnet_forward.1
= control target key start
LH: loop header
LB: loop body
LE: loop exit
PB: predicated region body
PF: predicated region fallthrough
CT: control target
= control target key end

     0   :  { %14 = vsyncpa [#allocation5], 0  ;;  %s12426_s0 = inlined_call_operand.vmem [shape: bf16[2,1024,27], index: 0, kind: input, shape index: {}]   ;;  %s12427_s1 = inlined_call_operand.vmem [shape: bf16[27,16], index: 1, kind: input, shape index: {}]   ;;  %s12428_s2 = inlined_call_operand.vmem [shape: f32[1,16], index: 2, kind: input, shape index: {}]   ;;  %s12429_s3 = inlined_call_operand.vmem [shape: bf16[9,16,32], index: 3, kind: input, shape index: {}]   ;;  %s12430_s4 = inlined_call_operand.vmem [shape: f32[1,32], index: 4, kind: input, shape index: {}]   ;;  %s12431_s5 = inlined_call_operand.vmem [shape: bf16[2048,128], index: 5, kind: input, shape index: {}]   ;;  %s12432_s6 = inlined_call_operand.vmem [shape: f32[1,128], index: 6, kind: input, shape index: {}]   ;;  %s12433_s7 = inlined_call_operand.vmem [shape: bf16[128,128], index: 7, kind: input, shape index: {}]   ;;  %s12434_s8 = inlined_call_operand.vmem [shape: f32[1,128], index: 8, kind: input, shape index: {}]   ;;  %s12435_s9 = inlined_call_operand.hbm [shape: f32[2,1,128], index: 9, kind: output, shape index: {}]  }
   0x1   :  { %16 = vsyncpa [#allocation5 + $0x1], 0  ;;  %s10132_s30 = smov 0   ;;  %s10134_s10 = smov 0  }
   0x2   :  { %s10136_s11 = smov 0   ;;  %s10138_s12 = smov 0  }
   0x3 LB: > { %s10153_s13 = sadd.s32 4294967295, %s10075_s12   ;;  %s8384_s14 = sadd.s32 4294967294, %s10075_s12   ;;  %s10075_s12 = sphi %s10138_s12, %s12566_s12   ;;  %s10071_s11 = sphi %s10136_s11, %s12565_s11   ;;  %s10067_s10 = sphi %s10134_s10, %s12564_s10   ;;  %s10063_s30 = sphi %s10132_s30, %s12563_s30  }
   0x4   : > { %s10157_s15 = sadd.s32 1, %s10075_s12   ;;  %s223_s16 = sadd.s32 1, %s10071_s11 }
   0x5   : > { %s220_s17 = ssub.s32 %s10075_s12, %s10157_s15  ;;  %p233_p0 = scmp.ne.s32.totalorder %s10071_s11, %s10067_s10 }
   0x6   : > { %p221_p1 = scmp.eq.s32.totalorder %s220_s17, 0  ;;  %p234_p2 = scmp.eq.s32.totalorder %s10153_s13, 1 }
   0x7   : > { %p239_p3 = scmp.ne.s32.totalorder %s10067_s10, %s10063_s30  ;;  %p240_p4 = scmp.eq.s32.totalorder %s8384_s14, 1 }
   0x8   : > { %s10168_s18 = scalar_select %p221_p1, %s10071_s11, %s223_s16  }
   0x9   : > { %p10170_p5 = por %p234_p2, %p233_p0  ;;  %p10174_p6 = por %p240_p4, %p239_p3 }
   0xa   : > { %p8387_p7 = scmp.ge.s32.totalorder %s10075_s12, 1  ;;  %p290_p8 = scmp.lt.s32.totalorder %s10075_s12, 3 }
   0xc   : > { %p291_p9 = pnand %p8387_p7, %p290_p8 }
   0xe   : > { %294 = sbr.rel (%p291_p9) target bundleno = 2462 (0x99e), region = 56 }
  0x13   : > { %v8652_v0 = vld [vmem:[%s12427_s1 + $0x8] sm:$0xf]  ;;  %v9766_v1 = vld [vmem:[%s12427_s1 + $0x8] sm:$0x30]  ;;  %vm987_vm0 = vcmask 1044480   ;;  %vm988_vm1 = vcmask 1045504   ;;  %s8325_s14 = scalar_lea.hbm %s12435_s9, %s10153_s13 }
  0x14   : > { %v8653_v2 = vor.u32 %v9766_v1, %v8652_v0  ;;  %p325_p10 = scmp.lt.s32.totalorder %s10153_s13, 1  ;;  %v10077_v3 = vmov 65535   ;;  %v9765_v7 = vld [vmem:[%s12427_s1] sm:$0xff]  ;;  %vm794_vm2 = vcmask 220160   ;;  %vm1498_vm3 = vcmask 125955   ;;  %s10079_s21 = smov 32  }
  0x15   : > { %v989_v4 = vsel %vm987_vm0, 4294967295, %v10077_v3  ;;  %vm1499_vm4 = vsmask.f32 7950  ;;  %vm1550_vm6 = vsmask.f32 256  ;;  %vm1549_vm7 = vcmask 122880  }
  0x16   : > { %v990_v5 = vsel %vm988_vm1, %v989_v4, 0  ;;  %s326_s25 = scalar_select %p325_p10, %s10153_s13, 1  ;;  %vm10478_vm5 = vmand %vm1498_vm3, %vm1499_vm4  ;;  %vm1487_vm9 = vcmask 125952   ;;  %vm1712_vm10 = vsmask.f32 4368  ;;  %vm2157_vm14 = vcmask 130048  }
  0x17   : > { %v992_v6 = vand.u32 %v8653_v2, %v990_v5  ;;  %vm10489_vm8 = vmand %vm1549_vm7, %vm1550_vm6  ;;  %vm2534_vm11 = vsmask.f32 3328  ;;  %vm2535_vm12 = vsmask.f32 7440  ;;  %s12438_s22 = smov 64   ;;  %vm6256_vm0 = vcmask 253952  }
  0x18   : > { %s9700_s26 = sshll.u32 %s326_s25, 9  ;;  %vm10554_vm13 = vmor %vm1550_vm6, %vm1712_vm10  ;;  %vm6287_vm4 = vcmask 778752   ;;  %vm6299_vm7 = vcmask 1041152   ;;  %s12561_s28 = smov 96  }
  0x19   : > { %1000 = vmatpush.bf16.msra.mxu0 %v992_v6  ;;  %s10194_s16 = scalar_lea.vmem %s12426_s0, %s9700_s26  ;;  %9960 = vmatpush.bf16.msra.mxu1 %v992_v6  ;;  %vm10566_vm15 = vmor %vm2534_vm11, %vm2535_vm12  ;;  %s12562_s24 = smov 64  }
  0x1a   : > { %9961 = vmatpush.bf16.msra.mxu3 %v992_v6  ;;  %v9701_v8 = vld [vmem:[%s10194_s16] sm:$0xff]  ;;  %v9702_v9 = vld [vmem:[%s10194_s16 + $0x8] sm:$0xff]  ;;  %v9703_v10 = vld [vmem:[%s10194_s16 + $0x10] sm:$0xff]  ;;  %s323_s26 = sand.u32 1, %s10067_s10   ;;  %s10033_s29 = scalar_lea.hbm %s12435_s9, 2 }
  0x1b   : > { %v9704_v11 = vld [vmem:[%s10194_s16 + $0x18] sm:$0xff]  ;;  %v9705_v12 = vld [vmem:[%s10194_s16 + $0x20] sm:$0xff]  ;;  %v9706_v13 = vld [vmem:[%s10194_s16 + $0x28] sm:$0xff] }
  0x1c   : > { %v9707_v14 = vld [vmem:[%s10194_s16 + $0x30] sm:$0xff]  ;;  %v9708_v15 = vld [vmem:[%s10194_s16 + $0x38] sm:$0xff]  ;;  %v9709_v16 = vld [vmem:[%s10194_s16 + $0x40] sm:$0xff] }
  0x1d   : > { %1001 = vmatpush.bf16.msra.mxu0 %v9765_v7  ;;  %9962 = vmatpush.bf16.msra.mxu1 %v9765_v7  ;;  %v9710_v19 = vld [vmem:[%s10194_s16 + $0x48] sm:$0xff]  ;;  %v9711_v22 = vld [vmem:[%s10194_s16 + $0x50] sm:$0xff]  ;;  %v9712_v25 = vld [vmem:[%s10194_s16 + $0x58] sm:$0xff] }
  0x1e   : > { %9963 = vmatpush.bf16.msra.mxu3 %v9765_v7  ;;  %v9713_v28 = vld [vmem:[%s10194_s16 + $0x60] sm:$0xff]  ;;  %v9714_v31 = vld [vmem:[%s10194_s16 + $0x68] sm:$0xff]  ;;  %v9715_v34 = vld [vmem:[%s10194_s16 + $0x70] sm:$0xff] }
  0x1f   : > { %v9716_v37 = vld [vmem:[%s10194_s16 + $0x78] sm:$0xff]  ;;  %v9717_v40 = vld [vmem:[%s10194_s16 + $0x80] sm:$0xff]  ;;  %v9718_v43 = vld [vmem:[%s10194_s16 + $0x88] sm:$0xff] }
  0x20   : > { %8654 = vmatmul.msk.bf16.vlgmr.msra.gmra.mxu0 %vm794_vm2, %v9701_v8  ;;  %v9719_v46 = vld [vmem:[%s10194_s16 + $0x90] sm:$0xff]  ;;  %v9720_v49 = vld [vmem:[%s10194_s16 + $0x98] sm:$0xff]  ;;  %v9721_v52 = vld [vmem:[%s10194_s16 + $0xa0] sm:$0xff] }
  0x21   : > { %v9722_v55 = vld [vmem:[%s10194_s16 + $0xa8] sm:$0xff]  ;;  %v9723_v58 = vld [vmem:[%s10194_s16 + $0xb0] sm:$0xff]  ;;  %v9724_v61 = vld [vmem:[%s10194_s16 + $0xb8] sm:$0xff] }
  0x22   : > { %v9725_v0 = vld [vmem:[%s10194_s16 + $0xc0] sm:$0xff]  ;;  %v9726_v3 = vld [vmem:[%s10194_s16 + $0xc8] sm:$0xff]  ;;  %v9727_v6 = vld [vmem:[%s10194_s16 + $0xd0] sm:$0xff] }
  0x23   : > { %vm11646_vm1 = vmand %vm6256_vm0, %vm1550_vm6 }
  0x30   : > { %8655 = vmatmul.msk.bf16.gmra.mxu0 %vm794_vm2, %v9702_v9  ;;  %v9728_v9 = vld [vmem:[%s10194_s16 + $0xd8] sm:$0xff] }
  0x40   : > { %8656 = vmatmul.msk.bf16.gmra.mxu0 %vm794_vm2, %v9703_v10 }
  0x50   : > { %8657 = vmatmul.msk.bf16.gmra.mxu0 %vm794_vm2, %v9704_v11 }
  0x60   : > { %8658 = vmatmul.msk.bf16.gmra.mxu0 %vm794_vm2, %v9705_v12  ;;  %v9729_v12 = vld [vmem:[%s10194_s16 + $0xe0] sm:$0xff] }
  0x70   : > { %8659 = vmatmul.msk.bf16.gmra.mxu0 %vm794_vm2, %v9706_v13 }
  0x80   : > { %8660 = vmatmul.msk.bf16.gmra.mxu0 %vm794_vm2, %v9707_v14 }
  0x90   : > { %8661 = vmatmul.msk.bf16.gmra.mxu0 %vm794_vm2, %v9708_v15  ;;  %v9730_v15 = vld [vmem:[%s10194_s16 + $0xe8] sm:$0xff] }
  0x9d   : > { %v10213_v17 = vpop.f32.mrf.mxu0 }
  0xa0   : > { %8662 = vmatmul.msk.bf16.gmra.mxu0 %vm794_vm2, %v9709_v16 }
  0xa5   : > { %v10216_v18 = vpop.f32.mrf.mxu0 }
  0xad   : > { %v10219_v20 = vpop.f32.mrf.mxu0 }
  0xb0   : > { %8663 = vmatmul.msk.bf16.gmra.mxu0 %vm794_vm2, %v9710_v19 }
  0xb5   : > { %v10222_v21 = vpop.f32.mrf.mxu0 }
  0xbd   : > { %v10225_v23 = vpop.f32.mrf.mxu0 }
  0xc0   : > { %8664 = vmatmul.msk.bf16.gmra.mxu0 %vm794_vm2, %v9711_v22  ;;  %v9731_v22 = vld [vmem:[%s10194_s16 + $0xf0] sm:$0xff] }
  0xc5   : > { %v10228_v24 = vpop.f32.mrf.mxu0 }
  0xcd   : > { %v10231_v26 = vpop.f32.mrf.mxu0 }
  0xd0   : > { %8665 = vmatmul.msk.bf16.gmra.mxu0 %vm794_vm2, %v9712_v25 }
  0xd5   : > { %v10234_v27 = vpop.f32.mrf.mxu0 }
  0xdd   : > { %v10237_v29 = vpop.f32.mrf.mxu0 }
  0xe0   : > { %8666 = vmatmul.msk.bf16.gmra.mxu0 %vm794_vm2, %v9713_v28 }
  0xe5   : > { %v10240_v30 = vpop.f32.mrf.mxu0 }
  0xe6   : > { %12441 = vst [vmem:[#allocation7_spill] sm:$0xff] %v10240_v30 }
  0xed   : > { %v10243_v32 = vpop.f32.mrf.mxu0 }
  0xee   : > { %12442 = vst [vmem:[#allocation8_spill] sm:$0xff] %v10243_v32  ;;  %v1591_v32 = vld [vmem:[#allocation2 + $0xec] sm:$0x1] }
  0xf0   : > { %8667 = vmatmul.msk.bf16.gmra.mxu0 %vm794_vm2, %v9714_v31  ;;  %v9732_v31 = vld [vmem:[%s10194_s16 + $0xf8] sm:$0xff] }
  0xf5   : > { %v10246_v33 = vpop.f32.mrf.mxu0 }
  0xf6   : > { %12443 = vst [vmem:[#allocation9_spill] sm:$0xff] %v10246_v33 }
  0xfd   : > { %v10249_v35 = vpop.f32.mrf.mxu0 }
  0xfe   : > { %12444 = vst [vmem:[#allocation10_spill] sm:$0xff] %v10249_v35  ;;  %v10503_v35 = vld [vmem:[%s12428_s2] ss:$0 sm:$0xff] }
 0x100   : > { %8668 = vmatmul.msk.bf16.gmra.mxu0 %vm794_vm2, %v9715_v34 }
 0x105   : > { %v10252_v36 = vpop.f32.mrf.mxu0 }
 0x106   : > { %12445 = vst [vmem:[#allocation11_spill] sm:$0xff] %v10252_v36 }
 0x10d   : > { %v10255_v38 = vpop.f32.mrf.mxu0 }
 0x10e   : > { %12446 = vst [vmem:[#allocation12_spill] sm:$0xff] %v10255_v38 }
 0x110   : > { %8669 = vmatmul.msk.bf16.gmra.mxu0 %vm794_vm2, %v9716_v37 }
 0x115   : > { %v10258_v39 = vpop.f32.mrf.mxu0 }
 0x116   : > { %12447 = vst [vmem:[#allocation13_spill] sm:$0xff] %v10258_v39 }
 0x11d   : > { %v10261_v41 = vpop.f32.mrf.mxu0 }
 0x11e   : > { %12448 = vst [vmem:[#allocation14_spill] sm:$0xff] %v10261_v41  ;;  %v9746_v41 = vld [vmem:[%s10194_s16 + $0x168] sm:$0xff] }
 0x120   : > { %8670 = vmatmul.msk.bf16.gmra.mxu0 %vm794_vm2, %v9717_v40  ;;  %v9733_v40 = vld [vmem:[%s10194_s16 + $0x100] sm:$0xff] }
 0x125   : > { %v10264_v42 = vpop.f32.mrf.mxu0 }
 0x126   : > { %12449 = vst [vmem:[#allocation15_spill] sm:$0xff] %v10264_v42  ;;  %v9763_v42 = vld [vmem:[%s10194_s16 + $0x1f0] sm:$0xff] }
 0x12d   : > { %v10267_v44 = vpop.f32.mrf.mxu0 }
 0x12e   : > { %12450 = vst [vmem:[#allocation16_spill] sm:$0xff] %v10267_v44  ;;  %v9744_v44 = vld [vmem:[%s10194_s16 + $0x158] sm:$0xff] }
 0x130   : > { %8671 = vmatmul.msk.bf16.gmra.mxu0 %vm794_vm2, %v9718_v43 }
 0x135   : > { %v10270_v45 = vpop.f32.mrf.mxu0 }
 0x136   : > { %12451 = vst [vmem:[#allocation17_spill] sm:$0xff] %v10270_v45  ;;  %v9761_v45 = vld [vmem:[%s10194_s16 + $0x1e0] sm:$0xff] }
 0x137   : > { %8714 = vmatmul.msk.bf16.vlgmr.msra.gmra.mxu1 %vm794_vm2, %v9761_v45 }
 0x13d   : > { %v10273_v47 = vpop.f32.mrf.mxu0 }
 0x13e   : > { %12452 = vst [vmem:[#allocation18_spill] sm:$0xff] %v10273_v47 }
 0x140   : > { %8672 = vmatmul.msk.bf16.gmra.mxu0 %vm794_vm2, %v9719_v46 }
 0x145   : > { %v10276_v48 = vpop.f32.mrf.mxu0 }
 0x146   : > { %12453 = vst [vmem:[#allocation19_spill] sm:$0xff] %v10276_v48 }
 0x14d   : > { %v10279_v50 = vpop.f32.mrf.mxu0 }
 0x14e   : > { %12454 = vst [vmem:[#allocation20_spill] sm:$0xff] %v10279_v50 }
 0x150   : > { %8673 = vmatmul.msk.bf16.gmra.mxu0 %vm794_vm2, %v9720_v49  ;;  %v9734_v49 = vld [vmem:[%s10194_s16 + $0x108] sm:$0xff] }
 0x155   : > { %v10282_v51 = vpop.f32.mrf.mxu0 }
 0x156   : > { %12455 = vst [vmem:[#allocation21_spill] sm:$0xff] %v10282_v51 }
 0x15d   : > { %v10285_v53 = vpop.f32.mrf.mxu0 }
 0x160   : > { %8674 = vmatmul.msk.bf16.gmra.mxu0 %vm794_vm2, %v9721_v52 }
 0x165   : > { %v10288_v54 = vpop.f32.mrf.mxu0 }
 0x16d   : > { %v10291_v56 = vpop.f32.mrf.mxu0 }
 0x170   : > { %8675 = vmatmul.msk.bf16.gmra.mxu0 %vm794_vm2, %v9722_v55 }
 0x175   : > { %v10294_v57 = vpop.f32.mrf.mxu0 }
 0x17d   : > { %v10297_v59 = vpop.f32.mrf.mxu0 }
 0x180   : > { %8676 = vmatmul.msk.bf16.gmra.mxu0 %vm794_vm2, %v9723_v58  ;;  %v9735_v58 = vld [vmem:[%s10194_s16 + $0x110] sm:$0xff] }
 0x185   : > { %v10300_v60 = vpop.f32.mrf.mxu0 }
 0x18d   : > { %v10303_v62 = vpop.f32.mrf.mxu0 }
 0x190   : > { %8677 = vmatmul.msk.bf16.gmra.mxu0 %vm794_vm2, %v9724_v61 }
 0x195   : > { %v10306_v63 = vpop.f32.mrf.mxu0 }
 0x19d   : > { %v10309_v1 = vpop.f32.mrf.mxu0 }
 0x1a0   : > { %8678 = vmatmul.msk.bf16.gmra.mxu0 %vm794_vm2, %v9725_v0 }
 0x1a5   : > { %v10312_v2 = vpop.f32.mrf.mxu0 }
 0x1ad   : > { %v10315_v4 = vpop.f32.mrf.mxu0 }
 0x1b0   : > { %8679 = vmatmul.msk.bf16.gmra.mxu0 %vm794_vm2, %v9726_v3  ;;  %v9736_v3 = vld [vmem:[%s10194_s16 + $0x118] sm:$0xff] }
 0x1b5   : > { %v10318_v5 = vpop.f32.mrf.mxu0 }
 0x1bd   : > { %v10321_v7 = vpop.f32.mrf.mxu0 }
 0x1c0   : > { %8680 = vmatmul.msk.bf16.gmra.mxu0 %vm794_vm2, %v9727_v6 }
 0x1c5   : > { %v10324_v8 = vpop.f32.mrf.mxu0 }
 0x1cd   : > { %v10327_v10 = vpop.f32.mrf.mxu0 }
 0x1d0   : > { %8681 = vmatmul.msk.bf16.gmra.mxu0 %vm794_vm2, %v9728_v9 }
 0x1d5   : > { %v10330_v11 = vpop.f32.mrf.mxu0 }
 0x1dd   : > { %v10333_v13 = vpop.f32.mrf.mxu0 }
 0x1e0   : > { %8682 = vmatmul.msk.bf16.gmra.mxu0 %vm794_vm2, %v9729_v12  ;;  %v9737_v12 = vld [vmem:[%s10194_s16 + $0x120] sm:$0xff] }
 0x1e5   : > { %v10336_v14 = vpop.f32.mrf.mxu0 }
 0x1e6   : > { %12456 = vst [vmem:[#allocation22_spill] sm:$0xff] %v10336_v14 }
 0x1ed   : > { %v10339_v16 = vpop.f32.mrf.mxu0 }
 0x1ee   : > { %12457 = vst [vmem:[#allocation23_spill] sm:$0xff] %v10339_v16 }
 0x1f0   : > { %8683 = vmatmul.msk.bf16.gmra.mxu0 %vm794_vm2, %v9730_v15 }
 0x1f5   : > { %v10342_v19 = vpop.f32.mrf.mxu0 }
 0x1f6   : > { %12458 = vst [vmem:[#allocation24_spill] sm:$0xff] %v10342_v19 }
 0x1fd   : > { %v10345_v25 = vpop.f32.mrf.mxu0 }
 0x1fe   : > { %12459 = vst [vmem:[#allocation25_spill] sm:$0xff] %v10345_v25 }
 0x200   : > { %8684 = vmatmul.msk.bf16.gmra.mxu0 %vm794_vm2, %v9731_v22 }
 0x205   : > { %v10348_v28 = vpop.f32.mrf.mxu0 }
 0x206   : > { %12460 = vst [vmem:[#allocation26_spill] sm:$0xff] %v10348_v28  ;;  %v9750_v28 = vld [vmem:[%s10194_s16 + $0x188] sm:$0xff] }
 0x20d   : > { %v10351_v34 = vpop.f32.mrf.mxu0 }
 0x20e   : > { %12461 = vst [vmem:[#allocation27_spill] sm:$0xff] %v10351_v34  ;;  %v9749_v34 = vld [vmem:[%s10194_s16 + $0x180] sm:$0xff] }
 0x210   : > { %8685 = vmatmul.msk.bf16.gmra.mxu0 %vm794_vm2, %v9732_v31  ;;  %v9738_v31 = vld [vmem:[%s10194_s16 + $0x128] sm:$0xff] }
 0x215   : > { %v10354_v37 = vpop.f32.mrf.mxu0 }
 0x216   : > { %12462 = vst [vmem:[#allocation28_spill] sm:$0xff] %v10354_v37  ;;  %v9748_v37 = vld [vmem:[%s10194_s16 + $0x178] sm:$0xff] }
 0x21d   : > { %v10357_v43 = vpop.f32.mrf.mxu0 }
 0x21e   : > { %12463 = vst [vmem:[#allocation29_spill] sm:$0xff] %v10357_v43 }
 0x220   : > { %8686 = vmatmul.msk.bf16.gmra.mxu0 %vm794_vm2, %v9733_v40 }
 0x225   : > { %v10360_v46 = vpop.f32.mrf.mxu0 }
 0x226   : > { %12464 = vst [vmem:[#allocation30_spill] sm:$0xff] %v10360_v46 }
 0x22d   : > { %v10363_v52 = vpop.f32.mrf.mxu0 }
 0x22e   : > { %12465 = vst [vmem:[#allocation31_spill] sm:$0xff] %v10363_v52 }
 0x230   : > { %8687 = vmatmul.msk.bf16.gmra.mxu0 %vm794_vm2, %v9734_v49 }
 0x235   : > { %v10366_v55 = vpop.f32.mrf.mxu0 }
 0x236   : > { %12466 = vst [vmem:[#allocation32_spill] sm:$0xff] %v10366_v55  ;;  %v9762_v55 = vld [vmem:[%s10194_s16 + $0x1e8] sm:$0xff] }
 0x237   : > { %8715 = vmatmul.msk.bf16.vlgmr.msra.gmra.mxu3 %vm794_vm2, %v9762_v55  ;;  %v9764_v55 = vld [vmem:[%s10194_s16 + $0x1f8] sm:$0xff] }
 0x23d   : > { %v10369_v61 = vpop.f32.mrf.mxu0 }
 0x23e   : > { %12467 = vst [vmem:[#allocation33_spill] sm:$0xff] %v10369_v61 }
 0x240   : > { %8688 = vmatmul.msk.bf16.gmra.mxu0 %vm794_vm2, %v9735_v58  ;;  %v9739_v58 = vld [vmem:[%s10194_s16 + $0x130] sm:$0xff] }
 0x245   : > { %v10372_v0 = vpop.f32.mrf.mxu0 }
 0x246   : > { %12468 = vst [vmem:[#allocation34_spill] sm:$0xff] %v10372_v0 }
 0x247   : > { %8716 = vmatmul.msk.bf16.gmra.mxu3 %vm794_vm2, %v9763_v42  ;;  %v9747_v42 = vld [vmem:[%s10194_s16 + $0x170] sm:$0xff] }
 0x24d   : > { %v10375_v6 = vpop.f32.mrf.mxu0 }
 0x24e   : > { %12469 = vst [vmem:[#allocation35_spill] sm:$0xff] %v10375_v6 }
 0x250   : > { %8689 = vmatmul.msk.bf16.gmra.mxu0 %vm794_vm2, %v9736_v3 }
 0x255   : > { %v10378_v9 = vpop.f32.mrf.mxu0 }
 0x256   : > { %12470 = vst [vmem:[#allocation36_spill] sm:$0xff] %v10378_v9 }
 0x257   : > { %8717 = vmatmul.msk.bf16.gmra.mxu3 %vm794_vm2, %v9764_v55 }
 0x25d   : > { %v10381_v15 = vpop.f32.mrf.mxu0 }
 0x260   : > { %8690 = vmatmul.msk.bf16.gmra.mxu0 %vm794_vm2, %v9737_v12  ;;  %v9740_v12 = vld [vmem:[%s10194_s16 + $0x138] sm:$0xff] }
 0x265   : > { %v10384_v22 = vpop.f32.mrf.mxu0 }
 0x26d   : > { %v10387_v40 = vpop.f32.mrf.mxu0 }
 0x270   : > { %8691 = vmatmul.msk.bf16.gmra.mxu0 %vm794_vm2, %v9738_v31  ;;  %v9741_v31 = vld [vmem:[%s10194_s16 + $0x140] sm:$0xff] }
 0x275   : > { %v10390_v49 = vpop.f32.mrf.mxu0 }
 0x27d   : > { %v10393_v3 = vpop.f32.mrf.mxu0 }
 0x280   : > { %8692 = vmatmul.msk.bf16.gmra.mxu0 %vm794_vm2, %v9739_v58  ;;  %v9742_v58 = vld [vmem:[%s10194_s16 + $0x148] sm:$0xff] }
 0x285   : > { %v10396_v51 = vpop.f32.mrf.mxu0 }
 0x28d   : > { %v10399_v9 = vpop.f32.mrf.mxu0 }
 0x290   : > { %8693 = vmatmul.msk.bf16.gmra.mxu0 %vm794_vm2, %v9740_v12  ;;  %v9743_v12 = vld [vmem:[%s10194_s16 + $0x150] sm:$0xff] }
 0x295   : > { %v10402_v50 = vpop.f32.mrf.mxu0 }
 0x29d   : > { %v10405_v6 = vpop.f32.mrf.mxu0 }
 0x2a0   : > { %8694 = vmatmul.msk.bf16.gmra.mxu0 %vm794_vm2, %v9741_v31 }
 0x2a5   : > { %v10408_v48 = vpop.f32.mrf.mxu0 }
 0x2ad   : > { %v10411_v0 = vpop.f32.mrf.mxu0 }
 0x2b0   : > { %8695 = vmatmul.msk.bf16.gmra.mxu0 %vm794_vm2, %v9742_v58 }
 0x2b5   : > { %v10414_v47 = vpop.f32.mrf.mxu0 }
 0x2bd   : > { %v10417_v61 = vpop.f32.mrf.mxu0 }
 0x2c0   : > { %8696 = vmatmul.msk.bf16.gmra.mxu0 %vm794_vm2, %v9743_v12  ;;  %v9745_v12 = vld [vmem:[%s10194_s16 + $0x160] sm:$0xff] }
 0x2c5   : > { %v10422_v31 = vpop.f32.mrf.mxu0 }
 0x2cd   : > { %v10427_v58 = vpop.f32.mrf.mxu0 }
 0x2d0   : > { %8697 = vmatmul.msk.bf16.gmra.mxu0 %vm794_vm2, %v9744_v44 }
 0x2d5   : > { %v10430_v52 = vpop.f32.mrf.mxu0 }
 0x2dd   : > { %v10435_v45 = vpop.f32.mrf.mxu0 }
 0x2e0   : > { %8698 = vmatmul.msk.bf16.gmra.mxu0 %vm794_vm2, %v9745_v12 }
 0x2e5   : > { %v10438_v46 = vpop.f32.mrf.mxu0 }
 0x2e6   : > { %12471 = vst [vmem:[#allocation37_spill] sm:$0xff] %v10438_v46 }
 0x2ed   : > { %v10443_v44 = vpop.f32.mrf.mxu0 }
 0x2ee   : > { %12472 = vst [vmem:[#allocation38_spill] sm:$0xff] %v10443_v44 }
 0x2f0   : > { %8699 = vmatmul.msk.bf16.gmra.mxu0 %vm794_vm2, %v9746_v41 }
 0x2f5   : > { %v10446_v43 = vpop.f32.mrf.mxu0 }
 0x2f6   : > { %12473 = vst [vmem:[#allocation39_spill] sm:$0xff] %v10446_v43  ;;  %v1308_v43 = vpop.f32.mrf.mxu3 }
 0x2fd   : > { %v10449_v39 = vpop.f32.mrf.mxu0 }
 0x2fe   : > { %12474 = vst [vmem:[#allocation40_spill] sm:$0xff] %v10449_v39  ;;  %v1310_v19 = vpop.f32.mrf.mxu3 }
 0x300   : > { %8700 = vmatmul.msk.bf16.gmra.mxu0 %vm794_vm2, %v9747_v42 }
 0x305   : > { %v10452_v12 = vpop.f32.mrf.mxu0 }
 0x306   : > { %12475 = vst [vmem:[#allocation41_spill] sm:$0xff] %v10452_v12 }
 0x30d   : > { %v10455_v38 = vpop.f32.mrf.mxu0 }
 0x30e   : > { %12476 = vst [vmem:[#allocation42_spill] sm:$0xff] %v10455_v38  ;;  %v9751_v38 = vld [vmem:[%s10194_s16 + $0x190] sm:$0xff] }
 0x310   : > { %8701 = vmatmul.msk.bf16.gmra.mxu0 %vm794_vm2, %v9748_v37 }
 0x315   : > { %v10458_v55 = vpop.f32.mrf.mxu0 }
 0x316   : > { %12477 = vst [vmem:[#allocation43_spill] sm:$0xff] %v10458_v55 }
 0x31d   : > { %v10461_v36 = vpop.f32.mrf.mxu0 }
 0x31e   : > { %12478 = vst [vmem:[#allocation44_spill] sm:$0xff] %v10461_v36 }
 0x320   : > { %8702 = vmatmul.msk.bf16.gmra.mxu0 %vm794_vm2, %v9749_v34 }
 0x325   : > { %v10464_v41 = vpop.f32.mrf.mxu0 }
 0x326   : > { %12479 = vst [vmem:[#allocation45_spill] sm:$0xff] %v10464_v41  ;;  %v1537_v41 = vld [vmem:[#allocation2 + $0xd0] sm:$0x8] }
 0x32d   : > { %v10467_v39 = vpop.f32.mrf.mxu0 }
 0x32e   : > { %12480 = vst [vmem:[#allocation46_spill] sm:$0xff] %v10467_v39 }
 0x330   : > { %8703 = vmatmul.msk.bf16.gmra.mxu0 %vm794_vm2, %v9750_v28  ;;  %v1538_v28 = vsel %vm10478_vm5, 0, %v1537_v41  ;;  %v1303_v41 = vpop.f32.mrf.mxu1 }
 0x331   : > { %1539 = vst [vmem:[#allocation2 + $0xd0] sm:$0x8] %v1538_v28  ;;  %v9753_v28 = vld [vmem:[%s10194_s16 + $0x1a0] sm:$0xff] }
 0x335   : > { %v10470_v42 = vpop.f32.mrf.mxu0 }
 0x336   : > { %12481 = vst [vmem:[#allocation47_spill] sm:$0xff] %v10470_v42  ;;  %v9752_v42 = vld [vmem:[%s10194_s16 + $0x198] sm:$0xff] }
 0x338   : > { %v1305_v33 = vpop.f32.mrf.mxu1 }
 0x33d   : > { %v10473_v12 = vpop.f32.mrf.mxu0 }
 0x33e   : > { %12482 = vst [vmem:[#allocation48_spill] sm:$0xff] %v10473_v12  ;;  %v1588_v12 = vld [vmem:[#allocation2 + $0xdc] sm:$0x1] }
 0x33f   : > { %v1589_v36 = vsel %vm10489_vm8, 0, %v1588_v12 }
 0x340   : > { %8704 = vmatmul.msk.bf16.gmra.mxu0 %vm794_vm2, %v9751_v38  ;;  %1590 = vst [vmem:[#allocation2 + $0xdc] sm:$0x1] %v1589_v36 }
 0x345   : > { %v10476_v37 = vpop.f32.mrf.mxu0 }
 0x346   : > { %12483 = vst [vmem:[#allocation49_spill] sm:$0xff] %v10476_v37 }
 0x34d   : > { %v10485_v39 = vpop.f32.mrf.mxu0 }
 0x34e   : > { %12486 = vst [vmem:[#allocation50_spill] sm:$0xff] %v10485_v39 }
 0x350   : > { %8705 = vmatmul.msk.bf16.gmra.mxu0 %vm794_vm2, %v9752_v42  ;;  %v1347_v42 = vmax.f32 %v10285_v53, %v10381_v15 }
 0x355   : > { %v10493_v37 = vpop.f32.mrf.mxu0 }
 0x356   : > { %12489 = vst [vmem:[#allocation51_spill] sm:$0xff] %v10493_v37  ;;  %v1540_v37 = vld [vmem:[#allocation2 + $0xe0] sm:$0x8] }
 0x357   : > { %v1541_v36 = vsel %vm10478_vm5, 0, %v1540_v37  ;;  %v9754_v37 = vld [vmem:[%s10194_s16 + $0x1a8] sm:$0xff] }
 0x358   : > { %1542 = vst [vmem:[#allocation2 + $0xe0] sm:$0x8] %v1541_v36  ;;  %v1592_v36 = vsel %vm10489_vm8, 0, %v1591_v32 }
 0x359   : > { %1593 = vst [vmem:[#allocation2 + $0xec] sm:$0x1] %v1592_v36 }
 0x35d   : > { %v1223_v55 = vpop.f32.mrf.mxu0 }
 0x35e   : > { %v1379_v39 = vmax.f32 %v1223_v55, %v1303_v41  ;;  %v1348_v55 = vmax.f32 %v10288_v54, %v10384_v22  ;;  %v9785_v22 = vld [vmem:[%s12429_s3 + $0x10] sm:$0xff] }
 0x35f   : > { %3033 = vmatpush.bf16.msrb.mxu3 %v9785_v22 }
 0x360   : > { %v1411_v25 = vmax.f32 %v1347_v42, %v1379_v39  ;;  %8706 = vmatmul.msk.bf16.gmra.mxu0 %vm794_vm2, %v9753_v28 }
 0x362   : > { %v1447_v12 = vadd.f32 %v10503_v35, %v1411_v25 }
 0x364   : > { %v1479_v53 = vmax.f32 %v1447_v12, 0.0  ;;  %v1349_v12 = vmax.f32 %v10291_v56, %v10387_v40  ;;  %v1350_v56 = vmax.f32 %v10294_v57, %v10390_v49  ;;  %v9755_v57 = vld [vmem:[%s10194_s16 + $0x1b0] sm:$0xff] }
 0x365   : > { %v1225_v15 = vpop.f32.mrf.mxu0 }
 0x366   : > { %v1624_v41 = vpack.c.bf16 %v1479_v53, %v1479_v53  ;;  %v1380_v39 = vmax.f32 %v1225_v15, %v1305_v33 }
 0x368   : > { %1656 = vst.msk [vmem:[#allocation2 + $0xd4] sm:$0xf] %vm1487_vm9, %v1624_v41  ;;  %v1412_v28 = vmax.f32 %v1348_v55, %v1380_v39  ;;  %v1313_v55 = vpop.f32.mrf.mxu3 }
 0x36a   : > { %v1448_v42 = vadd.f32 %v10503_v35, %v1412_v28  ;;  %v1351_v28 = vmax.f32 %v10297_v59, %v10393_v3 }
 0x36c   : > { %v1480_v44 = vmax.f32 %v1448_v42, 0.0 }
 0x36d   : > { %v1228_v25 = vpop.f32.mrf.mxu0 }
 0x36e   : > { %v1625_v16 = vpack.c.bf16 %v1480_v44, %v1480_v44  ;;  %v1381_v54 = vmax.f32 %v1228_v25, %v1308_v43 }
 0x370   : > { %1657 = vst.msk [vmem:[#allocation2 + $0xd8] sm:$0xf] %vm1487_vm9, %v1625_v16  ;;  %v1413_v33 = vmax.f32 %v1349_v12, %v1381_v54  ;;  %8707 = vmatmul.msk.bf16.gmra.mxu0 %vm794_vm2, %v9754_v37  ;;  %v10078_v16 = vmov 0   ;;  %v1315_v36 = vpop.f32.mrf.mxu3 }
 0x371   : > { %1488 = vst.msk [vmem:[#allocation2] sm:$0xf] %vm1487_vm9, %v10078_v16 }
 0x372   : > { %v1449_v53 = vadd.f32 %v10503_v35, %v1413_v33  ;;  %1489 = vst.msk [vmem:[#allocation2 + $0x4] sm:$0xf] %vm1487_vm9, %v10078_v16 }
 0x373   : > { %1490 = vst.msk [vmem:[#allocation2 + $0x8] sm:$0xf] %vm1487_vm9, %v10078_v16 }
 0x374   : > { %v1481_v15 = vmax.f32 %v1449_v53, 0.0  ;;  %1491 = vst.msk [vmem:[#allocation2 + $0xc] sm:$0xf] %vm1487_vm9, %v10078_v16 }
 0x375   : > { %v1230_v32 = vpop.f32.mrf.mxu0  ;;  %1493 = vst.msk [vmem:[#allocation2 + $0x110] sm:$0xf] %vm1487_vm9, %v10078_v16 }
 0x376   : > { %v1626_v43 = vpack.c.bf16 %v1481_v15, %v1481_v15  ;;  %v1382_v40 = vmax.f32 %v1230_v32, %v1310_v19  ;;  %1494 = vst.msk [vmem:[#allocation2 + $0x114] sm:$0xf] %vm1487_vm9, %v10078_v16  ;;  %v1543_v19 = vld [vmem:[#allocation2 + $0xf0] sm:$0x8] }
 0x377   : > { %1495 = vst.msk [vmem:[#allocation2 + $0x118] sm:$0xf] %vm1487_vm9, %v10078_v16  ;;  %v1544_v22 = vsel %vm10478_vm5, 0, %v1543_v19 }
 0x378   : > { %1658 = vst.msk [vmem:[#allocation2 + $0xe4] sm:$0xf] %vm1487_vm9, %v1626_v43  ;;  %v1414_v44 = vmax.f32 %v1350_v56, %v1382_v40  ;;  %v1664_v12 = vld [vmem:[#allocation2] sm:$0x8] }
 0x379   : > { %v1665_v25 = vld [vmem:[#allocation2 + $0x4] sm:$0xf]  ;;  %1496 = vst.msk [vmem:[#allocation2 + $0x11c] sm:$0xf] %vm1487_vm9, %v10078_v16  ;;  %v1715_v3 = vshrl.u32 %v1664_v12, 16 }
 0x37a   : > { %v1450_v41 = vadd.f32 %v10503_v35, %v1414_v44  ;;  %v1720_v54 = vshrl.u32 %v1665_v25, 16  ;;  %v2486_v33 = vld [vmem:[#allocation2 + $0x4] sm:$0xf]  ;;  %v1666_v59 = vld [vmem:[#allocation2 + $0x8] sm:$0xf]  ;;  %v1723_v15 = vshll.u32 %v1665_v25, 16 }
 0x37b   : > { %v1732_v56 = vshll.u32 %v1666_v59, 16  ;;  %v2487_v43 = vld [vmem:[#allocation2 + $0x8] sm:$0xf]  ;;  %v2538_v40 = vshrl.u32 %v2486_v33, 16  ;;  %v8718_v44 = vrot.slane %v1715_v3, 11  ;;  %v9783_v25 = vld [vmem:[%s12429_s3] sm:$0xff] }
 0x37c   : > { %v1482_v39 = vmax.f32 %v1450_v41, 0.0  ;;  %v1722_v32 = vrot.slane %v1720_v54, 7  ;;  %v2488_v41 = vld [vmem:[#allocation2 + $0xc] sm:$0x1]  ;;  %v9784_v12 = vld [vmem:[%s12429_s3 + $0x8] sm:$0xff]  ;;  %2404 = vmatpush.bf16.msra.mxu2 %v9783_v25 }
 0x37d   : > { %v1233_v49 = vpop.f32.mrf.mxu0  ;;  %1545 = vst [vmem:[#allocation2 + $0xf0] sm:$0x8] %v1544_v22  ;;  %2213 = vmatpush.bf16.msrb.mxu1 %v9784_v12  ;;  %v9767_v14 = vld [vmem:[#allocation2 + $0x4] sm:$0xff]  ;;  %v1318_v22 = vpop.f32.mrf.mxu3 }
 0x37e   : > { %v1627_v42 = vpack.c.bf16 %v1482_v39, %v1482_v39  ;;  %v1383_v37 = vmax.f32 %v1233_v49, %v1313_v55  ;;  %v1729_v55 = vshrl.u32 %v1666_v59, 16  ;;  %v2541_v39 = vshll.u32 %v2486_v33, 16 }
 0x37f   : > { %v2547_v49 = vshll.u32 %v2487_v43, 16  ;;  %v1725_v19 = vor.u32 %v1723_v15, %v1722_v32  ;;  %v1727_v46 = vrot.slane %v1722_v32, 4  ;;  %v2557_v15 = vshll.u32 %v2488_v41, 16  ;;  %v1501_v41 = vld [vmem:[#allocation2 + $0x10] sm:$0x8] }
 0x380   : > { %1659 = vst.msk [vmem:[#allocation2 + $0xe8] sm:$0xf] %vm1487_vm9, %v1627_v42  ;;  %v1415_v53 = vmax.f32 %v1351_v28, %v1383_v37  ;;  %8708 = vmatmul.msk.bf16.gmra.mxu0 %vm794_vm2, %v9755_v57  ;;  %v1731_v42 = vrot.slane %v1729_v55, 7  ;;  %v2540_v28 = vrot.slane %v2538_v40, 4  ;;  %v1352_v57 = vmax.f32 %v10300_v60, %v10396_v51  ;;  %8804 = vmatmul.msk.bf16.vlgmr.msrb.gmra.mxu1 %vm2157_vm14, %v9767_v14 }
 0x381   : > { %v2543_v33 = vrot.slane %v2541_v39, 5  ;;  %v1726_v51 = vsel %vm10554_vm13, %v8718_v44, %v1725_v19  ;;  %v2549_v3 = vrot.slane %v2547_v49, 5  ;;  %v2559_v49 = vrot.slane %v2557_v15, 5 }
 0x382   : > { %v1451_v16 = vadd.f32 %v10503_v35, %v1415_v53  ;;  %v2551_v53 = vshrl.u32 %v2487_v43, 16  ;;  %v1734_v60 = vor.u32 %v1732_v56, %v1731_v42  ;;  %v2295_v40 = vunpack.c.l.b16 %v1726_v51 }
 0x383   : > { %v1502_v19 = vsel %vm10478_vm5, 0, %v1501_v41 }
 0x384   : > { %v1483_v37 = vmax.f32 %v1451_v16, 0.0  ;;  %v2544_v16 = vor.u32 %v2543_v33, %v2540_v28  ;;  %v1735_v30 = vsel %vm10554_vm13, %v1727_v46, %v1734_v60  ;;  %v2553_v39 = vrot.slane %v2551_v53, 4  ;;  %1503 = vst [vmem:[#allocation2 + $0x10] sm:$0x8] %v1502_v19 }
 0x385   : > { %v1235_v59 = vpop.f32.mrf.mxu0  ;;  %v2296_v56 = vunpack.c.l.b16 %v1735_v30  ;;  %v1353_v53 = vmax.f32 %v10303_v62, %v10399_v9  ;;  %v1594_v62 = vld [vmem:[#allocation2 + $0xfc] sm:$0x1] }
 0x386   : > { %v1628_v32 = vpack.c.bf16 %v1483_v37, %v1483_v37  ;;  %v1384_v55 = vmax.f32 %v1235_v59, %v1315_v36  ;;  %v2545_v44 = vrot.slane %v2544_v16, 4  ;;  %v2554_v46 = vor.u32 %v2553_v39, %v2549_v3  ;;  %v9756_v37 = vld [vmem:[%s10194_s16 + $0x1b8] sm:$0xff] }
 0x387   : > { %v2327_v28 = vpack.c.b16 %v2296_v56, %v2295_v40  ;;  %v1320_v40 = vpop.f32.mrf.mxu3  ;;  %v1595_v41 = vsel %vm10489_vm8, 0, %v1594_v62  ;;  %v1325_v62 = vmax.f32 %v10219_v20, %v10315_v4 }
 0x388   : > { %1660 = vst.msk [vmem:[#allocation2 + $0xf4] sm:$0xf] %vm1487_vm9, %v1628_v32  ;;  %v1416_v43 = vmax.f32 %v1352_v57, %v1384_v55  ;;  %v2550_v30 = vsel %vm10566_vm15, %v2545_v44, %v2549_v3  ;;  %v2555_v57 = vrot.slane %v2554_v46, 4  ;;  %v1552_v55 = vld [vmem:[#allocation2 + $0x1c] sm:$0x1] }
 0x389   : > { %8824 = vmatmul.msk.bf16.vlgmr.msra.gmra.mxu2 %vm2157_vm14, %v2327_v28  ;;  %v2924_v25 = vunpack.c.l.b16 %v2550_v30  ;;  %v1553_v16 = vsel %vm10489_vm8, 0, %v1552_v55  ;;  %v9803_v46 = vld [vmem:[%s12429_s3 + $0x20] sm:$0xff]  ;;  %1596 = vst [vmem:[#allocation2 + $0xfc] sm:$0x1] %v1595_v41  ;;  %v1323_v30 = vmax.f32 %v10213_v17, %v10309_v1  ;;  %v1555_v17 = vld [vmem:[#allocation2 + $0x2c] sm:$0x1] }
 0x38a   : > { %v1452_v42 = vadd.f32 %v10503_v35, %v1416_v43  ;;  %v2560_v33 = vsel %vm10566_vm15, %v2555_v57, %v2559_v49  ;;  %1554 = vst [vmem:[#allocation2 + $0x1c] sm:$0x1] %v1553_v16  ;;  %v1354_v43 = vmax.f32 %v10306_v63, %v10402_v50  ;;  %v1504_v49 = vld [vmem:[#allocation2 + $0x20] sm:$0x8]  ;;  %3917 = vmatpush.bf16.msrb.mxu2 %v9803_v46 }
 0x38b   : > { %v2925_v60 = vunpack.c.l.b16 %v2560_v33  ;;  %v1505_v50 = vsel %vm10478_vm5, 0, %v1504_v49  ;;  %v9758_v16 = vld [vmem:[%s10194_s16 + $0x1c8] sm:$0xff] }
 0x38c   : > { %v1484_v14 = vmax.f32 %v1452_v42, 0.0  ;;  %1506 = vst [vmem:[#allocation2 + $0x20] sm:$0x8] %v1505_v50  ;;  %v9757_v42 = vld [vmem:[%s10194_s16 + $0x1c0] sm:$0xff] }
 0x38d   : > { %v1238_v12 = vpop.f32.mrf.mxu0  ;;  %v2956_v15 = vpack.c.b16 %v2925_v60, %v2924_v25  ;;  %v9804_v25 = vld [vmem:[%s12429_s3 + $0x28] sm:$0xff] }
 0x38e   : > { %v1629_v59 = vpack.c.bf16 %v1484_v14, %v1484_v14  ;;  %v1385_v51 = vmax.f32 %v1238_v12, %v1318_v22  ;;  %v9802_v12 = vld [vmem:[%s12429_s3 + $0x18] sm:$0xff]  ;;  %4575 = vmatpush.bf16.msra.mxu3 %v9804_v25 }
 0x38f   : > { %8846 = vmatmul.msk.bf16.vlgmr.msrb.gmra.mxu3 %vm2157_vm14, %v2956_v15  ;;  %3659 = vmatpush.bf16.msra.mxu1 %v9802_v12  ;;  %v1507_v15 = vld [vmem:[#allocation2 + $0x30] sm:$0x8] }
 0x390   : > { %1661 = vst.msk [vmem:[#allocation2 + $0xf8] sm:$0xf] %vm1487_vm9, %v1629_v59  ;;  %v1417_v3 = vmax.f32 %v1353_v53, %v1385_v51  ;;  %8709 = vmatmul.msk.bf16.gmra.mxu0 %vm794_vm2, %v9756_v37  ;;  %v1324_v59 = vmax.f32 %v10216_v18, %v10312_v2  ;;  %v1508_v55 = vsel %vm10478_vm5, 0, %v1507_v15 }
 0x391   : > { %1509 = vst [vmem:[#allocation2 + $0x30] sm:$0x8] %v1508_v55 }
 0x392   : > { %v1453_v32 = vadd.f32 %v10503_v35, %v1417_v3 }
 0x394   : > { %v1485_v39 = vmax.f32 %v1453_v32, 0.0 }
 0x395   : > { %v1240_v9 = vpop.f32.mrf.mxu0 }
 0x396   : > { %v1630_v56 = vpack.c.bf16 %v1485_v39, %v1485_v39  ;;  %v1386_v44 = vmax.f32 %v1240_v9, %v1320_v40 }
 0x398   : > { %1662 = vst.msk [vmem:[#allocation2 + $0x104] sm:$0xf] %vm1487_vm9, %v1630_v56  ;;  %v1418_v22 = vmax.f32 %v1354_v43, %v1386_v44  ;;  %v1667_v56 = vld [vmem:[#allocation2 + $0x10] sm:$0x8] }
 0x399   : > { %v1737_v49 = vshrl.u32 %v1667_v56, 16 }
 0x39a   : > { %v1454_v19 = vadd.f32 %v10503_v35, %v1418_v22 }
 0x39c   : > { %v1486_v63 = vmax.f32 %v1454_v19, 0.0  ;;  %v1558_v19 = vld [vmem:[#allocation2 + $0x3c] sm:$0x1] }
 0x39d   : > { %v1243_v28 = vpop.f32.mrf.mxu0  ;;  %v1559_v4 = vsel %vm10489_vm8, 0, %v1558_v19 }
 0x39e   : > { %v1631_v57 = vpack.c.bf16 %v1486_v63, %v1486_v63  ;;  %v1355_v14 = vmax.f32 %v10405_v6, %v1243_v28  ;;  %v1556_v6 = vsel %vm10489_vm8, 0, %v1555_v17  ;;  %1560 = vst [vmem:[#allocation2 + $0x3c] sm:$0x1] %v1559_v4  ;;  %v1326_v28 = vmax.f32 %v10222_v21, %v10318_v5 }
 0x39f   : > { %1557 = vst [vmem:[#allocation2 + $0x2c] sm:$0x1] %v1556_v6 }
 0x3a0   : > { %1663 = vst.msk [vmem:[#allocation2 + $0x108] sm:$0xf] %vm1487_vm9, %v1631_v57  ;;  %v1387_v37 = vmax.f32 %v1323_v30, %v1355_v14  ;;  %8710 = vmatmul.msk.bf16.gmra.mxu0 %vm794_vm2, %v9757_v42 }
 0x3a2   : > { %v1423_v33 = vadd.f32 %v10503_v35, %v1387_v37  ;;  %v2491_v37 = vld [vmem:[#allocation2 + $0x1c] sm:$0x1] }
 0x3a4   : > { %v1455_v1 = vmax.f32 %v1423_v33, 0.0  ;;  %v8719_v33 = vrot.slane %v1737_v49, 11 }
 0x3a5   : > { %v1245_v53 = vpop.f32.mrf.mxu0 }
 0x3a6   : > { %v1600_v51 = vpack.c.bf16 %v1455_v1, %v1455_v1  ;;  %v1356_v60 = vmax.f32 %v10408_v48, %v1245_v53 }
 0x3a8   : > { %1632 = vst.msk [vmem:[#allocation2 + $0x14] sm:$0xf] %vm1487_vm9, %v1600_v51  ;;  %v1388_v3 = vmax.f32 %v1324_v59, %v1356_v60  ;;  %v2581_v60 = vshll.u32 %v2491_v37, 16 }
 0x3aa   : > { %v1424_v32 = vadd.f32 %v10503_v35, %v1388_v3  ;;  %v2583_v56 = vrot.slane %v2581_v60, 5 }
 0x3ac   : > { %v1456_v40 = vmax.f32 %v1424_v32, 0.0 }
 0x3ad   : > { %v1248_v39 = vpop.f32.mrf.mxu0 }
 0x3ae   : > { %v1601_v18 = vpack.c.bf16 %v1456_v40, %v1456_v40  ;;  %v1357_v2 = vmax.f32 %v10411_v0, %v1248_v39  ;;  %v9759_v39 = vld [vmem:[%s10194_s16 + $0x1d0] sm:$0xff] }
 0x3af   : > { %v1668_v48 = vld [vmem:[#allocation2 + $0x14] sm:$0xf] }
 0x3b0   : > { %v2489_v9 = vld [vmem:[#allocation2 + $0x14] sm:$0xf]  ;;  %1633 = vst.msk [vmem:[#allocation2 + $0x18] sm:$0xf] %vm1487_vm9, %v1601_v18  ;;  %v1389_v43 = vmax.f32 %v1325_v62, %v1357_v2  ;;  %8711 = vmatmul.msk.bf16.gmra.mxu0 %vm794_vm2, %v9758_v16  ;;  %v1742_v44 = vshrl.u32 %v1668_v48, 16  ;;  %v1745_v14 = vshll.u32 %v1668_v48, 16 }
 0x3b1   : > { %v2562_v41 = vshrl.u32 %v2489_v9, 16  ;;  %v2565_v22 = vshll.u32 %v2489_v9, 16 }
 0x3b2   : > { %v1425_v46 = vadd.f32 %v10503_v35, %v1389_v43  ;;  %v1744_v20 = vrot.slane %v1742_v44, 7  ;;  %v1327_v44 = vmax.f32 %v10225_v23, %v10321_v7  ;;  %v1670_v23 = vld [vmem:[#allocation2 + $0x20] sm:$0x8] }
 0x3b3   : > { %v2564_v63 = vrot.slane %v2562_v41, 4  ;;  %v2567_v42 = vrot.slane %v2565_v22, 5 }
 0x3b4   : > { %v1457_v50 = vmax.f32 %v1425_v46, 0.0  ;;  %v1747_v6 = vor.u32 %v1745_v14, %v1744_v20  ;;  %v1749_v18 = vrot.slane %v1744_v20, 4 }
 0x3b5   : > { %v1250_v0 = vpop.f32.mrf.mxu0  ;;  %v2568_v21 = vor.u32 %v2567_v42, %v2564_v63 }
 0x3b6   : > { %v1602_v30 = vpack.c.bf16 %v1457_v50, %v1457_v50  ;;  %v1358_v57 = vmax.f32 %v10414_v47, %v1250_v0  ;;  %v1510_v47 = vld [vmem:[#allocation2 + $0x40] sm:$0x8]  ;;  %v1748_v62 = vsel %vm10554_vm13, %v8719_v33, %v1747_v6 }
 0x3b7   : > { %v9768_v25 = vld [vmem:[#allocation2 + $0x14] sm:$0xff]  ;;  %v1511_v55 = vsel %vm10478_vm5, 0, %v1510_v47  ;;  %v2569_v9 = vrot.slane %v2568_v21, 4  ;;  %v2297_v49 = vunpack.c.l.b16 %v1748_v62  ;;  %v1328_v21 = vmax.f32 %v10228_v24, %v10324_v8 }
 0x3b8   : > { %v1669_v12 = vld [vmem:[#allocation2 + $0x18] sm:$0xf]  ;;  %1634 = vst.msk [vmem:[#allocation2 + $0x24] sm:$0xf] %vm1487_vm9, %v1602_v30  ;;  %v1390_v1 = vmax.f32 %v1326_v28, %v1358_v57  ;;  %8805 = vmatmul.msk.bf16.gmra.mxu1 %vm2157_vm14, %v9768_v25  ;;  %v1759_v25 = vshrl.u32 %v1670_v23, 16  ;;  %v1329_v23 = vmax.f32 %v10231_v26, %v10327_v10 }
 0x3b9   : > { %v2490_v17 = vld [vmem:[#allocation2 + $0x18] sm:$0xf]  ;;  %v1751_v53 = vshrl.u32 %v1669_v12, 16  ;;  %v1754_v51 = vshll.u32 %v1669_v12, 16  ;;  %1512 = vst [vmem:[#allocation2 + $0x40] sm:$0x8] %v1511_v55 }
 0x3ba   : > { %v2571_v59 = vshll.u32 %v2490_v17, 16  ;;  %v2575_v5 = vshrl.u32 %v2490_v17, 16  ;;  %v1426_v3 = vadd.f32 %v10503_v35, %v1390_v1  ;;  %v1561_v12 = vld [vmem:[#allocation2 + $0x4c] sm:$0x1]  ;;  %v8720_v55 = vrot.slane %v1759_v25, 11 }
 0x3bb   : > { %v1753_v15 = vrot.slane %v1751_v53, 7  ;;  %v1673_v26 = vld [vmem:[#allocation2 + $0x30] sm:$0x8] }
 0x3bc   : > { %v2573_v32 = vrot.slane %v2571_v59, 5  ;;  %v2577_v40 = vrot.slane %v2575_v5, 4  ;;  %v1458_v16 = vmax.f32 %v1426_v3, 0.0  ;;  %v2494_v3 = vld [vmem:[#allocation2 + $0x2c] sm:$0x1] }
 0x3bd   : > { %v1756_v2 = vor.u32 %v1754_v51, %v1753_v15  ;;  %v1253_v48 = vpop.f32.mrf.mxu0  ;;  %v1562_v51 = vsel %vm10489_vm8, 0, %v1561_v12 }
 0x3be   : > { %v2578_v43 = vor.u32 %v2577_v40, %v2573_v32  ;;  %v1603_v41 = vpack.c.bf16 %v1458_v16, %v1458_v16  ;;  %v1359_v22 = vmax.f32 %v10417_v61, %v1253_v48  ;;  %v2574_v50 = vsel %vm10566_vm15, %v2569_v9, %v2573_v32  ;;  %1563 = vst [vmem:[#allocation2 + $0x4c] sm:$0x1] %v1562_v51  ;;  %v1513_v48 = vld [vmem:[#allocation2 + $0x50] sm:$0x8] }
 0x3bf   : > { %v1757_v46 = vsel %vm10554_vm13, %v1749_v18, %v1756_v2  ;;  %v1671_v4 = vld [vmem:[#allocation2 + $0x24] sm:$0xf]  ;;  %v2926_v14 = vunpack.c.l.b16 %v2574_v50  ;;  %v2605_v2 = vshll.u32 %v2494_v3, 16  ;;  %v1781_v51 = vshrl.u32 %v1673_v26, 16 }
 0x3c0   : > { %v2298_v19 = vunpack.c.l.b16 %v1757_v46  ;;  %v2579_v20 = vrot.slane %v2578_v43, 4  ;;  %v2492_v0 = vld [vmem:[#allocation2 + $0x24] sm:$0xf]  ;;  %1635 = vst.msk [vmem:[#allocation2 + $0x28] sm:$0xf] %vm1487_vm9, %v1603_v41  ;;  %v1391_v63 = vmax.f32 %v1327_v44, %v1359_v22  ;;  %8712 = vmatmul.msk.bf16.gmra.mxu0 %vm794_vm2, %v9759_v39  ;;  %v1764_v7 = vshrl.u32 %v1671_v4, 16 }
 0x3c1   : > { %v2586_v28 = vshrl.u32 %v2492_v0, 16  ;;  %v2589_v30 = vshll.u32 %v2492_v0, 16  ;;  %v1767_v47 = vshll.u32 %v1671_v4, 16  ;;  %v1514_v44 = vsel %vm10478_vm5, 0, %v1513_v48  ;;  %v9760_v46 = vld [vmem:[%s10194_s16 + $0x1d8] sm:$0xff]  ;;  %s12436_s16 = smov 96  }
 0x3c2   : > { %v2328_v42 = vpack.c.b16 %v2298_v19, %v2297_v49  ;;  %v2584_v61 = vsel %vm10566_vm15, %v2579_v20, %v2583_v56  ;;  %v1427_v57 = vadd.f32 %v10503_v35, %v1391_v63  ;;  %v1766_v1 = vrot.slane %v1764_v7, 7  ;;  %1515 = vst [vmem:[#allocation2 + $0x50] sm:$0x8] %v1514_v44 }
 0x3c3   : > { %v2927_v37 = vunpack.c.l.b16 %v2584_v61  ;;  %v2588_v53 = vrot.slane %v2586_v28, 4  ;;  %v2591_v59 = vrot.slane %v2589_v30, 5  ;;  %v2607_v63 = vrot.slane %v2605_v2, 5 }
 0x3c4   : > { %8825 = vmatmul.msk.bf16.gmra.mxu2 %vm2157_vm14, %v2328_v42  ;;  %v1459_v33 = vmax.f32 %v1427_v57, 0.0  ;;  %v1769_v39 = vor.u32 %v1767_v47, %v1766_v1  ;;  %v1771_v19 = vrot.slane %v1766_v1, 4 }
 0x3c5   : > { %v2957_v17 = vpack.c.b16 %v2927_v37, %v2926_v14  ;;  %v1255_v6 = vpop.f32.mrf.mxu0  ;;  %v2592_v8 = vor.u32 %v2591_v59, %v2588_v53 }
 0x3c6   : > { %v1604_v5 = vpack.c.bf16 %v1459_v33, %v1459_v33  ;;  %v1360_v60 = vmax.f32 %v10422_v31, %v1255_v6  ;;  %v1770_v49 = vsel %vm10554_vm13, %v8720_v55, %v1769_v39 }
 0x3c7   : > { %8847 = vmatmul.msk.bf16.gmra.mxu3 %vm2157_vm14, %v2957_v17  ;;  %v9769_v15 = vld [vmem:[#allocation2 + $0x24] sm:$0xff]  ;;  %v2593_v4 = vrot.slane %v2592_v8, 4  ;;  %v2299_v28 = vunpack.c.l.b16 %v1770_v49 }
 0x3c8   : > { %v1672_v32 = vld [vmem:[#allocation2 + $0x28] sm:$0xf]  ;;  %1636 = vst.msk [vmem:[#allocation2 + $0x34] sm:$0xf] %vm1487_vm9, %v1604_v5  ;;  %v1392_v16 = vmax.f32 %v1328_v21, %v1360_v60  ;;  %8806 = vmatmul.msk.bf16.gmra.mxu1 %vm2157_vm14, %v9769_v15  ;;  %v1564_v21 = vld [vmem:[#allocation2 + $0x5c] sm:$0x1] }
 0x3c9   : > { %v2493_v40 = vld [vmem:[#allocation2 + $0x28] sm:$0xf]  ;;  %v1773_v62 = vshrl.u32 %v1672_v32, 16  ;;  %v1776_v24 = vshll.u32 %v1672_v32, 16  ;;  %v1565_v55 = vsel %vm10489_vm8, 0, %v1564_v21 }
 0x3ca   : > { %v2595_v18 = vshll.u32 %v2493_v40, 16  ;;  %v2599_v31 = vshrl.u32 %v2493_v40, 16  ;;  %v1428_v9 = vadd.f32 %v10503_v35, %v1392_v16  ;;  %v1330_v40 = vmax.f32 %v10234_v27, %v10330_v11  ;;  %1566 = vst [vmem:[#allocation2 + $0x5c] sm:$0x1] %v1565_v55 }
 0x3cb   : > { %v1775_v43 = vrot.slane %v1773_v62, 7 }
 0x3cc   : > { %v2597_v56 = vrot.slane %v2595_v18, 5  ;;  %v2601_v41 = vrot.slane %v2599_v31, 4  ;;  %v1460_v22 = vmax.f32 %v1428_v9, 0.0  ;;  %v2497_v18 = vld [vmem:[#allocation2 + $0x3c] sm:$0x1]  ;;  %v8721_v31 = vrot.slane %v1781_v51, 11 }
 0x3cd   : > { %v1778_v50 = vor.u32 %v1776_v24, %v1775_v43  ;;  %v1258_v20 = vpop.f32.mrf.mxu0  ;;  %v2629_v44 = vshll.u32 %v2497_v18, 16 }
 0x3ce   : > { %v2602_v0 = vor.u32 %v2601_v41, %v2597_v56  ;;  %v1605_v7 = vpack.c.bf16 %v1460_v22, %v1460_v22  ;;  %v1361_v42 = vmax.f32 %v10427_v58, %v1258_v20  ;;  %v2598_v57 = vsel %vm10566_vm15, %v2593_v4, %v2597_v56  ;;  %v1516_v41 = vld [vmem:[#allocation2 + $0x60] sm:$0x8] }
 0x3cf   : > { %v1779_v61 = vsel %vm10554_vm13, %v1771_v19, %v1778_v50  ;;  %v1674_v37 = vld [vmem:[#allocation2 + $0x34] sm:$0xf]  ;;  %v2928_v53 = vunpack.c.l.b16 %v2598_v57  ;;  %v1517_v19 = vsel %vm10478_vm5, 0, %v1516_v41 }
 0x3d0   : > { %v2300_v30 = vunpack.c.l.b16 %v1779_v61  ;;  %v2603_v14 = vrot.slane %v2602_v0, 4  ;;  %v2495_v25 = vld [vmem:[#allocation2 + $0x34] sm:$0xf]  ;;  %1637 = vst.msk [vmem:[#allocation2 + $0x38] sm:$0xf] %vm1487_vm9, %v1605_v7  ;;  %v1393_v12 = vmax.f32 %v1329_v23, %v1361_v42  ;;  %8713 = vmatmul.msk.bf16.gmra.mxu0 %vm794_vm2, %v9760_v46  ;;  %v1786_v10 = vshrl.u32 %v1674_v37, 16 }
 0x3d1   : > { %v2610_v17 = vshrl.u32 %v2495_v25, 16  ;;  %v2613_v1 = vshll.u32 %v2495_v25, 16  ;;  %v1789_v62 = vshll.u32 %v1674_v37, 16  ;;  %1518 = vst [vmem:[#allocation2 + $0x60] sm:$0x8] %v1517_v19  ;;  %v2631_v61 = vrot.slane %v2629_v44, 5 }
 0x3d2   : > { %v2329_v33 = vpack.c.b16 %v2300_v30, %v2299_v28  ;;  %v2608_v58 = vsel %vm10566_vm15, %v2603_v14, %v2607_v63  ;;  %v1429_v6 = vadd.f32 %v10503_v35, %v1393_v12  ;;  %v1788_v47 = vrot.slane %v1786_v10, 7  ;;  %v1519_v19 = vld [vmem:[#allocation2 + $0x70] sm:$0x8] }
 0x3d3   : > { %v2929_v59 = vunpack.c.l.b16 %v2608_v58  ;;  %v2612_v15 = vrot.slane %v2610_v17, 4  ;;  %v2615_v32 = vrot.slane %v2613_v1, 5  ;;  %v1331_v28 = vmax.f32 %v10237_v29, %v10333_v13  ;;  %v1676_v17 = vld [vmem:[#allocation2 + $0x40] sm:$0x8] }
 0x3d4   : > { %8826 = vmatmul.msk.bf16.gmra.mxu2 %vm2157_vm14, %v2329_v33  ;;  %v1461_v5 = vmax.f32 %v1429_v6, 0.0  ;;  %v1791_v9 = vor.u32 %v1789_v62, %v1788_v47  ;;  %v1793_v0 = vrot.slane %v1788_v47, 4  ;;  %v1803_v21 = vshrl.u32 %v1676_v17, 16 }
 0x3d5   : > { %v2958_v60 = vpack.c.b16 %v2929_v59, %v2928_v53  ;;  %v1260_v3 = vpop.f32.mrf.mxu0  ;;  %v2616_v11 = vor.u32 %v2615_v32, %v2612_v15  ;;  %vm6275_vm2 = vcmask 516352  }
 0x3d6   : > { %v1606_v16 = vpack.c.bf16 %v1461_v5, %v1461_v5  ;;  %v1362_v39 = vmax.f32 %v10430_v52, %v1260_v3  ;;  %v1792_v4 = vsel %vm10554_vm13, %v8721_v31, %v1791_v9  ;;  %v1567_v5 = vld [vmem:[#allocation2 + $0x6c] sm:$0x1]  ;;  %vm11656_vm3 = vmand %vm6275_vm2, %vm1550_vm6 }
 0x3d7   : > { %8848 = vmatmul.msk.bf16.gmra.mxu3 %vm2157_vm14, %v2958_v60  ;;  %v9770_v24 = vld [vmem:[#allocation2 + $0x34] sm:$0xff]  ;;  %v2617_v7 = vrot.slane %v2616_v11, 4  ;;  %v2301_v37 = vunpack.c.l.b16 %v1792_v4 }
 0x3d8   : > { %v1675_v8 = vld [vmem:[#allocation2 + $0x38] sm:$0xf]  ;;  %1638 = vst.msk [vmem:[#allocation2 + $0x44] sm:$0xf] %vm1487_vm9, %v1606_v16  ;;  %v1394_v48 = vmax.f32 %v1330_v40, %v1362_v39  ;;  %8807 = vmatmul.msk.bf16.gmra.mxu1 %vm2157_vm14, %v9770_v24  ;;  %v1568_v40 = vsel %vm10489_vm8, 0, %v1567_v5  ;;  %v12494_v16 = vld [vmem:[#allocation22_spill] sm:$0xff] }
 0x3d9   : > { %v2496_v2 = vld [vmem:[#allocation2 + $0x38] sm:$0xf]  ;;  %v1795_v43 = vshrl.u32 %v1675_v8, 16  ;;  %v1798_v27 = vshll.u32 %v1675_v8, 16  ;;  %v12496_v24 = vld [vmem:[#allocation37_spill] sm:$0xff] }
 0x3da   : > { %v2619_v56 = vshll.u32 %v2496_v2, 16  ;;  %v2623_v52 = vshrl.u32 %v2496_v2, 16  ;;  %v1430_v22 = vadd.f32 %v10503_v35, %v1394_v48  ;;  %v12495_v39 = vld [vmem:[#allocation7_spill] sm:$0xff]  ;;  %v2500_v2 = vld [vmem:[#allocation2 + $0x4c] sm:$0x1] }
 0x3db   : > { %v1797_v46 = vrot.slane %v1795_v43, 7  ;;  %v1332_v62 = vmax.f32 %v12495_v39, %v12494_v16  ;;  %1569 = vst [vmem:[#allocation2 + $0x6c] sm:$0x1] %v1568_v40  ;;  %v8722_v43 = vrot.slane %v1803_v21, 11  ;;  %v1570_v40 = vld [vmem:[#allocation2 + $0x7c] sm:$0x1] }
 0x3dc   : > { %v2621_v49 = vrot.slane %v2619_v56, 5  ;;  %v2625_v50 = vrot.slane %v2623_v52, 4  ;;  %v1462_v20 = vmax.f32 %v1430_v22, 0.0 }
 0x3dd   : > { %v1800_v63 = vor.u32 %v1798_v27, %v1797_v46  ;;  %v1263_v23 = vpop.f32.mrf.mxu0 }
 0x3de   : > { %v2626_v42 = vor.u32 %v2625_v50, %v2621_v49  ;;  %v1607_v30 = vpack.c.bf16 %v1462_v20, %v1462_v20  ;;  %v1363_v57 = vmax.f32 %v10435_v45, %v1263_v23  ;;  %v2622_v12 = vsel %vm10566_vm15, %v2617_v7, %v2621_v49 }
 0x3df   : > { %v1801_v14 = vsel %vm10554_vm13, %v1793_v0, %v1800_v63  ;;  %v1677_v10 = vld [vmem:[#allocation2 + $0x44] sm:$0xf]  ;;  %v2930_v59 = vunpack.c.l.b16 %v2622_v12  ;;  %v2653_v49 = vshll.u32 %v2500_v2, 16  ;;  %v1520_v0 = vsel %vm10478_vm5, 0, %v1519_v19  ;;  %v12500_v2 = vld [vmem:[#allocation24_spill] sm:$0xff] }
 0x3e0   : > { %v2302_v25 = vunpack.c.l.b16 %v1801_v14  ;;  %v2627_v26 = vrot.slane %v2626_v42, 4  ;;  %v2498_v33 = vld [vmem:[#allocation2 + $0x44] sm:$0xf]  ;;  %1639 = vst.msk [vmem:[#allocation2 + $0x48] sm:$0xf] %vm1487_vm9, %v1607_v30  ;;  %v1395_v58 = vmax.f32 %v1331_v28, %v1363_v57  ;;  %v1808_v1 = vshrl.u32 %v1677_v10, 16 }
 0x3e1   : > { %v2634_v45 = vshrl.u32 %v2498_v33, 16  ;;  %v2637_v6 = vshll.u32 %v2498_v33, 16  ;;  %v1811_v31 = vshll.u32 %v1677_v10, 16  ;;  %1521 = vst [vmem:[#allocation2 + $0x70] sm:$0x8] %v1520_v0  ;;  %v2655_v14 = vrot.slane %v2653_v49, 5 }
 0x3e2   : > { %v2330_v29 = vpack.c.b16 %v2302_v25, %v2301_v37  ;;  %v2632_v13 = vsel %vm10566_vm15, %v2627_v26, %v2631_v61  ;;  %v1431_v53 = vadd.f32 %v10503_v35, %v1395_v58  ;;  %v1810_v3 = vrot.slane %v1808_v1, 7  ;;  %v12497_v37 = vld [vmem:[#allocation23_spill] sm:$0xff]  ;;  %v12498_v25 = vld [vmem:[#allocation8_spill] sm:$0xff]  ;;  %v12499_v10 = vld [vmem:[#allocation38_spill] sm:$0xff] }
 0x3e3   : > { %v2931_v51 = vunpack.c.l.b16 %v2632_v13  ;;  %v2636_v32 = vrot.slane %v2634_v45, 4  ;;  %v2639_v55 = vrot.slane %v2637_v6, 5  ;;  %v1333_v12 = vmax.f32 %v12498_v25, %v12497_v37  ;;  %v4040_v38 = vld [vmem:[#allocation2 + $0x44] sm:$0xf] }
 0x3e4   : > { %8827 = vmatmul.msk.bf16.gmra.mxu2 %vm2157_vm14, %v2330_v29  ;;  %v1463_v60 = vmax.f32 %v1431_v53, 0.0  ;;  %v1813_v11 = vor.u32 %v1811_v31, %v1810_v3  ;;  %v1815_v42 = vrot.slane %v1810_v3, 4  ;;  %v1571_v31 = vsel %vm10489_vm8, 0, %v1570_v40 }
 0x3e5   : > { %v2959_v47 = vpack.c.b16 %v2931_v51, %v2930_v59  ;;  %v1265_v15 = vpop.f32.mrf.mxu0  ;;  %v2640_v22 = vor.u32 %v2639_v55, %v2636_v32  ;;  %v1679_v59 = vld [vmem:[#allocation2 + $0x50] sm:$0x8]  ;;  %1572 = vst [vmem:[#allocation2 + $0x7c] sm:$0x1] %v1571_v31  ;;  %v1573_v31 = vld [vmem:[#allocation2 + $0x8c] sm:$0x1] }
 0x3e6   : > { %v1608_v18 = vpack.c.bf16 %v1463_v60, %v1463_v60  ;;  %v1364_v8 = vmax.f32 %v12496_v24, %v1265_v15  ;;  %v1814_v7 = vsel %vm10554_vm13, %v8722_v43, %v1813_v11  ;;  %v1825_v55 = vshrl.u32 %v1679_v59, 16 }
 0x3e7   : > { %8849 = vmatmul.msk.bf16.gmra.mxu3 %vm2157_vm14, %v2959_v47  ;;  %v9771_v48 = vld [vmem:[#allocation2 + $0x44] sm:$0xff]  ;;  %v2641_v30 = vrot.slane %v2640_v22, 4  ;;  %v2303_v17 = vunpack.c.l.b16 %v1814_v7  ;;  %v1522_v7 = vld [vmem:[#allocation2 + $0x80] sm:$0x8] }
 0x3e8   : > { %v1678_v9 = vld [vmem:[#allocation2 + $0x48] sm:$0xf]  ;;  %1640 = vst.msk [vmem:[#allocation2 + $0x54] sm:$0xf] %vm1487_vm9, %v1608_v18  ;;  %v1396_v27 = vmax.f32 %v1332_v62, %v1364_v8  ;;  %8808 = vmatmul.msk.bf16.gmra.mxu1 %vm2157_vm14, %v9771_v48  ;;  %v8723_v22 = vrot.slane %v1825_v55, 11 }
 0x3e9   : > { %v2499_v56 = vld [vmem:[#allocation2 + $0x48] sm:$0xf]  ;;  %v1817_v52 = vshrl.u32 %v1678_v9, 16  ;;  %v1820_v41 = vshll.u32 %v1678_v9, 16 }
 0x3ea   : > { %v2643_v44 = vshll.u32 %v2499_v56, 16  ;;  %v2647_v46 = vshrl.u32 %v2499_v56, 16  ;;  %v1432_v50 = vadd.f32 %v10503_v35, %v1396_v27  ;;  %v12501_v48 = vld [vmem:[#allocation9_spill] sm:$0xff]  ;;  %v12502_v56 = vld [vmem:[#allocation39_spill] sm:$0xff] }
 0x3eb   : > { %v1819_v20 = vrot.slane %v1817_v52, 7  ;;  %v1334_v9 = vmax.f32 %v12501_v48, %v12500_v2  ;;  %v2503_v52 = vld [vmem:[#allocation2 + $0x5c] sm:$0x1] }
 0x3ec   : > { %v2645_v4 = vrot.slane %v2643_v44, 5  ;;  %v2649_v63 = vrot.slane %v2647_v46, 4  ;;  %v1464_v23 = vmax.f32 %v1432_v50, 0.0 }
 0x3ed   : > { %v1822_v61 = vor.u32 %v1820_v41, %v1819_v20  ;;  %v1268_v28 = vpop.f32.mrf.mxu0 }
 0x3ee   : > { %v2650_v57 = vor.u32 %v2649_v63, %v2645_v4  ;;  %v1609_v26 = vpack.c.bf16 %v1464_v23, %v1464_v23  ;;  %v1365_v33 = vmax.f32 %v12499_v10, %v1268_v28  ;;  %v2646_v29 = vsel %vm10566_vm15, %v2641_v30, %v2645_v4 }
 0x3ef   : > { %v1823_v58 = vsel %vm10554_vm13, %v1815_v42, %v1822_v61  ;;  %v1680_v45 = vld [vmem:[#allocation2 + $0x54] sm:$0xf]  ;;  %v2932_v15 = vunpack.c.l.b16 %v2646_v29  ;;  %v2677_v23 = vshll.u32 %v2503_v52, 16  ;;  %v1523_v30 = vsel %vm10478_vm5, 0, %v1522_v7  ;;  %v12506_v52 = vld [vmem:[#allocation26_spill] sm:$0xff] }
 0x3f0   : > { %v2304_v1 = vunpack.c.l.b16 %v1823_v58  ;;  %v2651_v13 = vrot.slane %v2650_v57, 4  ;;  %v2501_v6 = vld [vmem:[#allocation2 + $0x54] sm:$0xf]  ;;  %1641 = vst.msk [vmem:[#allocation2 + $0x58] sm:$0xf] %vm1487_vm9, %v1609_v26  ;;  %v1397_v53 = vmax.f32 %v1333_v12, %v1365_v33  ;;  %v1830_v51 = vshrl.u32 %v1680_v45, 16 }
 0x3f1   : > { %v2658_v60 = vshrl.u32 %v2501_v6, 16  ;;  %v2661_v47 = vshll.u32 %v2501_v6, 16  ;;  %v1833_v11 = vshll.u32 %v1680_v45, 16  ;;  %1524 = vst [vmem:[#allocation2 + $0x80] sm:$0x8] %v1523_v30  ;;  %v2679_v58 = vrot.slane %v2677_v23, 5 }
 0x3f2   : > { %v2331_v21 = vpack.c.b16 %v2304_v1, %v2303_v17  ;;  %v2656_v5 = vsel %vm10566_vm15, %v2651_v13, %v2655_v14  ;;  %v1433_v3 = vadd.f32 %v10503_v35, %v1397_v53  ;;  %v1832_v62 = vrot.slane %v1830_v51, 7  ;;  %v12503_v17 = vld [vmem:[#allocation25_spill] sm:$0xff]  ;;  %v12504_v1 = vld [vmem:[#allocation10_spill] sm:$0xff]  ;;  %v12505_v13 = vld [vmem:[#allocation40_spill] sm:$0xff] }
 0x3f3   : > { %v2933_v32 = vunpack.c.l.b16 %v2656_v5  ;;  %v2660_v24 = vrot.slane %v2658_v60, 4  ;;  %v2663_v8 = vrot.slane %v2661_v47, 5 }
 0x3f4   : > { %8828 = vmatmul.msk.bf16.gmra.mxu2 %vm2157_vm14, %v2331_v21  ;;  %v1465_v16 = vmax.f32 %v1433_v3, 0.0  ;;  %v1835_v19 = vor.u32 %v1833_v11, %v1832_v62  ;;  %v1837_v25 = vrot.slane %v1832_v62, 4  ;;  %v1682_v3 = vld [vmem:[#allocation2 + $0x60] sm:$0x8]  ;;  %v1574_v11 = vsel %vm10489_vm8, 0, %v1573_v31 }
 0x3f5   : > { %v2960_v39 = vpack.c.b16 %v2933_v32, %v2932_v15  ;;  %v1270_v18 = vpop.f32.mrf.mxu0  ;;  %v2664_v0 = vor.u32 %v2663_v8, %v2660_v24  ;;  %v1847_v8 = vshrl.u32 %v1682_v3, 16  ;;  %1575 = vst [vmem:[#allocation2 + $0x8c] sm:$0x1] %v1574_v11  ;;  %v1685_v3 = vld [vmem:[#allocation2 + $0x70] sm:$0x8] }
 0x3f6   : > { %v1610_v43 = vpack.c.bf16 %v1465_v16, %v1465_v16  ;;  %v1366_v27 = vmax.f32 %v12502_v56, %v1270_v18  ;;  %v1836_v37 = vsel %vm10554_vm13, %v8723_v22, %v1835_v19 }
 0x3f7   : > { %8850 = vmatmul.msk.bf16.gmra.mxu3 %vm2157_vm14, %v2960_v39  ;;  %v9772_v44 = vld [vmem:[#allocation2 + $0x54] sm:$0xff]  ;;  %v2665_v10 = vrot.slane %v2664_v0, 4  ;;  %v2305_v53 = vunpack.c.l.b16 %v1836_v37  ;;  %v8724_v0 = vrot.slane %v1847_v8, 11  ;;  %v1525_v37 = vld [vmem:[#allocation2 + $0x90] sm:$0x8] }
 0x3f8   : > { %v1681_v41 = vld [vmem:[#allocation2 + $0x58] sm:$0xf]  ;;  %1642 = vst.msk [vmem:[#allocation2 + $0x64] sm:$0xf] %vm1487_vm9, %v1610_v43  ;;  %v1398_v49 = vmax.f32 %v1334_v9, %v1366_v27  ;;  %8809 = vmatmul.msk.bf16.gmra.mxu1 %vm2157_vm14, %v9772_v44 }
 0x3f9   : > { %v2502_v46 = vld [vmem:[#allocation2 + $0x58] sm:$0xf]  ;;  %v1839_v50 = vshrl.u32 %v1681_v41, 16  ;;  %v1842_v4 = vshll.u32 %v1681_v41, 16 }
 0x3fa   : > { %v2667_v20 = vshll.u32 %v2502_v46, 16  ;;  %v2671_v63 = vshrl.u32 %v2502_v46, 16  ;;  %v1434_v42 = vadd.f32 %v10503_v35, %v1398_v49  ;;  %v1335_v35 = vmax.f32 %v12504_v1, %v12503_v17  ;;  %v10756_v39 = vld [vmem:[%s12428_s2] ss:$0 sm:$0xff]  ;;  %v12508_v46 = vld [vmem:[#allocation41_spill] sm:$0xff] }
 0x3fb   : > { %v1841_v61 = vrot.slane %v1839_v50, 7  ;;  %v12507_v44 = vld [vmem:[#allocation11_spill] sm:$0xff]  ;;  %v2506_v50 = vld [vmem:[#allocation2 + $0x6c] sm:$0x1] }
 0x3fc   : > { %v2669_v28 = vrot.slane %v2667_v20, 5  ;;  %v2673_v57 = vrot.slane %v2671_v63, 4  ;;  %v1466_v14 = vmax.f32 %v1434_v42, 0.0  ;;  %v1336_v41 = vmax.f32 %v12507_v44, %v12506_v52 }
 0x3fd   : > { %v1844_v12 = vor.u32 %v1842_v4, %v1841_v61  ;;  %v1273_v26 = vpop.f32.mrf.mxu0  ;;  %v2215_v31 = vpop.f32.mrf.mxu1  ;;  %v1869_v44 = vshrl.u32 %v1685_v3, 16 }
 0x3fe   : > { %v2674_v33 = vor.u32 %v2673_v57, %v2669_v28  ;;  %v1611_v29 = vpack.c.bf16 %v1466_v14, %v1466_v14  ;;  %v1367_v45 = vmax.f32 %v12505_v13, %v1273_v26  ;;  %v2670_v51 = vsel %vm10566_vm15, %v2665_v10, %v2669_v28 }
 0x3ff   : > { %v1845_v6 = vsel %vm10554_vm13, %v1837_v25, %v1844_v12  ;;  %v1683_v5 = vld [vmem:[#allocation2 + $0x64] sm:$0xf]  ;;  %v2934_v18 = vunpack.c.l.b16 %v2670_v51  ;;  %v2701_v14 = vshll.u32 %v2506_v50, 16  ;;  %v1526_v10 = vsel %vm10478_vm5, 0, %v1525_v37  ;;  %v12512_v50 = vld [vmem:[#allocation28_spill] sm:$0xff] }
 0x400   : > { %v2306_v59 = vunpack.c.l.b16 %v1845_v6  ;;  %v2675_v21 = vrot.slane %v2674_v33, 4  ;;  %v2504_v60 = vld [vmem:[#allocation2 + $0x64] sm:$0xf]  ;;  %1643 = vst.msk [vmem:[#allocation2 + $0x68] sm:$0xf] %vm1487_vm9, %v1611_v29  ;;  %v1399_v47 = vmax.f32 %v1335_v35, %v1367_v45  ;;  %v1852_v15 = vshrl.u32 %v1683_v5, 16 }
 0x401   : > { %v2682_v40 = vshrl.u32 %v2504_v60, 16  ;;  %v2685_v16 = vshll.u32 %v2504_v60, 16  ;;  %v1855_v19 = vshll.u32 %v1683_v5, 16  ;;  %1527 = vst [vmem:[#allocation2 + $0x90] sm:$0x8] %v1526_v10  ;;  %v2703_v6 = vrot.slane %v2701_v14, 5 }
 0x402   : > { %v2332_v32 = vpack.c.b16 %v2306_v59, %v2305_v53  ;;  %v2680_v55 = vsel %vm10566_vm15, %v2675_v21, %v2679_v58  ;;  %v1435_v62 = vadd.f32 %v10756_v39, %v1399_v47  ;;  %v1854_v9 = vrot.slane %v1852_v15, 7  ;;  %v12509_v53 = vld [vmem:[#allocation27_spill] sm:$0xff]  ;;  %v12510_v59 = vld [vmem:[#allocation12_spill] sm:$0xff]  ;;  %v12511_v5 = vld [vmem:[#allocation42_spill] sm:$0xff] }
 0x403   : > { %v2935_v24 = vunpack.c.l.b16 %v2680_v55  ;;  %v2684_v56 = vrot.slane %v2682_v40, 4  ;;  %v2687_v27 = vrot.slane %v2685_v16, 5  ;;  %v1337_v51 = vmax.f32 %v12510_v59, %v12509_v53 }
 0x404   : > { %8829 = vmatmul.msk.bf16.gmra.mxu2 %vm2157_vm14, %v2332_v32  ;;  %v1467_v2 = vmax.f32 %v1435_v62, 0.0  ;;  %v1857_v7 = vor.u32 %v1855_v19, %v1854_v9  ;;  %v1859_v1 = vrot.slane %v1854_v9, 4  ;;  %v2509_v19 = vld [vmem:[#allocation2 + $0x7c] sm:$0x1] }
 0x405   : > { %v2961_v48 = vpack.c.b16 %v2935_v24, %v2934_v18  ;;  %v1275_v43 = vpop.f32.mrf.mxu0  ;;  %v2688_v30 = vor.u32 %v2687_v27, %v2684_v56 }
 0x406   : > { %v1612_v22 = vpack.c.bf16 %v1467_v2, %v1467_v2  ;;  %v1368_v49 = vmax.f32 %v12508_v46, %v1275_v43  ;;  %v1858_v17 = vsel %vm10554_vm13, %v8724_v0, %v1857_v7 }
 0x407   : > { %8851 = vmatmul.msk.bf16.gmra.mxu3 %vm2157_vm14, %v2961_v48  ;;  %v9773_v20 = vld [vmem:[#allocation2 + $0x64] sm:$0xff]  ;;  %v2689_v13 = vrot.slane %v2688_v30, 4  ;;  %v2307_v15 = vunpack.c.l.b16 %v1858_v17  ;;  %v8725_v30 = vrot.slane %v1869_v44, 11  ;;  %v1688_v44 = vld [vmem:[#allocation2 + $0x80] sm:$0x8] }
 0x408   : > { %v1684_v4 = vld [vmem:[#allocation2 + $0x68] sm:$0xf]  ;;  %1644 = vst.msk [vmem:[#allocation2 + $0x74] sm:$0xf] %vm1487_vm9, %v1612_v22  ;;  %v1400_v23 = vmax.f32 %v1336_v41, %v1368_v49  ;;  %8810 = vmatmul.msk.bf16.gmra.mxu1 %vm2157_vm14, %v9773_v20  ;;  %v1576_v41 = vld [vmem:[#allocation2 + $0x9c] sm:$0x1] }
 0x409   : > { %v2505_v63 = vld [vmem:[#allocation2 + $0x68] sm:$0xf]  ;;  %v1861_v42 = vshrl.u32 %v1684_v4, 16  ;;  %v1864_v28 = vshll.u32 %v1684_v4, 16  ;;  %v1577_v7 = vsel %vm10489_vm8, 0, %v1576_v41 }
 0x40a   : > { %v2691_v61 = vshll.u32 %v2505_v63, 16  ;;  %v2695_v57 = vshrl.u32 %v2505_v63, 16  ;;  %v1436_v25 = vadd.f32 %v10756_v39, %v1400_v23  ;;  %v12513_v20 = vld [vmem:[#allocation13_spill] sm:$0xff]  ;;  %1578 = vst [vmem:[#allocation2 + $0x9c] sm:$0x1] %v1577_v7 }
 0x40b   : > { %v1863_v12 = vrot.slane %v1861_v42, 7  ;;  %v1338_v4 = vmax.f32 %v12513_v20, %v12512_v50 }
 0x40c   : > { %v2693_v26 = vrot.slane %v2691_v61, 5  ;;  %v2697_v33 = vrot.slane %v2695_v57, 4  ;;  %v1468_v58 = vmax.f32 %v1436_v25, 0.0  ;;  %v2406_v2 = vpop.f32.mrf.mxu2  ;;  %v12514_v61 = vld [vmem:[#allocation43_spill] sm:$0xff] }
 0x40d   : > { %v1866_v35 = vor.u32 %v1864_v28, %v1863_v12  ;;  %v1278_v29 = vpop.f32.mrf.mxu0  ;;  %v2407_v56 = vadd.f32 %v2406_v2, %v2215_v31  ;;  %v2725_v12 = vshll.u32 %v2509_v19, 16 }
 0x40e   : > { %v2698_v45 = vor.u32 %v2697_v33, %v2693_v26  ;;  %v1613_v21 = vpack.c.bf16 %v1468_v58, %v1468_v58  ;;  %v1369_v60 = vmax.f32 %v12511_v5, %v1278_v29  ;;  %v2694_v55 = vsel %vm10566_vm15, %v2689_v13, %v2693_v26 }
 0x40f   : > { %v1867_v47 = vsel %vm10554_vm13, %v1859_v1, %v1866_v35  ;;  %v1686_v16 = vld [vmem:[#allocation2 + $0x74] sm:$0xf]  ;;  %v2936_v11 = vunpack.c.l.b16 %v2694_v55 }
 0x410   : > { %v2308_v32 = vunpack.c.l.b16 %v1867_v47  ;;  %v2699_v40 = vrot.slane %v2698_v45, 4  ;;  %v2507_v62 = vld [vmem:[#allocation2 + $0x74] sm:$0xf]  ;;  %1645 = vst.msk [vmem:[#allocation2 + $0x78] sm:$0xf] %vm1487_vm9, %v1613_v21  ;;  %v1401_v18 = vmax.f32 %v1337_v51, %v1369_v60  ;;  %v1874_v24 = vshrl.u32 %v1686_v16, 16 }
 0x411   : > { %v2706_v8 = vshrl.u32 %v2507_v62, 16  ;;  %v2709_v43 = vshll.u32 %v2507_v62, 16  ;;  %v1877_v57 = vshll.u32 %v1686_v16, 16  ;;  %v1528_v45 = vld [vmem:[#allocation2 + $0xa0] sm:$0x8]  ;;  %v12516_v62 = vld [vmem:[#allocation14_spill] sm:$0xff] }
 0x412   : > { %v2333_v48 = vpack.c.b16 %v2308_v32, %v2307_v15  ;;  %v2704_v9 = vsel %vm10566_vm15, %v2699_v40, %v2703_v6  ;;  %v1437_v27 = vadd.f32 %v10756_v39, %v1401_v18  ;;  %v1876_v49 = vrot.slane %v1874_v24, 7  ;;  %v3035_v17 = vpop.f32.mrf.mxu3  ;;  %v12515_v16 = vld [vmem:[#allocation29_spill] sm:$0xff] }
 0x413   : > { %v2937_v52 = vunpack.c.l.b16 %v2704_v9  ;;  %v2708_v63 = vrot.slane %v2706_v8, 4  ;;  %v2711_v23 = vrot.slane %v2709_v43, 5  ;;  %v10793_v13 = vadd.f32 %v3035_v17, %v2407_v56  ;;  %v12517_v8 = vld [vmem:[#allocation44_spill] sm:$0xff] }
 0x414   : > { %8830 = vmatmul.msk.bf16.gmra.mxu2 %vm2157_vm14, %v2333_v48  ;;  %v1469_v22 = vmax.f32 %v1437_v27, 0.0  ;;  %v1879_v10 = vor.u32 %v1877_v57, %v1876_v49  ;;  %v1529_v51 = vsel %vm10478_vm5, 0, %v1528_v45  ;;  %v1881_v47 = vrot.slane %v1876_v49, 4 }
 0x415   : > { %v2962_v46 = vpack.c.b16 %v2937_v52, %v2936_v11  ;;  %v1280_v0 = vpop.f32.mrf.mxu0  ;;  %v2712_v35 = vor.u32 %v2711_v23, %v2708_v63  ;;  %1530 = vst [vmem:[#allocation2 + $0xa0] sm:$0x8] %v1529_v51  ;;  %v2727_v40 = vrot.slane %v2725_v12, 5  ;;  %v1339_v18 = vmax.f32 %v12516_v62, %v12515_v16  ;;  %v1579_v63 = vld [vmem:[#allocation2 + $0xac] sm:$0x1]  ;;  %v10823_v62 = vpop.f32.mrf.mxu1 }
 0x416   : > { %v1614_v42 = vpack.c.bf16 %v1469_v22, %v1469_v22  ;;  %v1370_v28 = vmax.f32 %v12514_v61, %v1280_v0  ;;  %v1880_v60 = vsel %vm10554_vm13, %v8725_v30, %v1879_v10  ;;  %v1891_v0 = vshrl.u32 %v1688_v44, 16 }
 0x417   : > { %8852 = vmatmul.msk.bf16.gmra.mxu3 %vm2157_vm14, %v2962_v46  ;;  %v9774_v14 = vld [vmem:[#allocation2 + $0x74] sm:$0xff]  ;;  %v2713_v32 = vrot.slane %v2712_v35, 4  ;;  %v2309_v48 = vunpack.c.l.b16 %v1880_v60  ;;  %v1580_v57 = vsel %vm10489_vm8, 0, %v1579_v63 }
 0x418   : > { %v1687_v37 = vld [vmem:[#allocation2 + $0x78] sm:$0xf]  ;;  %1646 = vst.msk [vmem:[#allocation2 + $0x84] sm:$0xf] %vm1487_vm9, %v1614_v42  ;;  %v1402_v26 = vmax.f32 %v1338_v4, %v1370_v28  ;;  %8811 = vmatmul.msk.bf16.gmra.mxu1 %vm2157_vm14, %v9774_v14  ;;  %v12518_v14 = vld [vmem:[#allocation30_spill] sm:$0xff]  ;;  %v8726_v35 = vrot.slane %v1891_v0, 11 }
 0x419   : > { %v2508_v25 = vld [vmem:[#allocation2 + $0x78] sm:$0xf]  ;;  %v1883_v33 = vshrl.u32 %v1687_v37, 16  ;;  %v1886_v1 = vshll.u32 %v1687_v37, 16  ;;  %1581 = vst [vmem:[#allocation2 + $0xac] sm:$0x1] %v1580_v57 }
 0x41a   : > { %v2715_v58 = vshll.u32 %v2508_v25, 16  ;;  %v2719_v29 = vshrl.u32 %v2508_v25, 16  ;;  %v1438_v6 = vadd.f32 %v10756_v39, %v1402_v26  ;;  %v12519_v37 = vld [vmem:[#allocation15_spill] sm:$0xff]  ;;  %v12520_v26 = vld [vmem:[#allocation45_spill] sm:$0xff] }
 0x41b   : > { %v1885_v53 = vrot.slane %v1883_v33, 7  ;;  %v1340_v25 = vmax.f32 %v12519_v37, %v12518_v14  ;;  %v1691_v0 = vld [vmem:[#allocation2 + $0x90] sm:$0x8]  ;;  %v1582_v37 = vld [vmem:[#allocation2 + $0xbc] sm:$0x1] }
 0x41c   : > { %v2717_v59 = vrot.slane %v2715_v58, 5  ;;  %v2721_v21 = vrot.slane %v2719_v29, 4  ;;  %v1470_v5 = vmax.f32 %v1438_v6, 0.0  ;;  %v2512_v58 = vld [vmem:[#allocation2 + $0x8c] sm:$0x1]  ;;  %v1913_v14 = vshrl.u32 %v1691_v0, 16 }
 0x41d   : > { %v1888_v3 = vor.u32 %v1886_v1, %v1885_v53  ;;  %v1283_v15 = vpop.f32.mrf.mxu0  ;;  %v2749_v60 = vshll.u32 %v2512_v58, 16 }
 0x41e   : > { %v2722_v55 = vor.u32 %v2721_v21, %v2717_v59  ;;  %v1615_v24 = vpack.c.bf16 %v1470_v5, %v1470_v5  ;;  %v1371_v31 = vmax.f32 %v12517_v8, %v1283_v15  ;;  %v2718_v43 = vsel %vm10566_vm15, %v2713_v32, %v2717_v59 }
 0x41f   : > { %v1889_v2 = vsel %vm10554_vm13, %v1881_v47, %v1888_v3  ;;  %v1689_v27 = vld [vmem:[#allocation2 + $0x84] sm:$0xf]  ;;  %v2938_v20 = vunpack.c.l.b16 %v2718_v43  ;;  %v1531_v47 = vld [vmem:[#allocation2 + $0xb0] sm:$0x8] }
 0x420   : > { %v2310_v9 = vunpack.c.l.b16 %v1889_v2  ;;  %v2723_v56 = vrot.slane %v2722_v55, 4  ;;  %v2510_v11 = vld [vmem:[#allocation2 + $0x84] sm:$0xf]  ;;  %1647 = vst.msk [vmem:[#allocation2 + $0x88] sm:$0xf] %vm1487_vm9, %v1615_v24  ;;  %v1403_v52 = vmax.f32 %v1339_v18, %v1371_v31  ;;  %v1896_v41 = vshrl.u32 %v1689_v27, 16 }
 0x421   : > { %v2730_v49 = vshrl.u32 %v2510_v11, 16  ;;  %v2733_v19 = vshll.u32 %v2510_v11, 16  ;;  %v1899_v33 = vshll.u32 %v1689_v27, 16  ;;  %v1532_v55 = vsel %vm10478_vm5, 0, %v1531_v47  ;;  %v12521_v43 = vld [vmem:[#allocation31_spill] sm:$0xff] }
 0x422   : > { %v2334_v22 = vpack.c.b16 %v2310_v9, %v2309_v48  ;;  %v2728_v46 = vsel %vm10566_vm15, %v2723_v56, %v2727_v40  ;;  %v1439_v50 = vadd.f32 %v10756_v39, %v1403_v52  ;;  %v1898_v42 = vrot.slane %v1896_v41, 7  ;;  %1533 = vst [vmem:[#allocation2 + $0xb0] sm:$0x8] %v1532_v55  ;;  %v12522_v56 = vld [vmem:[#allocation16_spill] sm:$0xff]  ;;  %v12523_v52 = vld [vmem:[#allocation46_spill] sm:$0xff] }
 0x423   : > { %v2939_v4 = vunpack.c.l.b16 %v2728_v46  ;;  %v2732_v28 = vrot.slane %v2730_v49, 4  ;;  %v2735_v30 = vrot.slane %v2733_v19, 5  ;;  %v2751_v9 = vrot.slane %v2749_v60, 5 }
 0x424   : > { %8831 = vmatmul.msk.bf16.gmra.mxu2 %vm2157_vm14, %v2334_v22  ;;  %v1471_v23 = vmax.f32 %v1439_v50, 0.0  ;;  %v1901_v6 = vor.u32 %v1899_v33, %v1898_v42  ;;  %v1903_v24 = vrot.slane %v1898_v42, 4  ;;  %v1341_v27 = vmax.f32 %v12522_v56, %v12521_v43 }
 0x425   : > { %v2963_v7 = vpack.c.b16 %v2939_v4, %v2938_v20  ;;  %v1285_v61 = vpop.f32.mrf.mxu0  ;;  %v2736_v21 = vor.u32 %v2735_v30, %v2732_v28  ;;  %v8727_v47 = vrot.slane %v1913_v14, 11 }
 0x426   : > { %v1616_v12 = vpack.c.bf16 %v1471_v23, %v1471_v23  ;;  %v1372_v10 = vmax.f32 %v12520_v26, %v1285_v61  ;;  %v1902_v18 = vsel %vm10554_vm13, %v8726_v35, %v1901_v6  ;;  %v12525_v35 = vld [vmem:[#allocation17_spill] sm:$0xff]  ;;  %v12526_v6 = vld [vmem:[#allocation47_spill] sm:$0xff] }
 0x427   : > { %8853 = vmatmul.msk.bf16.gmra.mxu3 %vm2157_vm14, %v2963_v7  ;;  %v9775_v17 = vld [vmem:[#allocation2 + $0x84] sm:$0xff]  ;;  %v2737_v2 = vrot.slane %v2736_v21, 4  ;;  %v2311_v22 = vunpack.c.l.b16 %v1902_v18  ;;  %v2515_v21 = vld [vmem:[#allocation2 + $0x9c] sm:$0x1] }
 0x428   : > { %v1690_v1 = vld [vmem:[#allocation2 + $0x88] sm:$0xf]  ;;  %1648 = vst.msk [vmem:[#allocation2 + $0x94] sm:$0xf] %vm1487_vm9, %v1616_v12  ;;  %v1404_v45 = vmax.f32 %v1340_v25, %v1372_v10  ;;  %8812 = vmatmul.msk.bf16.gmra.mxu1 %vm2157_vm14, %v9775_v17  ;;  %v1583_v17 = vsel %vm10489_vm8, 0, %v1582_v37 }
 0x429   : > { %v2511_v29 = vld [vmem:[#allocation2 + $0x88] sm:$0xf]  ;;  %v1905_v53 = vshrl.u32 %v1690_v1, 16  ;;  %v1908_v51 = vshll.u32 %v1690_v1, 16  ;;  %v12524_v1 = vld [vmem:[#allocation32_spill] sm:$0xff] }
 0x42a   : > { %v2739_v59 = vshll.u32 %v2511_v29, 16  ;;  %v2743_v5 = vshrl.u32 %v2511_v29, 16  ;;  %v1440_v3 = vadd.f32 %v10756_v39, %v1404_v45  ;;  %v1342_v29 = vmax.f32 %v12525_v35, %v12524_v1  ;;  %1584 = vst [vmem:[#allocation2 + $0xbc] sm:$0x1] %v1583_v17 }
 0x42b   : > { %v1907_v15 = vrot.slane %v1905_v53, 7 }
 0x42c   : > { %v2741_v32 = vrot.slane %v2739_v59, 5  ;;  %v2745_v40 = vrot.slane %v2743_v5, 4  ;;  %v1472_v16 = vmax.f32 %v1440_v3, 0.0 }
 0x42d   : > { %v1910_v8 = vor.u32 %v1908_v51, %v1907_v15  ;;  %v1288_v31 = vpop.f32.mrf.mxu0 }
 0x42e   : > { %v2746_v48 = vor.u32 %v2745_v40, %v2741_v32  ;;  %v1617_v11 = vpack.c.bf16 %v1472_v16, %v1472_v16  ;;  %v1373_v44 = vmax.f32 %v12523_v52, %v1288_v31  ;;  %v2742_v49 = vsel %vm10566_vm15, %v2737_v2, %v2741_v32  ;;  %v1534_v31 = vld [vmem:[#allocation2 + $0xc0] sm:$0x8] }
 0x42f   : > { %v1911_v41 = vsel %vm10554_vm13, %v1903_v24, %v1910_v8  ;;  %v1692_v50 = vld [vmem:[#allocation2 + $0x94] sm:$0xf]  ;;  %v2940_v30 = vunpack.c.l.b16 %v2742_v49  ;;  %v2773_v8 = vshll.u32 %v2515_v21, 16  ;;  %v1535_v43 = vsel %vm10478_vm5, 0, %v1534_v31 }
 0x430   : > { %v2312_v46 = vunpack.c.l.b16 %v1911_v41  ;;  %v2747_v19 = vrot.slane %v2746_v48, 4  ;;  %v2513_v20 = vld [vmem:[#allocation2 + $0x94] sm:$0xf]  ;;  %1649 = vst.msk [vmem:[#allocation2 + $0x98] sm:$0xf] %vm1487_vm9, %v1617_v11  ;;  %v1405_v4 = vmax.f32 %v1341_v27, %v1373_v44  ;;  %v1918_v63 = vshrl.u32 %v1692_v50, 16 }
 0x431   : > { %v2754_v42 = vshrl.u32 %v2513_v20, 16  ;;  %v2757_v61 = vshll.u32 %v2513_v20, 16  ;;  %v1921_v51 = vshll.u32 %v1692_v50, 16  ;;  %1536 = vst [vmem:[#allocation2 + $0xc0] sm:$0x8] %v1535_v43  ;;  %v2775_v49 = vrot.slane %v2773_v8, 5 }
 0x432   : > { %v2335_v23 = vpack.c.b16 %v2312_v46, %v2311_v22  ;;  %v2752_v7 = vsel %vm10566_vm15, %v2747_v19, %v2751_v9  ;;  %v1441_v28 = vadd.f32 %v10756_v39, %v1405_v4  ;;  %v1920_v26 = vrot.slane %v1918_v63, 7  ;;  %v12527_v19 = vld [vmem:[#allocation33_spill] sm:$0xff]  ;;  %v12528_v50 = vld [vmem:[#allocation18_spill] sm:$0xff]  ;;  %v10856_v4 = vpop.f32.mrf.mxu2  ;;  %v12529_v63 = vld [vmem:[#allocation48_spill] sm:$0xff] }
 0x433   : > { %v2941_v57 = vunpack.c.l.b16 %v2752_v7  ;;  %v2756_v33 = vrot.slane %v2754_v42, 4  ;;  %v2759_v58 = vrot.slane %v2757_v61, 5  ;;  %v1343_v20 = vmax.f32 %v12528_v50, %v12527_v19 }
 0x434   : > { %8832 = vmatmul.msk.bf16.gmra.mxu2 %vm2157_vm14, %v2335_v23  ;;  %v1473_v25 = vmax.f32 %v1441_v28, 0.0  ;;  %v1923_v32 = vor.u32 %v1921_v51, %v1920_v26  ;;  %v1925_v52 = vrot.slane %v1920_v26, 4  ;;  %v1585_v51 = vld [vmem:[#allocation2 + $0xcc] sm:$0x1] }
 0x435   : > { %v2964_v12 = vpack.c.b16 %v2941_v57, %v2940_v30  ;;  %v1290_v10 = vpop.f32.mrf.mxu0  ;;  %v10845_v59 = vpop.f32.mrf.mxu1  ;;  %v2760_v18 = vor.u32 %v2759_v58, %v2756_v33 }
 0x436   : > { %v1618_v45 = vpack.c.bf16 %v1473_v25, %v1473_v25  ;;  %v1374_v53 = vmax.f32 %v12526_v6, %v1290_v10  ;;  %v1924_v11 = vsel %vm10554_vm13, %v8727_v47, %v1923_v32  ;;  %v10866_v10 = vpop.f32.mrf.mxu3  ;;  %v1586_v32 = vsel %vm10489_vm8, 0, %v1585_v51 }
 0x437   : > { %8854 = vmatmul.msk.bf16.gmra.mxu3 %vm2157_vm14, %v2964_v12  ;;  %v9776_v5 = vld [vmem:[#allocation2 + $0x94] sm:$0xff]  ;;  %v2761_v22 = vrot.slane %v2760_v18, 4  ;;  %v2313_v61 = vunpack.c.l.b16 %v1924_v11  ;;  %v1694_v12 = vld [vmem:[#allocation2 + $0xa0] sm:$0x8]  ;;  %1587 = vst [vmem:[#allocation2 + $0xcc] sm:$0x1] %v1586_v32 }
 0x438   : > { %v1693_v60 = vld [vmem:[#allocation2 + $0x98] sm:$0xf]  ;;  %1650 = vst.msk [vmem:[#allocation2 + $0xa4] sm:$0xf] %vm1487_vm9, %v1618_v45  ;;  %v1406_v15 = vmax.f32 %v1342_v29, %v1374_v53  ;;  %8813 = vmatmul.msk.bf16.gmra.mxu1 %vm2157_vm14, %v9776_v5  ;;  %v1935_v6 = vshrl.u32 %v1694_v12, 16 }
 0x439   : > { %v2514_v3 = vld [vmem:[#allocation2 + $0x98] sm:$0xf]  ;;  %v1927_v55 = vshrl.u32 %v1693_v60, 16  ;;  %v1930_v16 = vshll.u32 %v1693_v60, 16  ;;  %v1697_v32 = vld [vmem:[#allocation2 + $0xb0] sm:$0x8] }
 0x43a   : > { %v2763_v40 = vshll.u32 %v2514_v3, 16  ;;  %v2767_v24 = vshrl.u32 %v2514_v3, 16  ;;  %v1442_v2 = vadd.f32 %v10756_v39, %v1406_v15 }
 0x43b   : > { %v1929_v48 = vrot.slane %v1927_v55, 7  ;;  %v12530_v55 = vld [vmem:[#allocation34_spill] sm:$0xff] }
 0x43c   : > { %v2765_v9 = vrot.slane %v2763_v40, 5  ;;  %v2769_v56 = vrot.slane %v2767_v24, 4  ;;  %v1474_v27 = vmax.f32 %v1442_v2, 0.0  ;;  %v12531_v40 = vld [vmem:[#allocation19_spill] sm:$0xff]  ;;  %v12532_v24 = vld [vmem:[#allocation49_spill] sm:$0xff] }
 0x43d   : > { %v1932_v44 = vor.u32 %v1930_v16, %v1929_v48  ;;  %v1293_v41 = vpop.f32.mrf.mxu0  ;;  %v10859_v7 = vpop.f32.mrf.mxu1  ;;  %v1344_v16 = vmax.f32 %v12531_v40, %v12530_v55  ;;  %v2518_v48 = vld [vmem:[#allocation2 + $0xac] sm:$0x1] }
 0x43e   : > { %v2770_v46 = vor.u32 %v2769_v56, %v2765_v9  ;;  %v1619_v0 = vpack.c.bf16 %v1474_v27, %v1474_v27  ;;  %v1375_v23 = vmax.f32 %v12529_v63, %v1293_v41  ;;  %v2766_v30 = vsel %vm10566_vm15, %v2761_v22, %v2765_v9 }
 0x43f   : > { %v1933_v42 = vsel %vm10554_vm13, %v1925_v52, %v1932_v44  ;;  %v1695_v14 = vld [vmem:[#allocation2 + $0xa4] sm:$0xf]  ;;  %v2942_v29 = vunpack.c.l.b16 %v2766_v30  ;;  %v8728_v27 = vrot.slane %v1935_v6, 11 }
 0x440   : > { %v2314_v28 = vunpack.c.l.b16 %v1933_v42  ;;  %v2771_v57 = vrot.slane %v2770_v46, 4  ;;  %v2516_v37 = vld [vmem:[#allocation2 + $0xa4] sm:$0xf]  ;;  %1651 = vst.msk [vmem:[#allocation2 + $0xa8] sm:$0xf] %vm1487_vm9, %v1619_v0  ;;  %v1407_v25 = vmax.f32 %v1343_v20, %v1375_v23  ;;  %v1940_v26 = vshrl.u32 %v1695_v14, 16 }
 0x441   : > { %v2778_v17 = vshrl.u32 %v2516_v37, 16  ;;  %v2781_v1 = vshll.u32 %v2516_v37, 16  ;;  %v1943_v47 = vshll.u32 %v1695_v14, 16  ;;  %v2797_v20 = vshll.u32 %v2518_v48, 16  ;;  %v12533_v14 = vld [vmem:[#allocation35_spill] sm:$0xff]  ;;  %v12534_v37 = vld [vmem:[#allocation20_spill] sm:$0xff] }
 0x442   : > { %v2336_v33 = vpack.c.b16 %v2314_v28, %v2313_v61  ;;  %v2776_v58 = vsel %vm10566_vm15, %v2771_v57, %v2775_v49  ;;  %v1443_v35 = vadd.f32 %v10756_v39, %v1407_v25  ;;  %v1942_v53 = vrot.slane %v1940_v26, 7 }
 0x443   : > { %v2943_v45 = vunpack.c.l.b16 %v2776_v58  ;;  %v2780_v3 = vrot.slane %v2778_v17, 4  ;;  %v2783_v15 = vrot.slane %v2781_v1, 5  ;;  %v1345_v25 = vmax.f32 %v12534_v37, %v12533_v14  ;;  %v12535_v1 = vld [vmem:[#allocation50_spill] sm:$0xff] }
 0x444   : > { %8833 = vmatmul.msk.bf16.gmra.mxu2 %vm2157_vm14, %v2336_v33  ;;  %v1475_v21 = vmax.f32 %v1443_v35, 0.0  ;;  %v1945_v11 = vor.u32 %v1943_v47, %v1942_v53  ;;  %v1947_v30 = vrot.slane %v1942_v53, 4  ;;  %v2799_v58 = vrot.slane %v2797_v20, 5  ;;  %v12538_v20 = vld [vmem:[#allocation51_spill] sm:$0xff] }
 0x445   : > { %v2965_v5 = vpack.c.b16 %v2943_v45, %v2942_v29  ;;  %v1295_v60 = vpop.f32.mrf.mxu0  ;;  %v10878_v2 = vpop.f32.mrf.mxu1  ;;  %v2784_v19 = vor.u32 %v2783_v15, %v2780_v3 }
 0x446   : > { %v1620_v18 = vpack.c.bf16 %v1475_v21, %v1475_v21  ;;  %v1376_v8 = vmax.f32 %v12532_v24, %v1295_v60  ;;  %v1946_v42 = vsel %vm10554_vm13, %v8728_v27, %v1945_v11 }
 0x447   : > { %8855 = vmatmul.msk.bf16.gmra.mxu3 %vm2157_vm14, %v2965_v5  ;;  %v2411_v31 = vpop.f32.mrf.mxu2  ;;  %v9777_v43 = vld [vmem:[#allocation2 + $0xa4] sm:$0xff]  ;;  %v2785_v26 = vrot.slane %v2784_v19, 4  ;;  %v2315_v51 = vunpack.c.l.b16 %v1946_v42  ;;  %v2521_v42 = vld [vmem:[#allocation2 + $0xbc] sm:$0x1] }
 0x448   : > { %v2412_v9 = vadd.f32 %v2411_v31, %v10845_v59  ;;  %v1696_v56 = vld [vmem:[#allocation2 + $0xa8] sm:$0xf]  ;;  %1652 = vst.msk [vmem:[#allocation2 + $0xb4] sm:$0xf] %vm1487_vm9, %v1620_v18  ;;  %v1408_v44 = vmax.f32 %v1344_v16, %v1376_v8  ;;  %8814 = vmatmul.msk.bf16.gmra.mxu1 %vm2157_vm14, %v9777_v43  ;;  %v1957_v43 = vshrl.u32 %v1697_v32, 16 }
 0x449   : > { %v2517_v52 = vld [vmem:[#allocation2 + $0xa8] sm:$0xf]  ;;  %v1949_v41 = vshrl.u32 %v1696_v56, 16  ;;  %v1952_v49 = vshll.u32 %v1696_v56, 16 }
 0x44a   : > { %v2787_v22 = vshll.u32 %v2517_v52, 16  ;;  %v3040_v46 = vpop.f32.mrf.mxu3  ;;  %v2791_v50 = vshrl.u32 %v2517_v52, 16  ;;  %v1444_v0 = vadd.f32 %v10756_v39, %v1408_v44 }
 0x44b   : > { %v10884_v59 = vadd.f32 %v3040_v46, %v2412_v9  ;;  %v1951_v63 = vrot.slane %v1949_v41, 7  ;;  %v12536_v46 = vld [vmem:[#allocation36_spill] sm:$0xff] }
 0x44c   : > { %v2789_v23 = vrot.slane %v2787_v22, 5  ;;  %v2793_v61 = vrot.slane %v2791_v50, 4  ;;  %v1476_v28 = vmax.f32 %v1444_v0, 0.0 }
 0x44d   : > { %v1954_v57 = vor.u32 %v1952_v49, %v1951_v63  ;;  %v1298_v12 = vpop.f32.mrf.mxu0  ;;  %v10891_v45 = vpop.f32.mrf.mxu1  ;;  %v12537_v49 = vld [vmem:[#allocation21_spill] sm:$0xff] }
 0x44e   : > { %v2794_v33 = vor.u32 %v2793_v61, %v2789_v23  ;;  %v1621_v17 = vpack.c.bf16 %v1476_v28, %v1476_v28  ;;  %v1377_v35 = vmax.f32 %v12535_v1, %v1298_v12  ;;  %v2790_v5 = vsel %vm10566_vm15, %v2785_v26, %v2789_v23 }
 0x44f   : > { %v2413_v29 = vpop.f32.mrf.mxu2  ;;  %v1955_v6 = vsel %vm10554_vm13, %v1947_v30, %v1954_v57  ;;  %v1698_v47 = vld [vmem:[#allocation2 + $0xb4] sm:$0xf]  ;;  %v2944_v48 = vunpack.c.l.b16 %v2790_v5  ;;  %v1346_v19 = vmax.f32 %v12537_v49, %v12536_v46  ;;  %v8729_v57 = vrot.slane %v1957_v43, 11 }
 0x450   : > { %v2414_v53 = vadd.f32 %v2413_v29, %v10859_v7  ;;  %v2316_v21 = vunpack.c.l.b16 %v1955_v6  ;;  %v2795_v60 = vrot.slane %v2794_v33, 4  ;;  %v2519_v3 = vld [vmem:[#allocation2 + $0xb4] sm:$0xf]  ;;  %1653 = vst.msk [vmem:[#allocation2 + $0xb8] sm:$0xf] %vm1487_vm9, %v1621_v17  ;;  %v1409_v15 = vmax.f32 %v1345_v25, %v1377_v35 }
 0x451   : > { %v1962_v55 = vshrl.u32 %v1698_v47, 16  ;;  %v2802_v24 = vshrl.u32 %v2519_v3, 16  ;;  %v2805_v8 = vshll.u32 %v2519_v3, 16  ;;  %v1965_v44 = vshll.u32 %v1698_v47, 16 }
 0x452   : > { %v3042_v40 = vpop.f32.mrf.mxu3  ;;  %v2337_v16 = vpack.c.b16 %v2316_v21, %v2315_v51  ;;  %v2800_v18 = vsel %vm10566_vm15, %v2795_v60, %v2799_v58  ;;  %v1445_v7 = vadd.f32 %v10756_v39, %v1409_v15  ;;  %v2821_v35 = vshll.u32 %v2521_v42, 16 }
 0x453   : > { %v10902_v31 = vadd.f32 %v3042_v40, %v2414_v53  ;;  %v2945_v9 = vunpack.c.l.b16 %v2800_v18  ;;  %v1964_v56 = vrot.slane %v1962_v55, 7  ;;  %v2804_v41 = vrot.slane %v2802_v24, 4  ;;  %v1700_v24 = vld [vmem:[#allocation2 + $0xc0] sm:$0x8] }
 0x454   : > { %8834 = vmatmul.msk.bf16.gmra.mxu2 %vm2157_vm14, %v2337_v16  ;;  %v1477_v27 = vmax.f32 %v1445_v7, 0.0  ;;  %v2807_v22 = vrot.slane %v2805_v8, 5  ;;  %v2823_v32 = vrot.slane %v2821_v35, 5 }
 0x455   : > { %v2966_v11 = vpack.c.b16 %v2945_v9, %v2944_v48  ;;  %v1300_v52 = vpop.f32.mrf.mxu0  ;;  %v10909_v23 = vpop.f32.mrf.mxu1  ;;  %v1967_v14 = vor.u32 %v1965_v44, %v1964_v56  ;;  %v1969_v60 = vrot.slane %v1964_v56, 4 }
 0x456   : > { %v1622_v50 = vpack.c.bf16 %v1477_v27, %v1477_v27  ;;  %v1378_v0 = vmax.f32 %v12538_v20, %v1300_v52  ;;  %v2808_v17 = vor.u32 %v2807_v22, %v2804_v41 }
 0x457   : > { %8856 = vmatmul.msk.bf16.gmra.mxu3 %vm2157_vm14, %v2966_v11  ;;  %v2416_v63 = vpop.f32.mrf.mxu2  ;;  %v9778_v28 = vld [vmem:[#allocation2 + $0xb4] sm:$0xff]  ;;  %v1968_v53 = vsel %vm10554_vm13, %v8729_v57, %v1967_v14 }
 0x458   : > { %v2417_v61 = vadd.f32 %v2416_v63, %v10878_v2  ;;  %v1699_v30 = vld [vmem:[#allocation2 + $0xb8] sm:$0xf]  ;;  %1654 = vst.msk [vmem:[#allocation2 + $0xc4] sm:$0xf] %vm1487_vm9, %v1622_v50  ;;  %v1410_v25 = vmax.f32 %v1346_v19, %v1378_v0  ;;  %8815 = vmatmul.msk.bf16.gmra.mxu1 %vm2157_vm14, %v9778_v28  ;;  %v2809_v3 = vrot.slane %v2808_v17, 4  ;;  %v2317_v18 = vunpack.c.l.b16 %v1968_v53 }
 0x459   : > { %v2520_v37 = vld [vmem:[#allocation2 + $0xb8] sm:$0xf]  ;;  %v1971_v12 = vshrl.u32 %v1699_v30, 16  ;;  %v1974_v58 = vshll.u32 %v1699_v30, 16  ;;  %v1979_v19 = vshrl.u32 %v1700_v24, 16 }
 0x45a   : > { %v2811_v26 = vshll.u32 %v2520_v37, 16  ;;  %v3045_v33 = vpop.f32.mrf.mxu3  ;;  %v2815_v1 = vshrl.u32 %v2520_v37, 16  ;;  %v1446_v29 = vadd.f32 %v10756_v39, %v1410_v25  ;;  %v2524_v0 = vld [vmem:[#allocation2 + $0xcc] sm:$0x1]  ;;  %v1705_v14 = vld [vmem:[#allocation2 + $0xd8] sm:$0xf] }
 0x45b   : > { %v10915_v2 = vadd.f32 %v3045_v33, %v2417_v61  ;;  %v1973_v6 = vrot.slane %v1971_v12, 7  ;;  %v8730_v57 = vrot.slane %v1979_v19, 11 }
 0x45c   : > { %v2813_v51 = vrot.slane %v2811_v26, 5  ;;  %v2817_v21 = vrot.slane %v2815_v1, 4  ;;  %v1478_v5 = vmax.f32 %v1446_v29, 0.0 }
 0x45d   : > { %v1976_v47 = vor.u32 %v1974_v58, %v1973_v6  ;;  %v10919_v16 = vpop.f32.mrf.mxu1  ;;  %v2845_v58 = vshll.u32 %v2524_v0, 16  ;;  %v2526_v6 = vld [vmem:[#allocation2 + $0xd8] sm:$0xf] }
 0x45e   : > { %v2818_v15 = vor.u32 %v2817_v21, %v2813_v51  ;;  %v1623_v55 = vpack.c.bf16 %v1478_v5, %v1478_v5  ;;  %v2814_v48 = vsel %vm10566_vm15, %v2809_v3, %v2813_v51 }
 0x45f   : > { %v2418_v40 = vpop.f32.mrf.mxu2  ;;  %v1977_v39 = vsel %vm10554_vm13, %v1969_v60, %v1976_v47  ;;  %v1701_v43 = vld [vmem:[#allocation2 + $0xc4] sm:$0xf]  ;;  %v2847_v3 = vrot.slane %v2845_v58, 5 }
 0x460   : > { %v2419_v8 = vadd.f32 %v2418_v40, %v10891_v45  ;;  %v2318_v7 = vunpack.c.l.b16 %v1977_v39  ;;  %v2819_v9 = vrot.slane %v2818_v15, 4  ;;  %v2522_v56 = vld [vmem:[#allocation2 + $0xc4] sm:$0xf]  ;;  %1655 = vst.msk [vmem:[#allocation2 + $0xc8] sm:$0xf] %vm1487_vm9, %v1623_v55  ;;  %v1984_v27 = vshrl.u32 %v1701_v43, 16 }
 0x461   : > { %v2826_v11 = vshrl.u32 %v2522_v56, 16  ;;  %v2829_v52 = vshll.u32 %v2522_v56, 16  ;;  %v2946_v45 = vunpack.c.l.b16 %v2814_v48  ;;  %v1987_v61 = vshll.u32 %v1701_v43, 16  ;;  %v1704_v15 = vld [vmem:[#allocation2 + $0xd4] sm:$0xf] }
 0x462   : > { %v3047_v44 = vpop.f32.mrf.mxu3  ;;  %v2338_v41 = vpack.c.b16 %v2318_v7, %v2317_v18  ;;  %v2824_v22 = vsel %vm10566_vm15, %v2819_v9, %v2823_v32  ;;  %v1986_v50 = vrot.slane %v1984_v27, 7  ;;  %v2015_v32 = vshrl.u32 %v1705_v14, 16 }
 0x463   : > { %v10929_v46 = vadd.f32 %v3047_v44, %v2419_v8  ;;  %v2947_v49 = vunpack.c.l.b16 %v2824_v22  ;;  %v2828_v63 = vrot.slane %v2826_v11, 4  ;;  %v2831_v42 = vrot.slane %v2829_v52, 5  ;;  %v2525_v8 = vld [vmem:[#allocation2 + $0xd4] sm:$0xf] }
 0x464   : > { %8835 = vmatmul.msk.bf16.gmra.mxu2 %vm2157_vm14, %v2338_v41  ;;  %v1989_v26 = vor.u32 %v1987_v61, %v1986_v50  ;;  %v2859_v55 = vshll.u32 %v2526_v6, 16  ;;  %v2863_v7 = vshrl.u32 %v2526_v6, 16  ;;  %v2006_v11 = vshrl.u32 %v1704_v15, 16  ;;  %v1703_v61 = vld [vmem:[#allocation2 + $0xd0] sm:$0x8] }
 0x465   : > { %v2967_v20 = vpack.c.b16 %v2947_v49, %v2946_v45  ;;  %v10933_v30 = vpop.f32.mrf.mxu1  ;;  %v2832_v1 = vor.u32 %v2831_v42, %v2828_v63  ;;  %v2850_v22 = vshrl.u32 %v2525_v8, 16  ;;  %v2017_v49 = vrot.slane %v2015_v32, 7 }
 0x466   : > { %v1990_v40 = vsel %vm10554_vm13, %v8730_v57, %v1989_v26  ;;  %v2853_v19 = vshll.u32 %v2525_v8, 16  ;;  %v2001_v26 = vshrl.u32 %v1703_v61, 16 }
 0x467   : > { %8857 = vmatmul.msk.bf16.gmra.mxu3 %vm2157_vm14, %v2967_v20  ;;  %v2421_v28 = vpop.f32.mrf.mxu2  ;;  %v9779_v25 = vld [vmem:[#allocation2 + $0xc4] sm:$0xff]  ;;  %v2833_v18 = vrot.slane %v2832_v1, 4  ;;  %v2319_v44 = vunpack.c.l.b16 %v1990_v40 }
 0x468   : > { %v2422_v37 = vadd.f32 %v2421_v28, %v10909_v23  ;;  %v1702_v12 = vld [vmem:[#allocation2 + $0xc8] sm:$0xf]  ;;  %8816 = vmatmul.msk.bf16.gmra.mxu1 %vm2157_vm14, %v9779_v25  ;;  %v1991_v23 = vrot.slane %v1986_v50, 4  ;;  %v2861_v50 = vrot.slane %v2859_v55, 5  ;;  %v2865_v28 = vrot.slane %v2863_v7, 4 }
 0x469   : > { %v2523_v33 = vld [vmem:[#allocation2 + $0xc8] sm:$0xf]  ;;  %v1993_v17 = vshrl.u32 %v1702_v12, 16  ;;  %v1996_v53 = vshll.u32 %v1702_v12, 16  ;;  %v2008_v25 = vrot.slane %v2006_v11, 7  ;;  %v2018_v12 = vshll.u32 %v1705_v14, 16 }
 0x46a   : > { %v2835_v35 = vshll.u32 %v2523_v33, 16  ;;  %v2839_v29 = vshrl.u32 %v2523_v33, 16  ;;  %v3050_v51 = vpop.f32.mrf.mxu3  ;;  %v2852_v33 = vrot.slane %v2850_v22, 4  ;;  %v2855_v58 = vrot.slane %v2853_v19, 5  ;;  %v1707_v7 = vld [vmem:[#allocation2 + $0xe4] sm:$0xf] }
 0x46b   : > { %v10937_v21 = vadd.f32 %v3050_v51, %v2422_v37  ;;  %v1995_v5 = vrot.slane %v1993_v17, 7  ;;  %v2527_v37 = vld [vmem:[#allocation2 + $0xdc] sm:$0x1]  ;;  %v2020_v17 = vor.u32 %v2018_v12, %v2017_v49  ;;  %v2866_v1 = vor.u32 %v2865_v28, %v2861_v50 }
 0x46c   : > { %v2837_v60 = vrot.slane %v2835_v35, 5  ;;  %v2841_v47 = vrot.slane %v2839_v29, 4  ;;  %v2869_v35 = vshll.u32 %v2527_v37, 16  ;;  %v2009_v51 = vshll.u32 %v1704_v15, 16 }
 0x46d   : > { %v1998_v39 = vor.u32 %v1996_v53, %v1995_v5  ;;  %v2237_v9 = vpop.f32.mrf.mxu1  ;;  %v9780_v5 = vld [vmem:[#allocation2 + $0xd4] sm:$0xff]  ;;  %v2867_v55 = vrot.slane %v2866_v1, 4  ;;  %v2028_v49 = vshrl.u32 %v1707_v7, 16 }
 0x46e   : > { %v2842_v24 = vor.u32 %v2841_v47, %v2837_v60  ;;  %v2838_v56 = vsel %vm10566_vm15, %v2833_v18, %v2837_v60  ;;  %v2013_v60 = vrot.slane %v2008_v25, 4  ;;  %v8731_v47 = vrot.slane %v2001_v26, 11  ;;  %v1708_v18 = vld [vmem:[#allocation2 + $0xe8] sm:$0xf]  ;;  %v2530_v26 = vld [vmem:[#allocation2 + $0xec] sm:$0x1] }
 0x46f   : > { %v2423_v48 = vpop.f32.mrf.mxu2  ;;  %v1999_v43 = vsel %vm10554_vm13, %v1991_v23, %v1998_v39  ;;  %v2948_v63 = vunpack.c.l.b16 %v2838_v56  ;;  %v2011_v23 = vor.u32 %v2009_v51, %v2008_v25  ;;  %v2871_v40 = vrot.slane %v2869_v35, 5  ;;  %v2528_v56 = vld [vmem:[#allocation2 + $0xe4] sm:$0xf] }
 0x470   : > { %v2843_v27 = vrot.slane %v2842_v24, 4  ;;  %v2424_v52 = vadd.f32 %v2423_v48, %v10919_v16  ;;  %v2320_v41 = vunpack.c.l.b16 %v1999_v43  ;;  %v2021_v14 = vsel %vm10554_vm13, %v2013_v60, %v2020_v17  ;;  %v2529_v24 = vld [vmem:[#allocation2 + $0xe8] sm:$0xf] }
 0x471   : > { %v2322_v15 = vunpack.c.l.b16 %v2021_v14  ;;  %v2872_v48 = vsel %vm10566_vm15, %v2867_v55, %v2871_v40  ;;  %v2037_v43 = vshrl.u32 %v1708_v18, 16  ;;  %v2887_v11 = vshrl.u32 %v2529_v24, 16 }
 0x472   : > { %v2848_v45 = vsel %vm10566_vm15, %v2843_v27, %v2847_v3  ;;  %v3052_v20 = vpop.f32.mrf.mxu3  ;;  %v2339_v0 = vpack.c.b16 %v2320_v41, %v2319_v44  ;;  %v2856_v3 = vor.u32 %v2855_v58, %v2852_v33  ;;  %v2883_v27 = vshll.u32 %v2529_v24, 16 }
 0x473   : > { %v2949_v42 = vunpack.c.l.b16 %v2848_v45  ;;  %v10948_v57 = vadd.f32 %v3052_v20, %v2424_v52  ;;  %v2951_v19 = vunpack.c.l.b16 %v2872_v48  ;;  %v1706_v20 = vld [vmem:[#allocation2 + $0xe0] sm:$0x8]  ;;  %v2039_v28 = vrot.slane %v2037_v43, 7 }
 0x474   : > { %8836 = vmatmul.msk.bf16.gmra.mxu2 %vm2157_vm14, %v2339_v0  ;;  %v2857_v8 = vrot.slane %v2856_v3, 4  ;;  %v2874_v0 = vshrl.u32 %v2528_v56, 16  ;;  %v2885_v37 = vrot.slane %v2883_v27, 5  ;;  %v2030_v33 = vrot.slane %v2028_v49, 7 }
 0x475   : > { %v2968_v16 = vpack.c.b16 %v2949_v42, %v2948_v63  ;;  %v2240_v6 = vpop.f32.mrf.mxu1  ;;  %v2877_v63 = vshll.u32 %v2528_v56, 16  ;;  %v2040_v58 = vshll.u32 %v1708_v18, 16  ;;  %v2031_v35 = vshll.u32 %v1707_v7, 16  ;;  %v2532_v7 = vld [vmem:[#allocation2 + $0xf8] sm:$0xf] }
 0x476   : > { %v2862_v45 = vsel %vm10566_vm15, %v2857_v8, %v2861_v50  ;;  %v2876_v17 = vrot.slane %v2874_v0, 4  ;;  %v2035_v14 = vrot.slane %v2030_v33, 4  ;;  %v1711_v8 = vld [vmem:[#allocation2 + $0xf8] sm:$0xf]  ;;  %v1710_v56 = vld [vmem:[#allocation2 + $0xf4] sm:$0xf] }
 0x477   : > { %8858 = vmatmul.msk.bf16.gmra.mxu3 %vm2157_vm14, %v2968_v16  ;;  %v2426_v29 = vpop.f32.mrf.mxu2  ;;  %v2889_v16 = vrot.slane %v2887_v11, 4  ;;  %v2950_v12 = vunpack.c.l.b16 %v2862_v45  ;;  %v2879_v1 = vrot.slane %v2877_v63, 5  ;;  %v2059_v11 = vshrl.u32 %v1711_v8, 16 }
 0x478   : > { %v2427_v53 = vadd.f32 %v2426_v29, %v10933_v30  ;;  %8817 = vmatmul.msk.bf16.gmra.mxu1 %vm2157_vm14, %v9780_v5  ;;  %v2012_v30 = vsel %vm10554_vm13, %v8731_v47, %v2011_v23  ;;  %v2042_v29 = vor.u32 %v2040_v58, %v2039_v28  ;;  %v9781_v23 = vld [vmem:[#allocation2 + $0xe4] sm:$0xff]  ;;  %v2050_v63 = vshrl.u32 %v1710_v56, 16  ;;  %v1709_v28 = vld [vmem:[#allocation2 + $0xf0] sm:$0x8] }
 0x479   : > { %v2321_v22 = vunpack.c.l.b16 %v2012_v30  ;;  %v2969_v50 = vpack.c.b16 %v2951_v19, %v2950_v12  ;;  %v2890_v51 = vor.u32 %v2889_v16, %v2885_v37  ;;  %v2880_v55 = vor.u32 %v2879_v1, %v2876_v17 }
 0x47a   : > { %v3055_v32 = vpop.f32.mrf.mxu3  ;;  %v2043_v18 = vsel %vm10554_vm13, %v2035_v14, %v2042_v29  ;;  %v3148_v29 = vld [vmem:[#allocation2 + $0x14] sm:$0xf] }
 0x47b   : > { %v10956_v39 = vadd.f32 %v3055_v32, %v2427_v53  ;;  %v2340_v61 = vpack.c.b16 %v2322_v15, %v2321_v22  ;;  %v2893_v53 = vshll.u32 %v2530_v26, 16  ;;  %v2033_v32 = vor.u32 %v2031_v35, %v2030_v33  ;;  %v2533_v35 = vld [vmem:[#allocation2 + $0xfc] sm:$0x1] }
 0x47c   : > { %v2891_v24 = vrot.slane %v2890_v51, 4  ;;  %v2324_v48 = vunpack.c.l.b16 %v2043_v18  ;;  %v2881_v43 = vrot.slane %v2880_v55, 4  ;;  %v2911_v22 = vshrl.u32 %v2532_v7, 16  ;;  %v9822_v51 = vld [vmem:[%s12429_s3 + $0x38] sm:$0xff] }
 0x47d   : > { %v2242_v44 = vpop.f32.mrf.mxu1  ;;  %v2895_v30 = vrot.slane %v2893_v53, 5  ;;  %v2061_v26 = vrot.slane %v2059_v11, 7  ;;  %v2917_v55 = vshll.u32 %v2533_v35, 16  ;;  %5460 = vmatpush.bf16.msra.mxu2 %v9822_v51 }
 0x47e   : > { %v2886_v0 = vsel %vm10566_vm15, %v2881_v43, %v2885_v37  ;;  %v2913_v58 = vrot.slane %v2911_v22, 4  ;;  %v2062_v37 = vshll.u32 %v1711_v8, 16  ;;  %v9823_v8 = vld [vmem:[%s12429_s3 + $0x40] sm:$0xff]  ;;  %v3147_v43 = vld [vmem:[#allocation2 + $0x10] sm:$0x8] }
 0x47f   : > { %v2428_v52 = vpop.f32.mrf.mxu2  ;;  %v2896_v27 = vsel %vm10566_vm15, %v2891_v24, %v2895_v30  ;;  %v2952_v1 = vunpack.c.l.b16 %v2886_v0  ;;  %v2053_v24 = vshll.u32 %v1710_v56, 16  ;;  %v3201_v30 = vshrl.u32 %v3148_v29, 16  ;;  %6118 = vmatpush.bf16.msrb.mxu3 %v9823_v8 }
 0x480   : > { %v2429_v41 = vadd.f32 %v2428_v52, %v2237_v9  ;;  %v2023_v9 = vshrl.u32 %v1706_v20, 16  ;;  %v2531_v52 = vld [vmem:[#allocation2 + $0xf4] sm:$0xf]  ;;  %v3196_v0 = vshrl.u32 %v3147_v43, 16 }
 0x481   : > { %v2898_v16 = vshrl.u32 %v2531_v52, 16 }
 0x482   : > { %v3057_v42 = vpop.f32.mrf.mxu3  ;;  %v8732_v3 = vrot.slane %v2023_v9, 11  ;;  %v2901_v9 = vshll.u32 %v2531_v52, 16 }
 0x483   : > { %v10964_v25 = vadd.f32 %v3057_v42, %v2429_v41  ;;  %v2907_v41 = vshll.u32 %v2532_v7, 16 }
 0x484   : > { %8837 = vmatmul.msk.bf16.gmra.mxu2 %vm2157_vm14, %v2340_v61  ;;  %v2953_v61 = vunpack.c.l.b16 %v2896_v27  ;;  %v9821_v27 = vld [vmem:[%s12429_s3 + $0x30] sm:$0xff] }
 0x485   : > { %v10968_v60 = vpop.f32.mrf.mxu1  ;;  %v10983_v33 = vrot.slane %v2907_v41, 5  ;;  %5202 = vmatpush.bf16.msrb.mxu1 %v9821_v27 }
 0x486   : > { %v2970_v53 = vpack.c.b16 %v2953_v61, %v2952_v1  ;;  %v4032_v61 = vld [vmem:[#allocation2 + $0x18] sm:$0xf]  ;;  %v4031_v1 = vld [vmem:[#allocation2 + $0x14] sm:$0xf] }
 0x487   : > { %8859 = vmatmul.msk.bf16.gmra.mxu3 %vm2157_vm14, %v2969_v50  ;;  %v2431_v5 = vpop.f32.mrf.mxu2  ;;  %v3149_v50 = vld [vmem:[#allocation2 + $0x18] sm:$0xf]  ;;  %v2914_v14 = vor.u32 %v2913_v58, %v10983_v33  ;;  %v4089_v35 = vshll.u32 %v4032_v61, 16 }
 0x488   : > { %v2432_v47 = vadd.f32 %v2431_v5, %v2240_v6  ;;  %8818 = vmatmul.msk.bf16.gmra.mxu1 %vm2157_vm14, %v9781_v23  ;;  %v2034_v6 = vsel %vm10554_vm13, %v8732_v3, %v2033_v32  ;;  %v2045_v5 = vshrl.u32 %v1709_v28, 16  ;;  %v3210_v23 = vshrl.u32 %v3149_v50, 16 }
 0x489   : > { %v2323_v19 = vunpack.c.l.b16 %v2034_v6  ;;  %v2064_v3 = vor.u32 %v2062_v37, %v2061_v26  ;;  %v2903_v32 = vrot.slane %v2901_v9, 5  ;;  %v9782_v6 = vld [vmem:[#allocation2 + $0xf4] sm:$0xff]  ;;  %v4091_v8 = vrot.slane %v4089_v35, 5 }
 0x48a   : > { %v3060_v40 = vpop.f32.mrf.mxu3  ;;  %v8733_v11 = vrot.slane %v2045_v5, 11  ;;  %v3212_v41 = vrot.slane %v3210_v23, 7 }
 0x48b   : > { %v10973_v15 = vadd.f32 %v3060_v40, %v2432_v47  ;;  %v2341_v42 = vpack.c.b16 %v2324_v48, %v2323_v19  ;;  %v2900_v47 = vrot.slane %v2898_v16, 4  ;;  %v2915_v19 = vrot.slane %v2914_v14, 4  ;;  %v4033_v14 = vld [vmem:[#allocation2 + $0x1c] sm:$0x1] }
 0x48d   : > { %v10979_v49 = vpop.f32.mrf.mxu1 }
 0x48f   : > { %v2433_v45 = vpop.f32.mrf.mxu2 }
 0x490   : > { %v2434_v20 = vadd.f32 %v2433_v45, %v2242_v44  ;;  %v2052_v44 = vrot.slane %v2050_v63, 7  ;;  %v2904_v45 = vor.u32 %v2903_v32, %v2900_v47  ;;  %v3203_v63 = vrot.slane %v3201_v30, 7 }
 0x492   : > { %v3062_v12 = vpop.f32.mrf.mxu3  ;;  %v2057_v48 = vrot.slane %v2052_v44, 4  ;;  %v2055_v52 = vor.u32 %v2053_v24, %v2052_v44  ;;  %v2905_v9 = vrot.slane %v2904_v45, 4  ;;  %v4093_v44 = vshrl.u32 %v4032_v61, 16 }
 0x493   : > { %v10985_v17 = vadd.f32 %v3062_v12, %v2434_v20  ;;  %v3204_v12 = vshll.u32 %v3148_v29, 16 }
 0x494   : > { %8838 = vmatmul.msk.bf16.gmra.mxu2 %vm2157_vm14, %v2341_v42  ;;  %v2065_v56 = vsel %vm10554_vm13, %v2057_v48, %v2064_v3  ;;  %v3213_v42 = vshll.u32 %v3149_v50, 16  ;;  %v2056_v28 = vsel %vm10554_vm13, %v8733_v11, %v2055_v52  ;;  %v3208_v50 = vrot.slane %v3203_v63, 4  ;;  %v3152_v48 = vld [vmem:[#allocation2 + $0x28] sm:$0xf] }
 0x495   : > { %v10993_v18 = vpop.f32.mrf.mxu1  ;;  %v2326_v16 = vunpack.c.l.b16 %v2065_v56  ;;  %v3206_v5 = vor.u32 %v3204_v12, %v3203_v63  ;;  %v2325_v23 = vunpack.c.l.b16 %v2056_v28  ;;  %v2910_v29 = vsel %vm10566_vm15, %v2905_v9, %v10983_v33 }
 0x496   : > { %v3215_v26 = vor.u32 %v3213_v42, %v3212_v41  ;;  %v4099_v52 = vshll.u32 %v4033_v14, 16 }
 0x497   : > { %8860 = vmatmul.msk.bf16.gmra.mxu3 %vm2157_vm14, %v2970_v53  ;;  %v2436_v40 = vpop.f32.mrf.mxu2  ;;  %v8862_v53 = vrot.slane %v3196_v0, 11  ;;  %v2342_v30 = vpack.c.b16 %v2326_v16, %v2325_v23  ;;  %v3150_v0 = vld [vmem:[#allocation2 + $0x20] sm:$0x8] }
 0x498   : > { %v2437_v7 = vadd.f32 %v2436_v40, %v10968_v60  ;;  %8819 = vmatmul.msk.bf16.gmra.mxu1 %vm2157_vm14, %v9782_v6  ;;  %v2919_v60 = vrot.slane %v2917_v55, 5  ;;  %v3216_v32 = vsel %vm10554_vm13, %v3208_v50, %v3215_v26  ;;  %v4080_v55 = vshrl.u32 %v4031_v1, 16  ;;  %v3151_v6 = vld [vmem:[#allocation2 + $0x24] sm:$0xf] }
 0x499   : > { %v4083_v40 = vshll.u32 %v4031_v1, 16  ;;  %v3207_v27 = vsel %vm10554_vm13, %v8862_v53, %v3206_v5  ;;  %v3551_v33 = vunpack.c.l.b16 %v3216_v32  ;;  %v3223_v41 = vshrl.u32 %v3151_v6, 16  ;;  %v4035_v5 = vld [vmem:[#allocation2 + $0x28] sm:$0xf] }
 0x49a   : > { %v3065_v22 = vpop.f32.mrf.mxu3  ;;  %v2920_v58 = vsel %vm10566_vm15, %v2915_v19, %v2919_v60  ;;  %v3550_v56 = vunpack.c.l.b16 %v3207_v27  ;;  %v4082_v45 = vrot.slane %v4080_v55, 4  ;;  %v3218_v16 = vshrl.u32 %v3150_v0, 16 }
 0x49b   : > { %v11005_v20 = vadd.f32 %v3065_v22, %v2437_v7  ;;  %v2955_v3 = vunpack.c.l.b16 %v2920_v58  ;;  %v4095_v7 = vrot.slane %v4093_v44, 4  ;;  %v3232_v22 = vshrl.u32 %v3152_v48, 16 }
 0x49c   : > { %v4085_v19 = vrot.slane %v4083_v40, 5  ;;  %v3582_v28 = vpack.c.b16 %v3551_v33, %v3550_v56  ;;  %v3225_v12 = vrot.slane %v3223_v41, 7  ;;  %v4101_v35 = vrot.slane %v4099_v52, 5  ;;  %v3154_v33 = vld [vmem:[#allocation2 + $0x34] sm:$0xf] }
 0x49d   : > { %v2252_v51 = vpop.f32.mrf.mxu1  ;;  %v4096_v60 = vor.u32 %v4095_v7, %v4091_v8  ;;  %v3234_v26 = vrot.slane %v3232_v22, 7  ;;  %v3235_v53 = vshll.u32 %v3152_v48, 16  ;;  %v8863_v50 = vrot.slane %v3218_v16, 11 }
 0x49e   : > { %v4086_v58 = vor.u32 %v4085_v19, %v4082_v45  ;;  %v4117_v32 = vshrl.u32 %v4035_v5, 16  ;;  %v3230_v40 = vrot.slane %v3225_v12, 4  ;;  %v3155_v45 = vld [vmem:[#allocation2 + $0x38] sm:$0xf] }
 0x49f   : > { %v2438_v37 = vpop.f32.mrf.mxu2  ;;  %v4097_v1 = vrot.slane %v4096_v60, 4  ;;  %v3237_v23 = vor.u32 %v3235_v53, %v3234_v26  ;;  %v4036_v60 = vld [vmem:[#allocation2 + $0x2c] sm:$0x1] }
 0x4a0   : > { %v2439_v47 = vadd.f32 %v2438_v37, %v10979_v49  ;;  %v2954_v49 = vunpack.c.l.b16 %v2910_v29  ;;  %v3226_v37 = vshll.u32 %v3151_v6, 16  ;;  %v4087_v29 = vrot.slane %v4086_v58, 4  ;;  %v9786_v6 = vld [vmem:[#allocation2 + $0x14] sm:$0xff]  ;;  %v3153_v58 = vld [vmem:[#allocation2 + $0x30] sm:$0x8] }
 0x4a1   : > { %v3238_v27 = vsel %vm10554_vm13, %v3230_v40, %v3237_v23  ;;  %v4119_v56 = vrot.slane %v4117_v32, 4  ;;  %v3257_v40 = vshll.u32 %v3155_v45, 16 }
 0x4a2   : > { %v3067_v24 = vpop.f32.mrf.mxu3  ;;  %v2971_v11 = vpack.c.b16 %v2955_v3, %v2954_v49  ;;  %v4113_v3 = vshll.u32 %v4035_v5, 16  ;;  %v4092_v7 = vsel %vm10566_vm15, %v4087_v29, %v4091_v8  ;;  %v3553_v8 = vunpack.c.l.b16 %v3238_v27 }
 0x4a3   : > { %v11017_v43 = vadd.f32 %v3067_v24, %v2439_v47  ;;  %v3228_v47 = vor.u32 %v3226_v37, %v3225_v12  ;;  %v4034_v24 = vld [vmem:[#allocation2 + $0x24] sm:$0xf]  ;;  %v3240_v5 = vshrl.u32 %v3153_v58, 16 }
 0x4a4   : > { %8839 = vmatmul.msk.bf16.gmra.mxu2 %vm2157_vm14, %v2342_v30  ;;  %v4104_v52 = vshrl.u32 %v4034_v24, 16  ;;  %v4107_v41 = vshll.u32 %v4034_v24, 16  ;;  %v4115_v22 = vrot.slane %v4113_v3, 5  ;;  %v4038_v24 = vld [vmem:[#allocation2 + $0x38] sm:$0xf] }
 0x4a5   : > { %v2255_v42 = vpop.f32.mrf.mxu1  ;;  %v3229_v49 = vsel %vm10554_vm13, %v8863_v50, %v3228_v47  ;;  %v4141_v27 = vshrl.u32 %v4038_v24, 16 }
 0x4a6   : > { %v4106_v16 = vrot.slane %v4104_v52, 4  ;;  %v4109_v12 = vrot.slane %v4107_v41, 5  ;;  %v4120_v26 = vor.u32 %v4119_v56, %v4115_v22  ;;  %v4037_v56 = vld [vmem:[#allocation2 + $0x34] sm:$0xf] }
 0x4a7   : > { %8861 = vmatmul.msk.bf16.gmra.mxu3 %vm2157_vm14, %v2971_v11  ;;  %v2441_v63 = vpop.f32.mrf.mxu2 }
 0x4a8   : > { %v2442_v61 = vadd.f32 %v2441_v63, %v10993_v18  ;;  %8884 = vmatmul.msk.bf16.vlgmr.msra.gmra.mxu1 %vm2157_vm14, %v3582_v28  ;;  %v4102_v18 = vsel %vm10566_vm15, %v4097_v1, %v4101_v35  ;;  %v3552_v63 = vunpack.c.l.b16 %v3229_v49  ;;  %v3254_v28 = vshrl.u32 %v3155_v45, 16  ;;  %v9787_v45 = vld [vmem:[#allocation2 + $0x24] sm:$0xff] }
 0x4a9   : > { %v4467_v48 = vunpack.c.l.b16 %v4102_v18  ;;  %v4110_v29 = vor.u32 %v4109_v12, %v4106_v16  ;;  %v4121_v18 = vrot.slane %v4120_v26, 4  ;;  %v4137_v49 = vshll.u32 %v4038_v24, 16 }
 0x4aa   : > { %v3070_v9 = vpop.f32.mrf.mxu3  ;;  %v3583_v53 = vpack.c.b16 %v3553_v8, %v3552_v63  ;;  %v3256_v47 = vrot.slane %v3254_v28, 7  ;;  %v3157_v63 = vld [vmem:[#allocation2 + $0x44] sm:$0xf]  ;;  %v4128_v28 = vshrl.u32 %v4037_v56, 16  ;;  %v4131_v16 = vshll.u32 %v4037_v56, 16 }
 0x4ab   : > { %v11025_v44 = vadd.f32 %v3070_v9, %v2442_v61  ;;  %v3245_v61 = vshrl.u32 %v3154_v33, 16  ;;  %v4123_v9 = vshll.u32 %v4036_v60, 16  ;;  %v11052_v12 = vrot.slane %v4137_v49, 5 }
 0x4ac   : > { %v4143_v26 = vrot.slane %v4141_v27, 4  ;;  %v3270_v34 = vshll.u32 %v3157_v63, 16 }
 0x4ad   : > { %v2257_v55 = vpop.f32.mrf.mxu1  ;;  %v3247_v50 = vrot.slane %v3245_v61, 7  ;;  %v4125_v3 = vrot.slane %v4123_v9, 5  ;;  %v3158_v9 = vld [vmem:[#allocation2 + $0x48] sm:$0xf] }
 0x4af   : > { %v2443_v14 = vpop.f32.mrf.mxu2  ;;  %v3252_v41 = vrot.slane %v3247_v50, 4 }
 0x4b0   : > { %v2444_v30 = vadd.f32 %v2443_v14, %v2252_v51  ;;  %v4466_v51 = vunpack.c.l.b16 %v4092_v7  ;;  %v3248_v14 = vshll.u32 %v3154_v33, 16 }
 0x4b2   : > { %v3072_v11 = vpop.f32.mrf.mxu3  ;;  %v4498_v0 = vpack.c.b16 %v4467_v48, %v4466_v51  ;;  %v3250_v7 = vor.u32 %v3248_v14, %v3247_v50  ;;  %v4111_v48 = vrot.slane %v4110_v29, 4  ;;  %v3267_v50 = vshrl.u32 %v3157_v63, 16  ;;  %v3156_v14 = vld [vmem:[#allocation2 + $0x40] sm:$0x8] }
 0x4b3   : > { %v11035_v19 = vadd.f32 %v3072_v11, %v2444_v30  ;;  %v8864_v30 = vrot.slane %v3240_v5, 11  ;;  %v4133_v29 = vrot.slane %v4131_v16, 5 }
 0x4b4   : > { %8970 = vmatmul.msk.bf16.vlgmr.msrb.gmra.mxu2 %vm2157_vm14, %v9786_v6  ;;  %v3259_v6 = vor.u32 %v3257_v40, %v3256_v47  ;;  %v4116_v33 = vsel %vm10566_vm15, %v4111_v48, %v4115_v22  ;;  %v4039_v22 = vld [vmem:[#allocation2 + $0x3c] sm:$0x1]  ;;  %v3276_v47 = vshrl.u32 %v3158_v9, 16  ;;  %v3269_v49 = vrot.slane %v3267_v50, 7 }
 0x4b5   : > { %v2260_v35 = vpop.f32.mrf.mxu1  ;;  %v3251_v8 = vsel %vm10554_vm13, %v8864_v30, %v3250_v7  ;;  %v4468_v58 = vunpack.c.l.b16 %v4116_v33  ;;  %v1597_v7 = vld [vmem:[#allocation2 + $0x10c] sm:$0x1] }
 0x4b6   : > { %v3554_v5 = vunpack.c.l.b16 %v3251_v8  ;;  %v3278_v27 = vrot.slane %v3276_v47, 7  ;;  %v1598_v33 = vsel %vm10489_vm8, 0, %v1597_v7  ;;  %v4041_v8 = vld [vmem:[#allocation2 + $0x48] sm:$0xf]  ;;  %vm11691_vm8 = vmand %vm6299_vm7, %vm1550_vm6 }
 0x4b7   : > { %8992 = vmatmul.msk.bf16.vlgmr.msra.gmra.mxu3 %vm2157_vm14, %v4498_v0  ;;  %v2446_v1 = vpop.f32.mrf.mxu2  ;;  %v3260_v0 = vsel %vm10554_vm13, %v3252_v41, %v3259_v6  ;;  %1599 = vst [vmem:[#allocation2 + $0x10c] sm:$0x1] %v1598_v33  ;;  %v3159_v33 = vld [vmem:[#allocation2 + $0x50] sm:$0x8] }
 0x4b8   : > { %v2447_v37 = vadd.f32 %v2446_v1, %v2255_v42  ;;  %8885 = vmatmul.msk.bf16.gmra.mxu1 %vm2157_vm14, %v3583_v53  ;;  %v4126_v42 = vsel %vm10566_vm15, %v4121_v18, %v4125_v3  ;;  %v3555_v1 = vunpack.c.l.b16 %v3260_v0  ;;  %v4144_v18 = vor.u32 %v4143_v26, %v11052_v12 }
 0x4b9   : > { %v4469_v60 = vunpack.c.l.b16 %v4126_v42  ;;  %v4147_v3 = vshll.u32 %v4039_v22, 16  ;;  %v3262_v42 = vshrl.u32 %v3156_v14, 16  ;;  %v3272_v0 = vor.u32 %v3270_v34, %v3269_v49 }
 0x4ba   : > { %v3075_v23 = vpop.f32.mrf.mxu3  ;;  %v3584_v48 = vpack.c.b16 %v3555_v1, %v3554_v5  ;;  %v4145_v56 = vrot.slane %v4144_v18, 4  ;;  %v4161_v26 = vshll.u32 %v4041_v8, 16  ;;  %v4152_v18 = vshrl.u32 %v4040_v38, 16 }
 0x4bb   : > { %v11040_v32 = vadd.f32 %v3075_v23, %v2447_v37  ;;  %v1546_v37 = vld [vmem:[#allocation2 + $0x100] sm:$0x8]  ;;  %v4499_v53 = vpack.c.b16 %v4469_v60, %v4468_v58  ;;  %v4130_v23 = vrot.slane %v4128_v28, 4  ;;  %v3279_v60 = vshll.u32 %v3158_v9, 16  ;;  %v9788_v9 = vld [vmem:[#allocation2 + $0x34] sm:$0xff] }
 0x4bc   : > { %v1547_v30 = vsel %vm10478_vm5, 0, %v1546_v37  ;;  %v4165_v58 = vshrl.u32 %v4041_v8, 16  ;;  %v3274_v37 = vrot.slane %v3269_v49, 4  ;;  %v4163_v14 = vrot.slane %v4161_v26, 5  ;;  %vm11674_vm5 = vmand %vm6287_vm4, %vm1550_vm6 }
 0x4bd   : > { %v11044_v52 = vpop.f32.mrf.mxu1  ;;  %1548 = vst [vmem:[#allocation2 + $0x100] sm:$0x8] %v1547_v30  ;;  %v4134_v41 = vor.u32 %v4133_v29, %v4130_v23  ;;  %v3160_v23 = vld [vmem:[#allocation2 + $0x54] sm:$0xf]  ;;  %v3161_v30 = vld [vmem:[#allocation2 + $0x58] sm:$0xf] }
 0x4be   : > { %v3289_v49 = vshrl.u32 %v3160_v23, 16 }
 0x4bf   : > { %v2448_v11 = vpop.f32.mrf.mxu2  ;;  %v4135_v28 = vrot.slane %v4134_v41, 4 }
 0x4c0   : > { %v2449_v51 = vadd.f32 %v2448_v11, %v2257_v55 }
 0x4c1   : > { %v4140_v63 = vsel %vm10566_vm15, %v4135_v28, %v11052_v12 }
 0x4c2   : > { %v3077_v61 = vpop.f32.mrf.mxu3  ;;  %v4470_v7 = vunpack.c.l.b16 %v4140_v63  ;;  %v4044_v63 = vld [vmem:[#allocation2 + $0x58] sm:$0xf] }
 0x4c3   : > { %v11054_v55 = vadd.f32 %v3077_v61, %v2449_v51  ;;  %v4149_v51 = vrot.slane %v4147_v3, 5  ;;  %v3281_v61 = vor.u32 %v3279_v60, %v3278_v27  ;;  %v4155_v3 = vshll.u32 %v4040_v38, 16 }
 0x4c4   : > { %8971 = vmatmul.msk.bf16.gmra.mxu2 %vm2157_vm14, %v9787_v45  ;;  %v3298_v27 = vshrl.u32 %v3161_v30, 16  ;;  %v3292_v38 = vshll.u32 %v3160_v23, 16  ;;  %v9789_v23 = vld [vmem:[#allocation2 + $0x44] sm:$0xff] }
 0x4c5   : > { %v2265_v24 = vpop.f32.mrf.mxu1  ;;  %v4150_v16 = vsel %vm10566_vm15, %v4145_v56, %v4149_v51  ;;  %v3282_v47 = vsel %vm10554_vm13, %v3274_v37, %v3281_v61  ;;  %v4157_v41 = vrot.slane %v4155_v3, 5  ;;  %v3291_v61 = vrot.slane %v3289_v49, 7 }
 0x4c6   : > { %v4471_v5 = vunpack.c.l.b16 %v4150_v16  ;;  %v3557_v12 = vunpack.c.l.b16 %v3282_v47  ;;  %v3300_v28 = vrot.slane %v3298_v27, 7 }
 0x4c7   : > { %8993 = vmatmul.msk.bf16.gmra.mxu3 %vm2157_vm14, %v4499_v53  ;;  %v2451_v40 = vpop.f32.mrf.mxu2 }
 0x4c8   : > { %v2452_v6 = vadd.f32 %v2451_v40, %v2260_v35  ;;  %8886 = vmatmul.msk.bf16.gmra.mxu1 %vm2157_vm14, %v3584_v48  ;;  %v8865_v35 = vrot.slane %v3262_v42, 11  ;;  %v4167_v40 = vrot.slane %v4165_v58, 4  ;;  %v4500_v48 = vpack.c.b16 %v4471_v5, %v4470_v7 }
 0x4c9   : > { %v3294_v5 = vor.u32 %v3292_v38, %v3291_v61  ;;  %v3296_v7 = vrot.slane %v3291_v61, 4 }
 0x4ca   : > { %v3080_v11 = vpop.f32.mrf.mxu3  ;;  %v3273_v50 = vsel %vm10554_vm13, %v8865_v35, %v3272_v0  ;;  %v4168_v56 = vor.u32 %v4167_v40, %v4163_v14  ;;  %v3284_v0 = vshrl.u32 %v3159_v33, 16  ;;  %v3164_v33 = vld [vmem:[#allocation2 + $0x68] sm:$0xf] }
 0x4cb   : > { %v11064_v45 = vadd.f32 %v3080_v11, %v2452_v6  ;;  %v4042_v6 = vld [vmem:[#allocation2 + $0x4c] sm:$0x1]  ;;  %v3556_v42 = vunpack.c.l.b16 %v3273_v50  ;;  %v4154_v11 = vrot.slane %v4152_v18, 4  ;;  %v4189_v18 = vshrl.u32 %v4044_v63, 16 }
 0x4cc   : > { %v4171_v51 = vshll.u32 %v4042_v6, 16  ;;  %v4169_v58 = vrot.slane %v4168_v56, 4  ;;  %v4043_v6 = vld [vmem:[#allocation2 + $0x54] sm:$0xf] }
 0x4cd   : > { %v2267_v1 = vpop.f32.mrf.mxu1  ;;  %v3585_v35 = vpack.c.b16 %v3557_v12, %v3556_v42  ;;  %v4158_v26 = vor.u32 %v4157_v41, %v4154_v11  ;;  %v4176_v11 = vshrl.u32 %v4043_v6, 16  ;;  %v4179_v41 = vshll.u32 %v4043_v6, 16 }
 0x4cf   : > { %v2453_v22 = vpop.f32.mrf.mxu2  ;;  %v4159_v47 = vrot.slane %v4158_v26, 4  ;;  %v4181_v26 = vrot.slane %v4179_v41, 5 }
 0x4d0   : > { %v2454_v53 = vadd.f32 %v2453_v22, %v11044_v52  ;;  %v4173_v22 = vrot.slane %v4171_v51, 5  ;;  %v4191_v51 = vrot.slane %v4189_v18, 4 }
 0x4d2   : > { %v3082_v29 = vpop.f32.mrf.mxu3 }
 0x4d3   : > { %v11076_v52 = vadd.f32 %v3082_v29, %v2454_v53  ;;  %v3301_v53 = vshll.u32 %v3161_v30, 16  ;;  %v4185_v29 = vshll.u32 %v4044_v63, 16 }
 0x4d4   : > { %8972 = vmatmul.msk.bf16.gmra.mxu2 %vm2157_vm14, %v9788_v9  ;;  %v8866_v9 = vrot.slane %v3284_v0, 11 }
 0x4d5   : > { %v2270_v60 = vpop.f32.mrf.mxu1  ;;  %v3303_v50 = vor.u32 %v3301_v53, %v3300_v28  ;;  %v4187_v56 = vrot.slane %v4185_v29, 5  ;;  %v3320_v28 = vshrl.u32 %v3164_v33, 16 }
 0x4d6   : > { %v3295_v42 = vsel %vm10554_vm13, %v8866_v9, %v3294_v5 }
 0x4d7   : > { %8994 = vmatmul.msk.bf16.gmra.mxu3 %vm2157_vm14, %v4500_v48  ;;  %v2456_v34 = vpop.f32.mrf.mxu2  ;;  %v4164_v48 = vsel %vm10566_vm15, %v4159_v47, %v4163_v14  ;;  %v3304_v49 = vsel %vm10554_vm13, %v3296_v7, %v3303_v50  ;;  %v3558_v61 = vunpack.c.l.b16 %v3295_v42  ;;  %v3162_v50 = vld [vmem:[#allocation2 + $0x60] sm:$0x8]  ;;  %v3322_v47 = vrot.slane %v3320_v28, 7 }
 0x4d8   : > { %v2457_v8 = vadd.f32 %v2456_v34, %v2265_v24  ;;  %8887 = vmatmul.msk.bf16.gmra.mxu1 %vm2157_vm14, %v3585_v35  ;;  %v4174_v24 = vsel %vm10566_vm15, %v4169_v58, %v4173_v22  ;;  %v3559_v14 = vunpack.c.l.b16 %v3304_v49  ;;  %v3163_v35 = vld [vmem:[#allocation2 + $0x64] sm:$0xf]  ;;  %v4192_v58 = vor.u32 %v4191_v51, %v4187_v56 }
 0x4d9   : > { %v4473_v30 = vunpack.c.l.b16 %v4174_v24  ;;  %v3311_v63 = vshrl.u32 %v3163_v35, 16  ;;  %v3306_v6 = vshrl.u32 %v3162_v50, 16 }
 0x4da   : > { %v3085_v16 = vpop.f32.mrf.mxu3  ;;  %v3586_v5 = vpack.c.b16 %v3559_v14, %v3558_v61  ;;  %v4193_v18 = vrot.slane %v4192_v58, 4  ;;  %v9790_v58 = vld [vmem:[#allocation2 + $0x54] sm:$0xff] }
 0x4db   : > { %v11081_v37 = vadd.f32 %v3085_v16, %v2457_v8  ;;  %v4045_v8 = vld [vmem:[#allocation2 + $0x5c] sm:$0x1]  ;;  %v4178_v16 = vrot.slane %v4176_v11, 4 }
 0x4dc   : > { %v4195_v22 = vshll.u32 %v4045_v8, 16  ;;  %v8867_v8 = vrot.slane %v3306_v6, 11 }
 0x4dd   : > { %v2272_v40 = vpop.f32.mrf.mxu1  ;;  %v4182_v29 = vor.u32 %v4181_v26, %v4178_v16 }
 0x4df   : > { %v2458_v3 = vpop.f32.mrf.mxu2  ;;  %v4183_v49 = vrot.slane %v4182_v29, 4 }
 0x4e0   : > { %v2459_v12 = vadd.f32 %v2458_v3, %v2267_v1  ;;  %v4472_v1 = vunpack.c.l.b16 %v4164_v48  ;;  %v4197_v3 = vrot.slane %v4195_v22, 5  ;;  %v3323_v48 = vshll.u32 %v3164_v33, 16 }
 0x4e1   : > { %v4188_v28 = vsel %vm10566_vm15, %v4183_v49, %v4187_v56 }
 0x4e2   : > { %v3087_v27 = vpop.f32.mrf.mxu3  ;;  %v4501_v0 = vpack.c.b16 %v4473_v30, %v4472_v1  ;;  %v3314_v30 = vshll.u32 %v3163_v35, 16  ;;  %v3325_v42 = vor.u32 %v3323_v48, %v3322_v47  ;;  %v4474_v50 = vunpack.c.l.b16 %v4188_v28  ;;  %v4048_v47 = vld [vmem:[#allocation2 + $0x6c] sm:$0x1] }
 0x4e3   : > { %v11091_v34 = vadd.f32 %v3087_v27, %v2459_v12  ;;  %v3313_v12 = vrot.slane %v3311_v63, 7  ;;  %v4046_v27 = vld [vmem:[#allocation2 + $0x64] sm:$0xf] }
 0x4e4   : > { %8973 = vmatmul.msk.bf16.gmra.mxu2 %vm2157_vm14, %v9789_v23  ;;  %v4047_v23 = vld [vmem:[#allocation2 + $0x68] sm:$0xf]  ;;  %v4200_v16 = vshrl.u32 %v4046_v27, 16  ;;  %v4203_v22 = vshll.u32 %v4046_v27, 16 }
 0x4e5   : > { %v2275_v53 = vpop.f32.mrf.mxu1  ;;  %v4209_v11 = vshll.u32 %v4047_v23, 16  ;;  %v4213_v41 = vshrl.u32 %v4047_v23, 16  ;;  %v3316_v14 = vor.u32 %v3314_v30, %v3313_v12  ;;  %v4219_v23 = vshll.u32 %v4048_v47, 16 }
 0x4e7   : > { %8995 = vmatmul.msk.bf16.gmra.mxu3 %vm2157_vm14, %v4501_v0  ;;  %v2461_v38 = vpop.f32.mrf.mxu2  ;;  %v3318_v0 = vrot.slane %v3313_v12, 4  ;;  %v4215_v63 = vrot.slane %v4213_v41, 4  ;;  %v4205_v12 = vrot.slane %v4203_v22, 5 }
 0x4e8   : > { %v2462_v9 = vadd.f32 %v2461_v38, %v2270_v60  ;;  %8888 = vmatmul.msk.bf16.gmra.mxu1 %vm2157_vm14, %v3586_v5  ;;  %v4198_v60 = vsel %vm10566_vm15, %v4193_v18, %v4197_v3  ;;  %v4211_v38 = vrot.slane %v4209_v11, 5  ;;  %v4202_v18 = vrot.slane %v4200_v16, 4  ;;  %v3165_v11 = vld [vmem:[#allocation2 + $0x70] sm:$0x8]  ;;  %v4050_v16 = vld [vmem:[#allocation2 + $0x78] sm:$0xf] }
 0x4e9   : > { %v4475_v33 = vunpack.c.l.b16 %v4198_v60  ;;  %v3326_v35 = vsel %vm10554_vm13, %v3318_v0, %v3325_v42  ;;  %v4221_v0 = vrot.slane %v4219_v23, 5  ;;  %v3328_v28 = vshrl.u32 %v3165_v11, 16  ;;  %v3170_v11 = vld [vmem:[#allocation2 + $0x88] sm:$0xf] }
 0x4ea   : > { %v3090_v24 = vpop.f32.mrf.mxu3  ;;  %v3561_v56 = vunpack.c.l.b16 %v3326_v35  ;;  %v4216_v48 = vor.u32 %v4215_v63, %v4211_v38  ;;  %v4049_v63 = vld [vmem:[#allocation2 + $0x74] sm:$0xf] }
 0x4eb   : > { %v11096_v7 = vadd.f32 %v3090_v24, %v2462_v9  ;;  %v3167_v9 = vld [vmem:[#allocation2 + $0x78] sm:$0xf]  ;;  %v3166_v24 = vld [vmem:[#allocation2 + $0x74] sm:$0xf]  ;;  %v4502_v29 = vpack.c.b16 %v4475_v33, %v4474_v50  ;;  %v4233_v50 = vshll.u32 %v4050_v16, 16 }
 0x4ec   : > { %v3342_v3 = vshrl.u32 %v3167_v9, 16  ;;  %v3333_v49 = vshrl.u32 %v3166_v24, 16  ;;  %v3345_v35 = vshll.u32 %v3167_v9, 16 }
 0x4ed   : > { %v2277_v1 = vpop.f32.mrf.mxu1 }
 0x4ee   : > { %v3344_v41 = vrot.slane %v3342_v3, 7  ;;  %v3335_v33 = vrot.slane %v3333_v49, 7  ;;  %v4227_v49 = vshll.u32 %v4049_v63, 16 }
 0x4ef   : > { %v2463_v51 = vpop.f32.mrf.mxu2 }
 0x4f0   : > { %v2464_v61 = vadd.f32 %v2463_v51, %v2272_v40  ;;  %v3317_v40 = vsel %vm10554_vm13, %v8867_v8, %v3316_v14  ;;  %v4206_v8 = vor.u32 %v4205_v12, %v4202_v18  ;;  %v4217_v14 = vrot.slane %v4216_v48, 4 }
 0x4f1   : > { %v3560_v6 = vunpack.c.l.b16 %v3317_v40  ;;  %v4237_v40 = vshrl.u32 %v4050_v16, 16  ;;  %v3340_v3 = vrot.slane %v3335_v33, 4  ;;  %v4224_v48 = vshrl.u32 %v4049_v63, 16 }
 0x4f2   : > { %v3092_v26 = vpop.f32.mrf.mxu3  ;;  %v4207_v22 = vrot.slane %v4206_v8, 4  ;;  %v4051_v8 = vld [vmem:[#allocation2 + $0x7c] sm:$0x1]  ;;  %v4229_v16 = vrot.slane %v4227_v49, 5 }
 0x4f3   : > { %v11104_v5 = vadd.f32 %v3092_v26, %v2464_v61  ;;  %v3587_v27 = vpack.c.b16 %v3561_v56, %v3560_v6  ;;  %v3336_v26 = vshll.u32 %v3166_v24, 16 }
 0x4f4   : > { %8974 = vmatmul.msk.bf16.gmra.mxu2 %vm2157_vm14, %v9790_v58  ;;  %v3347_v58 = vor.u32 %v3345_v35, %v3344_v41  ;;  %v4212_v12 = vsel %vm10566_vm15, %v4207_v22, %v4211_v38 }
 0x4f5   : > { %v2280_v42 = vpop.f32.mrf.mxu1  ;;  %v3338_v18 = vor.u32 %v3336_v26, %v3335_v33  ;;  %v3364_v33 = vshrl.u32 %v3170_v11, 16 }
 0x4f6   : > { %v3348_v24 = vsel %vm10554_vm13, %v3340_v3, %v3347_v58  ;;  %v4243_v58 = vshll.u32 %v4051_v8, 16 }
 0x4f7   : > { %8996 = vmatmul.msk.bf16.gmra.mxu3 %vm2157_vm14, %v4502_v29  ;;  %v2466_v30 = vpop.f32.mrf.mxu2  ;;  %v8868_v29 = vrot.slane %v3328_v28, 11  ;;  %v3563_v38 = vunpack.c.l.b16 %v3348_v24  ;;  %v4226_v28 = vrot.slane %v4224_v48, 4 }
 0x4f8   : > { %v2467_v60 = vadd.f32 %v2466_v30, %v2275_v53  ;;  %8889 = vmatmul.msk.bf16.gmra.mxu1 %vm2157_vm14, %v3587_v27  ;;  %v4222_v53 = vsel %vm10566_vm15, %v4217_v14, %v4221_v0  ;;  %v9791_v30 = vld [vmem:[#allocation2 + $0x64] sm:$0xff]  ;;  %v4239_v27 = vrot.slane %v4237_v40, 4 }
 0x4f9   : > { %v4477_v9 = vunpack.c.l.b16 %v4222_v53  ;;  %v3169_v14 = vld [vmem:[#allocation2 + $0x84] sm:$0xf]  ;;  %v4230_v3 = vor.u32 %v4229_v16, %v4226_v28 }
 0x4fa   : > { %v3095_v51 = vpop.f32.mrf.mxu3  ;;  %v3355_v63 = vshrl.u32 %v3169_v14, 16  ;;  %v3358_v49 = vshll.u32 %v3169_v14, 16 }
 0x4fb   : > { %v11111_v61 = vadd.f32 %v3095_v51, %v2467_v60  ;;  %v4235_v60 = vrot.slane %v4233_v50, 5  ;;  %v4476_v51 = vunpack.c.l.b16 %v4212_v12  ;;  %v4245_v12 = vrot.slane %v4243_v58, 5 }
 0x4fc   : > { %v3357_v48 = vrot.slane %v3355_v63, 7 }
 0x4fd   : > { %v2282_v56 = vpop.f32.mrf.mxu1  ;;  %v4503_v0 = vpack.c.b16 %v4477_v9, %v4476_v51  ;;  %v4240_v26 = vor.u32 %v4239_v27, %v4235_v60  ;;  %v4231_v51 = vrot.slane %v4230_v3, 4 }
 0x4fe   : > { %v3362_v16 = vrot.slane %v3357_v48, 4 }
 0x4ff   : > { %v2468_v47 = vpop.f32.mrf.mxu2  ;;  %v4236_v58 = vsel %vm10566_vm15, %v4231_v51, %v4235_v60 }
 0x500   : > { %v2469_v6 = vadd.f32 %v2468_v47, %v2277_v1  ;;  %v3339_v1 = vsel %vm10554_vm13, %v8868_v29, %v3338_v18  ;;  %v3168_v47 = vld [vmem:[#allocation2 + $0x80] sm:$0x8]  ;;  %v3366_v29 = vrot.slane %v3364_v33, 7 }
 0x501   : > { %v3562_v35 = vunpack.c.l.b16 %v3339_v1  ;;  %v3350_v24 = vshrl.u32 %v3168_v47, 16  ;;  %v4052_v1 = vld [vmem:[#allocation2 + $0x84] sm:$0xf] }
 0x502   : > { %v3097_v23 = vpop.f32.mrf.mxu3 }
 0x503   : > { %v11119_v41 = vadd.f32 %v3097_v23, %v2469_v6  ;;  %v3588_v40 = vpack.c.b16 %v3563_v38, %v3562_v35  ;;  %v4241_v6 = vrot.slane %v4240_v26, 4  ;;  %v3367_v23 = vshll.u32 %v3170_v11, 16 }
 0x504   : > { %8975 = vmatmul.msk.bf16.gmra.mxu2 %vm2157_vm14, %v9791_v30  ;;  %v4053_v30 = vld [vmem:[#allocation2 + $0x88] sm:$0xf]  ;;  %v8869_v28 = vrot.slane %v3350_v24, 11  ;;  %v3360_v35 = vor.u32 %v3358_v49, %v3357_v48  ;;  %v3172_v24 = vld [vmem:[#allocation2 + $0x94] sm:$0xf] }
 0x505   : > { %v2285_v53 = vpop.f32.mrf.mxu1  ;;  %v3369_v27 = vor.u32 %v3367_v23, %v3366_v29  ;;  %v4257_v8 = vshll.u32 %v4053_v30, 16  ;;  %v4261_v38 = vshrl.u32 %v4053_v30, 16 }
 0x507   : > { %8997 = vmatmul.msk.bf16.gmra.mxu3 %vm2157_vm14, %v4503_v0  ;;  %v2471_v22 = vpop.f32.mrf.mxu2  ;;  %v3370_v14 = vsel %vm10554_vm13, %v3362_v16, %v3369_v27  ;;  %v4259_v47 = vrot.slane %v4257_v8, 5  ;;  %v4263_v29 = vrot.slane %v4261_v38, 4  ;;  %v3377_v38 = vshrl.u32 %v3172_v24, 16 }
 0x508   : > { %v2472_v50 = vadd.f32 %v2471_v22, %v2280_v42  ;;  %8890 = vmatmul.msk.bf16.gmra.mxu1 %vm2157_vm14, %v3588_v40  ;;  %v4246_v42 = vsel %vm10566_vm15, %v4241_v6, %v4245_v12  ;;  %v4248_v22 = vshrl.u32 %v4052_v1, 16  ;;  %v4251_v40 = vshll.u32 %v4052_v1, 16  ;;  %v4054_v12 = vld [vmem:[#allocation2 + $0x8c] sm:$0x1] }
 0x509   : > { %v4479_v11 = vunpack.c.l.b16 %v4246_v42  ;;  %v4478_v6 = vunpack.c.l.b16 %v4236_v58  ;;  %v3565_v60 = vunpack.c.l.b16 %v3370_v14  ;;  %v4264_v51 = vor.u32 %v4263_v29, %v4259_v47  ;;  %v4056_v29 = vld [vmem:[#allocation2 + $0x98] sm:$0xf] }
 0x50a   : > { %v3100_v18 = vpop.f32.mrf.mxu3  ;;  %v4250_v23 = vrot.slane %v4248_v22, 4  ;;  %v4253_v27 = vrot.slane %v4251_v40, 5  ;;  %v4267_v42 = vshll.u32 %v4054_v12, 16 }
 0x50b   : > { %v11126_v9 = vadd.f32 %v3100_v18, %v2472_v50  ;;  %v9792_v50 = vld [vmem:[#allocation2 + $0x74] sm:$0xff]  ;;  %v4504_v48 = vpack.c.b16 %v4479_v11, %v4478_v6  ;;  %v4265_v11 = vrot.slane %v4264_v51, 4  ;;  %v3380_v6 = vshll.u32 %v3172_v24, 16 }
 0x50c   : > { %v3173_v18 = vld [vmem:[#allocation2 + $0x98] sm:$0xf]  ;;  %v4254_v58 = vor.u32 %v4253_v27, %v4250_v23  ;;  %v4269_v14 = vrot.slane %v4267_v42, 5 }
 0x50d   : > { %v2287_v33 = vpop.f32.mrf.mxu1  ;;  %v3386_v30 = vshrl.u32 %v3173_v18, 16  ;;  %v3389_v40 = vshll.u32 %v3173_v18, 16 }
 0x50e   : > { %v4255_v12 = vrot.slane %v4254_v58, 4 }
 0x50f   : > { %v2473_v0 = vpop.f32.mrf.mxu2 }
 0x510   : > { %v2474_v26 = vadd.f32 %v2473_v0, %v2282_v56  ;;  %v3361_v56 = vsel %vm10554_vm13, %v8869_v28, %v3360_v35  ;;  %v3171_v28 = vld [vmem:[#allocation2 + $0x90] sm:$0x8]  ;;  %v3388_v35 = vrot.slane %v3386_v30, 7  ;;  %v4285_v30 = vshrl.u32 %v4056_v29, 16 }
 0x511   : > { %v3564_v49 = vunpack.c.l.b16 %v3361_v56 }
 0x512   : > { %v3102_v63 = vpop.f32.mrf.mxu3  ;;  %v3391_v56 = vor.u32 %v3389_v40, %v3388_v35  ;;  %v4287_v58 = vrot.slane %v4285_v30, 4  ;;  %v3175_v40 = vld [vmem:[#allocation2 + $0xa4] sm:$0xf] }
 0x513   : > { %v11134_v3 = vadd.f32 %v3102_v63, %v2474_v26  ;;  %v3589_v16 = vpack.c.b16 %v3565_v60, %v3564_v49  ;;  %v3372_v63 = vshrl.u32 %v3171_v28, 16  ;;  %v4055_v60 = vld [vmem:[#allocation2 + $0x94] sm:$0xf]  ;;  %v9793_v28 = vld [vmem:[#allocation2 + $0x84] sm:$0xff] }
 0x514   : > { %8976 = vmatmul.msk.bf16.gmra.mxu2 %vm2157_vm14, %v9792_v50  ;;  %v3379_v50 = vrot.slane %v3377_v38, 7  ;;  %v4260_v38 = vsel %vm10566_vm15, %v4255_v12, %v4259_v47  ;;  %v4275_v35 = vshll.u32 %v4055_v60, 16 }
 0x515   : > { %v2290_v8 = vpop.f32.mrf.mxu1  ;;  %v8870_v23 = vrot.slane %v3372_v63, 11  ;;  %v4480_v63 = vunpack.c.l.b16 %v4260_v38  ;;  %v3174_v38 = vld [vmem:[#allocation2 + $0xa0] sm:$0x8] }
 0x516   : > { %v3382_v27 = vor.u32 %v3380_v6, %v3379_v50  ;;  %v3384_v51 = vrot.slane %v3379_v50, 4  ;;  %v4057_v50 = vld [vmem:[#allocation2 + $0x9c] sm:$0x1] }
 0x517   : > { %8998 = vmatmul.msk.bf16.gmra.mxu3 %vm2157_vm14, %v4504_v48  ;;  %v2476_v1 = vpop.f32.mrf.mxu2  ;;  %v4281_v48 = vshll.u32 %v4056_v29, 16 }
 0x518   : > { %v2477_v0 = vadd.f32 %v2476_v1, %v2285_v53  ;;  %8891 = vmatmul.msk.bf16.gmra.mxu1 %vm2157_vm14, %v3589_v16  ;;  %v4270_v53 = vsel %vm10566_vm15, %v4265_v11, %v4269_v14  ;;  %v3392_v24 = vsel %vm10554_vm13, %v3384_v51, %v3391_v56  ;;  %v3176_v11 = vld [vmem:[#allocation2 + $0xa8] sm:$0xf]  ;;  %v3399_v51 = vshrl.u32 %v3175_v40, 16 }
 0x519   : > { %v4481_v18 = vunpack.c.l.b16 %v4270_v53  ;;  %v3567_v47 = vunpack.c.l.b16 %v3392_v24  ;;  %v3408_v56 = vshrl.u32 %v3176_v11, 16  ;;  %v4277_v53 = vrot.slane %v4275_v35, 5 }
 0x51a   : > { %v3105_v26 = vpop.f32.mrf.mxu3 }
 0x51b   : > { %v11141_v22 = vadd.f32 %v3105_v26, %v2477_v0  ;;  %v4272_v0 = vshrl.u32 %v4055_v60, 16  ;;  %v4283_v26 = vrot.slane %v4281_v48, 5  ;;  %v4505_v29 = vpack.c.b16 %v4481_v18, %v4480_v63 }
 0x51c   : > { %v4291_v48 = vshll.u32 %v4057_v50, 16  ;;  %v3401_v63 = vrot.slane %v3399_v51, 7  ;;  %v4059_v50 = vld [vmem:[#allocation2 + $0xa8] sm:$0xf] }
 0x51d   : > { %v2292_v1 = vpop.f32.mrf.mxu1  ;;  %v4274_v6 = vrot.slane %v4272_v0, 4  ;;  %v4288_v60 = vor.u32 %v4287_v58, %v4283_v26  ;;  %v3394_v58 = vshrl.u32 %v3174_v38, 16 }
 0x51f   : > { %v2478_v49 = vpop.f32.mrf.mxu2  ;;  %v4278_v18 = vor.u32 %v4277_v53, %v4274_v6  ;;  %v4289_v0 = vrot.slane %v4288_v60, 4  ;;  %v8871_v6 = vrot.slane %v3394_v58, 11  ;;  %v3406_v60 = vrot.slane %v3401_v63, 4 }
 0x520   : > { %v2479_v42 = vadd.f32 %v2478_v49, %v2287_v33  ;;  %v3383_v33 = vsel %vm10554_vm13, %v8870_v23, %v3382_v27 }
 0x521   : > { %v3566_v12 = vunpack.c.l.b16 %v3383_v33  ;;  %v3411_v33 = vshll.u32 %v3176_v11, 16 }
 0x522   : > { %v3107_v16 = vpop.f32.mrf.mxu3 }
 0x523   : > { %v11149_v14 = vadd.f32 %v3107_v16, %v2479_v42  ;;  %v3590_v27 = vpack.c.b16 %v3567_v47, %v3566_v12  ;;  %v3410_v16 = vrot.slane %v3408_v56, 7  ;;  %v4058_v47 = vld [vmem:[#allocation2 + $0xa4] sm:$0xf]  ;;  %v4305_v56 = vshll.u32 %v4059_v50, 16 }
 0x524   : > { %8977 = vmatmul.msk.bf16.gmra.mxu2 %vm2157_vm14, %v9793_v28  ;;  %v4293_v28 = vrot.slane %v4291_v48, 5  ;;  %v4309_v12 = vshrl.u32 %v4059_v50, 16 }
 0x525   : > { %12539 = vst [vmem:[#allocation22_spill] sm:$0xff] %v11149_v14  ;;  %v3661_v49 = vpop.f32.mrf.mxu1  ;;  %v3413_v14 = vor.u32 %v3411_v33, %v3410_v16  ;;  %v9794_v16 = vld [vmem:[#allocation2 + $0x94] sm:$0xff] }
 0x526   : > { %v3741_v23 = vadd.f32 %v3661_v49, %v10793_v13  ;;  %v4294_v13 = vsel %vm10566_vm15, %v4289_v0, %v4293_v28  ;;  %v3179_v0 = vld [vmem:[#allocation2 + $0xb8] sm:$0xf]  ;;  %v3178_v33 = vld [vmem:[#allocation2 + $0xb4] sm:$0xf] }
 0x527   : > { %8999 = vmatmul.msk.bf16.gmra.mxu3 %vm2157_vm14, %v4505_v29  ;;  %v2481_v30 = vpop.f32.mrf.mxu2  ;;  %v3402_v29 = vshll.u32 %v3175_v40, 16  ;;  %v4483_v11 = vunpack.c.l.b16 %v4294_v13  ;;  %v3414_v40 = vsel %vm10554_vm13, %v3406_v60, %v3413_v14  ;;  %v3421_v60 = vshrl.u32 %v3178_v33, 16 }
 0x528   : > { %v2482_v42 = vadd.f32 %v2481_v30, %v2290_v8  ;;  %8892 = vmatmul.msk.bf16.gmra.mxu1 %vm2157_vm14, %v3590_v27  ;;  %v4279_v8 = vrot.slane %v4278_v18, 4  ;;  %v4299_v27 = vshll.u32 %v4058_v47, 16  ;;  %v4311_v18 = vrot.slane %v4309_v12, 4 }
 0x529   : > { %v3404_v53 = vor.u32 %v3402_v29, %v3401_v63  ;;  %v4060_v63 = vld [vmem:[#allocation2 + $0xac] sm:$0x1] }
 0x52a   : > { %v3110_v24 = vpop.f32.mrf.mxu3  ;;  %v4284_v51 = vsel %vm10566_vm15, %v4279_v8, %v4283_v26  ;;  %v3569_v26 = vunpack.c.l.b16 %v3414_v40  ;;  %v4301_v29 = vrot.slane %v4299_v27, 5  ;;  %v3430_v8 = vshrl.u32 %v3179_v0, 16 }
 0x52b   : > { %v11157_v35 = vadd.f32 %v3110_v24, %v2482_v42  ;;  %v4296_v42 = vshrl.u32 %v4058_v47, 16  ;;  %v11165_v24 = vrot.slane %v4305_v56, 5  ;;  %v4482_v58 = vunpack.c.l.b16 %v4284_v51 }
 0x52c   : > { %v4315_v56 = vshll.u32 %v4060_v63, 16  ;;  %v3433_v63 = vshll.u32 %v3179_v0, 16 }
 0x52d   : > { %v3663_v49 = vpop.f32.mrf.mxu1  ;;  %v4506_v14 = vpack.c.b16 %v4483_v11, %v4482_v58  ;;  %v4298_v50 = vrot.slane %v4296_v42, 4  ;;  %v4312_v47 = vor.u32 %v4311_v18, %v11165_v24  ;;  %v3177_v11 = vld [vmem:[#allocation2 + $0xb0] sm:$0x8]  ;;  %v3432_v42 = vrot.slane %v3430_v8, 7 }
 0x52e   : > { %v3416_v58 = vshrl.u32 %v3177_v11, 16  ;;  %v9795_v11 = vld [vmem:[#allocation2 + $0xa4] sm:$0xff] }
 0x52f   : > { %v2483_v30 = vpop.f32.mrf.mxu2  ;;  %v4302_v40 = vor.u32 %v4301_v29, %v4298_v50  ;;  %v4061_v29 = vld [vmem:[#allocation2 + $0xb4] sm:$0xf] }
 0x530   : > { %v2484_v48 = vadd.f32 %v2483_v30, %v2292_v1  ;;  %v3405_v1 = vsel %vm10554_vm13, %v8871_v6, %v3404_v53  ;;  %v2409_v6 = vadd.f32 %v10856_v4, %v10823_v62 }
 0x531   : > { %v3568_v13 = vunpack.c.l.b16 %v3405_v1  ;;  %v3423_v1 = vrot.slane %v3421_v60, 7  ;;  %v4303_v4 = vrot.slane %v4302_v40, 4  ;;  %v4323_v40 = vshll.u32 %v4061_v29, 16 }
 0x532   : > { %v3112_v38 = vpop.f32.mrf.mxu3  ;;  %v3116_v62 = vadd.f32 %v10866_v10, %v2409_v6  ;;  %v4320_v6 = vshrl.u32 %v4061_v29, 16 }
 0x533   : > { %v11167_v28 = vadd.f32 %v3112_v38, %v2484_v48  ;;  %v3591_v51 = vpack.c.b16 %v3569_v26, %v3568_v13  ;;  %v4313_v38 = vrot.slane %v4312_v47, 4  ;;  %v4308_v10 = vsel %vm10566_vm15, %v4303_v4, %v11165_v24 }
 0x534   : > { %8978 = vmatmul.msk.bf16.gmra.mxu2 %vm2157_vm14, %v9794_v16  ;;  %v4317_v16 = vrot.slane %v4315_v56, 5  ;;  %v3742_v26 = vadd.f32 %v3663_v49, %v3116_v62  ;;  %v4322_v62 = vrot.slane %v4320_v6, 4 }
 0x535   : > { %v3666_v30 = vpop.f32.mrf.mxu1 }
 0x536   : > { %v3743_v48 = vadd.f32 %v3666_v30, %v10884_v59  ;;  %v3435_v59 = vor.u32 %v3433_v63, %v3432_v42  ;;  %v4318_v50 = vsel %vm10566_vm15, %v4313_v38, %v4317_v16  ;;  %v3182_v38 = vld [vmem:[#allocation2 + $0xc8] sm:$0xf]  ;;  %v3181_v63 = vld [vmem:[#allocation2 + $0xc4] sm:$0xf] }
 0x537   : > { %9000 = vmatmul.msk.bf16.gmra.mxu3 %vm2157_vm14, %v4506_v14  ;;  %v3919_v12 = vpop.f32.mrf.mxu2  ;;  %v4062_v14 = vld [vmem:[#allocation2 + $0xb8] sm:$0xf]  ;;  %v3452_v4 = vshrl.u32 %v3182_v38, 16 }
 0x538   : > { %v3999_v53 = vadd.f32 %v3919_v12, %v3741_v23  ;;  %8893 = vmatmul.msk.bf16.gmra.mxu1 %vm2157_vm14, %v3591_v51  ;;  %v3424_v23 = vshll.u32 %v3178_v33, 16  ;;  %v4329_v8 = vshll.u32 %v4062_v14, 16  ;;  %v4333_v13 = vshrl.u32 %v4062_v14, 16 }
 0x539   : > { %v8872_v12 = vrot.slane %v3416_v58, 11  ;;  %v4485_v33 = vunpack.c.l.b16 %v4318_v50  ;;  %v4484_v58 = vunpack.c.l.b16 %v4308_v10 }
 0x53a   : > { %v4577_v27 = vpop.f32.mrf.mxu3  ;;  %v3426_v30 = vor.u32 %v3424_v23, %v3423_v1  ;;  %v4331_v42 = vrot.slane %v4329_v8, 5 }
 0x53b   : > { %v11178_v18 = vadd.f32 %v4577_v27, %v3999_v53  ;;  %v3428_v53 = vrot.slane %v3423_v1, 4  ;;  %v4335_v27 = vrot.slane %v4333_v13, 4  ;;  %v4063_v1 = vld [vmem:[#allocation2 + $0xbc] sm:$0x1]  ;;  %v4507_v14 = vpack.c.b16 %v4485_v33, %v4484_v58 }
 0x53c   : > { %v4339_v50 = vshll.u32 %v4063_v1, 16  ;;  %v3443_v13 = vshrl.u32 %v3181_v63, 16  ;;  %v3446_v58 = vshll.u32 %v3181_v63, 16  ;;  %v4064_v1 = vld [vmem:[#allocation2 + $0xc4] sm:$0xf] }
 0x53d   : > { %v3668_v56 = vpop.f32.mrf.mxu1  ;;  %v3436_v49 = vsel %vm10554_vm13, %v3428_v53, %v3435_v59  ;;  %v4325_v59 = vrot.slane %v4323_v40, 5  ;;  %v3454_v53 = vrot.slane %v3452_v4, 7  ;;  %v3455_v40 = vshll.u32 %v3182_v38, 16 }
 0x53e   : > { %v3744_v0 = vadd.f32 %v3668_v56, %v10902_v31  ;;  %v3427_v31 = vsel %vm10554_vm13, %v8872_v12, %v3426_v30  ;;  %v3571_v24 = vunpack.c.l.b16 %v3436_v49  ;;  %v3180_v30 = vld [vmem:[#allocation2 + $0xc0] sm:$0x8]  ;;  %v4341_v49 = vrot.slane %v4339_v50, 5 }
 0x53f   : > { %v3921_v47 = vpop.f32.mrf.mxu2  ;;  %v3570_v23 = vunpack.c.l.b16 %v3427_v31  ;;  %v4326_v10 = vor.u32 %v4325_v59, %v4322_v62  ;;  %v3457_v31 = vor.u32 %v3455_v40, %v3454_v53  ;;  %v4347_v53 = vshll.u32 %v4064_v1, 16 }
 0x540   : > { %v4000_v60 = vadd.f32 %v3921_v47, %v3742_v26  ;;  %v4336_v26 = vor.u32 %v4335_v27, %v4331_v42  ;;  %v4065_v27 = vld [vmem:[#allocation2 + $0xc8] sm:$0xf] }
 0x541   : > { %v3592_v12 = vpack.c.b16 %v3571_v24, %v3570_v23  ;;  %v4353_v24 = vshll.u32 %v4065_v27, 16 }
 0x542   : > { %v4579_v51 = vpop.f32.mrf.mxu3  ;;  %v4337_v33 = vrot.slane %v4336_v26, 4 }
 0x543   : > { %v11189_v16 = vadd.f32 %v4579_v51, %v4000_v60  ;;  %v3438_v51 = vshrl.u32 %v3180_v30, 16  ;;  %v9796_v30 = vld [vmem:[#allocation2 + $0xb4] sm:$0xff] }
 0x544   : > { %8979 = vmatmul.msk.bf16.gmra.mxu2 %vm2157_vm14, %v9795_v11  ;;  %v3445_v11 = vrot.slane %v3443_v13, 7  ;;  %v4344_v13 = vshrl.u32 %v4064_v1, 16 }
 0x545   : > { %v3671_v8 = vpop.f32.mrf.mxu1  ;;  %v8873_v62 = vrot.slane %v3438_v51, 11  ;;  %v4066_v51 = vld [vmem:[#allocation2 + $0xcc] sm:$0x1] }
 0x546   : > { %v3745_v56 = vadd.f32 %v3671_v8, %v10915_v2  ;;  %v4342_v2 = vsel %vm10566_vm15, %v4337_v33, %v4341_v49  ;;  %v3448_v59 = vor.u32 %v3446_v58, %v3445_v11  ;;  %v3450_v26 = vrot.slane %v3445_v11, 4  ;;  %v3185_v33 = vld [vmem:[#allocation2 + $0xd8] sm:$0xf] }
 0x547   : > { %9001 = vmatmul.msk.bf16.gmra.mxu3 %vm2157_vm14, %v4507_v14  ;;  %v3924_v29 = vpop.f32.mrf.mxu2  ;;  %v4357_v14 = vshrl.u32 %v4065_v27, 16  ;;  %v4487_v63 = vunpack.c.l.b16 %v4342_v2  ;;  %v4346_v40 = vrot.slane %v4344_v13, 4  ;;  %v3474_v58 = vshrl.u32 %v3185_v33, 16 }
 0x548   : > { %v4001_v47 = vadd.f32 %v3924_v29, %v3743_v48  ;;  %8894 = vmatmul.msk.bf16.gmra.mxu1 %vm2157_vm14, %v3592_v12  ;;  %v4327_v48 = vrot.slane %v4326_v10, 4  ;;  %v3458_v8 = vsel %vm10554_vm13, %v3450_v26, %v3457_v31  ;;  %v4363_v1 = vshll.u32 %v4066_v51, 16 }
 0x549   : > { %v4359_v10 = vrot.slane %v4357_v14, 4 }
 0x54a   : > { %v4582_v60 = vpop.f32.mrf.mxu3  ;;  %v4332_v38 = vsel %vm10566_vm15, %v4327_v48, %v4331_v42  ;;  %v3573_v42 = vunpack.c.l.b16 %v3458_v8  ;;  %v4349_v48 = vrot.slane %v4347_v53, 5 }
 0x54b   : > { %v11197_v6 = vadd.f32 %v4582_v60, %v4001_v47  ;;  %v3184_v47 = vld [vmem:[#allocation2 + $0xd4] sm:$0xf]  ;;  %v4355_v60 = vrot.slane %v4353_v24, 5  ;;  %v3183_v24 = vld [vmem:[#allocation2 + $0xd0] sm:$0x8] }
 0x54c   : > { %v3465_v27 = vshrl.u32 %v3184_v47, 16  ;;  %v3460_v26 = vshrl.u32 %v3183_v24, 16  ;;  %v4350_v8 = vor.u32 %v4349_v48, %v4346_v40  ;;  %v3468_v53 = vshll.u32 %v3184_v47, 16  ;;  %v4067_v40 = vld [vmem:[#allocation2 + $0xd4] sm:$0xf] }
 0x54d   : > { %v3673_v23 = vpop.f32.mrf.mxu1  ;;  %v4360_v2 = vor.u32 %v4359_v10, %v4355_v60  ;;  %v3477_v10 = vshll.u32 %v3185_v33, 16 }
 0x54e   : > { %v3746_v29 = vadd.f32 %v3673_v23, %v10929_v46  ;;  %v3449_v46 = vsel %vm10554_vm13, %v8873_v62, %v3448_v59 }
 0x54f   : > { %v3926_v4 = vpop.f32.mrf.mxu2  ;;  %v3572_v31 = vunpack.c.l.b16 %v3449_v46  ;;  %v4361_v13 = vrot.slane %v4360_v2, 4  ;;  %v8874_v46 = vrot.slane %v3460_v26, 11  ;;  %v9797_v26 = vld [vmem:[#allocation2 + $0xc4] sm:$0xff] }
 0x550   : > { %v4002_v50 = vadd.f32 %v3926_v4, %v3744_v0  ;;  %v4486_v0 = vunpack.c.l.b16 %v4332_v38  ;;  %v3476_v38 = vrot.slane %v3474_v58, 7 }
 0x551   : > { %v3593_v59 = vpack.c.b16 %v3573_v42, %v3572_v31 }
 0x552   : > { %v4584_v12 = vpop.f32.mrf.mxu3  ;;  %v4508_v11 = vpack.c.b16 %v4487_v63, %v4486_v0  ;;  %v4068_v0 = vld [vmem:[#allocation2 + $0xd8] sm:$0xf] }
 0x553   : > { %v11206_v49 = vadd.f32 %v4584_v12, %v4002_v50  ;;  %v3467_v50 = vrot.slane %v3465_v27, 7  ;;  %v4365_v12 = vrot.slane %v4363_v1, 5  ;;  %v4377_v42 = vshll.u32 %v4068_v0, 16 }
 0x554   : > { %8980 = vmatmul.msk.bf16.gmra.mxu2 %vm2157_vm14, %v9796_v30  ;;  %v4381_v27 = vshrl.u32 %v4068_v0, 16 }
 0x555   : > { %v3676_v4 = vpop.f32.mrf.mxu1  ;;  %v3470_v51 = vor.u32 %v3468_v53, %v3467_v50  ;;  %v3472_v24 = vrot.slane %v3467_v50, 4  ;;  %v4371_v50 = vshll.u32 %v4067_v40, 16 }
 0x556   : > { %v3747_v62 = vadd.f32 %v3676_v4, %v10937_v21  ;;  %v4366_v21 = vsel %vm10566_vm15, %v4361_v13, %v4365_v12  ;;  %v3187_v4 = vld [vmem:[#allocation2 + $0xe4] sm:$0xf]  ;;  %v4069_v13 = vld [vmem:[#allocation2 + $0xdc] sm:$0x1] }
 0x557   : > { %9002 = vmatmul.msk.bf16.gmra.mxu3 %vm2157_vm14, %v4508_v11  ;;  %v3929_v14 = vpop.f32.mrf.mxu2  ;;  %v4351_v11 = vrot.slane %v4350_v8, 4  ;;  %v4489_v33 = vunpack.c.l.b16 %v4366_v21  ;;  %v3471_v1 = vsel %vm10554_vm13, %v8874_v46, %v3470_v51  ;;  %v4373_v51 = vrot.slane %v4371_v50, 5  ;;  %v3186_v21 = vld [vmem:[#allocation2 + $0xe0] sm:$0x8] }
 0x558   : > { %v4003_v23 = vadd.f32 %v3929_v14, %v3745_v56  ;;  %8895 = vmatmul.msk.bf16.gmra.mxu1 %vm2157_vm14, %v3593_v59  ;;  %v3479_v56 = vor.u32 %v3477_v10, %v3476_v38  ;;  %v4368_v38 = vshrl.u32 %v4067_v40, 16  ;;  %v3574_v53 = vunpack.c.l.b16 %v3471_v1 }
 0x559   : > { %v4356_v47 = vsel %vm10566_vm15, %v4351_v11, %v4355_v60  ;;  %v3487_v10 = vshrl.u32 %v3187_v4, 16  ;;  %v4387_v11 = vshll.u32 %v4069_v13, 16  ;;  %v3482_v40 = vshrl.u32 %v3186_v21, 16 }
 0x55a   : > { %v4587_v63 = vpop.f32.mrf.mxu3  ;;  %v3480_v14 = vsel %vm10554_vm13, %v3472_v24, %v3479_v56  ;;  %v4370_v46 = vrot.slane %v4368_v38, 4  ;;  %v3490_v38 = vshll.u32 %v3187_v4, 16 }
 0x55b   : > { %v11214_v30 = vadd.f32 %v4587_v63, %v4003_v23  ;;  %v3188_v23 = vld [vmem:[#allocation2 + $0xe8] sm:$0xf]  ;;  %v4379_v63 = vrot.slane %v4377_v42, 5  ;;  %v3575_v60 = vunpack.c.l.b16 %v3480_v14 }
 0x55c   : > { %v3496_v0 = vshrl.u32 %v3188_v23, 16  ;;  %v4374_v1 = vor.u32 %v4373_v51, %v4370_v46  ;;  %v3499_v50 = vshll.u32 %v3188_v23, 16  ;;  %v4070_v46 = vld [vmem:[#allocation2 + $0xe4] sm:$0xf]  ;;  %v9798_v23 = vld [vmem:[#allocation2 + $0xd4] sm:$0xff] }
 0x55d   : > { %v3678_v31 = vpop.f32.mrf.mxu1  ;;  %v3594_v24 = vpack.c.b16 %v3575_v60, %v3574_v53 }
 0x55e   : > { %v3748_v2 = vadd.f32 %v3678_v31, %v10948_v57  ;;  %v4488_v57 = vunpack.c.l.b16 %v4356_v47  ;;  %v3498_v47 = vrot.slane %v3496_v0, 7 }
 0x55f   : > { %v3931_v58 = vpop.f32.mrf.mxu2 }
 0x560   : > { %v4004_v48 = vadd.f32 %v3931_v58, %v3746_v29  ;;  %v4383_v29 = vrot.slane %v4381_v27, 4  ;;  %v4509_v12 = vpack.c.b16 %v4489_v33, %v4488_v57  ;;  %v8875_v57 = vrot.slane %v3482_v40, 11 }
 0x561   : > { %v4395_v40 = vshll.u32 %v4070_v46, 16 }
 0x562   : > { %v4589_v59 = vpop.f32.mrf.mxu3  ;;  %v4384_v56 = vor.u32 %v4383_v29, %v4379_v63  ;;  %v4071_v29 = vld [vmem:[#allocation2 + $0xe8] sm:$0xf] }
 0x563   : > { %v11225_v8 = vadd.f32 %v4589_v59, %v4004_v48  ;;  %v3489_v48 = vrot.slane %v3487_v10, 7  ;;  %v4389_v59 = vrot.slane %v4387_v11, 5  ;;  %v4401_v60 = vshll.u32 %v4071_v29, 16 }
 0x564   : > { %8981 = vmatmul.msk.bf16.gmra.mxu2 %vm2157_vm14, %v9797_v26  ;;  %v4385_v14 = vrot.slane %v4384_v56, 4  ;;  %v4405_v53 = vshrl.u32 %v4071_v29, 16 }
 0x565   : > { %v3681_v27 = vpop.f32.mrf.mxu1  ;;  %v3492_v13 = vor.u32 %v3490_v38, %v3489_v48  ;;  %v3494_v21 = vrot.slane %v3489_v48, 4 }
 0x566   : > { %v3749_v31 = vadd.f32 %v3681_v27, %v10956_v39  ;;  %v4390_v39 = vsel %vm10566_vm15, %v4385_v14, %v4389_v59  ;;  %v4407_v48 = vrot.slane %v4405_v53, 4  ;;  %v3190_v14 = vld [vmem:[#allocation2 + $0xf4] sm:$0xf] }
 0x567   : > { %9003 = vmatmul.msk.bf16.gmra.mxu3 %vm2157_vm14, %v4509_v12  ;;  %v3934_v42 = vpop.f32.mrf.mxu2  ;;  %v4375_v12 = vrot.slane %v4374_v1, 4  ;;  %v4491_v11 = vunpack.c.l.b16 %v4390_v39  ;;  %v4072_v1 = vld [vmem:[#allocation2 + $0xec] sm:$0x1] }
 0x568   : > { %v4005_v58 = vadd.f32 %v3934_v42, %v3747_v62  ;;  %8896 = vmatmul.msk.bf16.gmra.mxu1 %vm2157_vm14, %v3594_v24  ;;  %v3501_v62 = vor.u32 %v3499_v50, %v3498_v47  ;;  %v3493_v42 = vsel %vm10554_vm13, %v8875_v57, %v3492_v13  ;;  %v4392_v24 = vshrl.u32 %v4070_v46, 16 }
 0x569   : > { %v4380_v4 = vsel %vm10566_vm15, %v4375_v12, %v4379_v63  ;;  %v4403_v47 = vrot.slane %v4401_v60, 5  ;;  %v3576_v38 = vunpack.c.l.b16 %v3493_v42  ;;  %v4397_v57 = vrot.slane %v4395_v40, 5  ;;  %v4074_v40 = vld [vmem:[#allocation2 + $0xf8] sm:$0xf] }
 0x56a   : > { %v4592_v33 = vpop.f32.mrf.mxu3  ;;  %v3502_v27 = vsel %vm10554_vm13, %v3494_v21, %v3501_v62  ;;  %v4394_v29 = vrot.slane %v4392_v24, 4  ;;  %v4411_v62 = vshll.u32 %v4072_v1, 16  ;;  %v3509_v60 = vshrl.u32 %v3190_v14, 16  ;;  %v3189_v21 = vld [vmem:[#allocation2 + $0xf0] sm:$0x8] }
 0x56b   : > { %v11231_v26 = vadd.f32 %v4592_v33, %v4005_v58  ;;  %v3191_v33 = vld [vmem:[#allocation2 + $0xf8] sm:$0xf]  ;;  %v3577_v63 = vunpack.c.l.b16 %v3502_v27  ;;  %v4408_v13 = vor.u32 %v4407_v48, %v4403_v47  ;;  %v3504_v27 = vshrl.u32 %v3189_v21, 16  ;;  %v4073_v1 = vld [vmem:[#allocation2 + $0xf4] sm:$0xf] }
 0x56c   : > { %v3518_v50 = vshrl.u32 %v3191_v33, 16  ;;  %v3521_v24 = vshll.u32 %v3191_v33, 16  ;;  %v3512_v48 = vshll.u32 %v3190_v14, 16  ;;  %v4419_v21 = vshll.u32 %v4073_v1, 16 }
 0x56d   : > { %v3683_v0 = vpop.f32.mrf.mxu1 }
 0x56e   : > { %v3750_v56 = vadd.f32 %v3683_v0, %v10964_v25  ;;  %v4490_v25 = vunpack.c.l.b16 %v4380_v4  ;;  %v3595_v0 = vpack.c.b16 %v3577_v63, %v3576_v38  ;;  %v3520_v46 = vrot.slane %v3518_v50, 7 }
 0x56f   : > { %v3936_v10 = vpop.f32.mrf.mxu2  ;;  %v4398_v4 = vor.u32 %v4397_v57, %v4394_v29  ;;  %v4425_v63 = vshll.u32 %v4074_v40, 16  ;;  %v8876_v29 = vrot.slane %v3504_v27, 11  ;;  %v3193_v27 = vld [vmem:[#allocation2 + $0x104] sm:$0xf] }
 0x570   : > { %v4006_v51 = vadd.f32 %v3936_v10, %v3748_v2  ;;  %v4510_v59 = vpack.c.b16 %v4491_v11, %v4490_v25  ;;  %v4413_v11 = vrot.slane %v4411_v62, 5  ;;  %v3523_v25 = vor.u32 %v3521_v24, %v3520_v46 }
 0x571   : > { %v4427_v46 = vrot.slane %v4425_v63, 5 }
 0x572   : > { %v4594_v58 = vpop.f32.mrf.mxu3 }
 0x573   : > { %v11242_v2 = vadd.f32 %v4594_v58, %v4006_v51  ;;  %v3511_v58 = vrot.slane %v3509_v60, 7  ;;  %v4416_v60 = vshrl.u32 %v4073_v1, 16 }
 0x574   : > { %8982 = vmatmul.msk.bf16.gmra.mxu2 %vm2157_vm14, %v9798_v23  ;;  %v4409_v23 = vrot.slane %v4408_v13, 4 }
 0x575   : > { %v3686_v39 = vpop.f32.mrf.mxu1  ;;  %v3514_v57 = vor.u32 %v3512_v48, %v3511_v58  ;;  %v3516_v13 = vrot.slane %v3511_v58, 4  ;;  %v4418_v24 = vrot.slane %v4416_v60, 4 }
 0x576   : > { %v3751_v10 = vadd.f32 %v3686_v39, %v10973_v15  ;;  %v4414_v15 = vsel %vm10566_vm15, %v4409_v23, %v4413_v11 }
 0x577   : > { %9004 = vmatmul.msk.bf16.gmra.mxu3 %vm2157_vm14, %v4510_v59  ;;  %v3939_v12 = vpop.f32.mrf.mxu2  ;;  %v4429_v59 = vshrl.u32 %v4074_v40, 16  ;;  %v4493_v14 = vunpack.c.l.b16 %v4414_v15  ;;  %v3524_v39 = vsel %vm10554_vm13, %v3516_v13, %v3523_v25  ;;  %v4421_v25 = vrot.slane %v4419_v21, 5 }
 0x578   : > { %v4007_v53 = vadd.f32 %v3939_v12, %v3749_v31  ;;  %8897 = vmatmul.msk.bf16.gmra.mxu1 %vm2157_vm14, %v3595_v0  ;;  %v4399_v31 = vrot.slane %v4398_v4, 4  ;;  %v9799_v0 = vld [vmem:[#allocation2 + $0xe4] sm:$0xff] }
 0x579   : > { %v3194_v4 = vld [vmem:[#allocation2 + $0x108] sm:$0xf] }
 0x57a   : > { %v4597_v51 = vpop.f32.mrf.mxu3  ;;  %v4404_v33 = vsel %vm10566_vm15, %v4399_v31, %v4403_v47  ;;  %v3579_v47 = vunpack.c.l.b16 %v3524_v39  ;;  %v3540_v40 = vshrl.u32 %v3194_v4, 16  ;;  %v3543_v21 = vshll.u32 %v3194_v4, 16 }
 0x57b   : > { %v11248_v42 = vadd.f32 %v4597_v51, %v4007_v53  ;;  %v4431_v51 = vrot.slane %v4429_v59, 4  ;;  %v4492_v11 = vunpack.c.l.b16 %v4404_v33  ;;  %v3531_v59 = vshrl.u32 %v3193_v27, 16 }
 0x57c   : > { %v3542_v13 = vrot.slane %v3540_v40, 7  ;;  %v4422_v33 = vor.u32 %v4421_v25, %v4418_v24 }
 0x57d   : > { %v3688_v50 = vpop.f32.mrf.mxu1  ;;  %v4511_v58 = vpack.c.b16 %v4493_v14, %v4492_v11  ;;  %v4432_v31 = vor.u32 %v4431_v51, %v4427_v46  ;;  %v4077_v51 = vld [vmem:[#allocation2 + $0x108] sm:$0xf]  ;;  %v3534_v11 = vshll.u32 %v3193_v27, 16 }
 0x57e   : > { %v3752_v12 = vadd.f32 %v3688_v50, %v10985_v17  ;;  %v3515_v17 = vsel %vm10554_vm13, %v8876_v29, %v3514_v57  ;;  %v3192_v57 = vld [vmem:[#allocation2 + $0x100] sm:$0x8] }
 0x57f   : > { %v3941_v38 = vpop.f32.mrf.mxu2  ;;  %v3578_v48 = vunpack.c.l.b16 %v3515_v17  ;;  %v4433_v14 = vrot.slane %v4432_v31, 4  ;;  %v3545_v17 = vor.u32 %v3543_v21, %v3542_v13 }
 0x580   : > { %v4008_v62 = vadd.f32 %v3941_v38, %v3750_v56  ;;  %v4075_v56 = vld [vmem:[#allocation2 + $0xfc] sm:$0x1] }
 0x581   : > { %v4435_v15 = vshll.u32 %v4075_v56, 16  ;;  %v3596_v29 = vpack.c.b16 %v3579_v47, %v3578_v48  ;;  %v4076_v56 = vld [vmem:[#allocation2 + $0x104] sm:$0xf]  ;;  %v4449_v47 = vshll.u32 %v4077_v51, 16 }
 0x582   : > { %v4599_v53 = vpop.f32.mrf.mxu3 }
 0x583   : > { %v11257_v23 = vadd.f32 %v4599_v53, %v4008_v62  ;;  %v4437_v39 = vrot.slane %v4435_v15, 5  ;;  %v3526_v53 = vshrl.u32 %v3192_v57, 16  ;;  %v4443_v57 = vshll.u32 %v4076_v56, 16 }
 0x584   : > { %8983 = vmatmul.msk.bf16.gmra.mxu2 %vm2157_vm14, %v9799_v0  ;;  %v3533_v0 = vrot.slane %v3531_v59, 7  ;;  %v4440_v59 = vshrl.u32 %v4076_v56, 16  ;;  %v4451_v13 = vrot.slane %v4449_v47, 5 }
 0x585   : > { %v3691_v63 = vpop.f32.mrf.mxu1  ;;  %v8877_v24 = vrot.slane %v3526_v53, 11  ;;  %v4691_v53 = vld [vmem:[#allocation2 + $0x24] sm:$0xf] }
 0x586   : > { %v3753_v50 = vadd.f32 %v3691_v63, %v11005_v20  ;;  %v4438_v20 = vsel %vm10566_vm15, %v4433_v14, %v4437_v39  ;;  %v3536_v25 = vor.u32 %v3534_v11, %v3533_v0  ;;  %v3538_v31 = vrot.slane %v3533_v0, 4 }
 0x587   : > { %9005 = vmatmul.msk.bf16.gmra.mxu3 %vm2157_vm14, %v4511_v58  ;;  %v3944_v1 = vpop.f32.mrf.mxu2  ;;  %v4453_v58 = vshrl.u32 %v4077_v51, 16  ;;  %v4495_v27 = vunpack.c.l.b16 %v4438_v20  ;;  %v4442_v21 = vrot.slane %v4440_v59, 4 }
 0x588   : > { %v4009_v38 = vadd.f32 %v3944_v1, %v3751_v10  ;;  %8898 = vmatmul.msk.bf16.gmra.mxu1 %vm2157_vm14, %v3596_v29  ;;  %v4423_v10 = vrot.slane %v4422_v33, 4  ;;  %v3546_v63 = vsel %vm10554_vm13, %v3538_v31, %v3545_v17  ;;  %v9800_v29 = vld [vmem:[#allocation2 + $0xf4] sm:$0xff]  ;;  %v4692_v33 = vld [vmem:[#allocation2 + $0x28] sm:$0xf]  ;;  %v4445_v17 = vrot.slane %v4443_v57, 5 }
 0x589   : > { %v4753_v51 = vshrl.u32 %v4692_v33, 16  ;;  %v4756_v57 = vshll.u32 %v4692_v33, 16 }
 0x58a   : > { %v4602_v62 = vpop.f32.mrf.mxu3  ;;  %v4428_v4 = vsel %vm10566_vm15, %v4423_v10, %v4427_v46  ;;  %v3581_v46 = vunpack.c.l.b16 %v3546_v63 }
 0x58b   : > { %v11265_v60 = vadd.f32 %v4602_v62, %v4009_v38  ;;  %v4455_v62 = vrot.slane %v4453_v58, 4  ;;  %v4494_v39 = vunpack.c.l.b16 %v4428_v4  ;;  %v4744_v58 = vshrl.u32 %v4691_v53, 16 }
 0x58c   : > { %v4755_v31 = vrot.slane %v4753_v51, 7  ;;  %v4446_v4 = vor.u32 %v4445_v17, %v4442_v21 }
 0x58d   : > { %v3693_v48 = vpop.f32.mrf.mxu1  ;;  %v4512_v0 = vpack.c.b16 %v4495_v27, %v4494_v39  ;;  %v4456_v10 = vor.u32 %v4455_v62, %v4451_v13  ;;  %v5575_v62 = vld [vmem:[#allocation2 + $0x28] sm:$0xf]  ;;  %v4747_v39 = vshll.u32 %v4691_v53, 16 }
 0x58e   : > { %v3754_v1 = vadd.f32 %v3693_v48, %v11017_v43  ;;  %v3537_v43 = vsel %vm10554_vm13, %v8877_v24, %v3536_v25  ;;  %v4690_v25 = vld [vmem:[#allocation2 + $0x20] sm:$0x8] }
 0x58f   : > { %v3946_v40 = vpop.f32.mrf.mxu2  ;;  %v3580_v11 = vunpack.c.l.b16 %v3537_v43  ;;  %v4457_v27 = vrot.slane %v4456_v10, 4  ;;  %v4758_v43 = vor.u32 %v4756_v57, %v4755_v31 }
 0x590   : > { %v4010_v15 = vadd.f32 %v3946_v40, %v3752_v12  ;;  %v4078_v12 = vld [vmem:[#allocation2 + $0x10c] sm:$0x1] }
 0x591   : > { %v4459_v20 = vshll.u32 %v4078_v12, 16  ;;  %v3597_v24 = vpack.c.b16 %v3581_v46, %v3580_v11  ;;  %v5574_v12 = vld [vmem:[#allocation2 + $0x24] sm:$0xf]  ;;  %v5632_v46 = vshll.u32 %v5575_v62, 16 }
 0x592   : > { %v4604_v38 = vpop.f32.mrf.mxu3 }
 0x593   : > { %v11274_v14 = vadd.f32 %v4604_v38, %v4010_v15  ;;  %v4461_v63 = vrot.slane %v4459_v20, 5  ;;  %v4739_v38 = vshrl.u32 %v4690_v25, 16  ;;  %v5626_v25 = vshll.u32 %v5574_v12, 16 }
 0x594   : > { %8984 = vmatmul.msk.bf16.gmra.mxu2 %vm2157_vm14, %v9800_v29  ;;  %v4746_v29 = vrot.slane %v4744_v58, 7  ;;  %v5623_v58 = vshrl.u32 %v5574_v12, 16  ;;  %v5634_v31 = vrot.slane %v5632_v46, 5 }
 0x595   : > { %v3696_v47 = vpop.f32.mrf.mxu1  ;;  %v9008_v21 = vrot.slane %v4739_v38, 11  ;;  %v4694_v38 = vld [vmem:[#allocation2 + $0x34] sm:$0xf] }
 0x596   : > { %v3755_v48 = vadd.f32 %v3696_v47, %v11025_v44  ;;  %v4462_v44 = vsel %vm10566_vm15, %v4457_v27, %v4461_v63  ;;  %v4749_v17 = vor.u32 %v4747_v39, %v4746_v29  ;;  %v4751_v10 = vrot.slane %v4746_v29, 4 }
 0x597   : > { %9006 = vmatmul.msk.bf16.gmra.mxu3 %vm2157_vm14, %v4512_v0  ;;  %v3949_v56 = vpop.f32.mrf.mxu2  ;;  %v5636_v0 = vshrl.u32 %v5575_v62, 16  ;;  %v4497_v53 = vunpack.c.l.b16 %v4462_v44  ;;  %v5625_v57 = vrot.slane %v5623_v58, 4 }
 0x598   : > { %v4011_v40 = vadd.f32 %v3949_v56, %v3753_v50  ;;  %8899 = vmatmul.msk.bf16.gmra.mxu1 %vm2157_vm14, %v3597_v24  ;;  %v4447_v50 = vrot.slane %v4446_v4, 4  ;;  %v4759_v47 = vsel %vm10554_vm13, %v4751_v10, %v4758_v43  ;;  %v9801_v24 = vld [vmem:[#allocation2 + $0x104] sm:$0xff]  ;;  %v4695_v4 = vld [vmem:[#allocation2 + $0x38] sm:$0xf]  ;;  %v5628_v43 = vrot.slane %v5626_v25, 5 }
 0x599   : > { %v4775_v62 = vshrl.u32 %v4695_v4, 16  ;;  %v4778_v25 = vshll.u32 %v4695_v4, 16 }
 0x59a   : > { %v4607_v15 = vpop.f32.mrf.mxu3  ;;  %v4452_v33 = vsel %vm10566_vm15, %v4447_v50, %v4451_v13  ;;  %v5094_v13 = vunpack.c.l.b16 %v4759_v47 }
 0x59b   : > { %v11282_v59 = vadd.f32 %v4607_v15, %v4011_v40  ;;  %v5638_v15 = vrot.slane %v5636_v0, 4  ;;  %v4496_v63 = vunpack.c.l.b16 %v4452_v33  ;;  %v4766_v0 = vshrl.u32 %v4694_v38, 16 }
 0x59c   : > { %v4777_v10 = vrot.slane %v4775_v62, 7  ;;  %v5629_v33 = vor.u32 %v5628_v43, %v5625_v57 }
 0x59d   : > { %v3698_v11 = vpop.f32.mrf.mxu1  ;;  %v4513_v29 = vpack.c.b16 %v4497_v53, %v4496_v63  ;;  %v5639_v50 = vor.u32 %v5638_v15, %v5634_v31  ;;  %v5578_v15 = vld [vmem:[#allocation2 + $0x38] sm:$0xf]  ;;  %v4769_v63 = vshll.u32 %v4694_v38, 16 }
 0x59e   : > { %v3756_v56 = vadd.f32 %v3698_v11, %v11035_v19  ;;  %v4750_v19 = vsel %vm10554_vm13, %v9008_v21, %v4749_v17  ;;  %v4693_v17 = vld [vmem:[#allocation2 + $0x30] sm:$0x8] }
 0x59f   : > { %v3951_v51 = vpop.f32.mrf.mxu2  ;;  %v5093_v39 = vunpack.c.l.b16 %v4750_v19  ;;  %v5640_v53 = vrot.slane %v5639_v50, 4  ;;  %v4780_v19 = vor.u32 %v4778_v25, %v4777_v10 }
 0x5a0   : > { %v4012_v20 = vadd.f32 %v3951_v51, %v3754_v1  ;;  %v5576_v1 = vld [vmem:[#allocation2 + $0x2c] sm:$0x1] }
 0x5a1   : > { %v5642_v44 = vshll.u32 %v5576_v1, 16  ;;  %v5125_v21 = vpack.c.b16 %v5094_v13, %v5093_v39  ;;  %v5577_v1 = vld [vmem:[#allocation2 + $0x34] sm:$0xf]  ;;  %v5656_v13 = vshll.u32 %v5578_v15, 16 }
 0x5a2   : > { %v4609_v40 = vpop.f32.mrf.mxu3 }
 0x5a3   : > { %v11291_v27 = vadd.f32 %v4609_v40, %v4012_v20  ;;  %v5644_v47 = vrot.slane %v5642_v44, 5  ;;  %v4761_v40 = vshrl.u32 %v4693_v17, 16  ;;  %v5650_v17 = vshll.u32 %v5577_v1, 16 }
 0x5a4   : > { %8985 = vmatmul.msk.bf16.gmra.mxu2 %vm2157_vm14, %v9801_v24  ;;  %v4768_v24 = vrot.slane %v4766_v0, 7  ;;  %v5647_v0 = vshrl.u32 %v5577_v1, 16  ;;  %v5658_v10 = vrot.slane %v5656_v13, 5 }
 0x5a5   : > { %v3701_v46 = vpop.f32.mrf.mxu1  ;;  %v9009_v57 = vrot.slane %v4761_v40, 11  ;;  %v4697_v40 = vld [vmem:[#allocation2 + $0x44] sm:$0xf] }
 0x5a6   : > { %v3757_v11 = vadd.f32 %v3701_v46, %v11040_v32  ;;  %v5645_v32 = vsel %vm10566_vm15, %v5640_v53, %v5644_v47  ;;  %v4771_v43 = vor.u32 %v4769_v63, %v4768_v24  ;;  %v4773_v50 = vrot.slane %v4768_v24, 4 }
 0x5a7   : > { %9007 = vmatmul.msk.bf16.gmra.mxu3 %vm2157_vm14, %v4513_v29  ;;  %v3954_v12 = vpop.f32.mrf.mxu2  ;;  %v5660_v29 = vshrl.u32 %v5578_v15, 16  ;;  %v6010_v38 = vunpack.c.l.b16 %v5645_v32  ;;  %v5649_v25 = vrot.slane %v5647_v0, 4 }
 0x5a8   : > { %v4013_v51 = vadd.f32 %v3954_v12, %v3755_v48  ;;  %9030 = vmatmul.msk.bf16.vlgmr.msrb.gmra.mxu1 %vm2157_vm14, %v5125_v21  ;;  %v5630_v48 = vrot.slane %v5629_v33, 4  ;;  %v4781_v46 = vsel %vm10554_vm13, %v4773_v50, %v4780_v19  ;;  %v9805_v21 = vld [vmem:[#allocation2 + $0x24] sm:$0xff]  ;;  %v5652_v19 = vrot.slane %v5650_v17, 5 }
 0x5a9   : > { %v4698_v33 = vld [vmem:[#allocation2 + $0x48] sm:$0xf] }
 0x5aa   : > { %v4612_v20 = vpop.f32.mrf.mxu3  ;;  %v5635_v4 = vsel %vm10566_vm15, %v5630_v48, %v5634_v31  ;;  %v5096_v31 = vunpack.c.l.b16 %v4781_v46  ;;  %v4797_v15 = vshrl.u32 %v4698_v33, 16  ;;  %v4800_v17 = vshll.u32 %v4698_v33, 16 }
 0x5ab   : > { %v11299_v58 = vadd.f32 %v4612_v20, %v4013_v51  ;;  %v5662_v20 = vrot.slane %v5660_v29, 4  ;;  %v6009_v47 = vunpack.c.l.b16 %v5635_v4  ;;  %v4788_v29 = vshrl.u32 %v4697_v40, 16 }
 0x5ac   : > { %v4799_v50 = vrot.slane %v4797_v15, 7  ;;  %v5653_v4 = vor.u32 %v5652_v19, %v5649_v25 }
 0x5ad   : > { %v3703_v39 = vpop.f32.mrf.mxu1  ;;  %v6041_v24 = vpack.c.b16 %v6010_v38, %v6009_v47  ;;  %v5663_v48 = vor.u32 %v5662_v20, %v5658_v10  ;;  %v5581_v20 = vld [vmem:[#allocation2 + $0x48] sm:$0xf]  ;;  %v4791_v47 = vshll.u32 %v4697_v40, 16 }
 0x5ae   : > { %v3758_v12 = vadd.f32 %v3703_v39, %v11054_v55  ;;  %v4772_v55 = vsel %vm10554_vm13, %v9009_v57, %v4771_v43  ;;  %v4696_v43 = vld [vmem:[#allocation2 + $0x40] sm:$0x8] }
 0x5af   : > { %v3956_v62 = vpop.f32.mrf.mxu2  ;;  %v5095_v63 = vunpack.c.l.b16 %v4772_v55  ;;  %v5664_v38 = vrot.slane %v5663_v48, 4  ;;  %v4802_v55 = vor.u32 %v4800_v17, %v4799_v50 }
 0x5b0   : > { %v4014_v44 = vadd.f32 %v3956_v62, %v3756_v56  ;;  %v5579_v56 = vld [vmem:[#allocation2 + $0x3c] sm:$0x1] }
 0x5b1   : > { %v5666_v32 = vshll.u32 %v5579_v56, 16  ;;  %v5126_v57 = vpack.c.b16 %v5096_v31, %v5095_v63  ;;  %v5580_v56 = vld [vmem:[#allocation2 + $0x44] sm:$0xf]  ;;  %v5680_v31 = vshll.u32 %v5581_v20, 16 }
 0x5b2   : > { %v4614_v51 = vpop.f32.mrf.mxu3 }
 0x5b3   : > { %v11308_v53 = vadd.f32 %v4614_v51, %v4014_v44  ;;  %v5668_v46 = vrot.slane %v5666_v32, 5  ;;  %v4783_v51 = vshrl.u32 %v4696_v43, 16  ;;  %v5674_v43 = vshll.u32 %v5580_v56, 16 }
 0x5b4   : > { %9116 = vmatmul.msk.bf16.vlgmr.msra.gmra.mxu2 %vm2157_vm14, %v9805_v21  ;;  %v4790_v21 = vrot.slane %v4788_v29, 7  ;;  %v5671_v29 = vshrl.u32 %v5580_v56, 16  ;;  %v5682_v50 = vrot.slane %v5680_v31, 5 }
 0x5b5   : > { %v3706_v13 = vpop.f32.mrf.mxu1  ;;  %v9010_v25 = vrot.slane %v4783_v51, 11  ;;  %v4700_v51 = vld [vmem:[#allocation2 + $0x54] sm:$0xf] }
 0x5b6   : > { %v3759_v39 = vadd.f32 %v3706_v13, %v11064_v45  ;;  %v5669_v45 = vsel %vm10566_vm15, %v5664_v38, %v5668_v46  ;;  %v4793_v19 = vor.u32 %v4791_v47, %v4790_v21  ;;  %v4795_v48 = vrot.slane %v4790_v21, 4 }
 0x5b7   : > { %9138 = vmatmul.msk.bf16.vlgmr.msrb.gmra.mxu3 %vm2157_vm14, %v6041_v24  ;;  %v3959_v1 = vpop.f32.mrf.mxu2  ;;  %v5684_v24 = vshrl.u32 %v5581_v20, 16  ;;  %v6012_v40 = vunpack.c.l.b16 %v5669_v45  ;;  %v5673_v17 = vrot.slane %v5671_v29, 4 }
 0x5b8   : > { %v4015_v62 = vadd.f32 %v3959_v1, %v3757_v11  ;;  %9031 = vmatmul.msk.bf16.gmra.mxu1 %vm2157_vm14, %v5126_v57  ;;  %v5654_v11 = vrot.slane %v5653_v4, 4  ;;  %v4803_v13 = vsel %vm10554_vm13, %v4795_v48, %v4802_v55  ;;  %v9806_v57 = vld [vmem:[#allocation2 + $0x34] sm:$0xff]  ;;  %v5676_v55 = vrot.slane %v5674_v43, 5 }
 0x5b9   : > { %v4701_v4 = vld [vmem:[#allocation2 + $0x58] sm:$0xf] }
 0x5ba   : > { %v4617_v44 = vpop.f32.mrf.mxu3  ;;  %v5659_v33 = vsel %vm10566_vm15, %v5654_v11, %v5658_v10  ;;  %v5098_v10 = vunpack.c.l.b16 %v4803_v13  ;;  %v4819_v20 = vshrl.u32 %v4701_v4, 16  ;;  %v4822_v43 = vshll.u32 %v4701_v4, 16 }
 0x5bb   : > { %v11316_v0 = vadd.f32 %v4617_v44, %v4015_v62  ;;  %v5686_v44 = vrot.slane %v5684_v24, 4  ;;  %v6011_v46 = vunpack.c.l.b16 %v5659_v33  ;;  %v4810_v24 = vshrl.u32 %v4700_v51, 16 }
 0x5bc   : > { %v4821_v48 = vrot.slane %v4819_v20, 7  ;;  %v5677_v33 = vor.u32 %v5676_v55, %v5673_v17 }
 0x5bd   : > { %v3708_v63 = vpop.f32.mrf.mxu1  ;;  %v6042_v21 = vpack.c.b16 %v6012_v40, %v6011_v46  ;;  %v5687_v11 = vor.u32 %v5686_v44, %v5682_v50  ;;  %v5584_v44 = vld [vmem:[#allocation2 + $0x58] sm:$0xf]  ;;  %v4813_v46 = vshll.u32 %v4700_v51, 16 }
 0x5be   : > { %v3760_v1 = vadd.f32 %v3708_v63, %v11076_v52  ;;  %v4794_v52 = vsel %vm10554_vm13, %v9010_v25, %v4793_v19  ;;  %v4699_v19 = vld [vmem:[#allocation2 + $0x50] sm:$0x8] }
 0x5bf   : > { %v3961_v15 = vpop.f32.mrf.mxu2  ;;  %v5097_v47 = vunpack.c.l.b16 %v4794_v52  ;;  %v5688_v40 = vrot.slane %v5687_v11, 4  ;;  %v4824_v52 = vor.u32 %v4822_v43, %v4821_v48 }
 0x5c0   : > { %v4016_v32 = vadd.f32 %v3961_v15, %v3758_v12  ;;  %v5582_v12 = vld [vmem:[#allocation2 + $0x4c] sm:$0x1] }
 0x5c1   : > { %v5690_v45 = vshll.u32 %v5582_v12, 16  ;;  %v5127_v25 = vpack.c.b16 %v5098_v10, %v5097_v47  ;;  %v5583_v12 = vld [vmem:[#allocation2 + $0x54] sm:$0xf]  ;;  %v5704_v10 = vshll.u32 %v5584_v44, 16 }
 0x5c2   : > { %v4619_v62 = vpop.f32.mrf.mxu3 }
 0x5c3   : > { %v11325_v38 = vadd.f32 %v4619_v62, %v4016_v32  ;;  %v5692_v13 = vrot.slane %v5690_v45, 5  ;;  %v4805_v62 = vshrl.u32 %v4699_v19, 16  ;;  %v5698_v19 = vshll.u32 %v5583_v12, 16 }
 0x5c4   : > { %9117 = vmatmul.msk.bf16.gmra.mxu2 %vm2157_vm14, %v9806_v57  ;;  %v4812_v57 = vrot.slane %v4810_v24, 7  ;;  %v5695_v24 = vshrl.u32 %v5583_v12, 16  ;;  %v5706_v48 = vrot.slane %v5704_v10, 5 }
 0x5c5   : > { %v3711_v31 = vpop.f32.mrf.mxu1  ;;  %v9011_v17 = vrot.slane %v4805_v62, 11  ;;  %v4703_v62 = vld [vmem:[#allocation2 + $0x64] sm:$0xf] }
 0x5c6   : > { %v3761_v63 = vadd.f32 %v3711_v31, %v11081_v37  ;;  %v5693_v37 = vsel %vm10566_vm15, %v5688_v40, %v5692_v13  ;;  %v4815_v55 = vor.u32 %v4813_v46, %v4812_v57  ;;  %v4817_v11 = vrot.slane %v4812_v57, 4 }
 0x5c7   : > { %9139 = vmatmul.msk.bf16.gmra.mxu3 %vm2157_vm14, %v6042_v21  ;;  %v3964_v56 = vpop.f32.mrf.mxu2  ;;  %v5708_v21 = vshrl.u32 %v5584_v44, 16  ;;  %v6014_v51 = vunpack.c.l.b16 %v5693_v37  ;;  %v5697_v43 = vrot.slane %v5695_v24, 4 }
 0x5c8   : > { %v4017_v15 = vadd.f32 %v3964_v56, %v3759_v39  ;;  %9032 = vmatmul.msk.bf16.gmra.mxu1 %vm2157_vm14, %v5127_v25  ;;  %v5678_v39 = vrot.slane %v5677_v33, 4  ;;  %v4825_v31 = vsel %vm10554_vm13, %v4817_v11, %v4824_v52  ;;  %v9807_v25 = vld [vmem:[#allocation2 + $0x44] sm:$0xff]  ;;  %v5700_v52 = vrot.slane %v5698_v19, 5 }
 0x5c9   : > { %v4704_v33 = vld [vmem:[#allocation2 + $0x68] sm:$0xf] }
 0x5ca   : > { %v4622_v32 = vpop.f32.mrf.mxu3  ;;  %v5683_v4 = vsel %vm10566_vm15, %v5678_v39, %v5682_v50  ;;  %v5100_v50 = vunpack.c.l.b16 %v4825_v31  ;;  %v4841_v44 = vshrl.u32 %v4704_v33, 16  ;;  %v4844_v19 = vshll.u32 %v4704_v33, 16 }
 0x5cb   : > { %v11333_v29 = vadd.f32 %v4622_v32, %v4017_v15  ;;  %v5710_v32 = vrot.slane %v5708_v21, 4  ;;  %v6013_v13 = vunpack.c.l.b16 %v5683_v4  ;;  %v4832_v21 = vshrl.u32 %v4703_v62, 16 }
 0x5cc   : > { %v4843_v11 = vrot.slane %v4841_v44, 7  ;;  %v5701_v4 = vor.u32 %v5700_v52, %v5697_v43 }
 0x5cd   : > { %v3713_v47 = vpop.f32.mrf.mxu1  ;;  %v6043_v57 = vpack.c.b16 %v6014_v51, %v6013_v13  ;;  %v5711_v39 = vor.u32 %v5710_v32, %v5706_v48  ;;  %v5587_v32 = vld [vmem:[#allocation2 + $0x68] sm:$0xf]  ;;  %v4835_v13 = vshll.u32 %v4703_v62, 16 }
 0x5ce   : > { %v3762_v56 = vadd.f32 %v3713_v47, %v11091_v34  ;;  %v4816_v34 = vsel %vm10554_vm13, %v9011_v17, %v4815_v55  ;;  %v4702_v55 = vld [vmem:[#allocation2 + $0x60] sm:$0x8] }
 0x5cf   : > { %v3966_v20 = vpop.f32.mrf.mxu2  ;;  %v5099_v46 = vunpack.c.l.b16 %v4816_v34  ;;  %v5712_v51 = vrot.slane %v5711_v39, 4  ;;  %v4846_v34 = vor.u32 %v4844_v19, %v4843_v11 }
 0x5d0   : > { %v4018_v45 = vadd.f32 %v3966_v20, %v3760_v1  ;;  %v5585_v1 = vld [vmem:[#allocation2 + $0x5c] sm:$0x1] }
 0x5d1   : > { %v5714_v37 = vshll.u32 %v5585_v1, 16  ;;  %v5128_v17 = vpack.c.b16 %v5100_v50, %v5099_v46  ;;  %v5586_v1 = vld [vmem:[#allocation2 + $0x64] sm:$0xf]  ;;  %v5728_v50 = vshll.u32 %v5587_v32, 16 }
 0x5d2   : > { %v4624_v15 = vpop.f32.mrf.mxu3 }
 0x5d3   : > { %v11342_v40 = vadd.f32 %v4624_v15, %v4018_v45  ;;  %v5716_v31 = vrot.slane %v5714_v37, 5  ;;  %v4827_v15 = vshrl.u32 %v4702_v55, 16  ;;  %v5722_v55 = vshll.u32 %v5586_v1, 16 }
 0x5d4   : > { %9118 = vmatmul.msk.bf16.gmra.mxu2 %vm2157_vm14, %v9807_v25  ;;  %v4834_v25 = vrot.slane %v4832_v21, 7  ;;  %v5719_v21 = vshrl.u32 %v5586_v1, 16  ;;  %v5730_v11 = vrot.slane %v5728_v50, 5 }
 0x5d5   : > { %v3716_v10 = vpop.f32.mrf.mxu1  ;;  %v9012_v43 = vrot.slane %v4827_v15, 11  ;;  %v4706_v15 = vld [vmem:[#allocation2 + $0x74] sm:$0xf] }
 0x5d6   : > { %v3763_v47 = vadd.f32 %v3716_v10, %v11096_v7  ;;  %v5717_v7 = vsel %vm10566_vm15, %v5712_v51, %v5716_v31  ;;  %v4837_v52 = vor.u32 %v4835_v13, %v4834_v25  ;;  %v4839_v39 = vrot.slane %v4834_v25, 4 }
 0x5d7   : > { %9140 = vmatmul.msk.bf16.gmra.mxu3 %vm2157_vm14, %v6043_v57  ;;  %v3969_v12 = vpop.f32.mrf.mxu2  ;;  %v5732_v57 = vshrl.u32 %v5587_v32, 16  ;;  %v6016_v62 = vunpack.c.l.b16 %v5717_v7  ;;  %v5721_v19 = vrot.slane %v5719_v21, 4 }
 0x5d8   : > { %v4019_v20 = vadd.f32 %v3969_v12, %v3761_v63  ;;  %9033 = vmatmul.msk.bf16.gmra.mxu1 %vm2157_vm14, %v5128_v17  ;;  %v5702_v63 = vrot.slane %v5701_v4, 4  ;;  %v4847_v10 = vsel %vm10554_vm13, %v4839_v39, %v4846_v34  ;;  %v9808_v17 = vld [vmem:[#allocation2 + $0x54] sm:$0xff]  ;;  %v5724_v34 = vrot.slane %v5722_v55, 5 }
 0x5d9   : > { %v4707_v4 = vld [vmem:[#allocation2 + $0x78] sm:$0xf] }
 0x5da   : > { %v4627_v45 = vpop.f32.mrf.mxu3  ;;  %v5707_v33 = vsel %vm10566_vm15, %v5702_v63, %v5706_v48  ;;  %v5102_v48 = vunpack.c.l.b16 %v4847_v10  ;;  %v4863_v32 = vshrl.u32 %v4707_v4, 16  ;;  %v4866_v55 = vshll.u32 %v4707_v4, 16 }
 0x5db   : > { %v11350_v24 = vadd.f32 %v4627_v45, %v4019_v20  ;;  %v5734_v45 = vrot.slane %v5732_v57, 4  ;;  %v6015_v31 = vunpack.c.l.b16 %v5707_v33  ;;  %v4854_v57 = vshrl.u32 %v4706_v15, 16 }
 0x5dc   : > { %v4865_v39 = vrot.slane %v4863_v32, 7  ;;  %v5725_v33 = vor.u32 %v5724_v34, %v5721_v19 }
 0x5dd   : > { %v3718_v46 = vpop.f32.mrf.mxu1  ;;  %v6044_v25 = vpack.c.b16 %v6016_v62, %v6015_v31  ;;  %v5735_v63 = vor.u32 %v5734_v45, %v5730_v11  ;;  %v5590_v45 = vld [vmem:[#allocation2 + $0x78] sm:$0xf]  ;;  %v4857_v31 = vshll.u32 %v4706_v15, 16 }
 0x5de   : > { %v3764_v12 = vadd.f32 %v3718_v46, %v11104_v5  ;;  %v4838_v5 = vsel %vm10554_vm13, %v9012_v43, %v4837_v52  ;;  %v4705_v52 = vld [vmem:[#allocation2 + $0x70] sm:$0x8] }
 0x5df   : > { %v3971_v44 = vpop.f32.mrf.mxu2  ;;  %v5101_v13 = vunpack.c.l.b16 %v4838_v5  ;;  %v5736_v62 = vrot.slane %v5735_v63, 4  ;;  %v4868_v5 = vor.u32 %v4866_v55, %v4865_v39 }
 0x5e0   : > { %v4020_v37 = vadd.f32 %v3971_v44, %v3762_v56  ;;  %v5588_v56 = vld [vmem:[#allocation2 + $0x6c] sm:$0x1] }
 0x5e1   : > { %v5738_v7 = vshll.u32 %v5588_v56, 16  ;;  %v5129_v43 = vpack.c.b16 %v5102_v48, %v5101_v13  ;;  %v5589_v56 = vld [vmem:[#allocation2 + $0x74] sm:$0xf]  ;;  %v5752_v48 = vshll.u32 %v5590_v45, 16 }
 0x5e2   : > { %v4629_v20 = vpop.f32.mrf.mxu3 }
 0x5e3   : > { %v11359_v51 = vadd.f32 %v4629_v20, %v4020_v37  ;;  %v5740_v10 = vrot.slane %v5738_v7, 5  ;;  %v4849_v20 = vshrl.u32 %v4705_v52, 16  ;;  %v5746_v52 = vshll.u32 %v5589_v56, 16 }
 0x5e4   : > { %9119 = vmatmul.msk.bf16.gmra.mxu2 %vm2157_vm14, %v9808_v17  ;;  %v4856_v17 = vrot.slane %v4854_v57, 7  ;;  %v5743_v57 = vshrl.u32 %v5589_v56, 16  ;;  %v5754_v39 = vrot.slane %v5752_v48, 5 }
 0x5e5   : > { %v3721_v50 = vpop.f32.mrf.mxu1  ;;  %v9013_v19 = vrot.slane %v4849_v20, 11  ;;  %v4709_v20 = vld [vmem:[#allocation2 + $0x84] sm:$0xf] }
 0x5e6   : > { %v3765_v46 = vadd.f32 %v3721_v50, %v11111_v61  ;;  %v5741_v61 = vsel %vm10566_vm15, %v5736_v62, %v5740_v10  ;;  %v4859_v34 = vor.u32 %v4857_v31, %v4856_v17  ;;  %v4861_v63 = vrot.slane %v4856_v17, 4 }
 0x5e7   : > { %9141 = vmatmul.msk.bf16.gmra.mxu3 %vm2157_vm14, %v6044_v25  ;;  %v3974_v1 = vpop.f32.mrf.mxu2  ;;  %v5756_v25 = vshrl.u32 %v5590_v45, 16  ;;  %v6018_v15 = vunpack.c.l.b16 %v5741_v61  ;;  %v5745_v55 = vrot.slane %v5743_v57, 4 }
 0x5e8   : > { %v4021_v44 = vadd.f32 %v3974_v1, %v3763_v47  ;;  %9034 = vmatmul.msk.bf16.gmra.mxu1 %vm2157_vm14, %v5129_v43  ;;  %v5726_v47 = vrot.slane %v5725_v33, 4  ;;  %v4869_v50 = vsel %vm10554_vm13, %v4861_v63, %v4868_v5  ;;  %v9809_v43 = vld [vmem:[#allocation2 + $0x64] sm:$0xff]  ;;  %v5748_v5 = vrot.slane %v5746_v52, 5 }
 0x5e9   : > { %v4710_v33 = vld [vmem:[#allocation2 + $0x88] sm:$0xf] }
 0x5ea   : > { %v4632_v37 = vpop.f32.mrf.mxu3  ;;  %v5731_v4 = vsel %vm10566_vm15, %v5726_v47, %v5730_v11  ;;  %v5104_v11 = vunpack.c.l.b16 %v4869_v50  ;;  %v4885_v45 = vshrl.u32 %v4710_v33, 16  ;;  %v4888_v52 = vshll.u32 %v4710_v33, 16 }
 0x5eb   : > { %v11367_v21 = vadd.f32 %v4632_v37, %v4021_v44  ;;  %v5758_v37 = vrot.slane %v5756_v25, 4  ;;  %v6017_v10 = vunpack.c.l.b16 %v5731_v4  ;;  %v4876_v25 = vshrl.u32 %v4709_v20, 16 }
 0x5ec   : > { %v4887_v63 = vrot.slane %v4885_v45, 7  ;;  %v5749_v4 = vor.u32 %v5748_v5, %v5745_v55 }
 0x5ed   : > { %v3723_v13 = vpop.f32.mrf.mxu1  ;;  %v6045_v17 = vpack.c.b16 %v6018_v15, %v6017_v10  ;;  %v5759_v47 = vor.u32 %v5758_v37, %v5754_v39  ;;  %v5593_v37 = vld [vmem:[#allocation2 + $0x88] sm:$0xf]  ;;  %v4879_v10 = vshll.u32 %v4709_v20, 16 }
 0x5ee   : > { %v3766_v1 = vadd.f32 %v3723_v13, %v11119_v41  ;;  %v4860_v41 = vsel %vm10554_vm13, %v9013_v19, %v4859_v34  ;;  %v4708_v34 = vld [vmem:[#allocation2 + $0x80] sm:$0x8] }
 0x5ef   : > { %v3976_v32 = vpop.f32.mrf.mxu2  ;;  %v5103_v31 = vunpack.c.l.b16 %v4860_v41  ;;  %v5760_v15 = vrot.slane %v5759_v47, 4  ;;  %v4890_v41 = vor.u32 %v4888_v52, %v4887_v63 }
 0x5f0   : > { %v4022_v7 = vadd.f32 %v3976_v32, %v3764_v12  ;;  %v5591_v12 = vld [vmem:[#allocation2 + $0x7c] sm:$0x1] }
 0x5f1   : > { %v5762_v61 = vshll.u32 %v5591_v12, 16  ;;  %v5130_v19 = vpack.c.b16 %v5104_v11, %v5103_v31  ;;  %v5592_v12 = vld [vmem:[#allocation2 + $0x84] sm:$0xf]  ;;  %v5776_v11 = vshll.u32 %v5593_v37, 16 }
 0x5f2   : > { %v4634_v44 = vpop.f32.mrf.mxu3 }
 0x5f3   : > { %v11376_v62 = vadd.f32 %v4634_v44, %v4022_v7  ;;  %v5764_v50 = vrot.slane %v5762_v61, 5  ;;  %v4871_v44 = vshrl.u32 %v4708_v34, 16  ;;  %v5770_v34 = vshll.u32 %v5592_v12, 16 }
 0x5f4   : > { %9120 = vmatmul.msk.bf16.gmra.mxu2 %vm2157_vm14, %v9809_v43  ;;  %v4878_v43 = vrot.slane %v4876_v25, 7  ;;  %v5767_v25 = vshrl.u32 %v5592_v12, 16  ;;  %v5778_v63 = vrot.slane %v5776_v11, 5 }
 0x5f5   : > { %v3726_v48 = vpop.f32.mrf.mxu1  ;;  %v9014_v55 = vrot.slane %v4871_v44, 11  ;;  %v4712_v44 = vld [vmem:[#allocation2 + $0x94] sm:$0xf] }
 0x5f6   : > { %v3767_v13 = vadd.f32 %v3726_v48, %v11126_v9  ;;  %v5765_v9 = vsel %vm10566_vm15, %v5760_v15, %v5764_v50  ;;  %v4881_v5 = vor.u32 %v4879_v10, %v4878_v43  ;;  %v4883_v47 = vrot.slane %v4878_v43, 4 }
 0x5f7   : > { %9142 = vmatmul.msk.bf16.gmra.mxu3 %vm2157_vm14, %v6045_v17  ;;  %v3979_v56 = vpop.f32.mrf.mxu2  ;;  %v5780_v17 = vshrl.u32 %v5593_v37, 16  ;;  %v6020_v20 = vunpack.c.l.b16 %v5765_v9  ;;  %v5769_v52 = vrot.slane %v5767_v25, 4 }
 0x5f8   : > { %v4023_v32 = vadd.f32 %v3979_v56, %v3765_v46  ;;  %9035 = vmatmul.msk.bf16.gmra.mxu1 %vm2157_vm14, %v5130_v19  ;;  %v5750_v46 = vrot.slane %v5749_v4, 4  ;;  %v4891_v48 = vsel %vm10554_vm13, %v4883_v47, %v4890_v41  ;;  %v9810_v19 = vld [vmem:[#allocation2 + $0x74] sm:$0xff]  ;;  %v5772_v41 = vrot.slane %v5770_v34, 5 }
 0x5f9   : > { %v4713_v4 = vld [vmem:[#allocation2 + $0x98] sm:$0xf] }
 0x5fa   : > { %v4637_v7 = vpop.f32.mrf.mxu3  ;;  %v5755_v33 = vsel %vm10566_vm15, %v5750_v46, %v5754_v39  ;;  %v5106_v39 = vunpack.c.l.b16 %v4891_v48  ;;  %v4907_v37 = vshrl.u32 %v4713_v4, 16  ;;  %v4910_v34 = vshll.u32 %v4713_v4, 16 }
 0x5fb   : > { %v11384_v57 = vadd.f32 %v4637_v7, %v4023_v32  ;;  %v5782_v7 = vrot.slane %v5780_v17, 4  ;;  %v6019_v50 = vunpack.c.l.b16 %v5755_v33  ;;  %v4898_v17 = vshrl.u32 %v4712_v44, 16 }
 0x5fc   : > { %v4909_v47 = vrot.slane %v4907_v37, 7  ;;  %v5773_v33 = vor.u32 %v5772_v41, %v5769_v52 }
 0x5fd   : > { %v3728_v31 = vpop.f32.mrf.mxu1  ;;  %v6046_v43 = vpack.c.b16 %v6020_v20, %v6019_v50  ;;  %v5783_v46 = vor.u32 %v5782_v7, %v5778_v63  ;;  %v5596_v7 = vld [vmem:[#allocation2 + $0x98] sm:$0xf]  ;;  %v4901_v50 = vshll.u32 %v4712_v44, 16 }
 0x5fe   : > { %v3768_v56 = vadd.f32 %v3728_v31, %v11134_v3  ;;  %v4882_v3 = vsel %vm10554_vm13, %v9014_v55, %v4881_v5  ;;  %v4711_v5 = vld [vmem:[#allocation2 + $0x90] sm:$0x8] }
 0x5ff   : > { %v3981_v45 = vpop.f32.mrf.mxu2  ;;  %v5105_v10 = vunpack.c.l.b16 %v4882_v3  ;;  %v5784_v20 = vrot.slane %v5783_v46, 4  ;;  %v4912_v3 = vor.u32 %v4910_v34, %v4909_v47  ;;  %v4715_v34 = vld [vmem:[#allocation2 + $0xa4] sm:$0xf] }
 0x600   : > { %v4024_v61 = vadd.f32 %v3981_v45, %v3766_v1  ;;  %v5594_v1 = vld [vmem:[#allocation2 + $0x8c] sm:$0x1] }
 0x601   : > { %v5786_v9 = vshll.u32 %v5594_v1, 16  ;;  %v5131_v55 = vpack.c.b16 %v5106_v39, %v5105_v10  ;;  %v5595_v1 = vld [vmem:[#allocation2 + $0x94] sm:$0xf]  ;;  %v5800_v39 = vshll.u32 %v5596_v7, 16 }
 0x602   : > { %v4639_v32 = vpop.f32.mrf.mxu3  ;;  %v5794_v47 = vshll.u32 %v5595_v1, 16 }
 0x603   : > { %v11393_v15 = vadd.f32 %v4639_v32, %v4024_v61  ;;  %v5788_v48 = vrot.slane %v5786_v9, 5  ;;  %v4893_v32 = vshrl.u32 %v4711_v5, 16  ;;  %v9811_v5 = vld [vmem:[#allocation2 + $0x84] sm:$0xff] }
 0x604   : > { %9121 = vmatmul.msk.bf16.gmra.mxu2 %vm2157_vm14, %v9810_v19  ;;  %v4900_v19 = vrot.slane %v4898_v17, 7 }
 0x605   : > { %12540 = vst [vmem:[#allocation7_spill] sm:$0xff] %v11393_v15  ;;  %v3731_v11 = vpop.f32.mrf.mxu1  ;;  %v9015_v52 = vrot.slane %v4893_v32, 11 }
 0x606   : > { %v3769_v31 = vadd.f32 %v3731_v11, %v11141_v22  ;;  %v5789_v22 = vsel %vm10566_vm15, %v5784_v20, %v5788_v48  ;;  %v4903_v41 = vor.u32 %v4901_v50, %v4900_v19  ;;  %v4905_v46 = vrot.slane %v4900_v19, 4  ;;  %v4716_v20 = vld [vmem:[#allocation2 + $0xa8] sm:$0xf]  ;;  %v5597_v19 = vld [vmem:[#allocation2 + $0x9c] sm:$0x1] }
 0x607   : > { %9143 = vmatmul.msk.bf16.gmra.mxu3 %vm2157_vm14, %v6046_v43  ;;  %v3984_v12 = vpop.f32.mrf.mxu2  ;;  %v5804_v43 = vshrl.u32 %v5596_v7, 16  ;;  %v6022_v44 = vunpack.c.l.b16 %v5789_v22  ;;  %v5796_v22 = vrot.slane %v5794_v47, 5 }
 0x608   : > { %v4025_v45 = vadd.f32 %v3984_v12, %v3767_v13  ;;  %9036 = vmatmul.msk.bf16.gmra.mxu1 %vm2157_vm14, %v5131_v55  ;;  %v5774_v13 = vrot.slane %v5773_v33, 4  ;;  %v12541_v12 = vld [vmem:[#allocation22_spill] sm:$0xff]  ;;  %v4913_v17 = vsel %vm10554_vm13, %v4905_v46, %v4912_v3  ;;  %v4929_v3 = vshrl.u32 %v4716_v20, 16 }
 0x609   : > { %v5806_v33 = vrot.slane %v5804_v43, 4 }
 0x60a   : > { %v4642_v61 = vpop.f32.mrf.mxu3  ;;  %v5779_v4 = vsel %vm10566_vm15, %v5774_v13, %v5778_v63  ;;  %v5108_v63 = vunpack.c.l.b16 %v4913_v17 }
 0x60b   : > { %v11401_v25 = vadd.f32 %v4642_v61, %v4025_v45  ;;  %v5791_v45 = vshrl.u32 %v5595_v1, 16  ;;  %v5802_v61 = vrot.slane %v5800_v39, 5  ;;  %v6021_v32 = vunpack.c.l.b16 %v5779_v4 }
 0x60c   : > { %v5810_v39 = vshll.u32 %v5597_v19, 16 }
 0x60d   : > { %v3733_v10 = vpop.f32.mrf.mxu1  ;;  %v6047_v7 = vpack.c.b16 %v6022_v44, %v6021_v32  ;;  %v5793_v50 = vrot.slane %v5791_v45, 4  ;;  %v5807_v1 = vor.u32 %v5806_v33, %v5802_v61  ;;  %v4932_v33 = vshll.u32 %v4716_v20, 16  ;;  %v5599_v32 = vld [vmem:[#allocation2 + $0xa8] sm:$0xf] }
 0x60e   : > { %v3770_v11 = vadd.f32 %v3733_v10, %v12541_v12  ;;  %v4920_v10 = vshrl.u32 %v4715_v34, 16  ;;  %v4931_v12 = vrot.slane %v4929_v3, 7  ;;  %v5812_v45 = vrot.slane %v5810_v39, 5 }
 0x60f   : > { %v3986_v37 = vpop.f32.mrf.mxu2  ;;  %v5797_v44 = vor.u32 %v5796_v22, %v5793_v50  ;;  %v5808_v17 = vrot.slane %v5807_v1, 4  ;;  %v5828_v3 = vshrl.u32 %v5599_v32, 16 }
 0x610   : > { %v4026_v9 = vadd.f32 %v3986_v37, %v3768_v56  ;;  %v4904_v56 = vsel %vm10554_vm13, %v9015_v52, %v4903_v41  ;;  %v4922_v47 = vrot.slane %v4920_v10, 7  ;;  %v4934_v19 = vor.u32 %v4932_v33, %v4931_v12 }
 0x611   : > { %v5107_v13 = vunpack.c.l.b16 %v4904_v56  ;;  %v4923_v56 = vshll.u32 %v4715_v34, 16 }
 0x612   : > { %v4644_v55 = vpop.f32.mrf.mxu3  ;;  %v4927_v1 = vrot.slane %v4922_v47, 4 }
 0x613   : > { %v11410_v48 = vadd.f32 %v4644_v55, %v4026_v9  ;;  %v5132_v41 = vpack.c.b16 %v5108_v63, %v5107_v13  ;;  %v4714_v9 = vld [vmem:[#allocation2 + $0xa0] sm:$0x8]  ;;  %v5598_v63 = vld [vmem:[#allocation2 + $0xa4] sm:$0xf]  ;;  %v4925_v22 = vor.u32 %v4923_v56, %v4922_v47  ;;  %v4718_v47 = vld [vmem:[#allocation2 + $0xb4] sm:$0xf] }
 0x614   : > { %9122 = vmatmul.msk.bf16.gmra.mxu2 %vm2157_vm14, %v9811_v5  ;;  %v4915_v5 = vshrl.u32 %v4714_v9, 16  ;;  %v4935_v10 = vsel %vm10554_vm13, %v4927_v1, %v4934_v19  ;;  %v9812_v9 = vld [vmem:[#allocation2 + $0x94] sm:$0xff]  ;;  %v5818_v12 = vshll.u32 %v5598_v63, 16  ;;  %v4717_v1 = vld [vmem:[#allocation2 + $0xb0] sm:$0x8] }
 0x615   : > { %12542 = vst [vmem:[#allocation37_spill] sm:$0xff] %v11410_v48  ;;  %v3736_v37 = vpop.f32.mrf.mxu1 }
 0x616   : > { %v3771_v52 = vadd.f32 %v3736_v37, %v11157_v35  ;;  %v5813_v35 = vsel %vm10566_vm15, %v5808_v17, %v5812_v45  ;;  %v9016_v50 = vrot.slane %v4915_v5, 11  ;;  %v4719_v17 = vld [vmem:[#allocation2 + $0xb8] sm:$0xf] }
 0x617   : > { %9144 = vmatmul.msk.bf16.gmra.mxu3 %vm2157_vm14, %v6047_v7  ;;  %v3989_v43 = vpop.f32.mrf.mxu2  ;;  %v5824_v7 = vshll.u32 %v5599_v32, 16  ;;  %v6024_v34 = vunpack.c.l.b16 %v5813_v35  ;;  %v4951_v56 = vshrl.u32 %v4719_v17, 16 }
 0x618   : > { %v4027_v46 = vadd.f32 %v3989_v43, %v3769_v31  ;;  %9037 = vmatmul.msk.bf16.gmra.mxu1 %vm2157_vm14, %v5132_v41  ;;  %v5798_v31 = vrot.slane %v5797_v44, 4  ;;  %v5830_v44 = vrot.slane %v5828_v3, 4  ;;  %v4942_v3 = vshrl.u32 %v4718_v47, 16 }
 0x61a   : > { %v4647_v4 = vpop.f32.mrf.mxu3  ;;  %v5803_v20 = vsel %vm10566_vm15, %v5798_v31, %v5802_v61  ;;  %v5110_v61 = vunpack.c.l.b16 %v4935_v10  ;;  %v5820_v31 = vrot.slane %v5818_v12, 5  ;;  %v5602_v12 = vld [vmem:[#allocation2 + $0xb8] sm:$0xf] }
 0x61b   : > { %v11418_v55 = vadd.f32 %v4647_v4, %v4027_v46  ;;  %v5815_v46 = vshrl.u32 %v5598_v63, 16  ;;  %v5826_v4 = vrot.slane %v5824_v7, 5  ;;  %v6023_v5 = vunpack.c.l.b16 %v5803_v20 }
 0x61d   : > { %12543 = vst [vmem:[#allocation23_spill] sm:$0xff] %v11418_v55  ;;  %v3738_v43 = vpop.f32.mrf.mxu1  ;;  %v6048_v33 = vpack.c.b16 %v6024_v34, %v6023_v5  ;;  %v5817_v32 = vrot.slane %v5815_v46, 4  ;;  %v5831_v35 = vor.u32 %v5830_v44, %v5826_v4  ;;  %v4937_v46 = vshrl.u32 %v4717_v1, 16 }
 0x61e   : > { %v3772_v37 = vadd.f32 %v3738_v43, %v11167_v28  ;;  %v4926_v28 = vsel %vm10554_vm13, %v9016_v50, %v4925_v22  ;;  %v4953_v50 = vrot.slane %v4951_v56, 7  ;;  %v4945_v44 = vshll.u32 %v4718_v47, 16 }
 0x61f   : > { %v3991_v13 = vpop.f32.mrf.mxu2  ;;  %v5109_v19 = vunpack.c.l.b16 %v4926_v28  ;;  %v5832_v20 = vrot.slane %v5831_v35, 4  ;;  %v5852_v56 = vshrl.u32 %v5602_v12, 16 }
 0x620   : > { %v4028_v39 = vadd.f32 %v3991_v13, %v3770_v11  ;;  %v5600_v11 = vld [vmem:[#allocation2 + $0xac] sm:$0x1] }
 0x621   : > { %v5834_v63 = vshll.u32 %v5600_v11, 16  ;;  %v5133_v43 = vpack.c.b16 %v5110_v61, %v5109_v19  ;;  %v5601_v61 = vld [vmem:[#allocation2 + $0xb4] sm:$0xf]  ;;  %v9017_v19 = vrot.slane %v4937_v46, 11  ;;  %v5603_v46 = vld [vmem:[#allocation2 + $0xbc] sm:$0x1] }
 0x622   : > { %v4649_v41 = vpop.f32.mrf.mxu3  ;;  %v5842_v1 = vshll.u32 %v5601_v61, 16 }
 0x623   : > { %v11427_v45 = vadd.f32 %v4649_v41, %v4028_v39  ;;  %v5821_v39 = vor.u32 %v5820_v31, %v5817_v32  ;;  %v5836_v34 = vrot.slane %v5834_v63, 5  ;;  %v4944_v41 = vrot.slane %v4942_v3, 7 }
 0x624   : > { %9123 = vmatmul.msk.bf16.gmra.mxu2 %vm2157_vm14, %v9812_v9  ;;  %v4954_v9 = vshll.u32 %v4719_v17, 16  ;;  %v5839_v3 = vshrl.u32 %v5601_v61, 16  ;;  %v5858_v61 = vshll.u32 %v5603_v46, 16 }
 0x625   : > { %12544 = vst [vmem:[#allocation8_spill] sm:$0xff] %v11427_v45  ;;  %v11436_v28 = vpop.f32.mrf.mxu1  ;;  %v5837_v11 = vsel %vm10566_vm15, %v5832_v20, %v5836_v34  ;;  %v4947_v31 = vor.u32 %v4945_v44, %v4944_v41  ;;  %v4949_v35 = vrot.slane %v4944_v41, 4  ;;  %v4721_v41 = vld [vmem:[#allocation2 + $0xc4] sm:$0xf] }
 0x626   : > { %v4956_v5 = vor.u32 %v4954_v9, %v4953_v50 }
 0x627   : > { %9145 = vmatmul.msk.bf16.gmra.mxu3 %vm2157_vm14, %v6048_v33  ;;  %v3994_v7 = vpop.f32.mrf.mxu2  ;;  %v5848_v33 = vshll.u32 %v5602_v12, 16  ;;  %v5841_v12 = vrot.slane %v5839_v3, 4 }
 0x628   : > { %v4029_v13 = vadd.f32 %v3994_v7, %v3771_v52  ;;  %9038 = vmatmul.msk.bf16.gmra.mxu1 %vm2157_vm14, %v5133_v43  ;;  %v5822_v52 = vrot.slane %v5821_v39, 4  ;;  %v6026_v7 = vunpack.c.l.b16 %v5837_v11  ;;  %v4957_v47 = vsel %vm10554_vm13, %v4949_v35, %v4956_v5  ;;  %v9813_v43 = vld [vmem:[#allocation2 + $0xa4] sm:$0xff] }
 0x629   : > { %v5850_v50 = vrot.slane %v5848_v33, 5  ;;  %v4722_v39 = vld [vmem:[#allocation2 + $0xc8] sm:$0xf] }
 0x62a   : > { %v4652_v22 = vpop.f32.mrf.mxu3  ;;  %v5827_v17 = vsel %vm10566_vm15, %v5822_v52, %v5826_v4  ;;  %v5112_v4 = vunpack.c.l.b16 %v4957_v47  ;;  %v4973_v44 = vshrl.u32 %v4722_v39, 16  ;;  %v5844_v52 = vrot.slane %v5842_v1, 5  ;;  %v5605_v1 = vld [vmem:[#allocation2 + $0xc8] sm:$0xf] }
 0x62b   : > { %v11434_v10 = vadd.f32 %v4652_v22, %v4029_v13  ;;  %v5854_v22 = vrot.slane %v5852_v56, 4  ;;  %v6025_v34 = vunpack.c.l.b16 %v5827_v17  ;;  %v4964_v56 = vshrl.u32 %v4721_v41, 16 }
 0x62c   : > { %v5845_v17 = vor.u32 %v5844_v52, %v5841_v12  ;;  %v5860_v47 = vrot.slane %v5858_v61, 5  ;;  %v4724_v61 = vld [vmem:[#allocation2 + $0xd4] sm:$0xf] }
 0x62d   : > { %12545 = vst [vmem:[#allocation38_spill] sm:$0xff] %v11434_v10  ;;  %v6049_v9 = vpack.c.b16 %v6026_v7, %v6025_v34  ;;  %v5855_v11 = vor.u32 %v5854_v22, %v5850_v50  ;;  %v4967_v22 = vshll.u32 %v4721_v41, 16 }
 0x62f   : > { %v3996_v32 = vpop.f32.mrf.mxu2  ;;  %v5856_v7 = vrot.slane %v5855_v11, 4 }
 0x630   : > { %v4030_v63 = vadd.f32 %v3996_v32, %v3772_v37  ;;  %v4948_v37 = vsel %vm10554_vm13, %v9017_v19, %v4947_v31  ;;  %v11450_v32 = vpop.f32.mrf.mxu1  ;;  %v4720_v19 = vld [vmem:[#allocation2 + $0xc0] sm:$0x8]  ;;  %v4975_v31 = vrot.slane %v4973_v44, 7 }
 0x631   : > { %v5111_v5 = vunpack.c.l.b16 %v4948_v37  ;;  %v4959_v3 = vshrl.u32 %v4720_v19, 16  ;;  %v5846_v37 = vrot.slane %v5845_v17, 4  ;;  %v5861_v46 = vsel %vm10566_vm15, %v5856_v7, %v5860_v47  ;;  %v9814_v17 = vld [vmem:[#allocation2 + $0xb4] sm:$0xff] }
 0x632   : > { %v4654_v13 = vpop.f32.mrf.mxu3  ;;  %v6028_v52 = vunpack.c.l.b16 %v5861_v46 }
 0x633   : > { %v11444_v20 = vadd.f32 %v4654_v13, %v4030_v63  ;;  %v5134_v35 = vpack.c.b16 %v5112_v4, %v5111_v5  ;;  %v4966_v13 = vrot.slane %v4964_v56, 7  ;;  %v5872_v4 = vshll.u32 %v5605_v1, 16  ;;  %v4725_v56 = vld [vmem:[#allocation2 + $0xd8] sm:$0xf] }
 0x634   : > { %9124 = vmatmul.msk.bf16.gmra.mxu2 %vm2157_vm14, %v9813_v43  ;;  %v4976_v43 = vshll.u32 %v4722_v39, 16  ;;  %v5876_v5 = vshrl.u32 %v5605_v1, 16  ;;  %v5851_v12 = vsel %vm10566_vm15, %v5846_v37, %v5850_v50  ;;  %v5606_v50 = vld [vmem:[#allocation2 + $0xcc] sm:$0x1]  ;;  %v4986_v1 = vshrl.u32 %v4724_v61, 16 }
 0x635   : > { %12546 = vst [vmem:[#allocation24_spill] sm:$0xff] %v11444_v20  ;;  %v9018_v20 = vrot.slane %v4959_v3, 11  ;;  %v4969_v45 = vor.u32 %v4967_v22, %v4966_v13  ;;  %v11461_v7 = vrot.slane %v5872_v4, 5  ;;  %v6027_v3 = vunpack.c.l.b16 %v5851_v12 }
 0x636   : > { %v4978_v34 = vor.u32 %v4976_v43, %v4975_v31  ;;  %v5878_v47 = vrot.slane %v5876_v5, 4  ;;  %v4995_v22 = vshrl.u32 %v4725_v56, 16  ;;  %v5882_v10 = vshll.u32 %v5606_v50, 16 }
 0x637   : > { %9146 = vmatmul.msk.bf16.gmra.mxu3 %vm2157_vm14, %v6049_v9  ;;  %v5462_v33 = vpop.f32.mrf.mxu2  ;;  %v5604_v9 = vld [vmem:[#allocation2 + $0xc4] sm:$0xf]  ;;  %v6050_v37 = vpack.c.b16 %v6028_v52, %v6027_v3  ;;  %v4988_v48 = vrot.slane %v4986_v1, 7  ;;  %v5608_v3 = vld [vmem:[#allocation2 + $0xd8] sm:$0xf]  ;;  %v5285_v50 = vadd.f32 %v11450_v32, %v11189_v16 }
 0x638   : > { %9039 = vmatmul.msk.bf16.gmra.mxu1 %vm2157_vm14, %v5134_v35  ;;  %v4971_v35 = vrot.slane %v4966_v13, 4  ;;  %v5863_v41 = vshrl.u32 %v5604_v9, 16  ;;  %v5866_v11 = vshll.u32 %v5604_v9, 16  ;;  %v5209_v19 = vpop.f32.mrf.mxu1  ;;  %v4970_v13 = vsel %vm10554_vm13, %v9018_v20, %v4969_v45 }
 0x639   : > { %v5286_v4 = vadd.f32 %v5209_v19, %v11197_v6  ;;  %v5113_v5 = vunpack.c.l.b16 %v4970_v13  ;;  %v5879_v12 = vor.u32 %v5878_v47, %v11461_v7  ;;  %v4997_v15 = vrot.slane %v4995_v22, 7  ;;  %v5607_v22 = vld [vmem:[#allocation2 + $0xd4] sm:$0xf] }
 0x63a   : > { %v6120_v63 = vpop.f32.mrf.mxu3  ;;  %v4979_v39 = vsel %vm10554_vm13, %v4971_v35, %v4978_v34  ;;  %v5284_v34 = vadd.f32 %v11436_v28, %v11178_v18  ;;  %v5865_v46 = vrot.slane %v5863_v41, 4  ;;  %v5868_v9 = vrot.slane %v5866_v11, 5  ;;  %v4723_v35 = vld [vmem:[#allocation2 + $0xd0] sm:$0x8] }
 0x63b   : > { %v5114_v43 = vunpack.c.l.b16 %v4979_v39  ;;  %v4981_v55 = vshrl.u32 %v4723_v35, 16  ;;  %v5880_v52 = vrot.slane %v5879_v12, 4  ;;  %v5884_v41 = vrot.slane %v5882_v10, 5 }
 0x63c   : > { %v5542_v45 = vadd.f32 %v5462_v33, %v5284_v34  ;;  %v5869_v28 = vor.u32 %v5868_v9, %v5865_v46  ;;  %v4989_v19 = vshll.u32 %v4724_v61, 16  ;;  %v4998_v47 = vshll.u32 %v4725_v56, 16 }
 0x63d   : > { %v9019_v13 = vrot.slane %v4981_v55, 11  ;;  %v5885_v46 = vsel %vm10566_vm15, %v5880_v52, %v5884_v41  ;;  %v5896_v9 = vshll.u32 %v5608_v3, 16  ;;  %v5900_v10 = vshrl.u32 %v5608_v3, 16  ;;  %v11480_v55 = vld [vmem:[%s12430_s4] ss:$0 sm:$0xff] }
 0x63e   : > { %v6200_v6 = vadd.f32 %v6120_v63, %v5542_v45  ;;  %v4991_v34 = vor.u32 %v4989_v19, %v4988_v48  ;;  %v5000_v1 = vor.u32 %v4998_v47, %v4997_v15  ;;  %v4993_v16 = vrot.slane %v4988_v48, 4  ;;  %v9815_v45 = vld [vmem:[#allocation2 + $0xc4] sm:$0xff] }
 0x63f   : > { %v5464_v44 = vpop.f32.mrf.mxu2  ;;  %v5887_v35 = vshrl.u32 %v5607_v22, 16  ;;  %v6030_v12 = vunpack.c.l.b16 %v5885_v46  ;;  %v5898_v48 = vrot.slane %v5896_v9, 5  ;;  %v4727_v47 = vld [vmem:[#allocation2 + $0xe4] sm:$0xf]  ;;  %v4726_v9 = vld [vmem:[#allocation2 + $0xe0] sm:$0x8] }
 0x640   : > { %v5211_v33 = vpop.f32.mrf.mxu1  ;;  %v5543_v63 = vadd.f32 %v5464_v44, %v5285_v50 }
 0x641   : > { %v5287_v61 = vadd.f32 %v5211_v33, %v11206_v49  ;;  %v5001_v49 = vsel %vm10554_vm13, %v4993_v16, %v5000_v1  ;;  %v5889_v19 = vrot.slane %v5887_v35, 4  ;;  %v5003_v16 = vshrl.u32 %v4726_v9, 16  ;;  %v5611_v35 = vld [vmem:[#allocation2 + $0xe8] sm:$0xf] }
 0x642   : > { %v11459_v31 = vpop.f32.mrf.mxu3 }
 0x644   : > { %9125 = vmatmul.msk.bf16.gmra.mxu2 %vm2157_vm14, %v9814_v17  ;;  %v5135_v17 = vpack.c.b16 %v5114_v43, %v5113_v5 }
 0x647   : > { %9147 = vmatmul.msk.bf16.gmra.mxu3 %vm2157_vm14, %v6050_v37  ;;  %v5467_v20 = vpop.f32.mrf.mxu2  ;;  %v5870_v37 = vrot.slane %v5869_v28, 4  ;;  %v6201_v28 = vadd.f32 %v11459_v31, %v5543_v63 }
 0x648   : > { %v5544_v39 = vadd.f32 %v5467_v20, %v5286_v4  ;;  %9040 = vmatmul.msk.bf16.gmra.mxu1 %vm2157_vm14, %v5135_v17  ;;  %v4992_v20 = vsel %vm10554_vm13, %v9019_v13, %v4991_v34  ;;  %v5902_v17 = vrot.slane %v5900_v10, 4 }
 0x649   : > { %v5875_v15 = vsel %vm10566_vm15, %v5870_v37, %v11461_v7  ;;  %v5008_v37 = vshrl.u32 %v4727_v47, 16 }
 0x64a   : > { %v6125_v18 = vpop.f32.mrf.mxu3  ;;  %v6029_v41 = vunpack.c.l.b16 %v5875_v15  ;;  %v5903_v1 = vor.u32 %v5902_v17, %v5898_v48  ;;  %v5924_v17 = vshrl.u32 %v5611_v35, 16 }
 0x64b   : > { %v6202_v11 = vadd.f32 %v6125_v18, %v5544_v39  ;;  %v5890_v39 = vshll.u32 %v5607_v22, 16  ;;  %v4728_v18 = vld [vmem:[#allocation2 + $0xe8] sm:$0xf] }
 0x64c   : > { %v6051_v13 = vpack.c.b16 %v6030_v12, %v6029_v41  ;;  %v5017_v50 = vshrl.u32 %v4728_v18, 16  ;;  %v5020_v15 = vshll.u32 %v4728_v18, 16 }
 0x64d   : > { %v6232_v43 = vmax.f32 %v6200_v6, %v6202_v11  ;;  %v5609_v6 = vld [vmem:[#allocation2 + $0xdc] sm:$0x1]  ;;  %v5116_v11 = vunpack.c.l.b16 %v5001_v49  ;;  %v5892_v34 = vrot.slane %v5890_v39, 5  ;;  %v11497_v49 = vpop.f32.mrf.mxu1  ;;  %v5920_v39 = vshll.u32 %v5611_v35, 16 }
 0x64e   : > { %v5906_v22 = vshll.u32 %v5609_v6, 16  ;;  %v5019_v10 = vrot.slane %v5017_v50, 7 }
 0x64f   : > { %v6250_v56 = vrot.slane %v6232_v43, 1  ;;  %v5469_v32 = vpop.f32.mrf.mxu2  ;;  %v5893_v63 = vor.u32 %v5892_v34, %v5889_v19  ;;  %v5926_v34 = vrot.slane %v5924_v17, 4 }
 0x650   : > { %v5545_v5 = vadd.f32 %v5469_v32, %v5287_v61  ;;  %v5904_v61 = vrot.slane %v5903_v1, 4  ;;  %v5010_v32 = vrot.slane %v5008_v37, 7  ;;  %v5022_v12 = vor.u32 %v5020_v15, %v5019_v10  ;;  %v4731_v1 = vld [vmem:[#allocation2 + $0xf8] sm:$0xf] }
 0x651   : > { %v11485_v4 = vmax.f32 %v6232_v43, %v6250_v56  ;;  %v5115_v43 = vunpack.c.l.b16 %v4992_v20  ;;  %v5908_v56 = vrot.slane %v5906_v22, 5  ;;  %v5610_v20 = vld [vmem:[#allocation2 + $0xe4] sm:$0xf] }
 0x652   : > { %v6127_v44 = vpop.f32.mrf.mxu3  ;;  %v5015_v41 = vrot.slane %v5010_v32, 4  ;;  %v5914_v50 = vshll.u32 %v5610_v20, 16 }
 0x653   : > { %v6264_v7 = vadd.f32 %v11480_v55, %v11485_v4  ;;  %v6203_v52 = vadd.f32 %v6127_v44, %v5545_v5  ;;  %v5136_v46 = vpack.c.b16 %v5116_v11, %v5115_v43  ;;  %v5011_v5 = vshll.u32 %v4727_v47, 16 }
 0x654   : > { %9126 = vmatmul.msk.bf16.gmra.mxu2 %vm2157_vm14, %v9815_v45  ;;  %v5894_v44 = vrot.slane %v5893_v63, 4  ;;  %v5909_v45 = vsel %vm10566_vm15, %v5904_v61, %v5908_v56  ;;  %v5023_v19 = vsel %vm10554_vm13, %v5015_v41, %v5022_v12  ;;  %v5911_v47 = vshrl.u32 %v5610_v20, 16 }
 0x655   : > { %v6265_v3 = vmax.f32 %v6264_v7, 0.0  ;;  %v6233_v33 = vmax.f32 %v6201_v28, %v6203_v52  ;;  %v9020_v7 = vrot.slane %v5003_v16, 11  ;;  %v5013_v52 = vor.u32 %v5011_v5, %v5010_v32  ;;  %v4729_v5 = vld [vmem:[#allocation2 + $0xf0] sm:$0x8] }
 0x656   : > { %v5899_v18 = vsel %vm10566_vm15, %v5894_v44, %v5898_v48  ;;  %v6032_v11 = vunpack.c.l.b16 %v5909_v45  ;;  %v11506_v43 = vrot.slane %v5920_v39, 5  ;;  %v5118_v9 = vunpack.c.l.b16 %v5023_v19  ;;  %v11517_v44 = vpop.f32.mrf.mxu1 }
 0x657   : > { %v6266_v31 = vpack.c.bf16 %v6265_v3, %v6265_v3  ;;  %9148 = vmatmul.msk.bf16.gmra.mxu3 %vm2157_vm14, %v6051_v13  ;;  %v6305_v28 = vrot.slane %v6233_v33, 1  ;;  %v4730_v3 = vld [vmem:[#allocation2 + $0xf4] sm:$0xf]  ;;  %v6031_v37 = vunpack.c.l.b16 %v5899_v18  ;;  %v5014_v48 = vsel %vm10554_vm13, %v9020_v7, %v5013_v52  ;;  %v5472_v45 = vpop.f32.mrf.mxu2 }
 0x658   : > { %9041 = vmatmul.msk.bf16.gmra.mxu1 %vm2157_vm14, %v5136_v46  ;;  %v9816_v13 = vld [vmem:[#allocation2 + $0xd4] sm:$0xff]  ;;  %v5612_v46 = vld [vmem:[#allocation2 + $0xec] sm:$0x1]  ;;  %v5913_v63 = vrot.slane %v5911_v47, 4  ;;  %v5030_v61 = vshrl.u32 %v4730_v3, 16  ;;  %v5039_v56 = vshrl.u32 %v4731_v1, 16  ;;  %v5117_v16 = vunpack.c.l.b16 %v5014_v48 }
 0x659   : > { %6268 = vst [vmem:[#allocation1] sm:$0xff] %v6266_v31  ;;  %v11508_v22 = vmax.f32 %v6233_v33, %v6305_v28  ;;  %v6052_v10 = vpack.c.b16 %v6032_v11, %v6031_v37  ;;  %v5916_v32 = vrot.slane %v5914_v50, 5  ;;  %v5927_v15 = vor.u32 %v5926_v34, %v11506_v43  ;;  %v5614_v47 = vld [vmem:[#allocation2 + $0xf8] sm:$0xf] }
 0x65a   : > { %v5930_v35 = vshll.u32 %v5612_v46, 16  ;;  %v5137_v20 = vpack.c.b16 %v5118_v9, %v5117_v16  ;;  %v11519_v39 = vpop.f32.mrf.mxu3  ;;  %v5025_v17 = vshrl.u32 %v4729_v5, 16  ;;  %v5032_v28 = vrot.slane %v5030_v61, 7  ;;  %v5613_v61 = vld [vmem:[#allocation2 + $0xf4] sm:$0xf]  ;;  %v9817_v16 = vld [vmem:[#allocation2 + $0xe4] sm:$0xff] }
 0x65b   : > { %v6314_v33 = vadd.f32 %v11480_v55, %v11508_v22  ;;  %v5041_v7 = vrot.slane %v5039_v56, 7  ;;  %v5917_v52 = vor.u32 %v5916_v32, %v5913_v63  ;;  %v5928_v41 = vrot.slane %v5927_v15, 4  ;;  %v4733_v5 = vld [vmem:[#allocation2 + $0x104] sm:$0xf] }
 0x65c   : > { %v5033_v11 = vshll.u32 %v4730_v3, 16  ;;  %v5042_v19 = vshll.u32 %v4731_v1, 16  ;;  %v5944_v48 = vshll.u32 %v5614_v47, 16  ;;  %v5948_v46 = vshrl.u32 %v5614_v47, 16  ;;  %v4732_v47 = vld [vmem:[#allocation2 + $0x100] sm:$0x8] }
 0x65d   : > { %v6315_v18 = vmax.f32 %v6314_v33, 0.0  ;;  %v5918_v34 = vrot.slane %v5917_v52, 4  ;;  %v5615_v52 = vld [vmem:[#allocation2 + $0xfc] sm:$0x1] }
 0x65e   : > { %v5035_v50 = vor.u32 %v5033_v11, %v5032_v28  ;;  %v5219_v33 = vpop.f32.mrf.mxu1 }
 0x65f   : > { %v11525_v9 = vpack.c.bf16 %v6315_v18, %v6315_v18  ;;  %v11527_v56 = vpop.f32.mrf.mxu2  ;;  %v5923_v3 = vsel %vm10566_vm15, %v5918_v34, %v11506_v43  ;;  %v11540_v43 = vrot.slane %v5944_v48, 5  ;;  %v5288_v18 = vadd.f32 %v11497_v49, %v11214_v30 }
 0x660   : > { %v6270_v6 = vld [vmem:[#allocation1 + $0x1] ss:$4 sm:$0xff] }
 0x661   : > { %6280 = vst [vmem:[#allocation1] sm:$0xff] %v6266_v31  ;;  %6272 = vrot.lane.b32.xlu0 %v6270_v6, %s10079_s21  ;;  %v5932_v6 = vrot.slane %v5930_v35, 5  ;;  %v5546_v48 = vadd.f32 %v5472_v45, %v5288_v18 }
 0x662   : > { %v11533_v1 = vpop.f32.mrf.mxu3 }
 0x663   : > { %v5933_v37 = vsel %vm10566_vm15, %v5928_v41, %v5932_v6  ;;  %v5052_v6 = vshrl.u32 %v4733_v5, 16 }
 0x664   : > { %9127 = vmatmul.msk.bf16.gmra.mxu2 %vm2157_vm14, %v9816_v13  ;;  %v9021_v13 = vrot.slane %v5025_v17, 11  ;;  %v6034_v32 = vunpack.c.l.b16 %v5933_v37  ;;  %v5950_v17 = vrot.slane %v5948_v46, 4  ;;  %v5954_v37 = vshll.u32 %v5615_v52, 16 }
 0x665   : > { %v5290_v46 = vadd.f32 %v5219_v33, %v11231_v26  ;;  %v5055_v26 = vshll.u32 %v4733_v5, 16  ;;  %v6204_v33 = vadd.f32 %v11519_v39, %v5546_v48 }
 0x666   : > { %v5036_v15 = vsel %vm10554_vm13, %v9021_v13, %v5035_v50  ;;  %v5951_v34 = vor.u32 %v5950_v17, %v11540_v43  ;;  %v5617_v17 = vld [vmem:[#allocation2 + $0x108] sm:$0xf] }
 0x667   : > { %9149 = vmatmul.msk.bf16.gmra.mxu3 %vm2157_vm14, %v6052_v10  ;;  %v5037_v10 = vrot.slane %v5032_v28, 4  ;;  %v4734_v28 = vld [vmem:[#allocation2 + $0x108] sm:$0xf] }
 0x668   : > { %v6282_v12 = vld [vmem:[#allocation1 + $0x2] ss:$4 sm:$0xff]  ;;  %9042 = vmatmul.msk.bf16.gmra.mxu1 %vm2157_vm14, %v5137_v20  ;;  %v5938_v20 = vshll.u32 %v5613_v61, 16  ;;  %v5061_v13 = vshrl.u32 %v4734_v28, 16  ;;  %v5952_v45 = vrot.slane %v5951_v34, 4 }
 0x669   : > { %6292 = vst [vmem:[#allocation1] sm:$0xff] %v6266_v31  ;;  %6284 = vrot.lane.b32.xlu2 %v6282_v12, %s12438_s22  ;;  %v5044_v31 = vor.u32 %v5042_v19, %v5041_v7  ;;  %v5935_v12 = vshrl.u32 %v5613_v61, 16  ;;  %v6033_v7 = vunpack.c.l.b16 %v5923_v3  ;;  %v5119_v19 = vunpack.c.l.b16 %v5036_v15  ;;  %v5477_v61 = vpop.f32.mrf.mxu2  ;;  %v5616_v34 = vld [vmem:[#allocation2 + $0x104] sm:$0xf] }
 0x66a   : > { %v5047_v3 = vshrl.u32 %v4732_v47, 16  ;;  %v5548_v30 = vadd.f32 %v5477_v61, %v5290_v46  ;;  %v6135_v49 = vpop.f32.mrf.mxu3 }
 0x66b   : > { %v5045_v35 = vsel %vm10554_vm13, %v5037_v10, %v5044_v31  ;;  %v6053_v11 = vpack.c.b16 %v6034_v32, %v6033_v7  ;;  %v5937_v50 = vrot.slane %v5935_v12, 4  ;;  %v5940_v31 = vrot.slane %v5938_v20, 5  ;;  %v5221_v7 = vpop.f32.mrf.mxu1 }
 0x66c   : > { %v5120_v41 = vunpack.c.l.b16 %v5045_v35  ;;  %v5063_v32 = vrot.slane %v5061_v13, 7  ;;  %v5956_v35 = vrot.slane %v5954_v37, 5  ;;  %v6206_v12 = vadd.f32 %v6135_v49, %v5548_v30 }
 0x66d   : > { %v5941_v15 = vor.u32 %v5940_v31, %v5937_v50  ;;  %v5064_v20 = vshll.u32 %v4734_v28, 16  ;;  %v9022_v52 = vrot.slane %v5047_v3, 11  ;;  %v5968_v13 = vshll.u32 %v5617_v17, 16 }
 0x66e   : > { %v6234_v18 = vmax.f32 %v6204_v33, %v6206_v12  ;;  %v5957_v47 = vsel %vm10566_vm15, %v5952_v45, %v5956_v35  ;;  %v5972_v50 = vshrl.u32 %v5617_v17, 16  ;;  %v5291_v39 = vadd.f32 %v5221_v7, %v11242_v2  ;;  %v5618_v45 = vld [vmem:[#allocation2 + $0x10c] sm:$0x1] }
 0x66f   : > { %v6036_v2 = vunpack.c.l.b16 %v5957_v47  ;;  %v5959_v3 = vshrl.u32 %v5616_v34, 16  ;;  %v5970_v30 = vrot.slane %v5968_v13, 5 }
 0x670   : > { %v6294_v63 = vld [vmem:[#allocation1 + $0x3] ss:$4 sm:$0xff]  ;;  %v6349_v28 = vrot.slane %v6234_v18, 1 }
 0x671   : > { %6318 = vst [vmem:[#allocation1] sm:$0xff] %v11525_v9  ;;  %6296 = vrot.lane.b32.xlu1 %v6294_v63, %s12436_s16  ;;  %v5138_v63 = vpack.c.b16 %v5120_v41, %v5119_v19  ;;  %v5942_v19 = vrot.slane %v5941_v15, 4  ;;  %v5479_v48 = vpop.f32.mrf.mxu2  ;;  %v5961_v17 = vrot.slane %v5959_v3, 4 }
 0x672   : > { %v11564_v46 = vmax.f32 %v6234_v18, %v6349_v28 }
 0x673   : > { %v5224_v13 = vpop.f32.mrf.mxu1 }
 0x674   : > { %9128 = vmatmul.msk.bf16.gmra.mxu2 %vm2157_vm14, %v9817_v16  ;;  %v5054_v16 = vrot.slane %v5052_v6, 7  ;;  %v5289_v6 = vadd.f32 %v11517_v44, %v11225_v8  ;;  %v5947_v8 = vsel %vm10566_vm15, %v5942_v19, %v11540_v43  ;;  %v5974_v43 = vrot.slane %v5972_v50, 4 }
 0x675   : > { %v6035_v15 = vunpack.c.l.b16 %v5947_v8 }
 0x676   : > { %v5057_v41 = vor.u32 %v5055_v26, %v5054_v16  ;;  %v5547_v5 = vadd.f32 %v11527_v56, %v5289_v6  ;;  %v5059_v31 = vrot.slane %v5054_v16, 4  ;;  %v6137_v56 = vpop.f32.mrf.mxu3  ;;  %v5962_v16 = vshll.u32 %v5616_v34, 16 }
 0x677   : > { %9150 = vmatmul.msk.bf16.gmra.mxu3 %vm2157_vm14, %v6053_v11  ;;  %v5066_v11 = vor.u32 %v5064_v20, %v5063_v32  ;;  %v6054_v12 = vpack.c.b16 %v6036_v2, %v6035_v15 }
 0x678   : > { %v6320_v10 = vld [vmem:[#allocation1 + $0x1] ss:$4 sm:$0xff]  ;;  %9043 = vmatmul.msk.bf16.gmra.mxu1 %vm2157_vm14, %v5138_v63  ;;  %v5058_v44 = vsel %vm10554_vm13, %v9022_v52, %v5057_v41  ;;  %v6205_v49 = vadd.f32 %v11533_v1, %v5547_v5  ;;  %v5964_v7 = vrot.slane %v5962_v16, 5  ;;  %v5975_v52 = vor.u32 %v5974_v43, %v5970_v30 }
 0x679   : > { %6328 = vst [vmem:[#allocation1] sm:$0xff] %v11525_v9  ;;  %6322 = vrot.lane.b32.xlu0 %v6320_v10, %s10079_s21  ;;  %v5549_v10 = vadd.f32 %v5479_v48, %v5291_v39  ;;  %v5067_v61 = vsel %vm10554_vm13, %v5059_v31, %v5066_v11  ;;  %v9818_v63 = vld [vmem:[#allocation2 + $0xf4] sm:$0xff]  ;;  %v5121_v20 = vunpack.c.l.b16 %v5058_v44  ;;  %v5978_v41 = vshll.u32 %v5618_v45, 16 }
 0x67a   : > { %v5122_v35 = vunpack.c.l.b16 %v5067_v61  ;;  %v5965_v11 = vor.u32 %v5964_v7, %v5961_v17  ;;  %v5976_v19 = vrot.slane %v5975_v52, 4  ;;  %v5482_v61 = vpop.f32.mrf.mxu2 }
 0x67b   : > { %v6207_v32 = vadd.f32 %v6137_v56, %v5549_v10  ;;  %v5980_v47 = vrot.slane %v5978_v41, 5  ;;  %v5226_v10 = vpop.f32.mrf.mxu1 }
 0x67c   : > { %v5139_v18 = vpack.c.b16 %v5122_v35, %v5121_v20  ;;  %v5966_v50 = vrot.slane %v5965_v11, 4  ;;  %v5293_v52 = vadd.f32 %v5226_v10, %v11257_v23 }
 0x67d   : > { %v6235_v33 = vmax.f32 %v6205_v49, %v6207_v32  ;;  %v5981_v5 = vsel %vm10566_vm15, %v5976_v19, %v5980_v47  ;;  %v5292_v32 = vadd.f32 %v5224_v13, %v11248_v42 }
 0x67e   : > { %v5971_v31 = vsel %vm10566_vm15, %v5966_v50, %v5970_v30  ;;  %v6038_v34 = vunpack.c.l.b16 %v5981_v5 }
 0x67f   : > { %v6393_v39 = vrot.slane %v6235_v33, 1  ;;  %v6037_v8 = vunpack.c.l.b16 %v5971_v31  ;;  %v5550_v15 = vadd.f32 %v5482_v61, %v5292_v32 }
 0x680   : > { %v6330_v37 = vld [vmem:[#allocation1 + $0x2] ss:$4 sm:$0xff] }
 0x681   : > { %6338 = vst [vmem:[#allocation1] sm:$0xff] %v11525_v9  ;;  %6332 = vrot.lane.b32.xlu0 %v6330_v37, %s12438_s22  ;;  %v6358_v9 = vadd.f32 %v11480_v55, %v11564_v46  ;;  %v9819_v37 = vld [vmem:[#allocation2 + $0x104] sm:$0xff]  ;;  %v11581_v48 = vmax.f32 %v6235_v33, %v6393_v39  ;;  %v6055_v44 = vpack.c.b16 %v6038_v34, %v6037_v8 }
 0x682   : > { %v5484_v49 = vpop.f32.mrf.mxu2 }
 0x683   : > { %v6359_v26 = vmax.f32 %v6358_v9, 0.0  ;;  %v6402_v56 = vadd.f32 %v11480_v55, %v11581_v48  ;;  %v5229_v43 = vpop.f32.mrf.mxu1 }
 0x684   : > { %9129 = vmatmul.msk.bf16.gmra.mxu2 %vm2157_vm14, %v9818_v63  ;;  %v6140_v63 = vpop.f32.mrf.mxu3  ;;  %v5294_v45 = vadd.f32 %v5229_v43, %v11265_v60 }
 0x685   : > { %v6360_v6 = vpack.c.bf16 %v6359_v26, %v6359_v26  ;;  %v6403_v3 = vmax.f32 %v6402_v56, 0.0  ;;  %v6208_v17 = vadd.f32 %v6140_v63, %v5550_v15  ;;  %v4735_v63 = vld [vmem:[#allocation2 + $0x110] sm:$0x8] }
 0x686   : > { %v5069_v43 = vshrl.u32 %v4735_v63, 16 }
 0x687   : > { %9151 = vmatmul.msk.bf16.gmra.mxu3 %vm2157_vm14, %v6054_v12  ;;  %v6404_v16 = vpack.c.bf16 %v6403_v3, %v6403_v3  ;;  %v4736_v3 = vld [vmem:[#allocation2 + $0x114] sm:$0xf] }
 0x688   : > { %v6340_v1 = vld [vmem:[#allocation1 + $0x3] ss:$4 sm:$0xff]  ;;  %9044 = vmatmul.msk.bf16.gmra.mxu1 %vm2157_vm14, %v5139_v18  ;;  %v5077_v15 = vshll.u32 %v4736_v3, 16 }
 0x689   : > { %6362 = vst [vmem:[#allocation1] sm:$0xff] %v6360_v6  ;;  %6342 = vrot.lane.b32.xlu2 %v6340_v1, %s12436_s16 }
 0x68a   : > { %v5487_v26 = vpop.f32.mrf.mxu2 }
 0x68b   : > { %v5552_v33 = vadd.f32 %v5487_v26, %v5294_v45  ;;  %v5231_v20 = vpop.f32.mrf.mxu1  ;;  %v5619_v26 = vld [vmem:[#allocation2 + $0x114] sm:$0xf] }
 0x68c   : > { %v6142_v9 = vpop.f32.mrf.mxu3  ;;  %v5295_v1 = vadd.f32 %v5231_v20, %v11274_v14  ;;  %v5620_v20 = vld [vmem:[#allocation2 + $0x118] sm:$0xf] }
 0x690   : > { %v6364_v28 = vld [vmem:[#allocation1 + $0x1] ss:$4 sm:$0xff] }
 0x691   : > { %6372 = vst [vmem:[#allocation1] sm:$0xff] %v6360_v6  ;;  %6366 = vrot.lane.b32.xlu1 %v6364_v28, %s10079_s21 }
 0x692   : > { %v5489_v11 = vpop.f32.mrf.mxu2 }
 0x693   : > { %v5553_v19 = vadd.f32 %v5489_v11, %v5295_v1  ;;  %v11599_v23 = vpop.f32.mrf.mxu1 }
 0x694   : > { %9130 = vmatmul.msk.bf16.gmra.mxu2 %vm2157_vm14, %v9819_v37  ;;  %v6145_v12 = vpop.f32.mrf.mxu3  ;;  %v5296_v54 = vadd.f32 %v11599_v23, %v11282_v59 }
 0x695   : > { %v6210_v7 = vadd.f32 %v6145_v12, %v5552_v33  ;;  %v9023_v33 = vrot.slane %v5069_v43, 11 }
 0x697   : > { %9152 = vmatmul.msk.bf16.gmra.mxu3 %vm2157_vm14, %v6055_v44  ;;  %v6236_v41 = vmax.f32 %v6208_v17, %v6210_v7  ;;  %v5621_v17 = vld [vmem:[#allocation2 + $0x11c] sm:$0x1] }
 0x698   : > { %v6374_v2 = vld [vmem:[#allocation1 + $0x2] ss:$4 sm:$0xff]  ;;  %v6002_v11 = vshll.u32 %v5621_v17, 16 }
 0x699   : > { %6382 = vst [vmem:[#allocation1] sm:$0xff] %v6360_v6  ;;  %6376 = vrot.lane.b32.xlu1 %v6374_v2, %s12438_s22  ;;  %v5551_v6 = vadd.f32 %v5484_v49, %v5293_v52  ;;  %v6437_v42 = vrot.slane %v6236_v41, 1  ;;  %v5074_v49 = vshrl.u32 %v4736_v3, 16  ;;  %v5983_v52 = vshrl.u32 %v5619_v26, 16 }
 0x69a   : > { %v5492_v2 = vpop.f32.mrf.mxu2  ;;  %v6004_v43 = vrot.slane %v6002_v11, 5 }
 0x69b   : > { %v11594_v60 = vmax.f32 %v6236_v41, %v6437_v42  ;;  %v6209_v13 = vadd.f32 %v6142_v9, %v5551_v6  ;;  %v11602_v34 = vpop.f32.mrf.mxu1  ;;  %v9820_v9 = vld [vmem:[#allocation2 + $0x114] sm:$0xff]  ;;  %v5076_v12 = vrot.slane %v5074_v49, 7  ;;  %v5986_v41 = vshll.u32 %v5619_v26, 16 }
 0x69c   : > { %v6147_v47 = vpop.f32.mrf.mxu3  ;;  %v5992_v6 = vshll.u32 %v5620_v20, 16  ;;  %v5297_v23 = vadd.f32 %v11602_v34, %v11291_v27 }
 0x69d   : > { %v6446_v50 = vadd.f32 %v11480_v55, %v11594_v60  ;;  %v6211_v5 = vadd.f32 %v6147_v47, %v5553_v19  ;;  %v5079_v1 = vor.u32 %v5077_v15, %v5076_v12  ;;  %v5081_v42 = vrot.slane %v5076_v12, 4 }
 0x69e   : > { %v5985_v47 = vrot.slane %v5983_v52, 4 }
 0x69f   : > { %v6447_v39 = vmax.f32 %v6446_v50, 0.0  ;;  %v6237_v28 = vmax.f32 %v6209_v13, %v6211_v5  ;;  %v5988_v13 = vrot.slane %v5986_v41, 5  ;;  %v5994_v50 = vrot.slane %v5992_v6, 5 }
 0x6a0   : > { %v6384_v30 = vld [vmem:[#allocation1 + $0x3] ss:$4 sm:$0xff] }
 0x6a1   : > { %6406 = vst [vmem:[#allocation1] sm:$0xff] %v6404_v16  ;;  %6386 = vrot.lane.b32.xlu0 %v6384_v30, %s12436_s16  ;;  %v6448_v14 = vpack.c.bf16 %v6447_v39, %v6447_v39  ;;  %v6481_v37 = vrot.slane %v6237_v28, 1  ;;  %v4737_v30 = vld [vmem:[#allocation2 + $0x118] sm:$0xf]  ;;  %v5080_v39 = vsel %vm10554_vm13, %v9023_v33, %v5079_v1  ;;  %v5554_v33 = vadd.f32 %v5492_v2, %v5296_v54 }
 0x6a2   : > { %v5083_v45 = vshrl.u32 %v4737_v30, 16 }
 0x6a3   : > { %v11605_v44 = vmax.f32 %v6237_v28, %v6481_v37  ;;  %v5239_v61 = vpop.f32.mrf.mxu1  ;;  %v5123_v37 = vunpack.c.l.b16 %v5080_v39 }
 0x6a4   : > { %9131 = vmatmul.msk.bf16.gmra.mxu2 %vm2157_vm14, %v9820_v9  ;;  %v5085_v7 = vrot.slane %v5083_v45, 7  ;;  %v5298_v12 = vadd.f32 %v5239_v61, %v11299_v58 }
 0x6a5   : > { %v6490_v10 = vadd.f32 %v11480_v55, %v11605_v44 }
 0x6a7   : > { %v6491_v32 = vmax.f32 %v6490_v10, 0.0 }
 0x6a8   : > { %v6408_v35 = vld [vmem:[#allocation1 + $0x1] ss:$4 sm:$0xff] }
 0x6a9   : > { %6416 = vst [vmem:[#allocation1] sm:$0xff] %v6404_v16  ;;  %6410 = vrot.lane.b32.xlu1 %v6408_v35, %s10079_s21  ;;  %v5086_v35 = vshll.u32 %v4737_v30, 16  ;;  %v6492_v5 = vpack.c.bf16 %v6491_v32, %v6491_v32 }
 0x6ab   : > { %v5088_v19 = vor.u32 %v5086_v35, %v5085_v7  ;;  %v5241_v10 = vpop.f32.mrf.mxu1 }
 0x6ac   : > { %v5299_v58 = vadd.f32 %v5241_v10, %v11308_v53 }
 0x6b0   : > { %v6418_v18 = vld [vmem:[#allocation1 + $0x2] ss:$4 sm:$0xff] }
 0x6b1   : > { %6426 = vst [vmem:[#allocation1] sm:$0xff] %v6404_v16  ;;  %6420 = vrot.lane.b32.xlu2 %v6418_v18, %s12438_s22  ;;  %v11609_v16 = vpop.f32.mrf.mxu3  ;;  %v5996_v18 = vshrl.u32 %v5620_v20, 16 }
 0x6b2   : > { %v6212_v59 = vadd.f32 %v11609_v16, %v5554_v33  ;;  %v11638_v16 = vld [vmem:[%s12430_s4] sm:$0x1] }
 0x6b3   : > { %v5998_v28 = vrot.slane %v5996_v18, 4  ;;  %v5244_v52 = vpop.f32.mrf.mxu1 }
 0x6b5   : > { %v5999_v30 = vor.u32 %v5998_v28, %v5994_v50 }
 0x6b7   : > { %v6000_v32 = vrot.slane %v5999_v30, 4 }
 0x6b8   : > { %v6428_v31 = vld [vmem:[#allocation1 + $0x3] ss:$4 sm:$0xff] }
 0x6b9   : > { %6450 = vst [vmem:[#allocation1] sm:$0xff] %v6448_v14  ;;  %6430 = vrot.lane.b32.xlu1 %v6428_v31, %s12436_s16  ;;  %v5089_v31 = vsel %vm10554_vm13, %v5081_v42, %v5088_v19  ;;  %v6152_v3 = vpop.f32.mrf.mxu3  ;;  %v6005_v45 = vsel %vm10566_vm15, %v6000_v32, %v6004_v43  ;;  %v5300_v32 = vadd.f32 %v5244_v52, %v11316_v0 }
 0x6ba   : > { %v5124_v63 = vunpack.c.l.b16 %v5089_v31  ;;  %v6040_v26 = vunpack.c.l.b16 %v6005_v45  ;;  %v9935_v45 = vld [vmem:[%s12431_s5 + $0x378] sm:$0xff] }
 0x6bb   : > { %v5246_v11 = vpop.f32.mrf.mxu1 }
 0x6bc   : > { %v5140_v9 = vpack.c.b16 %v5124_v63, %v5123_v37  ;;  %v6258_v63 = vld [vmem:[#allocation3] sm:$0x1] }
 0x6be   : > { %9045 = vmatmul.msk.bf16.gmra.mxu1 %vm2157_vm14, %v5140_v9 }
 0x6c0   : > { %v6452_v8 = vld [vmem:[#allocation1 + $0x1] ss:$4 sm:$0xff] }
 0x6c1   : > { %6460 = vst [vmem:[#allocation1] sm:$0xff] %v6448_v14  ;;  %6454 = vrot.lane.b32.xlu2 %v6452_v8, %s10079_s21  ;;  %v5494_v8 = vpop.f32.mrf.mxu2  ;;  %v6155_v6 = vpop.f32.mrf.mxu3 }
 0x6c2   : > { %v5555_v1 = vadd.f32 %v5494_v8, %v5297_v23 }
 0x6c3   : > { %v5249_v37 = vpop.f32.mrf.mxu1 }
 0x6c4   : > { %v6213_v27 = vadd.f32 %v6152_v3, %v5555_v1  ;;  %v5302_v54 = vadd.f32 %v5249_v37, %v11333_v29 }
 0x6c8   : > { %v6462_v56 = vld [vmem:[#allocation1 + $0x2] ss:$4 sm:$0xff] }
 0x6c9   : > { %6470 = vst [vmem:[#allocation1] sm:$0xff] %v6448_v14  ;;  %6464 = vrot.lane.b32.xlu0 %v6462_v56, %s12438_s22  ;;  %v5989_v56 = vor.u32 %v5988_v13, %v5985_v47  ;;  %v5497_v7 = vpop.f32.mrf.mxu2  ;;  %v6157_v13 = vpop.f32.mrf.mxu3 }
 0x6ca   : > { %v5556_v41 = vadd.f32 %v5497_v7, %v5298_v12 }
 0x6cb   : > { %v5990_v49 = vrot.slane %v5989_v56, 4  ;;  %v5251_v43 = vpop.f32.mrf.mxu1 }
 0x6cc   : > { %v6214_v36 = vadd.f32 %v6155_v6, %v5556_v41  ;;  %v6308_v41 = vadd.f32 %v11508_v22, %v11638_v16  ;;  %v5301_v6 = vadd.f32 %v5246_v11, %v11325_v38  ;;  %v5303_v23 = vadd.f32 %v5251_v43, %v11342_v40 }
 0x6cd   : > { %v5995_v15 = vsel %vm10566_vm15, %v5990_v49, %v5994_v50  ;;  %v6253_v50 = vadd.f32 %v11485_v4, %v11638_v16  ;;  %v9891_v4 = vld [vmem:[%s12431_s5 + $0x218] sm:$0xff] }
 0x6ce   : > { %v6039_v35 = vunpack.c.l.b16 %v5995_v15  ;;  %v6238_v2 = vmax.f32 %v6212_v59, %v6214_v36 }
 0x6cf   : > { %v6254_v8 = vmax.f32 %v6253_v50, 0.0  ;;  %v6311_v50 = vld [vmem:[#allocation3 + $0x1] sm:$0x1] }
 0x6d0   : > { %v6472_v14 = vld [vmem:[#allocation1 + $0x3] ss:$4 sm:$0xff]  ;;  %v6056_v17 = vpack.c.b16 %v6040_v26, %v6039_v35  ;;  %v6525_v61 = vrot.slane %v6238_v2, 1 }
 0x6d1   : > { %6494 = vst [vmem:[#allocation1] sm:$0xff] %v6492_v5  ;;  %6474 = vrot.lane.b32.xlu2 %v6472_v14, %s12436_s16  ;;  %v5499_v18 = vpop.f32.mrf.mxu2  ;;  %v6160_v10 = vpop.f32.mrf.mxu3  ;;  %v6255_v56 = vpack.c.bf16 %v6254_v8, %v6254_v8 }
 0x6d2   : > { %9153 = vmatmul.msk.bf16.gmra.mxu3 %vm2157_vm14, %v6056_v17  ;;  %v11632_v19 = vmax.f32 %v6238_v2, %v6525_v61  ;;  %v5557_v47 = vadd.f32 %v5499_v18, %v5299_v58  ;;  %v6309_v2 = vmax.f32 %v6308_v41, 0.0  ;;  %v9913_v61 = vld [vmem:[%s12431_s5 + $0x2c8] sm:$0xff] }
 0x6d3   : > { %v6259_v9 = vsel %vm11646_vm1, %v6255_v56, %v6258_v63  ;;  %v6273_v35 = vpop.permute.xlu0 %6272  ;;  %v11660_v12 = vpop.f32.mrf.mxu1 }
 0x6d4   : > { %v6534_v53 = vadd.f32 %v11480_v55, %v11632_v19  ;;  %v6215_v34 = vadd.f32 %v6157_v13, %v5557_v47  ;;  %6260 = vst [vmem:[#allocation3] sm:$0x1] %v6259_v9  ;;  %v6285_v47 = vpop.permute.xlu2 %6284  ;;  %v6310_v40 = vpack.c.bf16 %v6309_v2, %v6309_v2 }
 0x6d6   : > { %v6239_v39 = vmax.f32 %v6213_v27, %v6215_v34 }
 0x6d8   : > { %v6496_v20 = vld [vmem:[#allocation1 + $0x1] ss:$4 sm:$0xff] }
 0x6d9   : > { %6504 = vst [vmem:[#allocation1] sm:$0xff] %v6492_v5  ;;  %6498 = vrot.lane.b32.xlu2 %v6496_v20, %s10079_s21  ;;  %v5502_v31 = vpop.f32.mrf.mxu2  ;;  %v6162_v49 = vpop.f32.mrf.mxu3 }
 0x6da   : > { %v5558_v15 = vadd.f32 %v5502_v31, %v5300_v32  ;;  %v6312_v31 = vsel %vm11646_vm1, %v6310_v40, %v6311_v50 }
 0x6db   : > { %v6277_v7 = vld [vmem:[#allocation3] sm:$0x1]  ;;  %v11671_v58 = vpop.f32.mrf.mxu1  ;;  %6313 = vst [vmem:[#allocation3 + $0x1] sm:$0x1] %v6312_v31 }
 0x6dc   : > { %v6278_v0 = vsel %vm11656_vm3, %v6273_v35, %v6277_v7  ;;  %v6216_v29 = vadd.f32 %v6160_v10, %v5558_v15 }
 0x6dd   : > { %6279 = vst [vmem:[#allocation3] sm:$0x1] %v6278_v0 }
 0x6e0   : > { %v6506_v42 = vld [vmem:[#allocation1 + $0x2] ss:$4 sm:$0xff] }
 0x6e1   : > { %6514 = vst [vmem:[#allocation1] sm:$0xff] %v6492_v5  ;;  %6508 = vrot.lane.b32.xlu1 %v6506_v42, %s12438_s22  ;;  %v6535_v5 = vmax.f32 %v6534_v53, 0.0  ;;  %v5504_v30 = vpop.f32.mrf.mxu2  ;;  %v6165_v17 = vpop.f32.mrf.mxu3  ;;  %v6569_v42 = vrot.slane %v6239_v39, 1 }
 0x6e2   : > { %v5559_v36 = vadd.f32 %v5504_v30, %v5301_v6 }
 0x6e3   : > { %v6536_v28 = vpack.c.bf16 %v6535_v5, %v6535_v5  ;;  %v11680_v53 = vmax.f32 %v6239_v39, %v6569_v42  ;;  %v6352_v5 = vadd.f32 %v11564_v46, %v11638_v16  ;;  %v6297_v10 = vpop.permute.xlu1 %6296  ;;  %v7222_v39 = vld [vmem:[%s12432_s6] sm:$0x1] }
 0x6e4   : > { %v6289_v38 = vld [vmem:[#allocation3] sm:$0x1]  ;;  %v6217_v11 = vadd.f32 %v6162_v49, %v5559_v36 }
 0x6e5   : > { %v6290_v27 = vsel %vm11674_vm5, %v6285_v47, %v6289_v38  ;;  %v6578_v37 = vadd.f32 %v11480_v55, %v11680_v53  ;;  %v6353_v63 = vmax.f32 %v6352_v5, 0.0  ;;  %v6325_v55 = vld [vmem:[#allocation3 + $0x1] sm:$0x1]  ;;  %v6343_v5 = vpop.permute.xlu2 %6342 }
 0x6e6   : > { %6291 = vst [vmem:[#allocation3] sm:$0x1] %v6290_v27 }
 0x6e7   : > { %v6354_v43 = vpack.c.bf16 %v6353_v63, %v6353_v63  ;;  %v6440_v63 = vadd.f32 %v11594_v60, %v11638_v16 }
 0x6e8   : > { %v6516_v14 = vld [vmem:[#allocation1 + $0x3] ss:$4 sm:$0xff] }
 0x6e9   : > { %6538 = vst [vmem:[#allocation1] sm:$0xff] %v6536_v28  ;;  %6518 = vrot.lane.b32.xlu0 %v6516_v14, %s12436_s16  ;;  %v5507_v33 = vpop.f32.mrf.mxu2  ;;  %v6167_v22 = vpop.f32.mrf.mxu3  ;;  %v6441_v60 = vmax.f32 %v6440_v63, 0.0 }
 0x6ea   : > { %v5560_v20 = vadd.f32 %v5507_v33, %v5302_v54  ;;  %v5259_v14 = vpop.f32.mrf.mxu1 }
 0x6eb   : > { %v6323_v30 = vpop.permute.xlu0 %6322  ;;  %v5306_v7 = vadd.f32 %v5259_v14, %v11367_v21  ;;  %v5305_v21 = vadd.f32 %v11671_v58, %v11359_v51 }
 0x6ec   : > { %v6218_v52 = vadd.f32 %v6165_v17, %v5560_v20  ;;  %v6326_v54 = vsel %vm11656_vm3, %v6323_v30, %v6325_v55  ;;  %v5304_v20 = vadd.f32 %v11660_v12, %v11350_v24 }
 0x6ed   : > { %v6301_v56 = vld [vmem:[#allocation3] sm:$0x1]  ;;  %6327 = vst [vmem:[#allocation3 + $0x1] sm:$0x1] %v6326_v54 }
 0x6ee   : > { %v11668_v59 = vmax.f32 %v6216_v29, %v6218_v52  ;;  %v6302_v46 = vsel %vm11691_vm8, %v6297_v10, %v6301_v56  ;;  %v6396_v56 = vadd.f32 %v11581_v48, %v11638_v16 }
 0x6ef   : > { %6303 = vst [vmem:[#allocation3] sm:$0x1] %v6302_v46 }
 0x6f0   : > { %v6540_v3 = vld [vmem:[#allocation1 + $0x1] ss:$4 sm:$0xff]  ;;  %v6613_v50 = vrot.slane %v11668_v59, 1 }
 0x6f1   : > { %6548 = vst [vmem:[#allocation1] sm:$0xff] %v6536_v28  ;;  %6542 = vrot.lane.b32.xlu0 %v6540_v3, %s10079_s21  ;;  %v5509_v1 = vpop.f32.mrf.mxu2  ;;  %v6170_v8 = vpop.f32.mrf.mxu3  ;;  %v6579_v3 = vmax.f32 %v6578_v37, 0.0 }
 0x6f2   : > { %v5561_v18 = vadd.f32 %v5509_v1, %v5303_v23  ;;  %v5261_v9 = vpop.f32.mrf.mxu1  ;;  %v11723_v37 = vmax.f32 %v11668_v59, %v6613_v50  ;;  %v11735_v59 = vld [vmem:[%s12430_s4] ss:$0 sm:$0xff] }
 0x6f3   : > { %v6580_v32 = vpack.c.bf16 %v6579_v3, %v6579_v3  ;;  %v6333_v0 = vpop.permute.xlu0 %6332  ;;  %v5307_v38 = vadd.f32 %v5261_v9, %v11376_v62 }
 0x6f4   : > { %v6219_v13 = vadd.f32 %v6167_v22, %v5561_v18  ;;  %v6335_v36 = vld [vmem:[#allocation3 + $0x1] sm:$0x1]  ;;  %v6622_v48 = vadd.f32 %v11735_v59, %v11723_v37 }
 0x6f5   : > { %v6336_v23 = vsel %vm11674_vm5, %v6333_v0, %v6335_v36  ;;  %v6399_v0 = vld [vmem:[#allocation3 + $0x3] sm:$0x1] }
 0x6f6   : > { %v11682_v34 = vmax.f32 %v6217_v11, %v6219_v13  ;;  %6337 = vst [vmem:[#allocation3 + $0x1] sm:$0x1] %v6336_v23  ;;  %v6623_v9 = vmax.f32 %v6622_v48, 0.0 }
 0x6f8   : > { %v6550_v26 = vld [vmem:[#allocation1 + $0x2] ss:$4 sm:$0xff] }
 0x6f9   : > { %6558 = vst [vmem:[#allocation1] sm:$0xff] %v6536_v28  ;;  %6552 = vrot.lane.b32.xlu2 %v6550_v26, %s12438_s22  ;;  %v5512_v28 = vpop.f32.mrf.mxu2  ;;  %v6172_v15 = vpop.f32.mrf.mxu3  ;;  %v6355_v26 = vld [vmem:[#allocation3 + $0x2] sm:$0x1] }
 0x6fa   : > { %v6356_v33 = vsel %vm11646_vm1, %v6354_v43, %v6355_v26  ;;  %v5562_v17 = vadd.f32 %v5512_v28, %v5304_v20  ;;  %v11705_v52 = vpop.f32.mrf.mxu1  ;;  %v6624_v20 = vpack.c.bf16 %v6623_v9, %v6623_v9 }
 0x6fb   : > { %6357 = vst [vmem:[#allocation3 + $0x2] sm:$0x1] %v6356_v33  ;;  %v5308_v36 = vadd.f32 %v11705_v52, %v11384_v57 }
 0x6fc   : > { %v6220_v42 = vadd.f32 %v6170_v8, %v5562_v17 }
 0x6fd   : > { %v6345_v28 = vld [vmem:[#allocation3 + $0x1] sm:$0x1] }
 0x6fe   : > { %v6346_v51 = vsel %vm11691_vm8, %v6343_v5, %v6345_v28 }
 0x6ff   : > { %6347 = vst [vmem:[#allocation3 + $0x1] sm:$0x1] %v6346_v51 }
 0x700   : > { %v6560_v35 = vld [vmem:[#allocation1 + $0x3] ss:$4 sm:$0xff] }
 0x701   : > { %v5514_v49 = vpop.f32.mrf.mxu2  ;;  %6562 = vrot.lane.b32.xlu1 %v6560_v35, %s12436_s16  ;;  %6582 = vst [vmem:[#allocation1] sm:$0xff] %v6580_v32  ;;  %v6175_v6 = vpop.f32.mrf.mxu3 }
 0x702   : > { %v6369_v24 = vld [vmem:[#allocation3 + $0x2] sm:$0x1]  ;;  %v5563_v47 = vadd.f32 %v5514_v49, %v5305_v21  ;;  %v5266_v27 = vpop.f32.mrf.mxu1  ;;  %v6397_v49 = vmax.f32 %v6396_v56, 0.0 }
 0x703   : > { %v6367_v2 = vpop.permute.xlu1 %6366 }
 0x704   : > { %v6370_v22 = vsel %vm11656_vm3, %v6367_v2, %v6369_v24  ;;  %v6221_v14 = vadd.f32 %v6172_v15, %v5563_v47  ;;  %v6398_v55 = vpack.c.bf16 %v6397_v49, %v6397_v49  ;;  %v6442_v15 = vpack.c.bf16 %v6441_v60, %v6441_v60 }
 0x705   : > { %6371 = vst [vmem:[#allocation3 + $0x2] sm:$0x1] %v6370_v22  ;;  %v6484_v49 = vadd.f32 %v11605_v44, %v11638_v16  ;;  %v6528_v44 = vadd.f32 %v11632_v19, %v11638_v16  ;;  %v9839_v19 = vld [vmem:[%s12431_s5 + $0x78] sm:$0xff] }
 0x706   : > { %8040 = vmatpush.bf16.msrb.mxu2 %v9839_v19 }
 0x708   : > { %v6584_v1 = vld [vmem:[#allocation1 + $0x1] ss:$4 sm:$0xff] }
 0x709   : > { %v5517_v29 = vpop.f32.mrf.mxu2  ;;  %6586 = vrot.lane.b32.xlu1 %v6584_v1, %s10079_s21  ;;  %6592 = vst [vmem:[#allocation1] sm:$0xff] %v6580_v32  ;;  %v6177_v40 = vpop.f32.mrf.mxu3 }
 0x70a   : > { %v5564_v41 = vadd.f32 %v5517_v29, %v5306_v7  ;;  %v5269_v43 = vpop.f32.mrf.mxu1  ;;  %v6443_v29 = vld [vmem:[#allocation3 + $0x4] sm:$0x1] }
 0x70b   : > { %v6377_v62 = vpop.permute.xlu1 %6376  ;;  %v6421_v17 = vpop.permute.xlu2 %6420  ;;  %v5310_v1 = vadd.f32 %v5269_v43, %v11401_v25 }
 0x70c   : > { %v6222_v18 = vadd.f32 %v6175_v6, %v5564_v41  ;;  %v6379_v8 = vld [vmem:[#allocation3 + $0x2] sm:$0x1]  ;;  %v6400_v41 = vsel %vm11646_vm1, %v6398_v55, %v6399_v0  ;;  %v6444_v6 = vsel %vm11646_vm1, %v6442_v15, %v6443_v29  ;;  %v6487_v29 = vld [vmem:[#allocation3 + $0x5] sm:$0x1] }
 0x70d   : > { %v6380_v3 = vsel %vm11674_vm5, %v6377_v62, %v6379_v8  ;;  %6401 = vst [vmem:[#allocation3 + $0x3] sm:$0x1] %v6400_v41  ;;  %v6657_v8 = vrot.slane %v11682_v34, 1 }
 0x70e   : > { %v11712_v12 = vmax.f32 %v6220_v42, %v6222_v18  ;;  %6381 = vst [vmem:[#allocation3 + $0x2] sm:$0x1] %v6380_v3 }
 0x70f   : > { %6445 = vst [vmem:[#allocation3 + $0x4] sm:$0x1] %v6444_v6  ;;  %v11761_v3 = vmax.f32 %v11682_v34, %v6657_v8 }
 0x710   : > { %v6594_v10 = vld [vmem:[#allocation1 + $0x2] ss:$4 sm:$0xff] }
 0x711   : > { %v5519_v11 = vpop.f32.mrf.mxu2  ;;  %6596 = vrot.lane.b32.xlu0 %v6594_v10, %s12438_s22  ;;  %6602 = vst [vmem:[#allocation1] sm:$0xff] %v6580_v32  ;;  %v6180_v30 = vpop.f32.mrf.mxu3  ;;  %v6666_v9 = vadd.f32 %v11735_v59, %v11761_v3 }
 0x712   : > { %v5565_v13 = vadd.f32 %v5519_v11, %v5307_v38  ;;  %v5271_v23 = vpop.f32.mrf.mxu1 }
 0x713   : > { %v6387_v35 = vpop.permute.xlu0 %6386  ;;  %v6667_v34 = vmax.f32 %v6666_v9, 0.0  ;;  %v12559_v9 = vld [vmem:[#allocation8_spill] sm:$0xff] }
 0x714   : > { %v6223_v31 = vadd.f32 %v6177_v40, %v5565_v13  ;;  %v6413_v13 = vld [vmem:[#allocation3 + $0x3] sm:$0x1]  ;;  %v12555_v40 = vld [vmem:[#allocation7_spill] sm:$0xff] }
 0x715   : > { %v6389_v26 = vld [vmem:[#allocation3 + $0x2] sm:$0x1]  ;;  %v5309_v57 = vadd.f32 %v5266_v27, %v12555_v40  ;;  %v6701_v40 = vrot.slane %v11712_v12, 1 }
 0x716   : > { %v11720_v58 = vmax.f32 %v6221_v14, %v6223_v31  ;;  %v6390_v33 = vsel %vm11691_vm8, %v6387_v35, %v6389_v26  ;;  %v6457_v25 = vld [vmem:[#allocation3 + $0x4] sm:$0x1] }
 0x717   : > { %6391 = vst [vmem:[#allocation3 + $0x2] sm:$0x1] %v6390_v33  ;;  %v12556_v14 = vld [vmem:[#allocation37_spill] sm:$0xff] }
 0x718   : > { %v6604_v7 = vld [vmem:[#allocation1 + $0x3] ss:$4 sm:$0xff]  ;;  %v5311_v31 = vadd.f32 %v5271_v23, %v12556_v14 }
 0x719   : > { %v5522_v46 = vpop.f32.mrf.mxu2  ;;  %v6182_v32 = vpop.f32.mrf.mxu3  ;;  %6606 = vrot.lane.b32.xlu2 %v6604_v7, %s12436_s16  ;;  %6626 = vst [vmem:[#allocation1] sm:$0xff] %v6624_v20  ;;  %v6668_v7 = vpack.c.bf16 %v6667_v34, %v6667_v34  ;;  %s8317_s16 = scalar_lea.sflag [#allocation5], %s323_s26 }
 0x71a   : > { %v5566_v2 = vadd.f32 %v5522_v46, %v5308_v36  ;;  %v5274_v51 = vpop.f32.mrf.mxu1 }
 0x71b   : > { %v6411_v21 = vpop.permute.xlu1 %6410  ;;  %v6455_v38 = vpop.permute.xlu2 %6454 }
 0x71c   : > { %v6224_v22 = vadd.f32 %v6180_v30, %v5566_v2  ;;  %v6414_v50 = vsel %vm11656_vm3, %v6411_v21, %v6413_v13  ;;  %v6458_v5 = vsel %vm11656_vm3, %v6455_v38, %v6457_v25  ;;  %v12557_v21 = vld [vmem:[#allocation23_spill] sm:$0xff] }
 0x71d   : > { %6415 = vst [vmem:[#allocation3 + $0x3] sm:$0x1] %v6414_v50 }
 0x71e   : > { %6459 = vst [vmem:[#allocation3 + $0x4] sm:$0x1] %v6458_v5 }
 0x720   : > { %v6628_v11 = vld [vmem:[#allocation1 + $0x1] ss:$4 sm:$0xff] }
 0x721   : > { %v5524_v54 = vpop.f32.mrf.mxu2  ;;  %v6185_v24 = vpop.f32.mrf.mxu3  ;;  %6630 = vrot.lane.b32.xlu0 %v6628_v11, %s10079_s21  ;;  %6636 = vst [vmem:[#allocation1] sm:$0xff] %v6624_v20 }
 0x722   : > { %v5567_v28 = vadd.f32 %v5524_v54, %v5309_v57  ;;  %v11771_v55 = vpop.f32.mrf.mxu1  ;;  %v6485_v54 = vmax.f32 %v6484_v49, 0.0 }
 0x724   : > { %v6225_v56 = vadd.f32 %v6182_v32, %v5567_v28  ;;  %v6423_v48 = vld [vmem:[#allocation3 + $0x3] sm:$0x1]  ;;  %v6486_v32 = vpack.c.bf16 %v6485_v54, %v6485_v54  ;;  %v12560_v54 = vld [vmem:[#allocation24_spill] sm:$0xff] }
 0x725   : > { %v6424_v43 = vsel %vm11674_vm5, %v6421_v17, %v6423_v48  ;;  %v6467_v6 = vld [vmem:[#allocation3 + $0x4] sm:$0x1] }
 0x726   : > { %6425 = vst [vmem:[#allocation3 + $0x3] sm:$0x1] %v6424_v43  ;;  %v6488_v23 = vsel %vm11646_vm1, %v6486_v32, %v6487_v29 }
 0x727   : > { %6489 = vst [vmem:[#allocation3 + $0x5] sm:$0x1] %v6488_v23 }
 0x728   : > { %v6638_v46 = vld [vmem:[#allocation1 + $0x2] ss:$4 sm:$0xff] }
 0x729   : > { %v5527_v42 = vpop.f32.mrf.mxu2  ;;  %v6187_v27 = vpop.f32.mrf.mxu3  ;;  %6640 = vrot.lane.b32.xlu2 %v6638_v46, %s12438_s22  ;;  %6646 = vst [vmem:[#allocation1] sm:$0xff] %v6624_v20 }
 0x72a   : > { %v5568_v18 = vadd.f32 %v5527_v42, %v5310_v1  ;;  %v9831_v1 = vld [vmem:[%s12431_s5 + $0x38] sm:$0xff] }
 0x72b   : > { %v6431_v35 = vpop.permute.xlu1 %6430  ;;  %v6475_v20 = vpop.permute.xlu2 %6474  ;;  %v9847_v42 = vld [vmem:[%s12431_s5 + $0xb8] sm:$0xff]  ;;  %8027 = vmatpush.bf16.msra.mxu1 %v9831_v1 }
 0x72c   : > { %v6226_v47 = vadd.f32 %v6185_v24, %v5568_v18  ;;  %v6529_v24 = vmax.f32 %v6528_v44, 0.0  ;;  %8053 = vmatpush.bf16.msra.mxu3 %v9847_v42 }
 0x72d   : > { %v6433_v26 = vld [vmem:[#allocation3 + $0x3] sm:$0x1] }
 0x72e   : > { %v11751_v52 = vmax.f32 %v6224_v22, %v6226_v47  ;;  %v6434_v33 = vsel %vm11691_vm8, %v6431_v35, %v6433_v26  ;;  %v5312_v22 = vadd.f32 %v5274_v51, %v12557_v21  ;;  %v12558_v47 = vld [vmem:[#allocation38_spill] sm:$0xff]  ;;  %v6530_v13 = vpack.c.bf16 %v6529_v24, %v6529_v24  ;;  %v6501_v28 = vld [vmem:[#allocation3 + $0x5] sm:$0x1] }
 0x72f   : > { %6435 = vst [vmem:[#allocation3 + $0x3] sm:$0x1] %v6434_v33  ;;  %v9838_v51 = vld [vmem:[%s12431_s5 + $0x70] sm:$0xff] }
 0x730   : > { %v11779_v41 = vld [vmem:[#allocation1 + $0x3] ss:$4 sm:$0xff]  ;;  %8041 = vmatpush.bf16.msrb.mxu2 %v9838_v51 }
 0x731   : > { %v5529_v62 = vpop.f32.mrf.mxu2  ;;  %v6190_v15 = vpop.f32.mrf.mxu3  ;;  %6670 = vst [vmem:[#allocation1] sm:$0xff] %v6668_v7 }
 0x732   : > { %v5569_v10 = vadd.f32 %v5529_v62, %v5311_v31  ;;  %v9830_v31 = vld [vmem:[%s12431_s5 + $0x30] sm:$0xff] }
 0x733   : > { %v6499_v57 = vpop.permute.xlu2 %6498  ;;  %8028 = vmatpush.bf16.msra.mxu1 %v9830_v31 }
 0x734   : > { %v6227_v63 = vadd.f32 %v6187_v27, %v5569_v10  ;;  %v6502_v62 = vsel %vm11656_vm3, %v6499_v57, %v6501_v28  ;;  %v6531_v10 = vld [vmem:[#allocation3 + $0x6] sm:$0x1]  ;;  %v9846_v27 = vld [vmem:[%s12431_s5 + $0xb0] sm:$0xff] }
 0x735   : > { %6503 = vst [vmem:[#allocation3 + $0x5] sm:$0x1] %v6502_v62  ;;  %v6532_v43 = vsel %vm11646_vm1, %v6530_v13, %v6531_v10  ;;  %8054 = vmatpush.bf16.msra.mxu3 %v9846_v27  ;;  %v9829_v28 = vld [vmem:[%s12431_s5 + $0x28] sm:$0xff] }
 0x736   : > { %v11763_v30 = vmax.f32 %v6225_v56, %v6227_v63  ;;  %v11810_v56 = vmax.f32 %v11712_v12, %v6701_v40  ;;  %6533 = vst [vmem:[#allocation3 + $0x6] sm:$0x1] %v6532_v43  ;;  %v5313_v12 = vadd.f32 %v11771_v55, %v12559_v9 }
 0x737   : > { %8029 = vmatpush.bf16.msra.mxu1 %v9829_v28 }
 0x738   : > { %v6672_v5 = vld [vmem:[#allocation1 + $0x1] ss:$4 sm:$0xff]  ;;  %v6710_v32 = vadd.f32 %v11735_v59, %v11810_v56 }
 0x739   : > { %v5532_v60 = vpop.f32.mrf.mxu2  ;;  %v11777_v0 = vpop.f32.mrf.mxu3  ;;  %6674 = vrot.lane.b32.xlu1 %v6672_v5, %s10079_s21  ;;  %6680 = vst [vmem:[#allocation1] sm:$0xff] %v6668_v7 }
 0x73a   : > { %v5570_v50 = vadd.f32 %v5532_v60, %v5312_v22 }
 0x73b   : > { %v5279_v36 = vpop.f32.mrf.mxu1  ;;  %v6465_v2 = vpop.permute.xlu0 %6464 }
 0x73c   : > { %v6468_v18 = vsel %vm11674_vm5, %v6465_v2, %v6467_v6  ;;  %v5314_v38 = vadd.f32 %v5279_v36, %v12558_v47  ;;  %v6228_v49 = vadd.f32 %v6190_v15, %v5570_v50  ;;  %v6511_v15 = vld [vmem:[#allocation3 + $0x5] sm:$0x1]  ;;  %v6711_v36 = vmax.f32 %v6710_v32, 0.0  ;;  %v6619_v32 = vld [vmem:[#allocation3 + $0x8] sm:$0x1] }
 0x73d   : > { %6469 = vst [vmem:[#allocation3 + $0x4] sm:$0x1] %v6468_v18  ;;  %v6545_v19 = vld [vmem:[#allocation3 + $0x6] sm:$0x1]  ;;  %v6572_v47 = vadd.f32 %v11680_v53, %v11638_v16  ;;  %v6575_v53 = vld [vmem:[#allocation3 + $0x7] sm:$0x1] }
 0x73e   : > { %v6712_v18 = vpack.c.bf16 %v6711_v36, %v6711_v36  ;;  %v9828_v36 = vld [vmem:[%s12431_s5 + $0x20] sm:$0xff] }
 0x73f   : > { %v6573_v40 = vmax.f32 %v6572_v47, 0.0  ;;  %8030 = vmatpush.bf16.msra.mxu1 %v9828_v36 }
 0x740   : > { %v6682_v44 = vld [vmem:[#allocation1 + $0x2] ss:$4 sm:$0xff] }
 0x741   : > { %v5534_v17 = vpop.f32.mrf.mxu2  ;;  %6684 = vrot.lane.b32.xlu0 %v6682_v44, %s12438_s22  ;;  %6690 = vst [vmem:[#allocation1] sm:$0xff] %v6668_v7  ;;  %v6574_v50 = vpack.c.bf16 %v6573_v40, %v6573_v40 }
 0x742   : > { %v5571_v33 = vadd.f32 %v5534_v17, %v5313_v12 }
 0x743   : > { %v5281_v63 = vpop.f32.mrf.mxu1 }
 0x744   : > { %v6477_v8 = vld [vmem:[#allocation3 + $0x4] sm:$0x1]  ;;  %v5315_v34 = vadd.f32 %v5281_v63, %v12560_v54  ;;  %v6229_v2 = vadd.f32 %v11777_v0, %v5571_v33  ;;  %v6616_v63 = vadd.f32 %v11723_v37, %v11638_v16 }
 0x745   : > { %v6478_v48 = vsel %vm11691_vm8, %v6475_v20, %v6477_v8  ;;  %v9837_v8 = vld [vmem:[%s12431_s5 + $0x68] sm:$0xff] }
 0x746   : > { %6479 = vst [vmem:[#allocation3 + $0x4] sm:$0x1] %v6478_v48  ;;  %8042 = vmatpush.bf16.msrb.mxu2 %v9837_v8  ;;  %v6617_v43 = vmax.f32 %v6616_v63, 0.0 }
 0x748   : > { %v11831_v7 = vld [vmem:[#allocation1 + $0x3] ss:$4 sm:$0xff]  ;;  %v6618_v37 = vpack.c.bf16 %v6617_v43, %v6617_v43 }
 0x749   : > { %v5537_v11 = vpop.f32.mrf.mxu2  ;;  %6714 = vst [vmem:[#allocation1] sm:$0xff] %v6712_v18 }
 0x74a   : > { %v5572_v25 = vadd.f32 %v5537_v11, %v5314_v38  ;;  %v6745_v11 = vrot.slane %v11720_v58, 1 }
 0x74c   : > { %v11842_v57 = vmax.f32 %v11720_v58, %v6745_v11 }
 0x750   : > { %v6716_v13 = vld [vmem:[#allocation1 + $0x1] ss:$4 sm:$0xff] }
 0x751   : > { %v5539_v26 = vpop.f32.mrf.mxu2  ;;  %6718 = vrot.lane.b32.xlu2 %v6716_v13, %s10079_s21  ;;  %6724 = vst [vmem:[#allocation1] sm:$0xff] %v6712_v18 }
 0x752   : > { %v5573_v20 = vadd.f32 %v5539_v26, %v5315_v34 }
 0x753   : > { %v6509_v29 = vpop.permute.xlu1 %6508  ;;  %v6553_v22 = vpop.permute.xlu2 %6552 }
 0x754   : > { %v6512_v55 = vsel %vm11674_vm5, %v6509_v29, %v6511_v15 }
 0x755   : > { %v6195_v46 = vpop.f32.mrf.mxu3  ;;  %6513 = vst [vmem:[#allocation3 + $0x5] sm:$0x1] %v6512_v55  ;;  %v6833_v55 = vrot.slane %v11763_v30, 1 }
 0x756   : > { %v6230_v60 = vadd.f32 %v6195_v46, %v5572_v25  ;;  %v6754_v25 = vadd.f32 %v11735_v59, %v11842_v57  ;;  %v6789_v46 = vrot.slane %v11751_v52, 1 }
 0x758   : > { %v11819_v35 = vmax.f32 %v6228_v49, %v6230_v60  ;;  %v6726_v5 = vld [vmem:[#allocation1 + $0x2] ss:$4 sm:$0xff]  ;;  %v6755_v31 = vmax.f32 %v6754_v25, 0.0  ;;  %v11867_v60 = vmax.f32 %v11751_v52, %v6789_v46  ;;  %v6620_v52 = vsel %vm11646_vm1, %v6618_v37, %v6619_v32 }
 0x759   : > { %6728 = vrot.lane.b32.xlu1 %v6726_v5, %s12438_s22  ;;  %6734 = vst [vmem:[#allocation1] sm:$0xff] %v6712_v18  ;;  %v9845_v49 = vld [vmem:[%s12431_s5 + $0xa8] sm:$0xff] }
 0x75a   : > { %v6756_v58 = vpack.c.bf16 %v6755_v31, %v6755_v31  ;;  %8055 = vmatpush.bf16.msra.mxu3 %v9845_v49  ;;  %v6798_v34 = vadd.f32 %v11735_v59, %v11867_v60  ;;  %6621 = vst [vmem:[#allocation3 + $0x8] sm:$0x1] %v6620_v52  ;;  %v6877_v63 = vrot.slane %v11819_v35, 1  ;;  %v9833_v37 = vld [vmem:[%s12431_s5 + $0x48] sm:$0xff]  ;;  %v9824_v52 = vld [vmem:[%s12431_s5] sm:$0xff] }
 0x75b   : > { %v6519_v14 = vpop.permute.xlu0 %6518 }
 0x75c   : > { %v6521_v24 = vld [vmem:[#allocation3 + $0x5] sm:$0x1]  ;;  %v6799_v33 = vmax.f32 %v6798_v34, 0.0  ;;  %v9843_v34 = vld [vmem:[%s12431_s5 + $0x98] sm:$0xff] }
 0x75d   : > { %v6197_v23 = vpop.f32.mrf.mxu3  ;;  %v6522_v21 = vsel %vm11691_vm8, %v6519_v14, %v6521_v24  ;;  %v6576_v14 = vsel %vm11646_vm1, %v6574_v50, %v6575_v53  ;;  %v6707_v53 = vld [vmem:[#allocation3 + $0xa] sm:$0x1] }
 0x75e   : > { %v6231_v1 = vadd.f32 %v6197_v23, %v5573_v20  ;;  %6523 = vst [vmem:[#allocation3 + $0x5] sm:$0x1] %v6522_v21  ;;  %v6800_v44 = vpack.c.bf16 %v6799_v33, %v6799_v33  ;;  %v6660_v23 = vadd.f32 %v11761_v3, %v11638_v16  ;;  %v11892_v21 = vmax.f32 %v11763_v30, %v6833_v55  ;;  %v6663_v30 = vld [vmem:[#allocation3 + $0x9] sm:$0x1]  ;;  %v9832_v33 = vld [vmem:[%s12431_s5 + $0x40] sm:$0xff] }
 0x75f   : > { %6577 = vst [vmem:[#allocation3 + $0x7] sm:$0x1] %v6576_v14 }
 0x760   : > { %v11829_v42 = vmax.f32 %v6229_v2, %v6231_v1  ;;  %v11852_v51 = vld [vmem:[#allocation1 + $0x3] ss:$4 sm:$0xff]  ;;  %v6661_v24 = vmax.f32 %v6660_v23, 0.0 }
 0x761   : > { %6758 = vst [vmem:[#allocation1] sm:$0xff] %v6756_v58  ;;  %v6633_v25 = vld [vmem:[#allocation3 + $0x8] sm:$0x1] }
 0x763   : > { %v6543_v6 = vpop.permute.xlu0 %6542 }
 0x764   : > { %v6546_v17 = vsel %vm11656_vm3, %v6543_v6, %v6545_v19 }
 0x765   : > { %6547 = vst [vmem:[#allocation3 + $0x6] sm:$0x1] %v6546_v17  ;;  %v6704_v17 = vadd.f32 %v11810_v56, %v11638_v16  ;;  %v9836_v56 = vld [vmem:[%s12431_s5 + $0x60] sm:$0xff] }
 0x766   : > { %v6589_v12 = vld [vmem:[#allocation3 + $0x7] sm:$0x1]  ;;  %8043 = vmatpush.bf16.msrb.mxu2 %v9836_v56 }
 0x767   : > { %v6705_v3 = vmax.f32 %v6704_v17, 0.0  ;;  %v9862_v17 = vld [vmem:[%s12431_s5 + $0x130] sm:$0xff]  ;;  %v9861_v56 = vld [vmem:[%s12431_s5 + $0x128] sm:$0xff] }
 0x768   : > { %v6760_v48 = vld [vmem:[#allocation1 + $0x1] ss:$4 sm:$0xff] }
 0x769   : > { %6762 = vrot.lane.b32.xlu0 %v6760_v48, %s10079_s21  ;;  %6768 = vst [vmem:[#allocation1] sm:$0xff] %v6756_v58  ;;  %v6706_v11 = vpack.c.bf16 %v6705_v3, %v6705_v3  ;;  %v11922_v48 = vmax.f32 %v11819_v35, %v6877_v63  ;;  %v9825_v35 = vld [vmem:[%s12431_s5 + $0x8] sm:$0xff]  ;;  %v6921_v3 = vrot.slane %v11829_v42, 1 }
 0x76b   : > { %v6708_v28 = vsel %vm11646_vm1, %v6706_v11, %v6707_v53  ;;  %v6886_v43 = vadd.f32 %v11735_v59, %v11922_v48 }
 0x76c   : > { %v6555_v0 = vld [vmem:[#allocation3 + $0x6] sm:$0x1]  ;;  %6709 = vst [vmem:[#allocation3 + $0xa] sm:$0x1] %v6708_v28  ;;  %v9851_v28 = vld [vmem:[%s12431_s5 + $0xd8] sm:$0xff] }
 0x76d   : > { %v6556_v38 = vsel %vm11674_vm5, %v6553_v22, %v6555_v0  ;;  %v6662_v22 = vpack.c.bf16 %v6661_v24, %v6661_v24  ;;  %v6842_v0 = vadd.f32 %v11735_v59, %v11892_v21  ;;  %v6748_v24 = vadd.f32 %v11842_v57, %v11638_v16  ;;  %v9871_v16 = vld [vmem:[%s12431_s5 + $0x178] sm:$0xff] }
 0x76e   : > { %6557 = vst [vmem:[#allocation3 + $0x6] sm:$0x1] %v6556_v38  ;;  %v9844_v38 = vld [vmem:[%s12431_s5 + $0xa0] sm:$0xff] }
 0x76f   : > { %v6843_v13 = vmax.f32 %v6842_v0, 0.0  ;;  %8056 = vmatpush.bf16.msra.mxu3 %v9844_v38  ;;  %v6664_v40 = vsel %vm11646_vm1, %v6662_v22, %v6663_v30  ;;  %v9840_v22 = vld [vmem:[%s12431_s5 + $0x80] sm:$0xff]  ;;  %v6749_v57 = vmax.f32 %v6748_v24, 0.0  ;;  %v11989_v38 = vmax.f32 %v11829_v42, %v6921_v3  ;;  %v9870_v42 = vld [vmem:[%s12431_s5 + $0x170] sm:$0xff] }
 0x770   : > { %v6770_v26 = vld [vmem:[#allocation1 + $0x2] ss:$4 sm:$0xff]  ;;  %6665 = vst [vmem:[#allocation3 + $0x9] sm:$0x1] %v6664_v40 }
 0x771   : > { %6772 = vrot.lane.b32.xlu2 %v6770_v26, %s12438_s22  ;;  %6778 = vst [vmem:[#allocation1] sm:$0xff] %v6756_v58  ;;  %v6844_v14 = vpack.c.bf16 %v6843_v13, %v6843_v13  ;;  %v9842_v26 = vld [vmem:[%s12431_s5 + $0x90] sm:$0xff]  ;;  %v9852_v13 = vld [vmem:[%s12431_s5 + $0xe0] sm:$0xff] }
 0x772   : > { %v9860_v40 = vld [vmem:[%s12431_s5 + $0x120] sm:$0xff] }
 0x773   : > { %v6563_v10 = vpop.permute.xlu1 %6562  ;;  %v6607_v1 = vpop.permute.xlu2 %6606  ;;  %8057 = vmatpush.bf16.msra.mxu3 %v9843_v34  ;;  %v6721_v55 = vld [vmem:[#allocation3 + $0xa] sm:$0x1] }
 0x775   : > { %v6565_v62 = vld [vmem:[#allocation3 + $0x6] sm:$0x1] }
 0x776   : > { %v6566_v27 = vsel %vm11691_vm8, %v6563_v10, %v6565_v62  ;;  %v9827_v10 = vld [vmem:[%s12431_s5 + $0x18] sm:$0xff] }
 0x777   : > { %6567 = vst [vmem:[#allocation3 + $0x6] sm:$0x1] %v6566_v27  ;;  %v9835_v27 = vld [vmem:[%s12431_s5 + $0x58] sm:$0xff]  ;;  %8031 = vmatpush.bf16.msra.mxu1 %v9827_v10  ;;  %8058 = vmatpush.bf16.msra.mxu3 %v9842_v26  ;;  %v6677_v36 = vld [vmem:[#allocation3 + $0x9] sm:$0x1] }
 0x778   : > { %v11876_v29 = vld [vmem:[#allocation1 + $0x3] ss:$4 sm:$0xff]  ;;  %8044 = vmatpush.bf16.msrb.mxu2 %v9835_v27 }
 0x779   : > { %6802 = vst [vmem:[#allocation1] sm:$0xff] %v6800_v44  ;;  %v9850_v10 = vld [vmem:[%s12431_s5 + $0xd0] sm:$0xff]  ;;  %v9867_v26 = vld [vmem:[%s12431_s5 + $0x158] sm:$0xff] }
 0x77a   : > { %v9858_v27 = vld [vmem:[%s12431_s5 + $0x110] sm:$0xff] }
 0x77b   : > { %v6587_v9 = vpop.permute.xlu1 %6586 }
 0x77c   : > { %v6590_v54 = vsel %vm11656_vm3, %v6587_v9, %v6589_v12  ;;  %v9826_v9 = vld [vmem:[%s12431_s5 + $0x10] sm:$0xff] }
 0x77d   : > { %6591 = vst [vmem:[#allocation3 + $0x7] sm:$0x1] %v6590_v54  ;;  %v9834_v12 = vld [vmem:[%s12431_s5 + $0x50] sm:$0xff]  ;;  %v6887_v54 = vmax.f32 %v6886_v43, 0.0  ;;  %8032 = vmatpush.bf16.msra.mxu1 %v9826_v9  ;;  %v9849_v43 = vld [vmem:[%s12431_s5 + $0xc8] sm:$0xff]  ;;  %v9868_v9 = vld [vmem:[%s12431_s5 + $0x160] sm:$0xff] }
 0x77e   : > { %8045 = vmatpush.bf16.msrb.mxu2 %v9834_v12 }
 0x77f   : > { %v6888_v32 = vpack.c.bf16 %v6887_v54, %v6887_v54  ;;  %v9848_v54 = vld [vmem:[%s12431_s5 + $0xc0] sm:$0xff] }
 0x780   : > { %v6804_v2 = vld [vmem:[#allocation1 + $0x1] ss:$4 sm:$0xff] }
 0x781   : > { %6806 = vrot.lane.b32.xlu1 %v6804_v2, %s10079_s21  ;;  %6812 = vst [vmem:[#allocation1] sm:$0xff] %v6800_v44  ;;  %8033 = vmatpush.bf16.msra.mxu1 %v9825_v35  ;;  %v12042_v35 = vld [vmem:[%s12430_s4] sm:$0x1] }
 0x782   : > { %8046 = vmatpush.bf16.msrb.mxu2 %v9833_v37  ;;  %v6792_v37 = vadd.f32 %v12042_v35, %v11867_v60  ;;  %v6836_v34 = vadd.f32 %v12042_v35, %v11892_v21  ;;  %v9866_v21 = vld [vmem:[%s12431_s5 + $0x150] sm:$0xff] }
 0x783   : > { %v6597_v15 = vpop.permute.xlu0 %6596  ;;  %v6641_v58 = vpop.permute.xlu2 %6640 }
 0x784   : > { %v6599_v20 = vld [vmem:[#allocation3 + $0x7] sm:$0x1]  ;;  %v6793_v60 = vmax.f32 %v6792_v37, 0.0  ;;  %v9880_v37 = vld [vmem:[%s12431_s5 + $0x1c0] sm:$0xff] }
 0x785   : > { %v6600_v6 = vsel %vm11674_vm5, %v6597_v15, %v6599_v20  ;;  %v9863_v15 = vld [vmem:[%s12431_s5 + $0x138] sm:$0xff]  ;;  %8034 = vmatpush.bf16.msra.mxu1 %v9824_v52 }
 0x786   : > { %6601 = vst [vmem:[#allocation3 + $0x7] sm:$0x1] %v6600_v6  ;;  %8047 = vmatpush.bf16.msrb.mxu2 %v9832_v33 }
 0x788   : > { %v6814_v47 = vld [vmem:[#allocation1 + $0x2] ss:$4 sm:$0xff] }
 0x789   : > { %6816 = vrot.lane.b32.xlu0 %v6814_v47, %s12438_s22  ;;  %6822 = vst [vmem:[#allocation1] sm:$0xff] %v6800_v44  ;;  %v9855_v44 = vld [vmem:[%s12431_s5 + $0xf8] sm:$0xff]  ;;  %v9853_v47 = vld [vmem:[%s12431_s5 + $0xe8] sm:$0xff] }
 0x78a   : > { %8066 = vmatpush.bf16.msrb.mxu1 %v9855_v44  ;;  %8079 = vmatpush.bf16.msra.mxu2 %v9863_v15  ;;  %v6794_v15 = vpack.c.bf16 %v6793_v60, %v6793_v60  ;;  %v6924_v60 = vadd.f32 %v12042_v35, %v11989_v38 }
 0x78d   : > { %v6609_v19 = vld [vmem:[#allocation3 + $0x7] sm:$0x1] }
 0x78e   : > { %v6610_v18 = vsel %vm11691_vm8, %v6607_v1, %v6609_v19  ;;  %v9854_v19 = vld [vmem:[%s12431_s5 + $0xf0] sm:$0xff]  ;;  %8080 = vmatpush.bf16.msra.mxu2 %v9862_v17 }
 0x78f   : > { %6611 = vst [vmem:[#allocation3 + $0x7] sm:$0x1] %v6610_v18  ;;  %v9841_v18 = vld [vmem:[%s12431_s5 + $0x88] sm:$0xff]  ;;  %8067 = vmatpush.bf16.msrb.mxu1 %v9854_v19 }
 0x790   : > { %v11909_v31 = vld [vmem:[#allocation1 + $0x3] ss:$4 sm:$0xff]  ;;  %8059 = vmatpush.bf16.msra.mxu3 %v9841_v18 }
 0x791   : > { %6846 = vst [vmem:[#allocation1] sm:$0xff] %v6844_v14 }
 0x792   : > { %8081 = vmatpush.bf16.msra.mxu2 %v9861_v56  ;;  %v9878_v56 = vld [vmem:[%s12431_s5 + $0x1b0] sm:$0xff] }
 0x793   : > { %v6631_v50 = vpop.permute.xlu0 %6630  ;;  %8068 = vmatpush.bf16.msrb.mxu1 %v9853_v47 }
 0x794   : > { %v6634_v5 = vsel %vm11656_vm3, %v6631_v50, %v6633_v25  ;;  %8060 = vmatpush.bf16.msra.mxu3 %v9840_v22  ;;  %v6750_v25 = vpack.c.bf16 %v6749_v57, %v6749_v57  ;;  %v9879_v22 = vld [vmem:[%s12431_s5 + $0x1b8] sm:$0xff] }
 0x795   : > { %6635 = vst [vmem:[#allocation3 + $0x8] sm:$0x1] %v6634_v5  ;;  %v6930_v5 = vadd.f32 %v11735_v59, %v11989_v38  ;;  %v6751_v59 = vld [vmem:[#allocation3 + $0xb] sm:$0x1] }
 0x796   : > { %8082 = vmatpush.bf16.msra.mxu2 %v9860_v40  ;;  %v6964_v19 = vld [vmem:[#allocation3] sm:$0xff]  ;;  %v9876_v40 = vld [vmem:[%s12431_s5 + $0x1a0] sm:$0xff] }
 0x797   : > { %8069 = vmatpush.bf16.msrb.mxu1 %v9852_v13  ;;  %v9885_v13 = vld [vmem:[%s12431_s5 + $0x1e8] sm:$0xff] }
 0x798   : > { %v6848_v46 = vld [vmem:[#allocation1 + $0x1] ss:$4 sm:$0xff]  ;;  %8092 = vmatpush.bf16.msrb.mxu3 %v9871_v16 }
 0x799   : > { %6850 = vrot.lane.b32.xlu2 %v6848_v46, %s10079_s21  ;;  %6856 = vst [vmem:[#allocation1] sm:$0xff] %v6844_v14 }
 0x79b   : > { %8070 = vmatpush.bf16.msrb.mxu1 %v9851_v28  ;;  %v6880_v28 = vadd.f32 %v12042_v35, %v11922_v48 }
 0x79c   : > { %v6643_v62 = vld [vmem:[#allocation3 + $0x8] sm:$0x1]  ;;  %8093 = vmatpush.bf16.msrb.mxu3 %v9870_v42  ;;  %v9875_v42 = vld [vmem:[%s12431_s5 + $0x198] sm:$0xff] }
 0x79d   : > { %v6644_v8 = vsel %vm11674_vm5, %v6641_v58, %v6643_v62  ;;  %v9869_v58 = vld [vmem:[%s12431_s5 + $0x168] sm:$0xff]  ;;  %v6931_v62 = vmax.f32 %v6930_v5, 0.0 }
 0x79e   : > { %6645 = vst [vmem:[#allocation3 + $0x8] sm:$0x1] %v6644_v8  ;;  %v6752_v8 = vsel %vm11646_vm1, %v6750_v25, %v6751_v59  ;;  %v9883_v25 = vld [vmem:[%s12431_s5 + $0x1d8] sm:$0xff] }
 0x79f   : > { %6753 = vst [vmem:[#allocation3 + $0xb] sm:$0x1] %v6752_v8  ;;  %v6932_v63 = vpack.c.bf16 %v6931_v62, %v6931_v62  ;;  %8071 = vmatpush.bf16.msrb.mxu1 %v9850_v10  ;;  %v9874_v10 = vld [vmem:[%s12431_s5 + $0x190] sm:$0xff] }
 0x7a0   : > { %v6858_v49 = vld [vmem:[#allocation1 + $0x2] ss:$4 sm:$0xff]  ;;  %8094 = vmatpush.bf16.msrb.mxu3 %v9869_v58 }
 0x7a1   : > { %6860 = vrot.lane.b32.xlu1 %v6858_v49, %s12438_s22  ;;  %6866 = vst [vmem:[#allocation1] sm:$0xff] %v6844_v14  ;;  %v9859_v14 = vld [vmem:[%s12431_s5 + $0x118] sm:$0xff]  ;;  %v9857_v49 = vld [vmem:[%s12431_s5 + $0x108] sm:$0xff] }
 0x7a2   : > { %8083 = vmatpush.bf16.msra.mxu2 %v9859_v14 }
 0x7a3   : > { %8072 = vmatpush.bf16.msrb.mxu1 %v9849_v43  ;;  %v9873_v43 = vld [vmem:[%s12431_s5 + $0x188] sm:$0xff] }
 0x7a4   : > { %8095 = vmatpush.bf16.msrb.mxu3 %v9868_v9 }
 0x7a6   : > { %8084 = vmatpush.bf16.msra.mxu2 %v9858_v27  ;;  %v6765_v24 = vld [vmem:[#allocation3 + $0xb] sm:$0x1] }
 0x7a7   : > { %8073 = vmatpush.bf16.msrb.mxu1 %v9848_v54  ;;  %v9872_v54 = vld [vmem:[%s12431_s5 + $0x180] sm:$0xff] }
 0x7a8   : > { %v11951_v20 = vld [vmem:[#allocation1 + $0x3] ss:$4 sm:$0xff]  ;;  %8096 = vmatpush.bf16.msrb.mxu3 %v9867_v26  ;;  %v6883_v26 = vld [vmem:[#allocation3 + $0xe] sm:$0x1] }
 0x7a9   : > { %6890 = vst [vmem:[#allocation1] sm:$0xff] %v6888_v32 }
 0x7aa   : > { %8085 = vmatpush.bf16.msra.mxu2 %v9857_v49  ;;  %v9881_v49 = vld [vmem:[%s12431_s5 + $0x1c8] sm:$0xff] }
 0x7ab   : > { %v6675_v6 = vpop.permute.xlu1 %6674  ;;  %v6719_v23 = vpop.permute.xlu2 %6718 }
 0x7ac   : > { %v6678_v2 = vsel %vm11656_vm3, %v6675_v6, %v6677_v36  ;;  %v6722_v1 = vsel %vm11656_vm3, %v6719_v23, %v6721_v55  ;;  %8097 = vmatpush.bf16.msrb.mxu3 %v9866_v21  ;;  %v9865_v36 = vld [vmem:[%s12431_s5 + $0x148] sm:$0xff]  ;;  %v6795_v23 = vld [vmem:[#allocation3 + $0xc] sm:$0x1]  ;;  %v9895_v21 = vld [vmem:[%s12431_s5 + $0x238] sm:$0xff] }
 0x7ad   : > { %6679 = vst [vmem:[#allocation3 + $0x9] sm:$0x1] %v6678_v2  ;;  %v6796_v55 = vsel %vm11646_vm1, %v6794_v15, %v6795_v23  ;;  %v6839_v2 = vld [vmem:[#allocation3 + $0xd] sm:$0x1] }
 0x7ae   : > { %6723 = vst [vmem:[#allocation3 + $0xa] sm:$0x1] %v6722_v1  ;;  %v9864_v1 = vld [vmem:[%s12431_s5 + $0x140] sm:$0xff]  ;;  %v9894_v15 = vld [vmem:[%s12431_s5 + $0x230] sm:$0xff] }
 0x7af   : > { %6797 = vst [vmem:[#allocation3 + $0xc] sm:$0x1] %v6796_v55 }
 0x7b0   : > { %v6892_v0 = vld [vmem:[#allocation1 + $0x1] ss:$4 sm:$0xff]  ;;  %8098 = vmatpush.bf16.msrb.mxu3 %v9865_v36 }
 0x7b1   : > { %6894 = vrot.lane.b32.xlu0 %v6892_v0, %s10079_s21  ;;  %6900 = vst [vmem:[#allocation1] sm:$0xff] %v6888_v32 }
 0x7b3   : > { %v6685_v30 = vpop.permute.xlu0 %6684 }
 0x7b4   : > { %v6687_v11 = vld [vmem:[#allocation3 + $0x9] sm:$0x1]  ;;  %8099 = vmatpush.bf16.msrb.mxu3 %v9864_v1  ;;  %v9901_v1 = vld [vmem:[%s12431_s5 + $0x268] sm:$0xff] }
 0x7b5   : > { %v6688_v50 = vsel %vm11674_vm5, %v6685_v30, %v6687_v11  ;;  %v6731_v52 = vld [vmem:[#allocation3 + $0xa] sm:$0x1] }
 0x7b6   : > { %6689 = vst [vmem:[#allocation3 + $0x9] sm:$0x1] %v6688_v50  ;;  %v9886_v30 = vld [vmem:[%s12431_s5 + $0x1f0] sm:$0xff]  ;;  %v9884_v50 = vld [vmem:[%s12431_s5 + $0x1e0] sm:$0xff] }
 0x7b7   : > { %v6809_v59 = vld [vmem:[#allocation3 + $0xc] sm:$0x1] }
 0x7b8   : > { %v6902_v53 = vld [vmem:[#allocation1 + $0x2] ss:$4 sm:$0xff] }
 0x7b9   : > { %6904 = vrot.lane.b32.xlu2 %v6902_v53, %s12438_s22  ;;  %6910 = vst [vmem:[#allocation1] sm:$0xff] %v6888_v32 }
 0x7c0   : > { %v6912_v46 = vld [vmem:[#allocation1 + $0x3] ss:$4 sm:$0xff] }
 0x7c1   : > { %6934 = vst [vmem:[#allocation1] sm:$0xff] %v6932_v63  ;;  %6694 = vrot.lane.b32.xlu2 %v11831_v7, %s12561_s28  ;;  %v9856_v7 = vld [vmem:[%s12431_s5 + $0x100] sm:$0xff] }
 0x7c2   : > { %8086 = vmatpush.bf16.msra.mxu2 %v9856_v7 }
 0x7c8   : > { %v6936_v12 = vld [vmem:[#allocation1 + $0x1] ss:$4 sm:$0xff] }
 0x7c9   : > { %6826 = vrot.lane.b32.xlu2 %v11909_v31, %s12561_s28  ;;  %6938 = vrot.lane.b32.xlu1 %v6936_v12, %s10079_s21  ;;  %6944 = vst [vmem:[#allocation1] sm:$0xff] %v6932_v63  ;;  %v6837_v31 = vmax.f32 %v6836_v34, 0.0  ;;  %s324_s21 = scalar_lea.vmem [#allocation4], %s323_s26 }
 0x7ca   : > { %s8327_s23 = sshll.u32 %s324_s21, 4  ;;  %s8328_s23 = int_to_ptr.vmem [resolvable:$true] %s8327_s23 }
 0x7cb   : > { %v6729_v32 = vpop.permute.xlu1 %6728  ;;  %v6838_v6 = vpack.c.bf16 %v6837_v31, %v6837_v31  ;;  %v6773_v16 = vpop.permute.xlu2 %6772  ;;  %v6925_v31 = vmax.f32 %v6924_v60, 0.0 }
 0x7cc   : > { %v6732_v33 = vsel %vm11674_vm5, %v6729_v32, %v6731_v52 }
 0x7cd   : > { %6733 = vst [vmem:[#allocation3 + $0xa] sm:$0x1] %v6732_v33  ;;  %v6926_v38 = vpack.c.bf16 %v6925_v31, %v6925_v31 }
 0x7d0   : > { %v6946_v44 = vld [vmem:[#allocation1 + $0x2] ss:$4 sm:$0xff] }
 0x7d1   : > { %6650 = vrot.lane.b32.xlu1 %v11779_v41, %s12561_s28  ;;  %6948 = vrot.lane.b32.xlu0 %v6946_v44, %s12562_s24  ;;  %6954 = vst [vmem:[#allocation1] sm:$0xff] %v6932_v63  ;;  %v6840_v41 = vsel %vm11646_vm1, %v6838_v6, %v6839_v2  ;;  %v9882_v63 = vld [vmem:[%s12431_s5 + $0x1d0] sm:$0xff]  ;;  %v9903_v44 = vld [vmem:[%s12431_s5 + $0x278] sm:$0xff]  ;;  %s8329_s24 = sshll.u32 %s8325_s14, 4  ;;  %s8330_s24 = int_to_ptr.hbm [resolvable:$true] %s8329_s24 }
 0x7d2   : > { %6841 = vst [vmem:[#allocation3 + $0xd] sm:$0x1] %v6840_v41  ;;  %v9902_v6 = vld [vmem:[%s12431_s5 + $0x270] sm:$0xff]  ;;  %v9893_v2 = vld [vmem:[%s12431_s5 + $0x228] sm:$0xff]  ;;  %v9911_v41 = vld [vmem:[%s12431_s5 + $0x2b8] sm:$0xff] }
 0x7d8   : > { %v6956_v17 = vld [vmem:[#allocation1 + $0x3] ss:$4 sm:$0xff] }
 0x7d9   : > { %6782 = vrot.lane.b32.xlu1 %v11876_v29, %s12561_s28  ;;  %6738 = vrot.lane.b32.xlu0 %v11852_v51, %s12561_s28  ;;  %7224 = vst [vmem:[#allocation1] ss:$9 sm:$0xff] %v6964_v19  ;;  %v9887_v29 = vld [vmem:[%s12431_s5 + $0x1f8] sm:$0xff]  ;;  %v6853_v62 = vld [vmem:[#allocation3 + $0xd] sm:$0x1] }
 0x7da   : > { %6958 = vrot.lane.b32.xlu2 %v6956_v17, %s12561_s28  ;;  %v6927_v19 = vld [vmem:[#allocation3 + $0xf] sm:$0x1] }
 0x7db   : > { %v6763_v18 = vpop.permute.xlu0 %6762  ;;  %v6928_v17 = vsel %vm11646_vm1, %v6926_v38, %v6927_v19 }
 0x7dc   : > { %v6766_v3 = vsel %vm11656_vm3, %v6763_v18, %v6765_v24  ;;  %6929 = vst [vmem:[#allocation3 + $0xf] sm:$0x1] %v6928_v17  ;;  %v9892_v18 = vld [vmem:[%s12431_s5 + $0x220] sm:$0xff] }
 0x7dd   : > { %6767 = vst [vmem:[#allocation3 + $0xb] sm:$0x1] %v6766_v3  ;;  %v9900_v24 = vld [vmem:[%s12431_s5 + $0x260] sm:$0xff]  ;;  %v6697_v3 = vld [vmem:[#allocation3 + $0x9] sm:$0x1] }
 0x7e0   : > { %v7225_v0 = vld [vmem:[#allocation1] sm:$0xff]  ;;  %v7226_v51 = vld [vmem:[#allocation1 + $0x9] sm:$0xff]  ;;  %v7227_v47 = vld [vmem:[#allocation1 + $0x12] sm:$0xff] }
 0x7e1   : > { %6914 = vrot.lane.b32.xlu1 %v6912_v46, %s12561_s28  ;;  %6870 = vrot.lane.b32.xlu0 %v11951_v20, %s12561_s28  ;;  %v9877_v20 = vld [vmem:[%s12431_s5 + $0x1a8] sm:$0xff]  ;;  %v7228_v5 = vld [vmem:[#allocation1 + $0x1b] sm:$0xff]  ;;  %v6881_v46 = vmax.f32 %v6880_v28, 0.0  ;;  %s10027_s28 = sshra.s32 %s8330_s24, 4  ;;  %s10028_s28 = int_to_ptr.hbm [resolvable:$true] %s10027_s28 }
 0x7e2   : > { %8035 = vmatmul.bf16.vlgmr.msra.gmra.mxu1 %v7225_v0  ;;  %8048 = vmatmul.bf16.vlgmr.msrb.gmra.mxu2 %v7226_v51  ;;  %v7229_v53 = vld [vmem:[#allocation1 + $0x24] sm:$0xff]  ;;  %v7230_v14 = vld [vmem:[#allocation1 + $0x2d] sm:$0xff]  ;;  %v7231_v52 = vld [vmem:[#allocation1 + $0x36] sm:$0xff]  ;;  %s10029_s25 = scalar_lea.hbm %s10028_s28, 1  ;;  %p10034_p0 = scmp.lt.s32.totalorder %s10028_s28, %s12435_s9 }
 0x7e3   : > { %8061 = vmatmul.bf16.vlgmr.msra.gmra.mxu3 %v7227_v47  ;;  %8105 = vmatpush.bf16.msra.mxu1 %v9879_v22  ;;  %v6882_v9 = vpack.c.bf16 %v6881_v46, %v6881_v46  ;;  %v7232_v33 = vld [vmem:[#allocation1 + $0x3f] sm:$0xff]  ;;  %v9910_v51 = vld [vmem:[%s12431_s5 + $0x2b0] sm:$0xff]  ;;  %v9909_v47 = vld [vmem:[%s12431_s5 + $0x2a8] sm:$0xff]  ;;  %p10030_p11 = scmp.ne.s32.totalorder %s10028_s28, %s10029_s25  ;;  %p10035_p1 = scmp.lt.s32.totalorder %s10033_s29, %s10029_s25 }
 0x7e4   : > { %v6775_v57 = vld [vmem:[#allocation3 + $0xb] sm:$0x1]  ;;  %8118 = vmatpush.bf16.msrb.mxu2 %v9887_v29  ;;  %8131 = vmatpush.bf16.msra.mxu3 %v9895_v21  ;;  %v9899_v0 = vld [vmem:[%s12431_s5 + $0x258] sm:$0xff]  ;;  %v9888_v28 = vld [vmem:[%s12431_s5 + $0x200] sm:$0xff] }
 0x7e5   : > { %v6776_v11 = vsel %vm11674_vm5, %v6773_v16, %v6775_v57  ;;  %v6884_v32 = vsel %vm11646_vm1, %v6882_v9, %v6883_v26  ;;  %v9898_v16 = vld [vmem:[%s12431_s5 + $0x250] sm:$0xff]  ;;  %p10031_p12 = pnand %p10030_p11, %p10170_p5  ;;  %p10036_p2 = por %p10035_p1, %p10034_p0 }
 0x7e6   : > { %6777 = vst [vmem:[#allocation3 + $0xb] sm:$0x1] %v6776_v11  ;;  %v6941_v46 = vld [vmem:[#allocation3 + $0xf] sm:$0x1] }
 0x7e7   : > { %8106 = vmatpush.bf16.msra.mxu1 %v9878_v56  ;;  %6885 = vst [vmem:[#allocation3 + $0xe] sm:$0x1] %v6884_v32  ;;  %v9890_v56 = vld [vmem:[%s12431_s5 + $0x210] sm:$0xff]  ;;  %p10032_p13 = pneg %p10031_p12 }
 0x7e8   : > { %8119 = vmatpush.bf16.msrb.mxu2 %v9886_v30  ;;  %8132 = vmatpush.bf16.msra.mxu3 %v9894_v15  ;;  %v9922_v15 = vld [vmem:[%s12431_s5 + $0x310] sm:$0xff] }
 0x7e9   : > { %p10037_p3 = pnand %p10036_p2, %p10032_p13 }
 0x7eb   : > { %8107 = vmatpush.bf16.msra.mxu1 %v9877_v20 }
 0x7ec   : > { %8120 = vmatpush.bf16.msrb.mxu2 %v9885_v13  ;;  %8133 = vmatpush.bf16.msra.mxu3 %v9893_v2  ;;  %v9932_v2 = vld [vmem:[%s12431_s5 + $0x360] sm:$0xff] }
 0x7ed   : > { %v6785_v38 = vld [vmem:[#allocation3 + $0xb] sm:$0x1] }
 0x7ee   : > { %v6897_v57 = vld [vmem:[#allocation3 + $0xe] sm:$0x1] }
 0x7ef   : > { %8108 = vmatpush.bf16.msra.mxu1 %v9876_v40 }
 0x7f0   : > { %8121 = vmatpush.bf16.msrb.mxu2 %v9884_v50  ;;  %8134 = vmatpush.bf16.msra.mxu3 %v9892_v18 }
 0x7f2   : > { %8074 = vmatmul.bf16.vlgmr.msrb.gmra.mxu1 %v7228_v5  ;;  %8087 = vmatmul.bf16.vlgmr.msra.gmra.mxu2 %v7229_v53  ;;  %v9897_v5 = vld [vmem:[%s12431_s5 + $0x248] sm:$0xff]  ;;  %v9908_v53 = vld [vmem:[%s12431_s5 + $0x2a0] sm:$0xff] }
 0x7f3   : > { %8100 = vmatmul.bf16.vlgmr.msrb.gmra.mxu3 %v7230_v14  ;;  %8109 = vmatpush.bf16.msra.mxu1 %v9875_v42  ;;  %v6807_v58 = vpop.permute.xlu1 %6806  ;;  %v6851_v8 = vpop.permute.xlu2 %6850  ;;  %v9896_v14 = vld [vmem:[%s12431_s5 + $0x240] sm:$0xff] }
 0x7f4   : > { %8122 = vmatpush.bf16.msrb.mxu2 %v9883_v25  ;;  %v6810_v27 = vsel %vm11656_vm3, %v6807_v58, %v6809_v59  ;;  %v6854_v48 = vsel %vm11656_vm3, %v6851_v8, %v6853_v62  ;;  %8135 = vmatpush.bf16.msra.mxu3 %v9891_v4  ;;  %v9889_v25 = vld [vmem:[%s12431_s5 + $0x208] sm:$0xff]  ;;  %v9907_v58 = vld [vmem:[%s12431_s5 + $0x298] sm:$0xff]  ;;  %v9906_v8 = vld [vmem:[%s12431_s5 + $0x290] sm:$0xff] }
 0x7f5   : > { %6811 = vst [vmem:[#allocation3 + $0xc] sm:$0x1] %v6810_v27  ;;  %v9919_v59 = vld [vmem:[%s12431_s5 + $0x2f8] sm:$0xff]  ;;  %v9926_v27 = vld [vmem:[%s12431_s5 + $0x330] sm:$0xff] }
 0x7f6   : > { %6855 = vst [vmem:[#allocation3 + $0xd] sm:$0x1] %v6854_v48  ;;  %v9927_v62 = vld [vmem:[%s12431_s5 + $0x338] sm:$0xff]  ;;  %v9905_v48 = vld [vmem:[%s12431_s5 + $0x288] sm:$0xff] }
 0x7f7   : > { %8110 = vmatpush.bf16.msra.mxu1 %v9874_v10  ;;  %v9918_v10 = vld [vmem:[%s12431_s5 + $0x2f0] sm:$0xff] }
 0x7f8   : > { %8123 = vmatpush.bf16.msrb.mxu2 %v9882_v63  ;;  %8136 = vmatpush.bf16.msra.mxu3 %v9890_v56  ;;  %v9917_v63 = vld [vmem:[%s12431_s5 + $0x2e8] sm:$0xff] }
 0x7fb   : > { %8111 = vmatpush.bf16.msra.mxu1 %v9873_v43  ;;  %v6817_v12 = vpop.permute.xlu0 %6816 }
 0x7fc   : > { %8124 = vmatpush.bf16.msrb.mxu2 %v9881_v49  ;;  %v6819_v7 = vld [vmem:[#allocation3 + $0xc] sm:$0x1]  ;;  %8137 = vmatpush.bf16.msra.mxu3 %v9889_v25  ;;  %v9925_v49 = vld [vmem:[%s12431_s5 + $0x328] sm:$0xff] }
 0x7fd   : > { %v6820_v34 = vsel %vm11674_vm5, %v6817_v12, %v6819_v7  ;;  %v6863_v35 = vld [vmem:[#allocation3 + $0xd] sm:$0x1]  ;;  %v9904_v12 = vld [vmem:[%s12431_s5 + $0x280] sm:$0xff] }
 0x7fe   : > { %6821 = vst [vmem:[#allocation3 + $0xc] sm:$0x1] %v6820_v34  ;;  %v9924_v7 = vld [vmem:[%s12431_s5 + $0x320] sm:$0xff]  ;;  %v6653_v34 = vld [vmem:[#allocation3 + $0x8] sm:$0x1] }
 0x7ff   : > { %8112 = vmatpush.bf16.msra.mxu1 %v9872_v54  ;;  %v9916_v54 = vld [vmem:[%s12431_s5 + $0x2e0] sm:$0xff] }
 0x800   : > { %8125 = vmatpush.bf16.msrb.mxu2 %v9880_v37  ;;  %8138 = vmatpush.bf16.msra.mxu3 %v9888_v28  ;;  %v9915_v37 = vld [vmem:[%s12431_s5 + $0x2d8] sm:$0xff] }
 0x802   : > { %8113 = vmatmul.bf16.vlgmr.msra.gmra.mxu1 %v7231_v52  ;;  %v9923_v52 = vld [vmem:[%s12431_s5 + $0x318] sm:$0xff] }
 0x803   : > { %8126 = vmatmul.bf16.vlgmr.msrb.gmra.mxu2 %v7232_v33  ;;  %8144 = vmatpush.bf16.msrb.mxu1 %v9903_v44  ;;  %v9934_v33 = vld [vmem:[%s12431_s5 + $0x370] sm:$0xff] }
 0x804   : > { %8157 = vmatpush.bf16.msra.mxu2 %v9911_v41  ;;  %8170 = vmatpush.bf16.msrb.mxu3 %v9919_v59  ;;  %v9914_v44 = vld [vmem:[%s12431_s5 + $0x2d0] sm:$0xff] }
 0x805   : > { %v6829_v20 = vld [vmem:[#allocation3 + $0xc] sm:$0x1] }
 0x806   : > { %v9942_v59 = vld [vmem:[%s12431_s5 + $0x3b0] sm:$0xff] }
 0x807   : > { %8145 = vmatpush.bf16.msrb.mxu1 %v9902_v6  ;;  %v9933_v6 = vld [vmem:[%s12431_s5 + $0x368] sm:$0xff] }
 0x808   : > { %8158 = vmatpush.bf16.msra.mxu2 %v9910_v51  ;;  %8171 = vmatpush.bf16.msrb.mxu3 %v9918_v10  ;;  %v9941_v10 = vld [vmem:[%s12431_s5 + $0x3a8] sm:$0xff] }
 0x80b   : > { %8146 = vmatpush.bf16.msrb.mxu1 %v9901_v1 }
 0x80c   : > { %8159 = vmatpush.bf16.msra.mxu2 %v9909_v47  ;;  %8172 = vmatpush.bf16.msrb.mxu3 %v9917_v63  ;;  %v9930_v47 = vld [vmem:[%s12431_s5 + $0x350] sm:$0xff] }
 0x80f   : > { %8147 = vmatpush.bf16.msrb.mxu1 %v9900_v24  ;;  %v9912_v24 = vld [vmem:[%s12431_s5 + $0x2c0] sm:$0xff] }
 0x810   : > { %8160 = vmatpush.bf16.msra.mxu2 %v9908_v53  ;;  %8173 = vmatpush.bf16.msrb.mxu3 %v9916_v54  ;;  %v9947_v54 = vld [vmem:[%s12431_s5 + $0x3d8] sm:$0xff] }
 0x813   : > { %v6861_v36 = vpop.permute.xlu1 %6860  ;;  %v6905_v23 = vpop.permute.xlu2 %6904  ;;  %8148 = vmatpush.bf16.msrb.mxu1 %v9899_v0 }
 0x814   : > { %v6864_v55 = vsel %vm11674_vm5, %v6861_v36, %v6863_v35  ;;  %8161 = vmatpush.bf16.msra.mxu2 %v9907_v58  ;;  %8174 = vmatpush.bf16.msrb.mxu3 %v9915_v37  ;;  %v6741_v36 = vld [vmem:[#allocation3 + $0xa] sm:$0x1] }
 0x815   : > { %6865 = vst [vmem:[#allocation3 + $0xd] sm:$0x1] %v6864_v55  ;;  %v9921_v55 = vld [vmem:[%s12431_s5 + $0x308] sm:$0xff] }
 0x817   : > { %8149 = vmatpush.bf16.msrb.mxu1 %v9898_v16 }
 0x818   : > { %8162 = vmatpush.bf16.msra.mxu2 %v9906_v8  ;;  %8175 = vmatpush.bf16.msrb.mxu3 %v9914_v44  ;;  %v9950_v8 = vld [vmem:[%s12431_s5 + $0x3f0] sm:$0xff]  ;;  %v9945_v44 = vld [vmem:[%s12431_s5 + $0x3c8] sm:$0xff] }
 0x81b   : > { %v6695_v22 = vpop.permute.xlu2 %6694  ;;  %8150 = vmatpush.bf16.msrb.mxu1 %v9897_v5 }
 0x81c   : > { %v6698_v29 = vsel %vm11691_vm8, %v6695_v22, %v6697_v3  ;;  %8163 = vmatpush.bf16.msra.mxu2 %v9905_v48  ;;  %8176 = vmatpush.bf16.msrb.mxu3 %v9913_v61  ;;  %v9920_v3 = vld [vmem:[%s12431_s5 + $0x300] sm:$0xff]  ;;  %v9931_v22 = vld [vmem:[%s12431_s5 + $0x358] sm:$0xff]  ;;  %v6873_v0 = vld [vmem:[#allocation3 + $0xd] sm:$0x1] }
 0x81d   : > { %6699 = vst [vmem:[#allocation3 + $0x9] sm:$0x1] %v6698_v29  ;;  %v9936_v61 = vld [vmem:[%s12431_s5 + $0x380] sm:$0xff] }
 0x81f   : > { %8151 = vmatpush.bf16.msrb.mxu1 %v9896_v14 }
 0x820   : > { %8164 = vmatpush.bf16.msra.mxu2 %v9904_v12  ;;  %8177 = vmatpush.bf16.msrb.mxu3 %v9912_v24  ;;  %v9939_v12 = vld [vmem:[%s12431_s5 + $0x398] sm:$0xff]  ;;  %v9957_v24 = vld [vmem:[%s12433_s7 + $0x28] sm:$0xff] }
 0x823   : > { %v6895_v30 = vpop.permute.xlu0 %6894  ;;  %v6827_v11 = vpop.permute.xlu2 %6826  ;;  %8183 = vmatpush.bf16.msra.mxu1 %v9927_v62 }
 0x824   : > { %v6898_v13 = vsel %vm11656_vm3, %v6895_v30, %v6897_v57  ;;  %v6830_v40 = vsel %vm11691_vm8, %v6827_v11, %v6829_v20  ;;  %8196 = vmatpush.bf16.msrb.mxu2 %v9935_v45  ;;  %v9929_v57 = vld [vmem:[%s12431_s5 + $0x348] sm:$0xff]  ;;  %v9928_v30 = vld [vmem:[%s12431_s5 + $0x340] sm:$0xff] }
 0x825   : > { %6899 = vst [vmem:[#allocation3 + $0xe] sm:$0x1] %v6898_v13  ;;  %v9943_v13 = vld [vmem:[%s12431_s5 + $0x3b8] sm:$0xff] }
 0x826   : > { %6831 = vst [vmem:[#allocation3 + $0xc] sm:$0x1] %v6830_v40 }
 0x827   : > { %8184 = vmatpush.bf16.msra.mxu1 %v9926_v27  ;;  %v9949_v27 = vld [vmem:[%s12431_s5 + $0x3e8] sm:$0xff] }
 0x828   : > { %8197 = vmatpush.bf16.msrb.mxu2 %v9934_v33  ;;  %v9938_v33 = vld [vmem:[%s12431_s5 + $0x390] sm:$0xff] }
 0x82b   : > { %8185 = vmatpush.bf16.msra.mxu1 %v9925_v49 }
 0x82c   : > { %v6907_v50 = vld [vmem:[#allocation3 + $0xe] sm:$0x1]  ;;  %8198 = vmatpush.bf16.msrb.mxu2 %v9933_v6 }
 0x82d   : > { %v6908_v42 = vsel %vm11674_vm5, %v6905_v23, %v6907_v50  ;;  %v9951_v50 = vld [vmem:[%s12431_s5 + $0x3f8] sm:$0xff] }
 0x82e   : > { %6909 = vst [vmem:[#allocation3 + $0xe] sm:$0x1] %v6908_v42 }
 0x82f   : > { %8186 = vmatpush.bf16.msra.mxu1 %v9924_v7 }
 0x830   : > { %8199 = vmatpush.bf16.msrb.mxu2 %v9932_v2 }
 0x833   : > { %8187 = vmatpush.bf16.msra.mxu1 %v9923_v52 }
 0x834   : > { %v6959_v19 = vpop.permute.xlu2 %6958  ;;  %8200 = vmatpush.bf16.msrb.mxu2 %v9931_v22 }
 0x835   : > { %v6917_v29 = vld [vmem:[#allocation3 + $0xe] sm:$0x1] }
 0x837   : > { %8188 = vmatpush.bf16.msra.mxu1 %v9922_v15 }
 0x838   : > { %8201 = vmatpush.bf16.msrb.mxu2 %v9930_v47 }
 0x83b   : > { %v6939_v43 = vpop.permute.xlu1 %6938  ;;  %8189 = vmatpush.bf16.msra.mxu1 %v9921_v55 }
 0x83c   : > { %v6942_v9 = vsel %vm11656_vm3, %v6939_v43, %v6941_v46  ;;  %8202 = vmatpush.bf16.msrb.mxu2 %v9929_v57  ;;  %v9940_v43 = vld [vmem:[%s12431_s5 + $0x3a0] sm:$0xff] }
 0x83d   : > { %6943 = vst [vmem:[#allocation3 + $0xf] sm:$0x1] %v6942_v9  ;;  %v9948_v9 = vld [vmem:[%s12431_s5 + $0x3e0] sm:$0xff] }
 0x83f   : > { %8190 = vmatpush.bf16.msra.mxu1 %v9920_v3  ;;  %v9956_v3 = vld [vmem:[%s12433_s7 + $0x20] sm:$0xff] }
 0x840   : > { %8203 = vmatpush.bf16.msrb.mxu2 %v9928_v30  ;;  %v9952_v30 = vld [vmem:[%s12433_s7] sm:$0xff] }
 0x843   : > { %v6651_v26 = vpop.permute.xlu1 %6650  ;;  %v6949_v32 = vpop.permute.xlu0 %6948 }
 0x844   : > { %v6654_v60 = vsel %vm11691_vm8, %v6651_v26, %v6653_v34  ;;  %v6951_v31 = vld [vmem:[#allocation3 + $0xf] sm:$0x1] }
 0x845   : > { %6655 = vst [vmem:[#allocation3 + $0x8] sm:$0x1] %v6654_v60  ;;  %v6952_v21 = vsel %vm11674_vm5, %v6949_v32, %v6951_v31  ;;  %v9946_v31 = vld [vmem:[%s12431_s5 + $0x3d0] sm:$0xff] }
 0x846   : > { %6953 = vst [vmem:[#allocation3 + $0xf] sm:$0x1] %v6952_v21  ;;  %v9937_v21 = vld [vmem:[%s12431_s5 + $0x388] sm:$0xff] }
 0x84b   : > { %v6783_v35 = vpop.permute.xlu1 %6782  ;;  %v6739_v23 = vpop.permute.xlu0 %6738 }
 0x84c   : > { %v6786_v1 = vsel %vm11691_vm8, %v6783_v35, %v6785_v38  ;;  %v6742_v41 = vsel %vm11691_vm8, %v6739_v23, %v6741_v36  ;;  %v9944_v36 = vld [vmem:[%s12431_s5 + $0x3c0] sm:$0xff] }
 0x84d   : > { %v6961_v17 = vld [vmem:[#allocation3 + $0xf] sm:$0x1]  ;;  %6787 = vst [vmem:[#allocation3 + $0xb] sm:$0x1] %v6786_v1 }
 0x84e   : > { %v6962_v18 = vsel %vm11691_vm8, %v6959_v19, %v6961_v17  ;;  %6743 = vst [vmem:[#allocation3 + $0xa] sm:$0x1] %v6742_v41  ;;  %v9959_v17 = vld [vmem:[%s12433_s7 + $0x38] sm:$0xff] }
 0x84f   : > { %6963 = vst [vmem:[#allocation3 + $0xf] sm:$0x1] %v6962_v18  ;;  %v9958_v18 = vld [vmem:[%s12433_s7 + $0x30] sm:$0xff] }
 0x853   : > { %v6915_v4 = vpop.permute.xlu1 %6914  ;;  %v6871_v51 = vpop.permute.xlu0 %6870 }
 0x854   : > { %v6918_v56 = vsel %vm11691_vm8, %v6915_v4, %v6917_v29  ;;  %v6874_v16 = vsel %vm11691_vm8, %v6871_v51, %v6873_v0  ;;  %v9955_v29 = vld [vmem:[%s12433_s7 + $0x18] sm:$0xff]  ;;  %v9954_v4 = vld [vmem:[%s12433_s7 + $0x10] sm:$0xff] }
 0x855   : > { %6919 = vst [vmem:[#allocation3 + $0xe] sm:$0x1] %v6918_v56  ;;  %v9953_v56 = vld [vmem:[%s12433_s7 + $0x8] sm:$0xff] }
 0x856   : > { %6875 = vst [vmem:[#allocation3 + $0xd] sm:$0x1] %v6874_v16 }
 0x85d   : > { %v6965_v11 = vld [vmem:[#allocation3 + $0x8] sm:$0xff] }
 0x85e   : > { %7234 = vst [vmem:[#allocation1] ss:$9 sm:$0xff] %v6965_v11 }
 0x85f   : > { %v8036_v20 = vpop.f32.mrf.mxu1 }
 0x860   : > { %v8037_v40 = vadd.f32 %v8036_v20, %v7222_v39 }
 0x865   : > { %v8049_v42 = vpop.f32.mrf.mxu2  ;;  %v7235_v25 = vld [vmem:[#allocation1] sm:$0xff]  ;;  %v7236_v5 = vld [vmem:[#allocation1 + $0x9] sm:$0xff]  ;;  %v7237_v53 = vld [vmem:[#allocation1 + $0x12] sm:$0xff] }
 0x866   : > { %v8050_v28 = vadd.f32 %v8049_v42, %v8037_v40  ;;  %v8062_v14 = vpop.f32.mrf.mxu3  ;;  %8139 = vmatmul.bf16.vlgmr.msra.gmra.mxu3 %v7235_v25  ;;  %8152 = vmatmul.bf16.vlgmr.msrb.gmra.mxu1 %v7236_v5  ;;  %v7238_v45 = vld [vmem:[#allocation1 + $0x1b] sm:$0xff]  ;;  %v7239_v37 = vld [vmem:[#allocation1 + $0x24] sm:$0xff]  ;;  %v7240_v32 = vld [vmem:[#allocation1 + $0x2d] sm:$0xff] }
 0x867   : > { %8165 = vmatmul.bf16.vlgmr.msra.gmra.mxu2 %v7237_v53  ;;  %v8038_v58 = vpop.f32.mrf.mxu1  ;;  %8209 = vmatpush.bf16.msra.mxu3 %v9943_v13  ;;  %v7241_v23 = vld [vmem:[#allocation1 + $0x36] sm:$0xff]  ;;  %v7242_v2 = vld [vmem:[#allocation1 + $0x3f] sm:$0xff] }
 0x868   : > { %v8063_v62 = vadd.f32 %v8062_v14, %v8050_v28  ;;  %8222 = vmatpush.bf16.msrb.mxu1 %v9951_v50  ;;  %8302 = vmatpush.bf16.msra.mxu2 %v9959_v17 }
 0x86b   : > { %8210 = vmatpush.bf16.msra.mxu3 %v9942_v59 }
 0x86c   : > { %8223 = vmatpush.bf16.msrb.mxu1 %v9950_v8  ;;  %8303 = vmatpush.bf16.msra.mxu2 %v9958_v18 }
 0x86d   : > { %v8051_v48 = vpop.f32.mrf.mxu2 }
 0x86e   : > { %v8064_v63 = vpop.f32.mrf.mxu3 }
 0x86f   : > { %v8075_v46 = vpop.f32.mrf.mxu1  ;;  %8211 = vmatpush.bf16.msra.mxu3 %v9941_v10 }
 0x870   : > { %v8076_v49 = vadd.f32 %v8075_v46, %v8063_v62  ;;  %8224 = vmatpush.bf16.msrb.mxu1 %v9949_v27  ;;  %8304 = vmatpush.bf16.msra.mxu2 %v9957_v24  ;;  %v8253_v46 = vld [vmem:[%s12434_s8] sm:$0x1] }
 0x873   : > { %8212 = vmatpush.bf16.msra.mxu3 %v9940_v43 }
 0x874   : > { %8225 = vmatpush.bf16.msrb.mxu1 %v9948_v9  ;;  %8305 = vmatpush.bf16.msra.mxu2 %v9956_v3 }
 0x875   : > { %v8088_v7 = vpop.f32.mrf.mxu2 }
 0x876   : > { %v8089_v34 = vadd.f32 %v8088_v7, %v8076_v49  ;;  %v8101_v26 = vpop.f32.mrf.mxu3  ;;  %8178 = vmatmul.bf16.vlgmr.msrb.gmra.mxu3 %v7238_v45  ;;  %8191 = vmatmul.bf16.vlgmr.msra.gmra.mxu1 %v7239_v37 }
 0x877   : > { %8204 = vmatmul.bf16.vlgmr.msrb.gmra.mxu2 %v7240_v32  ;;  %v8077_v52 = vpop.f32.mrf.mxu1  ;;  %8213 = vmatpush.bf16.msra.mxu3 %v9939_v12 }
 0x878   : > { %v8102_v60 = vadd.f32 %v8101_v26, %v8089_v34  ;;  %8226 = vmatpush.bf16.msrb.mxu1 %v9947_v54  ;;  %8306 = vmatpush.bf16.msra.mxu2 %v9955_v29 }
 0x87b   : > { %8214 = vmatpush.bf16.msra.mxu3 %v9938_v33 }
 0x87c   : > { %8227 = vmatpush.bf16.msrb.mxu1 %v9946_v31  ;;  %8307 = vmatpush.bf16.msra.mxu2 %v9954_v4 }
 0x87d   : > { %v8090_v15 = vpop.f32.mrf.mxu2 }
 0x87e   : > { %v8103_v6 = vpop.f32.mrf.mxu3 }
 0x87f   : > { %v8114_v38 = vpop.f32.mrf.mxu1  ;;  %8215 = vmatpush.bf16.msra.mxu3 %v9937_v21 }
 0x880   : > { %v8115_v35 = vadd.f32 %v8114_v38, %v8102_v60  ;;  %8228 = vmatpush.bf16.msrb.mxu1 %v9945_v44  ;;  %8308 = vmatpush.bf16.msra.mxu2 %v9953_v56 }
 0x883   : > { %8216 = vmatpush.bf16.msra.mxu3 %v9936_v61 }
 0x884   : > { %8229 = vmatpush.bf16.msrb.mxu1 %v9944_v36  ;;  %8309 = vmatpush.bf16.msra.mxu2 %v9952_v30 }
 0x886   : > { %v8127_v55 = vpop.f32.mrf.mxu2  ;;  %8217 = vmatmul.bf16.vlgmr.msra.gmra.mxu3 %v7241_v23 }
 0x887   : > { %v8128_v1 = vadd.f32 %v8127_v55, %v8115_v35  ;;  %8230 = vmatmul.bf16.vlgmr.msrb.gmra.mxu1 %v7242_v2  ;;  %v8116_v41 = vpop.f32.mrf.mxu1 }
 0x88e   : > { %v8129_v19 = vpop.f32.mrf.mxu2 }
 0x8e3   : > { %v8153_v22 = vpop.f32.mrf.mxu1 }
 0x8e9   : > { %v8140_v0 = vpop.f32.mrf.mxu3 }
 0x8ea   : > { %v8166_v51 = vpop.f32.mrf.mxu2  ;;  %v8141_v20 = vadd.f32 %v8140_v0, %v8128_v1 }
 0x8eb   : > { %v8155_v47 = vpop.f32.mrf.mxu1 }
 0x8ec   : > { %v8154_v13 = vadd.f32 %v8153_v22, %v8141_v20 }
 0x8ee   : > { %v8167_v42 = vadd.f32 %v8166_v51, %v8154_v13 }
 0x8f1   : > { %v8142_v16 = vpop.f32.mrf.mxu3 }
 0x8f2   : > { %v8168_v57 = vpop.f32.mrf.mxu2 }
 0x8f3   : > { %v8192_v11 = vpop.f32.mrf.mxu1 }
 0x8f9   : > { %v8179_v39 = vpop.f32.mrf.mxu3 }
 0x8fa   : > { %v8205_v40 = vpop.f32.mrf.mxu2  ;;  %v8180_v25 = vadd.f32 %v8179_v39, %v8167_v42 }
 0x8fb   : > { %v8194_v50 = vpop.f32.mrf.mxu1 }
 0x8fc   : > { %v8193_v28 = vadd.f32 %v8192_v11, %v8180_v25 }
 0x8fe   : > { %v8206_v58 = vadd.f32 %v8205_v40, %v8193_v28 }
 0x901   : > { %v8181_v5 = vpop.f32.mrf.mxu3 }
 0x902   : > { %v8207_v53 = vpop.f32.mrf.mxu2 }
 0x904   : > { %v8231_v14 = vpop.f32.mrf.mxu1 }
 0x909   : > { %v8218_v59 = vpop.f32.mrf.mxu3 }
 0x90a   : > { %v8219_v62 = vadd.f32 %v8218_v59, %v8206_v58 }
 0x90c   : > { %v8232_v8 = vadd.f32 %v8231_v14, %v8219_v62  ;;  %v8233_v10 = vpop.f32.mrf.mxu1 }
 0x90e   : > { %v8235_v27 = vmax.f32 %v8232_v8, 0.0 }
 0x910   : > { %v8236_v48 = vpack.c.bf16 %v8235_v27, %v8235_v27 }
 0x911   : > { %v8220_v63 = vpop.f32.mrf.mxu3 }
 0x912   : > { %8310 = vmatmul.bf16.vlgmr.msra.gmra.mxu2 %v8236_v48 }
 0x995   : > { %v8311_v43 = vpop.f32.mrf.mxu2 }
 0x996   : > { %v8312_v49 = vadd.f32 %v8311_v43, %v8253_v46 }
 0x998   : > { %8315 = vst [vmem:[%s324_s21] sm:$0x1] %v8312_v49 }
 0x999   : > { %10040 = shalt.err (!%p10037_p3)
}
 0x99a   : > { %9964 = dma.vmem_to_hbm [thread:$0]  (%p10170_p5), %s8328_s23, 16, %s8330_s24, %s8317_s16  }
 0x99d   : > { %v8313_v9 = vpop.f32.mrf.mxu2 }
 0x99e PF: > { %p9970_p4 = scmp.ge.s32.totalorder %s10075_s12, 2  ;;  %s8341_s26 = sand.u32 1, %s10063_s30  }
 0x99f   : > { %s8342_s14 = scalar_lea.sflag [#allocation5], %s8341_s26 }
 0x9a0   : > { %p9967_p7 = pnand %p9970_p4, %p10174_p6 }
 0x9a2   : > { %p9968_p8 = pneg %p9967_p7 }
 0x9a4   : > { %10058 = dma.done.wait (%p9968_p8), %s8342_s14, 16  }
 0x9a5   : > { %10060 = vsyncadd (%p9968_p8), %s8342_s14, 4294967280  ;;  %p19_p9 = scmp.ge.s32.totalorder %s10157_s15, 4   ;;  %s12563_s30 = smov %s10067_s10 }
 0x9a6   : > { %s12564_s10 = smov %s10071_s11  ;;  %s12565_s11 = smov %s10168_s18 }
 0x9a7   : > { %s12566_s12 = smov %s10157_s15  ;;  %21 = sbr.rel (!%p19_p9) target bundleno = 3 (0x3), region = 150 }
 0x9ac   :  { %8347 = vsyncpa [#allocation5], 1 }
 0x9ad   :  { %8349 = vsyncpa [#allocation5 + $0x1], 1 }

</bundles_post_ra>
